<compile_context>
chip_gen: v6e
topology: v6e:2x2x1
jax: 0.10.0
libtpu: 0.0.40
codegen_flags: <defaults>
</compile_context>

<pallas_src>
import jax
import jax.numpy as jnp
from jax import lax
from jax.experimental import pallas as pl
from jax.experimental.pallas import tpu as pltpu


KH, KW = 7, 7
PAD = 3
LANES = 128  # TPU lane width; channels are padded up to a multiple of this.


def _round_up(x, m):
    return ((x + m - 1) // m) * m


def _row_tile(h):
    """Largest divisor of h that is <= 16, preferring multiples of 4."""
    cands = [d for d in range(1, min(h, 16) + 1) if h % d == 0]
    by4 = [d for d in cands if d % 4 == 0]
    return max(by4) if by4 else max(cands)


def dwconv_kernel(x_ref, w_ref, b_ref, o_ref):
    """Depthwise 7x7 conv producing TH output rows of one batch element.

    x_ref: (1, Hp, Wp, C)  zero-padded input image, resident across row tiles
    w_ref: (KH*KW, C)      per-channel filter taps, tap index = kh*KW + kw
    b_ref: (1, C)          bias
    o_ref: (1, TH, W, C)   output row tile
    """
    TH = o_ref.shape[1]
    W = o_ref.shape[2]
    C = o_ref.shape[3]

    # Rows accumulated per inner chunk (bounds vreg pressure; 4 keeps the
    # kernel VALU-bound while acc + live row + tap table stay ~50 vregs).
    th = 4 if TH % 4 == 0 else (2 if TH % 2 == 0 else 1)
    num_chunks = TH // th

    row_base = pl.multiple_of(pl.program_id(1) * TH, TH)

    # Loop-invariant hoists: tap table (~7 vregs) and bias, cast once.
    taps = w_ref[...].astype(jnp.float32)          # (49, C)
    bias = b_ref[...].astype(jnp.float32)          # (1, C)

    def chunk_body(j, carry):
        row0 = j * th
        # Accumulator held as `th` separate (1, W, C) f32 rows.
        acc = [jnp.zeros((1, W, C), jnp.float32) for _ in range(th)]
        # kw-outer: one sublane-shifted row load per (kw, input-row) feeds
        # every kh tap that uses it (kh selection is a free row offset).
        for kw in range(KW):
            for i in range(th + KH - 1):           # band row index
                src = x_ref[0, pl.ds(row_base + row0 + i, 1), kw:kw + W, :]
                src = src.astype(jnp.float32)      # (1, W, C)
                r_lo = max(0, i - (KH - 1))
                r_hi = min(th - 1, i)
                for r in range(r_lo, r_hi + 1):
                    kh = i - r
                    acc[r] = acc[r] + src * taps[kh * KW + kw]
        for r in range(th):
            o_ref[0, pl.ds(row0 + r, 1), :, :] = (acc[r] + bias).astype(o_ref.dtype)
        return carry

    lax.fori_loop(0, num_chunks, chunk_body, 0)


def depthwise_conv7x7(x_nchw, weight_oihw, bias):
    """x_nchw: (N, C, H, W); weight_oihw: (C, 1, 7, 7); bias: (C,). Returns NCHW."""
    N, C, H, W = x_nchw.shape
    CP = _round_up(C, LANES)                       # lane-dense channel count
    Hp = H + 2 * PAD
    Wp = _round_up(W + 2 * PAD, 8)                 # whole (8,128) tiles per plane
    TH = _row_tile(H)                              # output rows per grid step

    # NCHW -> NHWC, zero-pad: 3-px halo (plus alignment cols on the right),
    # channels up to CP.  Zero weights/bias in the padded lanes keep them 0.
    x_nhwc = jnp.transpose(x_nchw, (0, 2, 3, 1))
    x_pad = jnp.pad(
        x_nhwc, ((0, 0), (PAD, PAD), (PAD, Wp - W - PAD), (0, CP - C)))

    # (C, 1, KH, KW) -> (KH*KW, CP), tap-major.
    w_taps = jnp.transpose(weight_oihw[:, 0, :, :].reshape(C, KH * KW), (1, 0))
    w_taps = jnp.pad(w_taps, ((0, 0), (0, CP - C)))
    b_pad = jnp.pad(bias, (0, CP - C)).reshape(1, CP)

    # The resident input block is double-buffered by Pallas; keep it well under
    # every chip's VMEM (v7x has only 64 MiB physical / 32 MiB default scoped).
    blk_bytes = Hp * Wp * CP * x_pad.dtype.itemsize
    assert 2 * blk_bytes <= 16 * 1024 * 1024, (
        "resident input block too large for VMEM; tile the input rows instead")

    out_nhwc = pl.pallas_call(
        dwconv_kernel,
        out_shape=jax.ShapeDtypeStruct((N, H, W, CP), x_nchw.dtype),
        grid_spec=pltpu.PrefetchScalarGridSpec(
            num_scalar_prefetch=0,
            grid=(N, H // TH),
            in_specs=[
                # Full padded image per batch element; index_map ignores the
                # row-tile axis so the block stays resident across row tiles.
                pl.BlockSpec((1, Hp, Wp, CP), lambda n, r: (n, 0, 0, 0)),
                pl.BlockSpec((KH * KW, CP), lambda n, r: (0, 0)),
                pl.BlockSpec((1, CP), lambda n, r: (0, 0)),
            ],
            out_specs=pl.BlockSpec((1, TH, W, CP), lambda n, r: (n, r, 0, 0)),
        ),
        compiler_params=pltpu.CompilerParams(
            dimension_semantics=("parallel", "parallel")),
    )(x_pad, w_taps, b_pad)

    # Drop the padded channels, NHWC -> NCHW to match the PyTorch module.
    return jnp.transpose(out_nhwc[..., :C], (0, 3, 1, 2))


if __name__ == "__main__":
    key = jax.random.PRNGKey(0)
    k_x, k_w, k_b = jax.random.split(key, 3)

    # Module fixes channels at 96 (groups=96); use the spec's 56x56 resolution.
    N, C, H, W = 2, 96, 56, 56
    x = jax.random.normal(k_x, (N, C, H, W), dtype=jnp.float32)

    # Deterministic synthetic parameters (shapes from Conv2d(96,96,7,groups=96)).
    weight = jax.random.normal(k_w, (C, 1, KH, KW), dtype=jnp.float32) * 0.05
    bias = jax.random.normal(k_b, (C,), dtype=jnp.float32) * 0.05

    out = depthwise_conv7x7(x, weight, bias)
    out = jax.block_until_ready(out)

    # Cross-check against XLA's grouped conv (same semantics as the PyTorch module).
    ref = lax.conv_general_dilated(
        x, weight,
        window_strides=(1, 1),
        padding=((PAD, PAD), (PAD, PAD)),
        dimension_numbers=("NCHW", "OIHW", "NCHW"),
        feature_group_count=C,
    ) + bias.reshape(1, C, 1, 1)
    assert out.shape == (N, C, H, W)
    assert jnp.allclose(out, ref, atol=1e-4, rtol=1e-4)

    print("KERNEL_OK")
</pallas_src>

<mosaic_0001>
module attributes {stable_mosaic.version = 11 : i64} {
  func.func @dwconv_kernel(%arg0: i32, %arg1: i32, %arg2: memref<1x62x64x128xf32, #tpu.memory_space<vmem>>, %arg3: memref<49x128xf32, #tpu.memory_space<vmem>>, %arg4: memref<1x128xf32, #tpu.memory_space<vmem>>, %arg5: memref<1x8x56x128xf32, #tpu.memory_space<vmem>>) attributes {dimension_semantics = [#tpu.dimension_semantics<parallel>, #tpu.dimension_semantics<parallel>], iteration_bounds = array<i64: 2, 7>, scalar_prefetch = 0 : i64, scratch_operands = 0 : i64, tpu.core_type = #tpu.core_type<tc>, window_params = [{transform_indices = @transform_0, window_bounds = array<i64: 1, 62, 64, 128>}, {pipeline_mode = #tpu.pipeline_mode<synchronous>, transform_indices = @transform_1, window_bounds = array<i64: 49, 128>}, {pipeline_mode = #tpu.pipeline_mode<synchronous>, transform_indices = @transform_2, window_bounds = array<i64: 1, 128>}, {transform_indices = @transform_3, window_bounds = array<i64: 1, 8, 56, 128>}]} {
    %c8_i32 = arith.constant 8 : i32
    %0 = arith.muli %arg1, %c8_i32 : i32
    %1 = tpu.assume_multiple %0, 8 : i32
    %c0 = arith.constant 0 : index
    %c0_0 = arith.constant 0 : index
    %2 = vector.load %arg3[%c0, %c0_0] : memref<49x128xf32, #tpu.memory_space<vmem>>, vector<49x128xf32>
    %c0_1 = arith.constant 0 : index
    %c0_2 = arith.constant 0 : index
    %3 = vector.load %arg4[%c0_1, %c0_2] : memref<1x128xf32, #tpu.memory_space<vmem>>, vector<1x128xf32>
    %c0_i32 = arith.constant 0 : i32
    %c2_i32 = arith.constant 2 : i32
    %4 = arith.addi %c0_i32, %c2_i32 : i32
    %c1_i32 = arith.constant 1 : i32
    scf.for %arg6 = %c0_i32 to %4 step %c1_i32  : i32 {
      %c4_i32 = arith.constant 4 : i32
      %5 = arith.muli %arg6, %c4_i32 : i32
      %cst = arith.constant 0.000000e+00 : f32
      %6 = vector.broadcast %cst : f32 to vector<1x56x128xf32>
      %cst_4 = arith.constant 0.000000e+00 : f32
      %7 = vector.broadcast %cst_4 : f32 to vector<1x56x128xf32>
      %cst_5 = arith.constant 0.000000e+00 : f32
      %8 = vector.broadcast %cst_5 : f32 to vector<1x56x128xf32>
      %cst_6 = arith.constant 0.000000e+00 : f32
      %9 = vector.broadcast %cst_6 : f32 to vector<1x56x128xf32>
      %10 = arith.addi %1, %5 : i32
      %c0_i32_7 = arith.constant 0 : i32
      %11 = arith.addi %10, %c0_i32_7 : i32
      %c0_8 = arith.constant 0 : index
      %12 = arith.index_cast %11 : i32 to index
      %c0_9 = arith.constant 0 : index
      %c0_10 = arith.constant 0 : index
      %13 = vector.load %arg2[%c0_8, %12, %c0_9, %c0_10] : memref<1x62x64x128xf32, #tpu.memory_space<vmem>>, vector<1x1x56x128xf32>
      %14 = vector.shape_cast %13 : vector<1x1x56x128xf32> to vector<1x56x128xf32>
      %15 = vector.extract_strided_slice %2 {offsets = [0, 0], sizes = [1, 128], strides = [1, 1]} : vector<49x128xf32> to vector<1x128xf32>
      %16 = vector.shape_cast %15 : vector<1x128xf32> to vector<128xf32>
      %17 = vector.shape_cast %16 : vector<128xf32> to vector<1x1x128xf32>
      %18 = vector.broadcast %17 : vector<1x1x128xf32> to vector<1x56x128xf32>
      %19 = arith.mulf %14, %18 : vector<1x56x128xf32>
      %20 = arith.addf %6, %19 : vector<1x56x128xf32>
      %21 = arith.addi %1, %5 : i32
      %c1_i32_11 = arith.constant 1 : i32
      %22 = arith.addi %21, %c1_i32_11 : i32
      %c0_12 = arith.constant 0 : index
      %23 = arith.index_cast %22 : i32 to index
      %c0_13 = arith.constant 0 : index
      %c0_14 = arith.constant 0 : index
      %24 = vector.load %arg2[%c0_12, %23, %c0_13, %c0_14] : memref<1x62x64x128xf32, #tpu.memory_space<vmem>>, vector<1x1x56x128xf32>
      %25 = vector.shape_cast %24 : vector<1x1x56x128xf32> to vector<1x56x128xf32>
      %26 = vector.extract_strided_slice %2 {offsets = [7, 0], sizes = [1, 128], strides = [1, 1]} : vector<49x128xf32> to vector<1x128xf32>
      %27 = vector.shape_cast %26 : vector<1x128xf32> to vector<128xf32>
      %28 = vector.shape_cast %27 : vector<128xf32> to vector<1x1x128xf32>
      %29 = vector.broadcast %28 : vector<1x1x128xf32> to vector<1x56x128xf32>
      %30 = arith.mulf %25, %29 : vector<1x56x128xf32>
      %31 = arith.addf %20, %30 : vector<1x56x128xf32>
      %32 = vector.extract_strided_slice %2 {offsets = [0, 0], sizes = [1, 128], strides = [1, 1]} : vector<49x128xf32> to vector<1x128xf32>
      %33 = vector.shape_cast %32 : vector<1x128xf32> to vector<128xf32>
      %34 = vector.shape_cast %33 : vector<128xf32> to vector<1x1x128xf32>
      %35 = vector.broadcast %34 : vector<1x1x128xf32> to vector<1x56x128xf32>
      %36 = arith.mulf %25, %35 : vector<1x56x128xf32>
      %37 = arith.addf %7, %36 : vector<1x56x128xf32>
      %38 = arith.addi %1, %5 : i32
      %c2_i32_15 = arith.constant 2 : i32
      %39 = arith.addi %38, %c2_i32_15 : i32
      %c0_16 = arith.constant 0 : index
      %40 = arith.index_cast %39 : i32 to index
      %c0_17 = arith.constant 0 : index
      %c0_18 = arith.constant 0 : index
      %41 = vector.load %arg2[%c0_16, %40, %c0_17, %c0_18] : memref<1x62x64x128xf32, #tpu.memory_space<vmem>>, vector<1x1x56x128xf32>
      %42 = vector.shape_cast %41 : vector<1x1x56x128xf32> to vector<1x56x128xf32>
      %43 = vector.extract_strided_slice %2 {offsets = [14, 0], sizes = [1, 128], strides = [1, 1]} : vector<49x128xf32> to vector<1x128xf32>
      %44 = vector.shape_cast %43 : vector<1x128xf32> to vector<128xf32>
      %45 = vector.shape_cast %44 : vector<128xf32> to vector<1x1x128xf32>
      %46 = vector.broadcast %45 : vector<1x1x128xf32> to vector<1x56x128xf32>
      %47 = arith.mulf %42, %46 : vector<1x56x128xf32>
      %48 = arith.addf %31, %47 : vector<1x56x128xf32>
      %49 = vector.extract_strided_slice %2 {offsets = [7, 0], sizes = [1, 128], strides = [1, 1]} : vector<49x128xf32> to vector<1x128xf32>
      %50 = vector.shape_cast %49 : vector<1x128xf32> to vector<128xf32>
      %51 = vector.shape_cast %50 : vector<128xf32> to vector<1x1x128xf32>
      %52 = vector.broadcast %51 : vector<1x1x128xf32> to vector<1x56x128xf32>
      %53 = arith.mulf %42, %52 : vector<1x56x128xf32>
      %54 = arith.addf %37, %53 : vector<1x56x128xf32>
      %55 = vector.extract_strided_slice %2 {offsets = [0, 0], sizes = [1, 128], strides = [1, 1]} : vector<49x128xf32> to vector<1x128xf32>
      %56 = vector.shape_cast %55 : vector<1x128xf32> to vector<128xf32>
      %57 = vector.shape_cast %56 : vector<128xf32> to vector<1x1x128xf32>
      %58 = vector.broadcast %57 : vector<1x1x128xf32> to vector<1x56x128xf32>
      %59 = arith.mulf %42, %58 : vector<1x56x128xf32>
      %60 = arith.addf %8, %59 : vector<1x56x128xf32>
      %61 = arith.addi %1, %5 : i32
      %c3_i32 = arith.constant 3 : i32
      %62 = arith.addi %61, %c3_i32 : i32
      %c0_19 = arith.constant 0 : index
      %63 = arith.index_cast %62 : i32 to index
      %c0_20 = arith.constant 0 : index
      %c0_21 = arith.constant 0 : index
      %64 = vector.load %arg2[%c0_19, %63, %c0_20, %c0_21] : memref<1x62x64x128xf32, #tpu.memory_space<vmem>>, vector<1x1x56x128xf32>
      %65 = vector.shape_cast %64 : vector<1x1x56x128xf32> to vector<1x56x128xf32>
      %66 = vector.extract_strided_slice %2 {offsets = [21, 0], sizes = [1, 128], strides = [1, 1]} : vector<49x128xf32> to vector<1x128xf32>
      %67 = vector.shape_cast %66 : vector<1x128xf32> to vector<128xf32>
      %68 = vector.shape_cast %67 : vector<128xf32> to vector<1x1x128xf32>
      %69 = vector.broadcast %68 : vector<1x1x128xf32> to vector<1x56x128xf32>
      %70 = arith.mulf %65, %69 : vector<1x56x128xf32>
      %71 = arith.addf %48, %70 : vector<1x56x128xf32>
      %72 = vector.extract_strided_slice %2 {offsets = [14, 0], sizes = [1, 128], strides = [1, 1]} : vector<49x128xf32> to vector<1x128xf32>
      %73 = vector.shape_cast %72 : vector<1x128xf32> to vector<128xf32>
      %74 = vector.shape_cast %73 : vector<128xf32> to vector<1x1x128xf32>
      %75 = vector.broadcast %74 : vector<1x1x128xf32> to vector<1x56x128xf32>
      %76 = arith.mulf %65, %75 : vector<1x56x128xf32>
      %77 = arith.addf %54, %76 : vector<1x56x128xf32>
      %78 = vector.extract_strided_slice %2 {offsets = [7, 0], sizes = [1, 128], strides = [1, 1]} : vector<49x128xf32> to vector<1x128xf32>
      %79 = vector.shape_cast %78 : vector<1x128xf32> to vector<128xf32>
      %80 = vector.shape_cast %79 : vector<128xf32> to vector<1x1x128xf32>
      %81 = vector.broadcast %80 : vector<1x1x128xf32> to vector<1x56x128xf32>
      %82 = arith.mulf %65, %81 : vector<1x56x128xf32>
      %83 = arith.addf %60, %82 : vector<1x56x128xf32>
      %84 = vector.extract_strided_slice %2 {offsets = [0, 0], sizes = [1, 128], strides = [1, 1]} : vector<49x128xf32> to vector<1x128xf32>
      %85 = vector.shape_cast %84 : vector<1x128xf32> to vector<128xf32>
      %86 = vector.shape_cast %85 : vector<128xf32> to vector<1x1x128xf32>
      %87 = vector.broadcast %86 : vector<1x1x128xf32> to vector<1x56x128xf32>
      %88 = arith.mulf %65, %87 : vector<1x56x128xf32>
      %89 = arith.addf %9, %88 : vector<1x56x128xf32>
      %90 = arith.addi %1, %5 : i32
      %c4_i32_22 = arith.constant 4 : i32
      %91 = arith.addi %90, %c4_i32_22 : i32
      %c0_23 = arith.constant 0 : index
      %92 = arith.index_cast %91 : i32 to index
      %c0_24 = arith.constant 0 : index
      %c0_25 = arith.constant 0 : index
      %93 = vector.load %arg2[%c0_23, %92, %c0_24, %c0_25] : memref<1x62x64x128xf32, #tpu.memory_space<vmem>>, vector<1x1x56x128xf32>
      %94 = vector.shape_cast %93 : vector<1x1x56x128xf32> to vector<1x56x128xf32>
      %95 = vector.extract_strided_slice %2 {offsets = [28, 0], sizes = [1, 128], strides = [1, 1]} : vector<49x128xf32> to vector<1x128xf32>
      %96 = vector.shape_cast %95 : vector<1x128xf32> to vector<128xf32>
      %97 = vector.shape_cast %96 : vector<128xf32> to vector<1x1x128xf32>
      %98 = vector.broadcast %97 : vector<1x1x128xf32> to vector<1x56x128xf32>
      %99 = arith.mulf %94, %98 : vector<1x56x128xf32>
      %100 = arith.addf %71, %99 : vector<1x56x128xf32>
      %101 = vector.extract_strided_slice %2 {offsets = [21, 0], sizes = [1, 128], strides = [1, 1]} : vector<49x128xf32> to vector<1x128xf32>
      %102 = vector.shape_cast %101 : vector<1x128xf32> to vector<128xf32>
      %103 = vector.shape_cast %102 : vector<128xf32> to vector<1x1x128xf32>
      %104 = vector.broadcast %103 : vector<1x1x128xf32> to vector<1x56x128xf32>
      %105 = arith.mulf %94, %104 : vector<1x56x128xf32>
      %106 = arith.addf %77, %105 : vector<1x56x128xf32>
      %107 = vector.extract_strided_slice %2 {offsets = [14, 0], sizes = [1, 128], strides = [1, 1]} : vector<49x128xf32> to vector<1x128xf32>
      %108 = vector.shape_cast %107 : vector<1x128xf32> to vector<128xf32>
      %109 = vector.shape_cast %108 : vector<128xf32> to vector<1x1x128xf32>
      %110 = vector.broadcast %109 : vector<1x1x128xf32> to vector<1x56x128xf32>
      %111 = arith.mulf %94, %110 : vector<1x56x128xf32>
      %112 = arith.addf %83, %111 : vector<1x56x128xf32>
      %113 = vector.extract_strided_slice %2 {offsets = [7, 0], sizes = [1, 128], strides = [1, 1]} : vector<49x128xf32> to vector<1x128xf32>
      %114 = vector.shape_cast %113 : vector<1x128xf32> to vector<128xf32>
      %115 = vector.shape_cast %114 : vector<128xf32> to vector<1x1x128xf32>
      %116 = vector.broadcast %115 : vector<1x1x128xf32> to vector<1x56x128xf32>
      %117 = arith.mulf %94, %116 : vector<1x56x128xf32>
      %118 = arith.addf %89, %117 : vector<1x56x128xf32>
      %119 = arith.addi %1, %5 : i32
      %c5_i32 = arith.constant 5 : i32
      %120 = arith.addi %119, %c5_i32 : i32
      %c0_26 = arith.constant 0 : index
      %121 = arith.index_cast %120 : i32 to index
      %c0_27 = arith.constant 0 : index
      %c0_28 = arith.constant 0 : index
      %122 = vector.load %arg2[%c0_26, %121, %c0_27, %c0_28] : memref<1x62x64x128xf32, #tpu.memory_space<vmem>>, vector<1x1x56x128xf32>
      %123 = vector.shape_cast %122 : vector<1x1x56x128xf32> to vector<1x56x128xf32>
      %124 = vector.extract_strided_slice %2 {offsets = [35, 0], sizes = [1, 128], strides = [1, 1]} : vector<49x128xf32> to vector<1x128xf32>
      %125 = vector.shape_cast %124 : vector<1x128xf32> to vector<128xf32>
      %126 = vector.shape_cast %125 : vector<128xf32> to vector<1x1x128xf32>
      %127 = vector.broadcast %126 : vector<1x1x128xf32> to vector<1x56x128xf32>
      %128 = arith.mulf %123, %127 : vector<1x56x128xf32>
      %129 = arith.addf %100, %128 : vector<1x56x128xf32>
      %130 = vector.extract_strided_slice %2 {offsets = [28, 0], sizes = [1, 128], strides = [1, 1]} : vector<49x128xf32> to vector<1x128xf32>
      %131 = vector.shape_cast %130 : vector<1x128xf32> to vector<128xf32>
      %132 = vector.shape_cast %131 : vector<128xf32> to vector<1x1x128xf32>
      %133 = vector.broadcast %132 : vector<1x1x128xf32> to vector<1x56x128xf32>
      %134 = arith.mulf %123, %133 : vector<1x56x128xf32>
      %135 = arith.addf %106, %134 : vector<1x56x128xf32>
      %136 = vector.extract_strided_slice %2 {offsets = [21, 0], sizes = [1, 128], strides = [1, 1]} : vector<49x128xf32> to vector<1x128xf32>
      %137 = vector.shape_cast %136 : vector<1x128xf32> to vector<128xf32>
      %138 = vector.shape_cast %137 : vector<128xf32> to vector<1x1x128xf32>
      %139 = vector.broadcast %138 : vector<1x1x128xf32> to vector<1x56x128xf32>
      %140 = arith.mulf %123, %139 : vector<1x56x128xf32>
      %141 = arith.addf %112, %140 : vector<1x56x128xf32>
      %142 = vector.extract_strided_slice %2 {offsets = [14, 0], sizes = [1, 128], strides = [1, 1]} : vector<49x128xf32> to vector<1x128xf32>
      %143 = vector.shape_cast %142 : vector<1x128xf32> to vector<128xf32>
      %144 = vector.shape_cast %143 : vector<128xf32> to vector<1x1x128xf32>
      %145 = vector.broadcast %144 : vector<1x1x128xf32> to vector<1x56x128xf32>
      %146 = arith.mulf %123, %145 : vector<1x56x128xf32>
      %147 = arith.addf %118, %146 : vector<1x56x128xf32>
      %148 = arith.addi %1, %5 : i32
      %c6_i32 = arith.constant 6 : i32
      %149 = arith.addi %148, %c6_i32 : i32
      %c0_29 = arith.constant 0 : index
      %150 = arith.index_cast %149 : i32 to index
      %c0_30 = arith.constant 0 : index
      %c0_31 = arith.constant 0 : index
      %151 = vector.load %arg2[%c0_29, %150, %c0_30, %c0_31] : memref<1x62x64x128xf32, #tpu.memory_space<vmem>>, vector<1x1x56x128xf32>
      %152 = vector.shape_cast %151 : vector<1x1x56x128xf32> to vector<1x56x128xf32>
      %153 = vector.extract_strided_slice %2 {offsets = [42, 0], sizes = [1, 128], strides = [1, 1]} : vector<49x128xf32> to vector<1x128xf32>
      %154 = vector.shape_cast %153 : vector<1x128xf32> to vector<128xf32>
      %155 = vector.shape_cast %154 : vector<128xf32> to vector<1x1x128xf32>
      %156 = vector.broadcast %155 : vector<1x1x128xf32> to vector<1x56x128xf32>
      %157 = arith.mulf %152, %156 : vector<1x56x128xf32>
      %158 = arith.addf %129, %157 : vector<1x56x128xf32>
      %159 = vector.extract_strided_slice %2 {offsets = [35, 0], sizes = [1, 128], strides = [1, 1]} : vector<49x128xf32> to vector<1x128xf32>
      %160 = vector.shape_cast %159 : vector<1x128xf32> to vector<128xf32>
      %161 = vector.shape_cast %160 : vector<128xf32> to vector<1x1x128xf32>
      %162 = vector.broadcast %161 : vector<1x1x128xf32> to vector<1x56x128xf32>
      %163 = arith.mulf %152, %162 : vector<1x56x128xf32>
      %164 = arith.addf %135, %163 : vector<1x56x128xf32>
      %165 = vector.extract_strided_slice %2 {offsets = [28, 0], sizes = [1, 128], strides = [1, 1]} : vector<49x128xf32> to vector<1x128xf32>
      %166 = vector.shape_cast %165 : vector<1x128xf32> to vector<128xf32>
      %167 = vector.shape_cast %166 : vector<128xf32> to vector<1x1x128xf32>
      %168 = vector.broadcast %167 : vector<1x1x128xf32> to vector<1x56x128xf32>
      %169 = arith.mulf %152, %168 : vector<1x56x128xf32>
      %170 = arith.addf %141, %169 : vector<1x56x128xf32>
      %171 = vector.extract_strided_slice %2 {offsets = [21, 0], sizes = [1, 128], strides = [1, 1]} : vector<49x128xf32> to vector<1x128xf32>
      %172 = vector.shape_cast %171 : vector<1x128xf32> to vector<128xf32>
      %173 = vector.shape_cast %172 : vector<128xf32> to vector<1x1x128xf32>
      %174 = vector.broadcast %173 : vector<1x1x128xf32> to vector<1x56x128xf32>
      %175 = arith.mulf %152, %174 : vector<1x56x128xf32>
      %176 = arith.addf %147, %175 : vector<1x56x128xf32>
      %177 = arith.addi %1, %5 : i32
      %c7_i32 = arith.constant 7 : i32
      %178 = arith.addi %177, %c7_i32 : i32
      %c0_32 = arith.constant 0 : index
      %179 = arith.index_cast %178 : i32 to index
      %c0_33 = arith.constant 0 : index
      %c0_34 = arith.constant 0 : index
      %180 = vector.load %arg2[%c0_32, %179, %c0_33, %c0_34] : memref<1x62x64x128xf32, #tpu.memory_space<vmem>>, vector<1x1x56x128xf32>
      %181 = vector.shape_cast %180 : vector<1x1x56x128xf32> to vector<1x56x128xf32>
      %182 = vector.extract_strided_slice %2 {offsets = [42, 0], sizes = [1, 128], strides = [1, 1]} : vector<49x128xf32> to vector<1x128xf32>
      %183 = vector.shape_cast %182 : vector<1x128xf32> to vector<128xf32>
      %184 = vector.shape_cast %183 : vector<128xf32> to vector<1x1x128xf32>
      %185 = vector.broadcast %184 : vector<1x1x128xf32> to vector<1x56x128xf32>
      %186 = arith.mulf %181, %185 : vector<1x56x128xf32>
      %187 = arith.addf %164, %186 : vector<1x56x128xf32>
      %188 = vector.extract_strided_slice %2 {offsets = [35, 0], sizes = [1, 128], strides = [1, 1]} : vector<49x128xf32> to vector<1x128xf32>
      %189 = vector.shape_cast %188 : vector<1x128xf32> to vector<128xf32>
      %190 = vector.shape_cast %189 : vector<128xf32> to vector<1x1x128xf32>
      %191 = vector.broadcast %190 : vector<1x1x128xf32> to vector<1x56x128xf32>
      %192 = arith.mulf %181, %191 : vector<1x56x128xf32>
      %193 = arith.addf %170, %192 : vector<1x56x128xf32>
      %194 = vector.extract_strided_slice %2 {offsets = [28, 0], sizes = [1, 128], strides = [1, 1]} : vector<49x128xf32> to vector<1x128xf32>
      %195 = vector.shape_cast %194 : vector<1x128xf32> to vector<128xf32>
      %196 = vector.shape_cast %195 : vector<128xf32> to vector<1x1x128xf32>
      %197 = vector.broadcast %196 : vector<1x1x128xf32> to vector<1x56x128xf32>
      %198 = arith.mulf %181, %197 : vector<1x56x128xf32>
      %199 = arith.addf %176, %198 : vector<1x56x128xf32>
      %200 = arith.addi %1, %5 : i32
      %c8_i32_35 = arith.constant 8 : i32
      %201 = arith.addi %200, %c8_i32_35 : i32
      %c0_36 = arith.constant 0 : index
      %202 = arith.index_cast %201 : i32 to index
      %c0_37 = arith.constant 0 : index
      %c0_38 = arith.constant 0 : index
      %203 = vector.load %arg2[%c0_36, %202, %c0_37, %c0_38] : memref<1x62x64x128xf32, #tpu.memory_space<vmem>>, vector<1x1x56x128xf32>
      %204 = vector.shape_cast %203 : vector<1x1x56x128xf32> to vector<1x56x128xf32>
      %205 = vector.extract_strided_slice %2 {offsets = [42, 0], sizes = [1, 128], strides = [1, 1]} : vector<49x128xf32> to vector<1x128xf32>
      %206 = vector.shape_cast %205 : vector<1x128xf32> to vector<128xf32>
      %207 = vector.shape_cast %206 : vector<128xf32> to vector<1x1x128xf32>
      %208 = vector.broadcast %207 : vector<1x1x128xf32> to vector<1x56x128xf32>
      %209 = arith.mulf %204, %208 : vector<1x56x128xf32>
      %210 = arith.addf %193, %209 : vector<1x56x128xf32>
      %211 = vector.extract_strided_slice %2 {offsets = [35, 0], sizes = [1, 128], strides = [1, 1]} : vector<49x128xf32> to vector<1x128xf32>
      %212 = vector.shape_cast %211 : vector<1x128xf32> to vector<128xf32>
      %213 = vector.shape_cast %212 : vector<128xf32> to vector<1x1x128xf32>
      %214 = vector.broadcast %213 : vector<1x1x128xf32> to vector<1x56x128xf32>
      %215 = arith.mulf %204, %214 : vector<1x56x128xf32>
      %216 = arith.addf %199, %215 : vector<1x56x128xf32>
      %217 = arith.addi %1, %5 : i32
      %c9_i32 = arith.constant 9 : i32
      %218 = arith.addi %217, %c9_i32 : i32
      %c0_39 = arith.constant 0 : index
      %219 = arith.index_cast %218 : i32 to index
      %c0_40 = arith.constant 0 : index
      %c0_41 = arith.constant 0 : index
      %220 = vector.load %arg2[%c0_39, %219, %c0_40, %c0_41] : memref<1x62x64x128xf32, #tpu.memory_space<vmem>>, vector<1x1x56x128xf32>
      %221 = vector.shape_cast %220 : vector<1x1x56x128xf32> to vector<1x56x128xf32>
      %222 = vector.extract_strided_slice %2 {offsets = [42, 0], sizes = [1, 128], strides = [1, 1]} : vector<49x128xf32> to vector<1x128xf32>
      %223 = vector.shape_cast %222 : vector<1x128xf32> to vector<128xf32>
      %224 = vector.shape_cast %223 : vector<128xf32> to vector<1x1x128xf32>
      %225 = vector.broadcast %224 : vector<1x1x128xf32> to vector<1x56x128xf32>
      %226 = arith.mulf %221, %225 : vector<1x56x128xf32>
      %227 = arith.addf %216, %226 : vector<1x56x128xf32>
      %228 = arith.addi %1, %5 : i32
      %c0_i32_42 = arith.constant 0 : i32
      %229 = arith.addi %228, %c0_i32_42 : i32
      %c0_43 = arith.constant 0 : index
      %230 = arith.index_cast %229 : i32 to index
      %c1 = arith.constant 1 : index
      %c0_44 = arith.constant 0 : index
      %231 = vector.load %arg2[%c0_43, %230, %c1, %c0_44] : memref<1x62x64x128xf32, #tpu.memory_space<vmem>>, vector<1x1x56x128xf32>
      %232 = vector.shape_cast %231 : vector<1x1x56x128xf32> to vector<1x56x128xf32>
      %233 = vector.extract_strided_slice %2 {offsets = [1, 0], sizes = [1, 128], strides = [1, 1]} : vector<49x128xf32> to vector<1x128xf32>
      %234 = vector.shape_cast %233 : vector<1x128xf32> to vector<128xf32>
      %235 = vector.shape_cast %234 : vector<128xf32> to vector<1x1x128xf32>
      %236 = vector.broadcast %235 : vector<1x1x128xf32> to vector<1x56x128xf32>
      %237 = arith.mulf %232, %236 : vector<1x56x128xf32>
      %238 = arith.addf %158, %237 : vector<1x56x128xf32>
      %239 = arith.addi %1, %5 : i32
      %c1_i32_45 = arith.constant 1 : i32
      %240 = arith.addi %239, %c1_i32_45 : i32
      %c0_46 = arith.constant 0 : index
      %241 = arith.index_cast %240 : i32 to index
      %c1_47 = arith.constant 1 : index
      %c0_48 = arith.constant 0 : index
      %242 = vector.load %arg2[%c0_46, %241, %c1_47, %c0_48] : memref<1x62x64x128xf32, #tpu.memory_space<vmem>>, vector<1x1x56x128xf32>
      %243 = vector.shape_cast %242 : vector<1x1x56x128xf32> to vector<1x56x128xf32>
      %244 = vector.extract_strided_slice %2 {offsets = [8, 0], sizes = [1, 128], strides = [1, 1]} : vector<49x128xf32> to vector<1x128xf32>
      %245 = vector.shape_cast %244 : vector<1x128xf32> to vector<128xf32>
      %246 = vector.shape_cast %245 : vector<128xf32> to vector<1x1x128xf32>
      %247 = vector.broadcast %246 : vector<1x1x128xf32> to vector<1x56x128xf32>
      %248 = arith.mulf %243, %247 : vector<1x56x128xf32>
      %249 = arith.addf %238, %248 : vector<1x56x128xf32>
      %250 = vector.extract_strided_slice %2 {offsets = [1, 0], sizes = [1, 128], strides = [1, 1]} : vector<49x128xf32> to vector<1x128xf32>
      %251 = vector.shape_cast %250 : vector<1x128xf32> to vector<128xf32>
      %252 = vector.shape_cast %251 : vector<128xf32> to vector<1x1x128xf32>
      %253 = vector.broadcast %252 : vector<1x1x128xf32> to vector<1x56x128xf32>
      %254 = arith.mulf %243, %253 : vector<1x56x128xf32>
      %255 = arith.addf %187, %254 : vector<1x56x128xf32>
      %256 = arith.addi %1, %5 : i32
      %c2_i32_49 = arith.constant 2 : i32
      %257 = arith.addi %256, %c2_i32_49 : i32
      %c0_50 = arith.constant 0 : index
      %258 = arith.index_cast %257 : i32 to index
      %c1_51 = arith.constant 1 : index
      %c0_52 = arith.constant 0 : index
      %259 = vector.load %arg2[%c0_50, %258, %c1_51, %c0_52] : memref<1x62x64x128xf32, #tpu.memory_space<vmem>>, vector<1x1x56x128xf32>
      %260 = vector.shape_cast %259 : vector<1x1x56x128xf32> to vector<1x56x128xf32>
      %261 = vector.extract_strided_slice %2 {offsets = [15, 0], sizes = [1, 128], strides = [1, 1]} : vector<49x128xf32> to vector<1x128xf32>
      %262 = vector.shape_cast %261 : vector<1x128xf32> to vector<128xf32>
      %263 = vector.shape_cast %262 : vector<128xf32> to vector<1x1x128xf32>
      %264 = vector.broadcast %263 : vector<1x1x128xf32> to vector<1x56x128xf32>
      %265 = arith.mulf %260, %264 : vector<1x56x128xf32>
      %266 = arith.addf %249, %265 : vector<1x56x128xf32>
      %267 = vector.extract_strided_slice %2 {offsets = [8, 0], sizes = [1, 128], strides = [1, 1]} : vector<49x128xf32> to vector<1x128xf32>
      %268 = vector.shape_cast %267 : vector<1x128xf32> to vector<128xf32>
      %269 = vector.shape_cast %268 : vector<128xf32> to vector<1x1x128xf32>
      %270 = vector.broadcast %269 : vector<1x1x128xf32> to vector<1x56x128xf32>
      %271 = arith.mulf %260, %270 : vector<1x56x128xf32>
      %272 = arith.addf %255, %271 : vector<1x56x128xf32>
      %273 = vector.extract_strided_slice %2 {offsets = [1, 0], sizes = [1, 128], strides = [1, 1]} : vector<49x128xf32> to vector<1x128xf32>
      %274 = vector.shape_cast %273 : vector<1x128xf32> to vector<128xf32>
      %275 = vector.shape_cast %274 : vector<128xf32> to vector<1x1x128xf32>
      %276 = vector.broadcast %275 : vector<1x1x128xf32> to vector<1x56x128xf32>
      %277 = arith.mulf %260, %276 : vector<1x56x128xf32>
      %278 = arith.addf %210, %277 : vector<1x56x128xf32>
      %279 = arith.addi %1, %5 : i32
      %c3_i32_53 = arith.constant 3 : i32
      %280 = arith.addi %279, %c3_i32_53 : i32
      %c0_54 = arith.constant 0 : index
      %281 = arith.index_cast %280 : i32 to index
      %c1_55 = arith.constant 1 : index
      %c0_56 = arith.constant 0 : index
      %282 = vector.load %arg2[%c0_54, %281, %c1_55, %c0_56] : memref<1x62x64x128xf32, #tpu.memory_space<vmem>>, vector<1x1x56x128xf32>
      %283 = vector.shape_cast %282 : vector<1x1x56x128xf32> to vector<1x56x128xf32>
      %284 = vector.extract_strided_slice %2 {offsets = [22, 0], sizes = [1, 128], strides = [1, 1]} : vector<49x128xf32> to vector<1x128xf32>
      %285 = vector.shape_cast %284 : vector<1x128xf32> to vector<128xf32>
      %286 = vector.shape_cast %285 : vector<128xf32> to vector<1x1x128xf32>
      %287 = vector.broadcast %286 : vector<1x1x128xf32> to vector<1x56x128xf32>
      %288 = arith.mulf %283, %287 : vector<1x56x128xf32>
      %289 = arith.addf %266, %288 : vector<1x56x128xf32>
      %290 = vector.extract_strided_slice %2 {offsets = [15, 0], sizes = [1, 128], strides = [1, 1]} : vector<49x128xf32> to vector<1x128xf32>
      %291 = vector.shape_cast %290 : vector<1x128xf32> to vector<128xf32>
      %292 = vector.shape_cast %291 : vector<128xf32> to vector<1x1x128xf32>
      %293 = vector.broadcast %292 : vector<1x1x128xf32> to vector<1x56x128xf32>
      %294 = arith.mulf %283, %293 : vector<1x56x128xf32>
      %295 = arith.addf %272, %294 : vector<1x56x128xf32>
      %296 = vector.extract_strided_slice %2 {offsets = [8, 0], sizes = [1, 128], strides = [1, 1]} : vector<49x128xf32> to vector<1x128xf32>
      %297 = vector.shape_cast %296 : vector<1x128xf32> to vector<128xf32>
      %298 = vector.shape_cast %297 : vector<128xf32> to vector<1x1x128xf32>
      %299 = vector.broadcast %298 : vector<1x1x128xf32> to vector<1x56x128xf32>
      %300 = arith.mulf %283, %299 : vector<1x56x128xf32>
      %301 = arith.addf %278, %300 : vector<1x56x128xf32>
      %302 = vector.extract_strided_slice %2 {offsets = [1, 0], sizes = [1, 128], strides = [1, 1]} : vector<49x128xf32> to vector<1x128xf32>
      %303 = vector.shape_cast %302 : vector<1x128xf32> to vector<128xf32>
      %304 = vector.shape_cast %303 : vector<128xf32> to vector<1x1x128xf32>
      %305 = vector.broadcast %304 : vector<1x1x128xf32> to vector<1x56x128xf32>
      %306 = arith.mulf %283, %305 : vector<1x56x128xf32>
      %307 = arith.addf %227, %306 : vector<1x56x128xf32>
      %308 = arith.addi %1, %5 : i32
      %c4_i32_57 = arith.constant 4 : i32
      %309 = arith.addi %308, %c4_i32_57 : i32
      %c0_58 = arith.constant 0 : index
      %310 = arith.index_cast %309 : i32 to index
      %c1_59 = arith.constant 1 : index
      %c0_60 = arith.constant 0 : index
      %311 = vector.load %arg2[%c0_58, %310, %c1_59, %c0_60] : memref<1x62x64x128xf32, #tpu.memory_space<vmem>>, vector<1x1x56x128xf32>
      %312 = vector.shape_cast %311 : vector<1x1x56x128xf32> to vector<1x56x128xf32>
      %313 = vector.extract_strided_slice %2 {offsets = [29, 0], sizes = [1, 128], strides = [1, 1]} : vector<49x128xf32> to vector<1x128xf32>
      %314 = vector.shape_cast %313 : vector<1x128xf32> to vector<128xf32>
      %315 = vector.shape_cast %314 : vector<128xf32> to vector<1x1x128xf32>
      %316 = vector.broadcast %315 : vector<1x1x128xf32> to vector<1x56x128xf32>
      %317 = arith.mulf %312, %316 : vector<1x56x128xf32>
      %318 = arith.addf %289, %317 : vector<1x56x128xf32>
      %319 = vector.extract_strided_slice %2 {offsets = [22, 0], sizes = [1, 128], strides = [1, 1]} : vector<49x128xf32> to vector<1x128xf32>
      %320 = vector.shape_cast %319 : vector<1x128xf32> to vector<128xf32>
      %321 = vector.shape_cast %320 : vector<128xf32> to vector<1x1x128xf32>
      %322 = vector.broadcast %321 : vector<1x1x128xf32> to vector<1x56x128xf32>
      %323 = arith.mulf %312, %322 : vector<1x56x128xf32>
      %324 = arith.addf %295, %323 : vector<1x56x128xf32>
      %325 = vector.extract_strided_slice %2 {offsets = [15, 0], sizes = [1, 128], strides = [1, 1]} : vector<49x128xf32> to vector<1x128xf32>
      %326 = vector.shape_cast %325 : vector<1x128xf32> to vector<128xf32>
      %327 = vector.shape_cast %326 : vector<128xf32> to vector<1x1x128xf32>
      %328 = vector.broadcast %327 : vector<1x1x128xf32> to vector<1x56x128xf32>
      %329 = arith.mulf %312, %328 : vector<1x56x128xf32>
      %330 = arith.addf %301, %329 : vector<1x56x128xf32>
      %331 = vector.extract_strided_slice %2 {offsets = [8, 0], sizes = [1, 128], strides = [1, 1]} : vector<49x128xf32> to vector<1x128xf32>
      %332 = vector.shape_cast %331 : vector<1x128xf32> to vector<128xf32>
      %333 = vector.shape_cast %332 : vector<128xf32> to vector<1x1x128xf32>
      %334 = vector.broadcast %333 : vector<1x1x128xf32> to vector<1x56x128xf32>
      %335 = arith.mulf %312, %334 : vector<1x56x128xf32>
      %336 = arith.addf %307, %335 : vector<1x56x128xf32>
      %337 = arith.addi %1, %5 : i32
      %c5_i32_61 = arith.constant 5 : i32
      %338 = arith.addi %337, %c5_i32_61 : i32
      %c0_62 = arith.constant 0 : index
      %339 = arith.index_cast %338 : i32 to index
      %c1_63 = arith.constant 1 : index
      %c0_64 = arith.constant 0 : index
      %340 = vector.load %arg2[%c0_62, %339, %c1_63, %c0_64] : memref<1x62x64x128xf32, #tpu.memory_space<vmem>>, vector<1x1x56x128xf32>
      %341 = vector.shape_cast %340 : vector<1x1x56x128xf32> to vector<1x56x128xf32>
      %342 = vector.extract_strided_slice %2 {offsets = [36, 0], sizes = [1, 128], strides = [1, 1]} : vector<49x128xf32> to vector<1x128xf32>
      %343 = vector.shape_cast %342 : vector<1x128xf32> to vector<128xf32>
      %344 = vector.shape_cast %343 : vector<128xf32> to vector<1x1x128xf32>
      %345 = vector.broadcast %344 : vector<1x1x128xf32> to vector<1x56x128xf32>
      %346 = arith.mulf %341, %345 : vector<1x56x128xf32>
      %347 = arith.addf %318, %346 : vector<1x56x128xf32>
      %348 = vector.extract_strided_slice %2 {offsets = [29, 0], sizes = [1, 128], strides = [1, 1]} : vector<49x128xf32> to vector<1x128xf32>
      %349 = vector.shape_cast %348 : vector<1x128xf32> to vector<128xf32>
      %350 = vector.shape_cast %349 : vector<128xf32> to vector<1x1x128xf32>
      %351 = vector.broadcast %350 : vector<1x1x128xf32> to vector<1x56x128xf32>
      %352 = arith.mulf %341, %351 : vector<1x56x128xf32>
      %353 = arith.addf %324, %352 : vector<1x56x128xf32>
      %354 = vector.extract_strided_slice %2 {offsets = [22, 0], sizes = [1, 128], strides = [1, 1]} : vector<49x128xf32> to vector<1x128xf32>
      %355 = vector.shape_cast %354 : vector<1x128xf32> to vector<128xf32>
      %356 = vector.shape_cast %355 : vector<128xf32> to vector<1x1x128xf32>
      %357 = vector.broadcast %356 : vector<1x1x128xf32> to vector<1x56x128xf32>
      %358 = arith.mulf %341, %357 : vector<1x56x128xf32>
      %359 = arith.addf %330, %358 : vector<1x56x128xf32>
      %360 = vector.extract_strided_slice %2 {offsets = [15, 0], sizes = [1, 128], strides = [1, 1]} : vector<49x128xf32> to vector<1x128xf32>
      %361 = vector.shape_cast %360 : vector<1x128xf32> to vector<128xf32>
      %362 = vector.shape_cast %361 : vector<128xf32> to vector<1x1x128xf32>
      %363 = vector.broadcast %362 : vector<1x1x128xf32> to vector<1x56x128xf32>
      %364 = arith.mulf %341, %363 : vector<1x56x128xf32>
      %365 = arith.addf %336, %364 : vector<1x56x128xf32>
      %366 = arith.addi %1, %5 : i32
      %c6_i32_65 = arith.constant 6 : i32
      %367 = arith.addi %366, %c6_i32_65 : i32
      %c0_66 = arith.constant 0 : index
      %368 = arith.index_cast %367 : i32 to index
      %c1_67 = arith.constant 1 : index
      %c0_68 = arith.constant 0 : index
      %369 = vector.load %arg2[%c0_66, %368, %c1_67, %c0_68] : memref<1x62x64x128xf32, #tpu.memory_space<vmem>>, vector<1x1x56x128xf32>
      %370 = vector.shape_cast %369 : vector<1x1x56x128xf32> to vector<1x56x128xf32>
      %371 = vector.extract_strided_slice %2 {offsets = [43, 0], sizes = [1, 128], strides = [1, 1]} : vector<49x128xf32> to vector<1x128xf32>
      %372 = vector.shape_cast %371 : vector<1x128xf32> to vector<128xf32>
      %373 = vector.shape_cast %372 : vector<128xf32> to vector<1x1x128xf32>
      %374 = vector.broadcast %373 : vector<1x1x128xf32> to vector<1x56x128xf32>
      %375 = arith.mulf %370, %374 : vector<1x56x128xf32>
      %376 = arith.addf %347, %375 : vector<1x56x128xf32>
      %377 = vector.extract_strided_slice %2 {offsets = [36, 0], sizes = [1, 128], strides = [1, 1]} : vector<49x128xf32> to vector<1x128xf32>
      %378 = vector.shape_cast %377 : vector<1x128xf32> to vector<128xf32>
      %379 = vector.shape_cast %378 : vector<128xf32> to vector<1x1x128xf32>
      %380 = vector.broadcast %379 : vector<1x1x128xf32> to vector<1x56x128xf32>
      %381 = arith.mulf %370, %380 : vector<1x56x128xf32>
      %382 = arith.addf %353, %381 : vector<1x56x128xf32>
      %383 = vector.extract_strided_slice %2 {offsets = [29, 0], sizes = [1, 128], strides = [1, 1]} : vector<49x128xf32> to vector<1x128xf32>
      %384 = vector.shape_cast %383 : vector<1x128xf32> to vector<128xf32>
      %385 = vector.shape_cast %384 : vector<128xf32> to vector<1x1x128xf32>
      %386 = vector.broadcast %385 : vector<1x1x128xf32> to vector<1x56x128xf32>
      %387 = arith.mulf %370, %386 : vector<1x56x128xf32>
      %388 = arith.addf %359, %387 : vector<1x56x128xf32>
      %389 = vector.extract_strided_slice %2 {offsets = [22, 0], sizes = [1, 128], strides = [1, 1]} : vector<49x128xf32> to vector<1x128xf32>
      %390 = vector.shape_cast %389 : vector<1x128xf32> to vector<128xf32>
      %391 = vector.shape_cast %390 : vector<128xf32> to vector<1x1x128xf32>
      %392 = vector.broadcast %391 : vector<1x1x128xf32> to vector<1x56x128xf32>
      %393 = arith.mulf %370, %392 : vector<1x56x128xf32>
      %394 = arith.addf %365, %393 : vector<1x56x128xf32>
      %395 = arith.addi %1, %5 : i32
      %c7_i32_69 = arith.constant 7 : i32
      %396 = arith.addi %395, %c7_i32_69 : i32
      %c0_70 = arith.constant 0 : index
      %397 = arith.index_cast %396 : i32 to index
      %c1_71 = arith.constant 1 : index
      %c0_72 = arith.constant 0 : index
      %398 = vector.load %arg2[%c0_70, %397, %c1_71, %c0_72] : memref<1x62x64x128xf32, #tpu.memory_space<vmem>>, vector<1x1x56x128xf32>
      %399 = vector.shape_cast %398 : vector<1x1x56x128xf32> to vector<1x56x128xf32>
      %400 = vector.extract_strided_slice %2 {offsets = [43, 0], sizes = [1, 128], strides = [1, 1]} : vector<49x128xf32> to vector<1x128xf32>
      %401 = vector.shape_cast %400 : vector<1x128xf32> to vector<128xf32>
      %402 = vector.shape_cast %401 : vector<128xf32> to vector<1x1x128xf32>
      %403 = vector.broadcast %402 : vector<1x1x128xf32> to vector<1x56x128xf32>
      %404 = arith.mulf %399, %403 : vector<1x56x128xf32>
      %405 = arith.addf %382, %404 : vector<1x56x128xf32>
      %406 = vector.extract_strided_slice %2 {offsets = [36, 0], sizes = [1, 128], strides = [1, 1]} : vector<49x128xf32> to vector<1x128xf32>
      %407 = vector.shape_cast %406 : vector<1x128xf32> to vector<128xf32>
      %408 = vector.shape_cast %407 : vector<128xf32> to vector<1x1x128xf32>
      %409 = vector.broadcast %408 : vector<1x1x128xf32> to vector<1x56x128xf32>
      %410 = arith.mulf %399, %409 : vector<1x56x128xf32>
      %411 = arith.addf %388, %410 : vector<1x56x128xf32>
      %412 = vector.extract_strided_slice %2 {offsets = [29, 0], sizes = [1, 128], strides = [1, 1]} : vector<49x128xf32> to vector<1x128xf32>
      %413 = vector.shape_cast %412 : vector<1x128xf32> to vector<128xf32>
      %414 = vector.shape_cast %413 : vector<128xf32> to vector<1x1x128xf32>
      %415 = vector.broadcast %414 : vector<1x1x128xf32> to vector<1x56x128xf32>
      %416 = arith.mulf %399, %415 : vector<1x56x128xf32>
      %417 = arith.addf %394, %416 : vector<1x56x128xf32>
      %418 = arith.addi %1, %5 : i32
      %c8_i32_73 = arith.constant 8 : i32
      %419 = arith.addi %418, %c8_i32_73 : i32
      %c0_74 = arith.constant 0 : index
      %420 = arith.index_cast %419 : i32 to index
      %c1_75 = arith.constant 1 : index
      %c0_76 = arith.constant 0 : index
      %421 = vector.load %arg2[%c0_74, %420, %c1_75, %c0_76] : memref<1x62x64x128xf32, #tpu.memory_space<vmem>>, vector<1x1x56x128xf32>
      %422 = vector.shape_cast %421 : vector<1x1x56x128xf32> to vector<1x56x128xf32>
      %423 = vector.extract_strided_slice %2 {offsets = [43, 0], sizes = [1, 128], strides = [1, 1]} : vector<49x128xf32> to vector<1x128xf32>
      %424 = vector.shape_cast %423 : vector<1x128xf32> to vector<128xf32>
      %425 = vector.shape_cast %424 : vector<128xf32> to vector<1x1x128xf32>
      %426 = vector.broadcast %425 : vector<1x1x128xf32> to vector<1x56x128xf32>
      %427 = arith.mulf %422, %426 : vector<1x56x128xf32>
      %428 = arith.addf %411, %427 : vector<1x56x128xf32>
      %429 = vector.extract_strided_slice %2 {offsets = [36, 0], sizes = [1, 128], strides = [1, 1]} : vector<49x128xf32> to vector<1x128xf32>
      %430 = vector.shape_cast %429 : vector<1x128xf32> to vector<128xf32>
      %431 = vector.shape_cast %430 : vector<128xf32> to vector<1x1x128xf32>
      %432 = vector.broadcast %431 : vector<1x1x128xf32> to vector<1x56x128xf32>
      %433 = arith.mulf %422, %432 : vector<1x56x128xf32>
      %434 = arith.addf %417, %433 : vector<1x56x128xf32>
      %435 = arith.addi %1, %5 : i32
      %c9_i32_77 = arith.constant 9 : i32
      %436 = arith.addi %435, %c9_i32_77 : i32
      %c0_78 = arith.constant 0 : index
      %437 = arith.index_cast %436 : i32 to index
      %c1_79 = arith.constant 1 : index
      %c0_80 = arith.constant 0 : index
      %438 = vector.load %arg2[%c0_78, %437, %c1_79, %c0_80] : memref<1x62x64x128xf32, #tpu.memory_space<vmem>>, vector<1x1x56x128xf32>
      %439 = vector.shape_cast %438 : vector<1x1x56x128xf32> to vector<1x56x128xf32>
      %440 = vector.extract_strided_slice %2 {offsets = [43, 0], sizes = [1, 128], strides = [1, 1]} : vector<49x128xf32> to vector<1x128xf32>
      %441 = vector.shape_cast %440 : vector<1x128xf32> to vector<128xf32>
      %442 = vector.shape_cast %441 : vector<128xf32> to vector<1x1x128xf32>
      %443 = vector.broadcast %442 : vector<1x1x128xf32> to vector<1x56x128xf32>
      %444 = arith.mulf %439, %443 : vector<1x56x128xf32>
      %445 = arith.addf %434, %444 : vector<1x56x128xf32>
      %446 = arith.addi %1, %5 : i32
      %c0_i32_81 = arith.constant 0 : i32
      %447 = arith.addi %446, %c0_i32_81 : i32
      %c0_82 = arith.constant 0 : index
      %448 = arith.index_cast %447 : i32 to index
      %c2 = arith.constant 2 : index
      %c0_83 = arith.constant 0 : index
      %449 = vector.load %arg2[%c0_82, %448, %c2, %c0_83] : memref<1x62x64x128xf32, #tpu.memory_space<vmem>>, vector<1x1x56x128xf32>
      %450 = vector.shape_cast %449 : vector<1x1x56x128xf32> to vector<1x56x128xf32>
      %451 = vector.extract_strided_slice %2 {offsets = [2, 0], sizes = [1, 128], strides = [1, 1]} : vector<49x128xf32> to vector<1x128xf32>
      %452 = vector.shape_cast %451 : vector<1x128xf32> to vector<128xf32>
      %453 = vector.shape_cast %452 : vector<128xf32> to vector<1x1x128xf32>
      %454 = vector.broadcast %453 : vector<1x1x128xf32> to vector<1x56x128xf32>
      %455 = arith.mulf %450, %454 : vector<1x56x128xf32>
      %456 = arith.addf %376, %455 : vector<1x56x128xf32>
      %457 = arith.addi %1, %5 : i32
      %c1_i32_84 = arith.constant 1 : i32
      %458 = arith.addi %457, %c1_i32_84 : i32
      %c0_85 = arith.constant 0 : index
      %459 = arith.index_cast %458 : i32 to index
      %c2_86 = arith.constant 2 : index
      %c0_87 = arith.constant 0 : index
      %460 = vector.load %arg2[%c0_85, %459, %c2_86, %c0_87] : memref<1x62x64x128xf32, #tpu.memory_space<vmem>>, vector<1x1x56x128xf32>
      %461 = vector.shape_cast %460 : vector<1x1x56x128xf32> to vector<1x56x128xf32>
      %462 = vector.extract_strided_slice %2 {offsets = [9, 0], sizes = [1, 128], strides = [1, 1]} : vector<49x128xf32> to vector<1x128xf32>
      %463 = vector.shape_cast %462 : vector<1x128xf32> to vector<128xf32>
      %464 = vector.shape_cast %463 : vector<128xf32> to vector<1x1x128xf32>
      %465 = vector.broadcast %464 : vector<1x1x128xf32> to vector<1x56x128xf32>
      %466 = arith.mulf %461, %465 : vector<1x56x128xf32>
      %467 = arith.addf %456, %466 : vector<1x56x128xf32>
      %468 = vector.extract_strided_slice %2 {offsets = [2, 0], sizes = [1, 128], strides = [1, 1]} : vector<49x128xf32> to vector<1x128xf32>
      %469 = vector.shape_cast %468 : vector<1x128xf32> to vector<128xf32>
      %470 = vector.shape_cast %469 : vector<128xf32> to vector<1x1x128xf32>
      %471 = vector.broadcast %470 : vector<1x1x128xf32> to vector<1x56x128xf32>
      %472 = arith.mulf %461, %471 : vector<1x56x128xf32>
      %473 = arith.addf %405, %472 : vector<1x56x128xf32>
      %474 = arith.addi %1, %5 : i32
      %c2_i32_88 = arith.constant 2 : i32
      %475 = arith.addi %474, %c2_i32_88 : i32
      %c0_89 = arith.constant 0 : index
      %476 = arith.index_cast %475 : i32 to index
      %c2_90 = arith.constant 2 : index
      %c0_91 = arith.constant 0 : index
      %477 = vector.load %arg2[%c0_89, %476, %c2_90, %c0_91] : memref<1x62x64x128xf32, #tpu.memory_space<vmem>>, vector<1x1x56x128xf32>
      %478 = vector.shape_cast %477 : vector<1x1x56x128xf32> to vector<1x56x128xf32>
      %479 = vector.extract_strided_slice %2 {offsets = [16, 0], sizes = [1, 128], strides = [1, 1]} : vector<49x128xf32> to vector<1x128xf32>
      %480 = vector.shape_cast %479 : vector<1x128xf32> to vector<128xf32>
      %481 = vector.shape_cast %480 : vector<128xf32> to vector<1x1x128xf32>
      %482 = vector.broadcast %481 : vector<1x1x128xf32> to vector<1x56x128xf32>
      %483 = arith.mulf %478, %482 : vector<1x56x128xf32>
      %484 = arith.addf %467, %483 : vector<1x56x128xf32>
      %485 = vector.extract_strided_slice %2 {offsets = [9, 0], sizes = [1, 128], strides = [1, 1]} : vector<49x128xf32> to vector<1x128xf32>
      %486 = vector.shape_cast %485 : vector<1x128xf32> to vector<128xf32>
      %487 = vector.shape_cast %486 : vector<128xf32> to vector<1x1x128xf32>
      %488 = vector.broadcast %487 : vector<1x1x128xf32> to vector<1x56x128xf32>
      %489 = arith.mulf %478, %488 : vector<1x56x128xf32>
      %490 = arith.addf %473, %489 : vector<1x56x128xf32>
      %491 = vector.extract_strided_slice %2 {offsets = [2, 0], sizes = [1, 128], strides = [1, 1]} : vector<49x128xf32> to vector<1x128xf32>
      %492 = vector.shape_cast %491 : vector<1x128xf32> to vector<128xf32>
      %493 = vector.shape_cast %492 : vector<128xf32> to vector<1x1x128xf32>
      %494 = vector.broadcast %493 : vector<1x1x128xf32> to vector<1x56x128xf32>
      %495 = arith.mulf %478, %494 : vector<1x56x128xf32>
      %496 = arith.addf %428, %495 : vector<1x56x128xf32>
      %497 = arith.addi %1, %5 : i32
      %c3_i32_92 = arith.constant 3 : i32
      %498 = arith.addi %497, %c3_i32_92 : i32
      %c0_93 = arith.constant 0 : index
      %499 = arith.index_cast %498 : i32 to index
      %c2_94 = arith.constant 2 : index
      %c0_95 = arith.constant 0 : index
      %500 = vector.load %arg2[%c0_93, %499, %c2_94, %c0_95] : memref<1x62x64x128xf32, #tpu.memory_space<vmem>>, vector<1x1x56x128xf32>
      %501 = vector.shape_cast %500 : vector<1x1x56x128xf32> to vector<1x56x128xf32>
      %502 = vector.extract_strided_slice %2 {offsets = [23, 0], sizes = [1, 128], strides = [1, 1]} : vector<49x128xf32> to vector<1x128xf32>
      %503 = vector.shape_cast %502 : vector<1x128xf32> to vector<128xf32>
      %504 = vector.shape_cast %503 : vector<128xf32> to vector<1x1x128xf32>
      %505 = vector.broadcast %504 : vector<1x1x128xf32> to vector<1x56x128xf32>
      %506 = arith.mulf %501, %505 : vector<1x56x128xf32>
      %507 = arith.addf %484, %506 : vector<1x56x128xf32>
      %508 = vector.extract_strided_slice %2 {offsets = [16, 0], sizes = [1, 128], strides = [1, 1]} : vector<49x128xf32> to vector<1x128xf32>
      %509 = vector.shape_cast %508 : vector<1x128xf32> to vector<128xf32>
      %510 = vector.shape_cast %509 : vector<128xf32> to vector<1x1x128xf32>
      %511 = vector.broadcast %510 : vector<1x1x128xf32> to vector<1x56x128xf32>
      %512 = arith.mulf %501, %511 : vector<1x56x128xf32>
      %513 = arith.addf %490, %512 : vector<1x56x128xf32>
      %514 = vector.extract_strided_slice %2 {offsets = [9, 0], sizes = [1, 128], strides = [1, 1]} : vector<49x128xf32> to vector<1x128xf32>
      %515 = vector.shape_cast %514 : vector<1x128xf32> to vector<128xf32>
      %516 = vector.shape_cast %515 : vector<128xf32> to vector<1x1x128xf32>
      %517 = vector.broadcast %516 : vector<1x1x128xf32> to vector<1x56x128xf32>
      %518 = arith.mulf %501, %517 : vector<1x56x128xf32>
      %519 = arith.addf %496, %518 : vector<1x56x128xf32>
      %520 = vector.extract_strided_slice %2 {offsets = [2, 0], sizes = [1, 128], strides = [1, 1]} : vector<49x128xf32> to vector<1x128xf32>
      %521 = vector.shape_cast %520 : vector<1x128xf32> to vector<128xf32>
      %522 = vector.shape_cast %521 : vector<128xf32> to vector<1x1x128xf32>
      %523 = vector.broadcast %522 : vector<1x1x128xf32> to vector<1x56x128xf32>
      %524 = arith.mulf %501, %523 : vector<1x56x128xf32>
      %525 = arith.addf %445, %524 : vector<1x56x128xf32>
      %526 = arith.addi %1, %5 : i32
      %c4_i32_96 = arith.constant 4 : i32
      %527 = arith.addi %526, %c4_i32_96 : i32
      %c0_97 = arith.constant 0 : index
      %528 = arith.index_cast %527 : i32 to index
      %c2_98 = arith.constant 2 : index
      %c0_99 = arith.constant 0 : index
      %529 = vector.load %arg2[%c0_97, %528, %c2_98, %c0_99] : memref<1x62x64x128xf32, #tpu.memory_space<vmem>>, vector<1x1x56x128xf32>
      %530 = vector.shape_cast %529 : vector<1x1x56x128xf32> to vector<1x56x128xf32>
      %531 = vector.extract_strided_slice %2 {offsets = [30, 0], sizes = [1, 128], strides = [1, 1]} : vector<49x128xf32> to vector<1x128xf32>
      %532 = vector.shape_cast %531 : vector<1x128xf32> to vector<128xf32>
      %533 = vector.shape_cast %532 : vector<128xf32> to vector<1x1x128xf32>
      %534 = vector.broadcast %533 : vector<1x1x128xf32> to vector<1x56x128xf32>
      %535 = arith.mulf %530, %534 : vector<1x56x128xf32>
      %536 = arith.addf %507, %535 : vector<1x56x128xf32>
      %537 = vector.extract_strided_slice %2 {offsets = [23, 0], sizes = [1, 128], strides = [1, 1]} : vector<49x128xf32> to vector<1x128xf32>
      %538 = vector.shape_cast %537 : vector<1x128xf32> to vector<128xf32>
      %539 = vector.shape_cast %538 : vector<128xf32> to vector<1x1x128xf32>
      %540 = vector.broadcast %539 : vector<1x1x128xf32> to vector<1x56x128xf32>
      %541 = arith.mulf %530, %540 : vector<1x56x128xf32>
      %542 = arith.addf %513, %541 : vector<1x56x128xf32>
      %543 = vector.extract_strided_slice %2 {offsets = [16, 0], sizes = [1, 128], strides = [1, 1]} : vector<49x128xf32> to vector<1x128xf32>
      %544 = vector.shape_cast %543 : vector<1x128xf32> to vector<128xf32>
      %545 = vector.shape_cast %544 : vector<128xf32> to vector<1x1x128xf32>
      %546 = vector.broadcast %545 : vector<1x1x128xf32> to vector<1x56x128xf32>
      %547 = arith.mulf %530, %546 : vector<1x56x128xf32>
      %548 = arith.addf %519, %547 : vector<1x56x128xf32>
      %549 = vector.extract_strided_slice %2 {offsets = [9, 0], sizes = [1, 128], strides = [1, 1]} : vector<49x128xf32> to vector<1x128xf32>
      %550 = vector.shape_cast %549 : vector<1x128xf32> to vector<128xf32>
      %551 = vector.shape_cast %550 : vector<128xf32> to vector<1x1x128xf32>
      %552 = vector.broadcast %551 : vector<1x1x128xf32> to vector<1x56x128xf32>
      %553 = arith.mulf %530, %552 : vector<1x56x128xf32>
      %554 = arith.addf %525, %553 : vector<1x56x128xf32>
      %555 = arith.addi %1, %5 : i32
      %c5_i32_100 = arith.constant 5 : i32
      %556 = arith.addi %555, %c5_i32_100 : i32
      %c0_101 = arith.constant 0 : index
      %557 = arith.index_cast %556 : i32 to index
      %c2_102 = arith.constant 2 : index
      %c0_103 = arith.constant 0 : index
      %558 = vector.load %arg2[%c0_101, %557, %c2_102, %c0_103] : memref<1x62x64x128xf32, #tpu.memory_space<vmem>>, vector<1x1x56x128xf32>
      %559 = vector.shape_cast %558 : vector<1x1x56x128xf32> to vector<1x56x128xf32>
      %560 = vector.extract_strided_slice %2 {offsets = [37, 0], sizes = [1, 128], strides = [1, 1]} : vector<49x128xf32> to vector<1x128xf32>
      %561 = vector.shape_cast %560 : vector<1x128xf32> to vector<128xf32>
      %562 = vector.shape_cast %561 : vector<128xf32> to vector<1x1x128xf32>
      %563 = vector.broadcast %562 : vector<1x1x128xf32> to vector<1x56x128xf32>
      %564 = arith.mulf %559, %563 : vector<1x56x128xf32>
      %565 = arith.addf %536, %564 : vector<1x56x128xf32>
      %566 = vector.extract_strided_slice %2 {offsets = [30, 0], sizes = [1, 128], strides = [1, 1]} : vector<49x128xf32> to vector<1x128xf32>
      %567 = vector.shape_cast %566 : vector<1x128xf32> to vector<128xf32>
      %568 = vector.shape_cast %567 : vector<128xf32> to vector<1x1x128xf32>
      %569 = vector.broadcast %568 : vector<1x1x128xf32> to vector<1x56x128xf32>
      %570 = arith.mulf %559, %569 : vector<1x56x128xf32>
      %571 = arith.addf %542, %570 : vector<1x56x128xf32>
      %572 = vector.extract_strided_slice %2 {offsets = [23, 0], sizes = [1, 128], strides = [1, 1]} : vector<49x128xf32> to vector<1x128xf32>
      %573 = vector.shape_cast %572 : vector<1x128xf32> to vector<128xf32>
      %574 = vector.shape_cast %573 : vector<128xf32> to vector<1x1x128xf32>
      %575 = vector.broadcast %574 : vector<1x1x128xf32> to vector<1x56x128xf32>
      %576 = arith.mulf %559, %575 : vector<1x56x128xf32>
      %577 = arith.addf %548, %576 : vector<1x56x128xf32>
      %578 = vector.extract_strided_slice %2 {offsets = [16, 0], sizes = [1, 128], strides = [1, 1]} : vector<49x128xf32> to vector<1x128xf32>
      %579 = vector.shape_cast %578 : vector<1x128xf32> to vector<128xf32>
      %580 = vector.shape_cast %579 : vector<128xf32> to vector<1x1x128xf32>
      %581 = vector.broadcast %580 : vector<1x1x128xf32> to vector<1x56x128xf32>
      %582 = arith.mulf %559, %581 : vector<1x56x128xf32>
      %583 = arith.addf %554, %582 : vector<1x56x128xf32>
      %584 = arith.addi %1, %5 : i32
      %c6_i32_104 = arith.constant 6 : i32
      %585 = arith.addi %584, %c6_i32_104 : i32
      %c0_105 = arith.constant 0 : index
      %586 = arith.index_cast %585 : i32 to index
      %c2_106 = arith.constant 2 : index
      %c0_107 = arith.constant 0 : index
      %587 = vector.load %arg2[%c0_105, %586, %c2_106, %c0_107] : memref<1x62x64x128xf32, #tpu.memory_space<vmem>>, vector<1x1x56x128xf32>
      %588 = vector.shape_cast %587 : vector<1x1x56x128xf32> to vector<1x56x128xf32>
      %589 = vector.extract_strided_slice %2 {offsets = [44, 0], sizes = [1, 128], strides = [1, 1]} : vector<49x128xf32> to vector<1x128xf32>
      %590 = vector.shape_cast %589 : vector<1x128xf32> to vector<128xf32>
      %591 = vector.shape_cast %590 : vector<128xf32> to vector<1x1x128xf32>
      %592 = vector.broadcast %591 : vector<1x1x128xf32> to vector<1x56x128xf32>
      %593 = arith.mulf %588, %592 : vector<1x56x128xf32>
      %594 = arith.addf %565, %593 : vector<1x56x128xf32>
      %595 = vector.extract_strided_slice %2 {offsets = [37, 0], sizes = [1, 128], strides = [1, 1]} : vector<49x128xf32> to vector<1x128xf32>
      %596 = vector.shape_cast %595 : vector<1x128xf32> to vector<128xf32>
      %597 = vector.shape_cast %596 : vector<128xf32> to vector<1x1x128xf32>
      %598 = vector.broadcast %597 : vector<1x1x128xf32> to vector<1x56x128xf32>
      %599 = arith.mulf %588, %598 : vector<1x56x128xf32>
      %600 = arith.addf %571, %599 : vector<1x56x128xf32>
      %601 = vector.extract_strided_slice %2 {offsets = [30, 0], sizes = [1, 128], strides = [1, 1]} : vector<49x128xf32> to vector<1x128xf32>
      %602 = vector.shape_cast %601 : vector<1x128xf32> to vector<128xf32>
      %603 = vector.shape_cast %602 : vector<128xf32> to vector<1x1x128xf32>
      %604 = vector.broadcast %603 : vector<1x1x128xf32> to vector<1x56x128xf32>
      %605 = arith.mulf %588, %604 : vector<1x56x128xf32>
      %606 = arith.addf %577, %605 : vector<1x56x128xf32>
      %607 = vector.extract_strided_slice %2 {offsets = [23, 0], sizes = [1, 128], strides = [1, 1]} : vector<49x128xf32> to vector<1x128xf32>
      %608 = vector.shape_cast %607 : vector<1x128xf32> to vector<128xf32>
      %609 = vector.shape_cast %608 : vector<128xf32> to vector<1x1x128xf32>
      %610 = vector.broadcast %609 : vector<1x1x128xf32> to vector<1x56x128xf32>
      %611 = arith.mulf %588, %610 : vector<1x56x128xf32>
      %612 = arith.addf %583, %611 : vector<1x56x128xf32>
      %613 = arith.addi %1, %5 : i32
      %c7_i32_108 = arith.constant 7 : i32
      %614 = arith.addi %613, %c7_i32_108 : i32
      %c0_109 = arith.constant 0 : index
      %615 = arith.index_cast %614 : i32 to index
      %c2_110 = arith.constant 2 : index
      %c0_111 = arith.constant 0 : index
      %616 = vector.load %arg2[%c0_109, %615, %c2_110, %c0_111] : memref<1x62x64x128xf32, #tpu.memory_space<vmem>>, vector<1x1x56x128xf32>
      %617 = vector.shape_cast %616 : vector<1x1x56x128xf32> to vector<1x56x128xf32>
      %618 = vector.extract_strided_slice %2 {offsets = [44, 0], sizes = [1, 128], strides = [1, 1]} : vector<49x128xf32> to vector<1x128xf32>
      %619 = vector.shape_cast %618 : vector<1x128xf32> to vector<128xf32>
      %620 = vector.shape_cast %619 : vector<128xf32> to vector<1x1x128xf32>
      %621 = vector.broadcast %620 : vector<1x1x128xf32> to vector<1x56x128xf32>
      %622 = arith.mulf %617, %621 : vector<1x56x128xf32>
      %623 = arith.addf %600, %622 : vector<1x56x128xf32>
      %624 = vector.extract_strided_slice %2 {offsets = [37, 0], sizes = [1, 128], strides = [1, 1]} : vector<49x128xf32> to vector<1x128xf32>
      %625 = vector.shape_cast %624 : vector<1x128xf32> to vector<128xf32>
      %626 = vector.shape_cast %625 : vector<128xf32> to vector<1x1x128xf32>
      %627 = vector.broadcast %626 : vector<1x1x128xf32> to vector<1x56x128xf32>
      %628 = arith.mulf %617, %627 : vector<1x56x128xf32>
      %629 = arith.addf %606, %628 : vector<1x56x128xf32>
      %630 = vector.extract_strided_slice %2 {offsets = [30, 0], sizes = [1, 128], strides = [1, 1]} : vector<49x128xf32> to vector<1x128xf32>
      %631 = vector.shape_cast %630 : vector<1x128xf32> to vector<128xf32>
      %632 = vector.shape_cast %631 : vector<128xf32> to vector<1x1x128xf32>
      %633 = vector.broadcast %632 : vector<1x1x128xf32> to vector<1x56x128xf32>
      %634 = arith.mulf %617, %633 : vector<1x56x128xf32>
      %635 = arith.addf %612, %634 : vector<1x56x128xf32>
      %636 = arith.addi %1, %5 : i32
      %c8_i32_112 = arith.constant 8 : i32
      %637 = arith.addi %636, %c8_i32_112 : i32
      %c0_113 = arith.constant 0 : index
      %638 = arith.index_cast %637 : i32 to index
      %c2_114 = arith.constant 2 : index
      %c0_115 = arith.constant 0 : index
      %639 = vector.load %arg2[%c0_113, %638, %c2_114, %c0_115] : memref<1x62x64x128xf32, #tpu.memory_space<vmem>>, vector<1x1x56x128xf32>
      %640 = vector.shape_cast %639 : vector<1x1x56x128xf32> to vector<1x56x128xf32>
      %641 = vector.extract_strided_slice %2 {offsets = [44, 0], sizes = [1, 128], strides = [1, 1]} : vector<49x128xf32> to vector<1x128xf32>
      %642 = vector.shape_cast %641 : vector<1x128xf32> to vector<128xf32>
      %643 = vector.shape_cast %642 : vector<128xf32> to vector<1x1x128xf32>
      %644 = vector.broadcast %643 : vector<1x1x128xf32> to vector<1x56x128xf32>
      %645 = arith.mulf %640, %644 : vector<1x56x128xf32>
      %646 = arith.addf %629, %645 : vector<1x56x128xf32>
      %647 = vector.extract_strided_slice %2 {offsets = [37, 0], sizes = [1, 128], strides = [1, 1]} : vector<49x128xf32> to vector<1x128xf32>
      %648 = vector.shape_cast %647 : vector<1x128xf32> to vector<128xf32>
      %649 = vector.shape_cast %648 : vector<128xf32> to vector<1x1x128xf32>
      %650 = vector.broadcast %649 : vector<1x1x128xf32> to vector<1x56x128xf32>
      %651 = arith.mulf %640, %650 : vector<1x56x128xf32>
      %652 = arith.addf %635, %651 : vector<1x56x128xf32>
      %653 = arith.addi %1, %5 : i32
      %c9_i32_116 = arith.constant 9 : i32
      %654 = arith.addi %653, %c9_i32_116 : i32
      %c0_117 = arith.constant 0 : index
      %655 = arith.index_cast %654 : i32 to index
      %c2_118 = arith.constant 2 : index
      %c0_119 = arith.constant 0 : index
      %656 = vector.load %arg2[%c0_117, %655, %c2_118, %c0_119] : memref<1x62x64x128xf32, #tpu.memory_space<vmem>>, vector<1x1x56x128xf32>
      %657 = vector.shape_cast %656 : vector<1x1x56x128xf32> to vector<1x56x128xf32>
      %658 = vector.extract_strided_slice %2 {offsets = [44, 0], sizes = [1, 128], strides = [1, 1]} : vector<49x128xf32> to vector<1x128xf32>
      %659 = vector.shape_cast %658 : vector<1x128xf32> to vector<128xf32>
      %660 = vector.shape_cast %659 : vector<128xf32> to vector<1x1x128xf32>
      %661 = vector.broadcast %660 : vector<1x1x128xf32> to vector<1x56x128xf32>
      %662 = arith.mulf %657, %661 : vector<1x56x128xf32>
      %663 = arith.addf %652, %662 : vector<1x56x128xf32>
      %664 = arith.addi %1, %5 : i32
      %c0_i32_120 = arith.constant 0 : i32
      %665 = arith.addi %664, %c0_i32_120 : i32
      %c0_121 = arith.constant 0 : index
      %666 = arith.index_cast %665 : i32 to index
      %c3 = arith.constant 3 : index
      %c0_122 = arith.constant 0 : index
      %667 = vector.load %arg2[%c0_121, %666, %c3, %c0_122] : memref<1x62x64x128xf32, #tpu.memory_space<vmem>>, vector<1x1x56x128xf32>
      %668 = vector.shape_cast %667 : vector<1x1x56x128xf32> to vector<1x56x128xf32>
      %669 = vector.extract_strided_slice %2 {offsets = [3, 0], sizes = [1, 128], strides = [1, 1]} : vector<49x128xf32> to vector<1x128xf32>
      %670 = vector.shape_cast %669 : vector<1x128xf32> to vector<128xf32>
      %671 = vector.shape_cast %670 : vector<128xf32> to vector<1x1x128xf32>
      %672 = vector.broadcast %671 : vector<1x1x128xf32> to vector<1x56x128xf32>
      %673 = arith.mulf %668, %672 : vector<1x56x128xf32>
      %674 = arith.addf %594, %673 : vector<1x56x128xf32>
      %675 = arith.addi %1, %5 : i32
      %c1_i32_123 = arith.constant 1 : i32
      %676 = arith.addi %675, %c1_i32_123 : i32
      %c0_124 = arith.constant 0 : index
      %677 = arith.index_cast %676 : i32 to index
      %c3_125 = arith.constant 3 : index
      %c0_126 = arith.constant 0 : index
      %678 = vector.load %arg2[%c0_124, %677, %c3_125, %c0_126] : memref<1x62x64x128xf32, #tpu.memory_space<vmem>>, vector<1x1x56x128xf32>
      %679 = vector.shape_cast %678 : vector<1x1x56x128xf32> to vector<1x56x128xf32>
      %680 = vector.extract_strided_slice %2 {offsets = [10, 0], sizes = [1, 128], strides = [1, 1]} : vector<49x128xf32> to vector<1x128xf32>
      %681 = vector.shape_cast %680 : vector<1x128xf32> to vector<128xf32>
      %682 = vector.shape_cast %681 : vector<128xf32> to vector<1x1x128xf32>
      %683 = vector.broadcast %682 : vector<1x1x128xf32> to vector<1x56x128xf32>
      %684 = arith.mulf %679, %683 : vector<1x56x128xf32>
      %685 = arith.addf %674, %684 : vector<1x56x128xf32>
      %686 = vector.extract_strided_slice %2 {offsets = [3, 0], sizes = [1, 128], strides = [1, 1]} : vector<49x128xf32> to vector<1x128xf32>
      %687 = vector.shape_cast %686 : vector<1x128xf32> to vector<128xf32>
      %688 = vector.shape_cast %687 : vector<128xf32> to vector<1x1x128xf32>
      %689 = vector.broadcast %688 : vector<1x1x128xf32> to vector<1x56x128xf32>
      %690 = arith.mulf %679, %689 : vector<1x56x128xf32>
      %691 = arith.addf %623, %690 : vector<1x56x128xf32>
      %692 = arith.addi %1, %5 : i32
      %c2_i32_127 = arith.constant 2 : i32
      %693 = arith.addi %692, %c2_i32_127 : i32
      %c0_128 = arith.constant 0 : index
      %694 = arith.index_cast %693 : i32 to index
      %c3_129 = arith.constant 3 : index
      %c0_130 = arith.constant 0 : index
      %695 = vector.load %arg2[%c0_128, %694, %c3_129, %c0_130] : memref<1x62x64x128xf32, #tpu.memory_space<vmem>>, vector<1x1x56x128xf32>
      %696 = vector.shape_cast %695 : vector<1x1x56x128xf32> to vector<1x56x128xf32>
      %697 = vector.extract_strided_slice %2 {offsets = [17, 0], sizes = [1, 128], strides = [1, 1]} : vector<49x128xf32> to vector<1x128xf32>
      %698 = vector.shape_cast %697 : vector<1x128xf32> to vector<128xf32>
      %699 = vector.shape_cast %698 : vector<128xf32> to vector<1x1x128xf32>
      %700 = vector.broadcast %699 : vector<1x1x128xf32> to vector<1x56x128xf32>
      %701 = arith.mulf %696, %700 : vector<1x56x128xf32>
      %702 = arith.addf %685, %701 : vector<1x56x128xf32>
      %703 = vector.extract_strided_slice %2 {offsets = [10, 0], sizes = [1, 128], strides = [1, 1]} : vector<49x128xf32> to vector<1x128xf32>
      %704 = vector.shape_cast %703 : vector<1x128xf32> to vector<128xf32>
      %705 = vector.shape_cast %704 : vector<128xf32> to vector<1x1x128xf32>
      %706 = vector.broadcast %705 : vector<1x1x128xf32> to vector<1x56x128xf32>
      %707 = arith.mulf %696, %706 : vector<1x56x128xf32>
      %708 = arith.addf %691, %707 : vector<1x56x128xf32>
      %709 = vector.extract_strided_slice %2 {offsets = [3, 0], sizes = [1, 128], strides = [1, 1]} : vector<49x128xf32> to vector<1x128xf32>
      %710 = vector.shape_cast %709 : vector<1x128xf32> to vector<128xf32>
      %711 = vector.shape_cast %710 : vector<128xf32> to vector<1x1x128xf32>
      %712 = vector.broadcast %711 : vector<1x1x128xf32> to vector<1x56x128xf32>
      %713 = arith.mulf %696, %712 : vector<1x56x128xf32>
      %714 = arith.addf %646, %713 : vector<1x56x128xf32>
      %715 = arith.addi %1, %5 : i32
      %c3_i32_131 = arith.constant 3 : i32
      %716 = arith.addi %715, %c3_i32_131 : i32
      %c0_132 = arith.constant 0 : index
      %717 = arith.index_cast %716 : i32 to index
      %c3_133 = arith.constant 3 : index
      %c0_134 = arith.constant 0 : index
      %718 = vector.load %arg2[%c0_132, %717, %c3_133, %c0_134] : memref<1x62x64x128xf32, #tpu.memory_space<vmem>>, vector<1x1x56x128xf32>
      %719 = vector.shape_cast %718 : vector<1x1x56x128xf32> to vector<1x56x128xf32>
      %720 = vector.extract_strided_slice %2 {offsets = [24, 0], sizes = [1, 128], strides = [1, 1]} : vector<49x128xf32> to vector<1x128xf32>
      %721 = vector.shape_cast %720 : vector<1x128xf32> to vector<128xf32>
      %722 = vector.shape_cast %721 : vector<128xf32> to vector<1x1x128xf32>
      %723 = vector.broadcast %722 : vector<1x1x128xf32> to vector<1x56x128xf32>
      %724 = arith.mulf %719, %723 : vector<1x56x128xf32>
      %725 = arith.addf %702, %724 : vector<1x56x128xf32>
      %726 = vector.extract_strided_slice %2 {offsets = [17, 0], sizes = [1, 128], strides = [1, 1]} : vector<49x128xf32> to vector<1x128xf32>
      %727 = vector.shape_cast %726 : vector<1x128xf32> to vector<128xf32>
      %728 = vector.shape_cast %727 : vector<128xf32> to vector<1x1x128xf32>
      %729 = vector.broadcast %728 : vector<1x1x128xf32> to vector<1x56x128xf32>
      %730 = arith.mulf %719, %729 : vector<1x56x128xf32>
      %731 = arith.addf %708, %730 : vector<1x56x128xf32>
      %732 = vector.extract_strided_slice %2 {offsets = [10, 0], sizes = [1, 128], strides = [1, 1]} : vector<49x128xf32> to vector<1x128xf32>
      %733 = vector.shape_cast %732 : vector<1x128xf32> to vector<128xf32>
      %734 = vector.shape_cast %733 : vector<128xf32> to vector<1x1x128xf32>
      %735 = vector.broadcast %734 : vector<1x1x128xf32> to vector<1x56x128xf32>
      %736 = arith.mulf %719, %735 : vector<1x56x128xf32>
      %737 = arith.addf %714, %736 : vector<1x56x128xf32>
      %738 = vector.extract_strided_slice %2 {offsets = [3, 0], sizes = [1, 128], strides = [1, 1]} : vector<49x128xf32> to vector<1x128xf32>
      %739 = vector.shape_cast %738 : vector<1x128xf32> to vector<128xf32>
      %740 = vector.shape_cast %739 : vector<128xf32> to vector<1x1x128xf32>
      %741 = vector.broadcast %740 : vector<1x1x128xf32> to vector<1x56x128xf32>
      %742 = arith.mulf %719, %741 : vector<1x56x128xf32>
      %743 = arith.addf %663, %742 : vector<1x56x128xf32>
      %744 = arith.addi %1, %5 : i32
      %c4_i32_135 = arith.constant 4 : i32
      %745 = arith.addi %744, %c4_i32_135 : i32
      %c0_136 = arith.constant 0 : index
      %746 = arith.index_cast %745 : i32 to index
      %c3_137 = arith.constant 3 : index
      %c0_138 = arith.constant 0 : index
      %747 = vector.load %arg2[%c0_136, %746, %c3_137, %c0_138] : memref<1x62x64x128xf32, #tpu.memory_space<vmem>>, vector<1x1x56x128xf32>
      %748 = vector.shape_cast %747 : vector<1x1x56x128xf32> to vector<1x56x128xf32>
      %749 = vector.extract_strided_slice %2 {offsets = [31, 0], sizes = [1, 128], strides = [1, 1]} : vector<49x128xf32> to vector<1x128xf32>
      %750 = vector.shape_cast %749 : vector<1x128xf32> to vector<128xf32>
      %751 = vector.shape_cast %750 : vector<128xf32> to vector<1x1x128xf32>
      %752 = vector.broadcast %751 : vector<1x1x128xf32> to vector<1x56x128xf32>
      %753 = arith.mulf %748, %752 : vector<1x56x128xf32>
      %754 = arith.addf %725, %753 : vector<1x56x128xf32>
      %755 = vector.extract_strided_slice %2 {offsets = [24, 0], sizes = [1, 128], strides = [1, 1]} : vector<49x128xf32> to vector<1x128xf32>
      %756 = vector.shape_cast %755 : vector<1x128xf32> to vector<128xf32>
      %757 = vector.shape_cast %756 : vector<128xf32> to vector<1x1x128xf32>
      %758 = vector.broadcast %757 : vector<1x1x128xf32> to vector<1x56x128xf32>
      %759 = arith.mulf %748, %758 : vector<1x56x128xf32>
      %760 = arith.addf %731, %759 : vector<1x56x128xf32>
      %761 = vector.extract_strided_slice %2 {offsets = [17, 0], sizes = [1, 128], strides = [1, 1]} : vector<49x128xf32> to vector<1x128xf32>
      %762 = vector.shape_cast %761 : vector<1x128xf32> to vector<128xf32>
      %763 = vector.shape_cast %762 : vector<128xf32> to vector<1x1x128xf32>
      %764 = vector.broadcast %763 : vector<1x1x128xf32> to vector<1x56x128xf32>
      %765 = arith.mulf %748, %764 : vector<1x56x128xf32>
      %766 = arith.addf %737, %765 : vector<1x56x128xf32>
      %767 = vector.extract_strided_slice %2 {offsets = [10, 0], sizes = [1, 128], strides = [1, 1]} : vector<49x128xf32> to vector<1x128xf32>
      %768 = vector.shape_cast %767 : vector<1x128xf32> to vector<128xf32>
      %769 = vector.shape_cast %768 : vector<128xf32> to vector<1x1x128xf32>
      %770 = vector.broadcast %769 : vector<1x1x128xf32> to vector<1x56x128xf32>
      %771 = arith.mulf %748, %770 : vector<1x56x128xf32>
      %772 = arith.addf %743, %771 : vector<1x56x128xf32>
      %773 = arith.addi %1, %5 : i32
      %c5_i32_139 = arith.constant 5 : i32
      %774 = arith.addi %773, %c5_i32_139 : i32
      %c0_140 = arith.constant 0 : index
      %775 = arith.index_cast %774 : i32 to index
      %c3_141 = arith.constant 3 : index
      %c0_142 = arith.constant 0 : index
      %776 = vector.load %arg2[%c0_140, %775, %c3_141, %c0_142] : memref<1x62x64x128xf32, #tpu.memory_space<vmem>>, vector<1x1x56x128xf32>
      %777 = vector.shape_cast %776 : vector<1x1x56x128xf32> to vector<1x56x128xf32>
      %778 = vector.extract_strided_slice %2 {offsets = [38, 0], sizes = [1, 128], strides = [1, 1]} : vector<49x128xf32> to vector<1x128xf32>
      %779 = vector.shape_cast %778 : vector<1x128xf32> to vector<128xf32>
      %780 = vector.shape_cast %779 : vector<128xf32> to vector<1x1x128xf32>
      %781 = vector.broadcast %780 : vector<1x1x128xf32> to vector<1x56x128xf32>
      %782 = arith.mulf %777, %781 : vector<1x56x128xf32>
      %783 = arith.addf %754, %782 : vector<1x56x128xf32>
      %784 = vector.extract_strided_slice %2 {offsets = [31, 0], sizes = [1, 128], strides = [1, 1]} : vector<49x128xf32> to vector<1x128xf32>
      %785 = vector.shape_cast %784 : vector<1x128xf32> to vector<128xf32>
      %786 = vector.shape_cast %785 : vector<128xf32> to vector<1x1x128xf32>
      %787 = vector.broadcast %786 : vector<1x1x128xf32> to vector<1x56x128xf32>
      %788 = arith.mulf %777, %787 : vector<1x56x128xf32>
      %789 = arith.addf %760, %788 : vector<1x56x128xf32>
      %790 = vector.extract_strided_slice %2 {offsets = [24, 0], sizes = [1, 128], strides = [1, 1]} : vector<49x128xf32> to vector<1x128xf32>
      %791 = vector.shape_cast %790 : vector<1x128xf32> to vector<128xf32>
      %792 = vector.shape_cast %791 : vector<128xf32> to vector<1x1x128xf32>
      %793 = vector.broadcast %792 : vector<1x1x128xf32> to vector<1x56x128xf32>
      %794 = arith.mulf %777, %793 : vector<1x56x128xf32>
      %795 = arith.addf %766, %794 : vector<1x56x128xf32>
      %796 = vector.extract_strided_slice %2 {offsets = [17, 0], sizes = [1, 128], strides = [1, 1]} : vector<49x128xf32> to vector<1x128xf32>
      %797 = vector.shape_cast %796 : vector<1x128xf32> to vector<128xf32>
      %798 = vector.shape_cast %797 : vector<128xf32> to vector<1x1x128xf32>
      %799 = vector.broadcast %798 : vector<1x1x128xf32> to vector<1x56x128xf32>
      %800 = arith.mulf %777, %799 : vector<1x56x128xf32>
      %801 = arith.addf %772, %800 : vector<1x56x128xf32>
      %802 = arith.addi %1, %5 : i32
      %c6_i32_143 = arith.constant 6 : i32
      %803 = arith.addi %802, %c6_i32_143 : i32
      %c0_144 = arith.constant 0 : index
      %804 = arith.index_cast %803 : i32 to index
      %c3_145 = arith.constant 3 : index
      %c0_146 = arith.constant 0 : index
      %805 = vector.load %arg2[%c0_144, %804, %c3_145, %c0_146] : memref<1x62x64x128xf32, #tpu.memory_space<vmem>>, vector<1x1x56x128xf32>
      %806 = vector.shape_cast %805 : vector<1x1x56x128xf32> to vector<1x56x128xf32>
      %807 = vector.extract_strided_slice %2 {offsets = [45, 0], sizes = [1, 128], strides = [1, 1]} : vector<49x128xf32> to vector<1x128xf32>
      %808 = vector.shape_cast %807 : vector<1x128xf32> to vector<128xf32>
      %809 = vector.shape_cast %808 : vector<128xf32> to vector<1x1x128xf32>
      %810 = vector.broadcast %809 : vector<1x1x128xf32> to vector<1x56x128xf32>
      %811 = arith.mulf %806, %810 : vector<1x56x128xf32>
      %812 = arith.addf %783, %811 : vector<1x56x128xf32>
      %813 = vector.extract_strided_slice %2 {offsets = [38, 0], sizes = [1, 128], strides = [1, 1]} : vector<49x128xf32> to vector<1x128xf32>
      %814 = vector.shape_cast %813 : vector<1x128xf32> to vector<128xf32>
      %815 = vector.shape_cast %814 : vector<128xf32> to vector<1x1x128xf32>
      %816 = vector.broadcast %815 : vector<1x1x128xf32> to vector<1x56x128xf32>
      %817 = arith.mulf %806, %816 : vector<1x56x128xf32>
      %818 = arith.addf %789, %817 : vector<1x56x128xf32>
      %819 = vector.extract_strided_slice %2 {offsets = [31, 0], sizes = [1, 128], strides = [1, 1]} : vector<49x128xf32> to vector<1x128xf32>
      %820 = vector.shape_cast %819 : vector<1x128xf32> to vector<128xf32>
      %821 = vector.shape_cast %820 : vector<128xf32> to vector<1x1x128xf32>
      %822 = vector.broadcast %821 : vector<1x1x128xf32> to vector<1x56x128xf32>
      %823 = arith.mulf %806, %822 : vector<1x56x128xf32>
      %824 = arith.addf %795, %823 : vector<1x56x128xf32>
      %825 = vector.extract_strided_slice %2 {offsets = [24, 0], sizes = [1, 128], strides = [1, 1]} : vector<49x128xf32> to vector<1x128xf32>
      %826 = vector.shape_cast %825 : vector<1x128xf32> to vector<128xf32>
      %827 = vector.shape_cast %826 : vector<128xf32> to vector<1x1x128xf32>
      %828 = vector.broadcast %827 : vector<1x1x128xf32> to vector<1x56x128xf32>
      %829 = arith.mulf %806, %828 : vector<1x56x128xf32>
      %830 = arith.addf %801, %829 : vector<1x56x128xf32>
      %831 = arith.addi %1, %5 : i32
      %c7_i32_147 = arith.constant 7 : i32
      %832 = arith.addi %831, %c7_i32_147 : i32
      %c0_148 = arith.constant 0 : index
      %833 = arith.index_cast %832 : i32 to index
      %c3_149 = arith.constant 3 : index
      %c0_150 = arith.constant 0 : index
      %834 = vector.load %arg2[%c0_148, %833, %c3_149, %c0_150] : memref<1x62x64x128xf32, #tpu.memory_space<vmem>>, vector<1x1x56x128xf32>
      %835 = vector.shape_cast %834 : vector<1x1x56x128xf32> to vector<1x56x128xf32>
      %836 = vector.extract_strided_slice %2 {offsets = [45, 0], sizes = [1, 128], strides = [1, 1]} : vector<49x128xf32> to vector<1x128xf32>
      %837 = vector.shape_cast %836 : vector<1x128xf32> to vector<128xf32>
      %838 = vector.shape_cast %837 : vector<128xf32> to vector<1x1x128xf32>
      %839 = vector.broadcast %838 : vector<1x1x128xf32> to vector<1x56x128xf32>
      %840 = arith.mulf %835, %839 : vector<1x56x128xf32>
      %841 = arith.addf %818, %840 : vector<1x56x128xf32>
      %842 = vector.extract_strided_slice %2 {offsets = [38, 0], sizes = [1, 128], strides = [1, 1]} : vector<49x128xf32> to vector<1x128xf32>
      %843 = vector.shape_cast %842 : vector<1x128xf32> to vector<128xf32>
      %844 = vector.shape_cast %843 : vector<128xf32> to vector<1x1x128xf32>
      %845 = vector.broadcast %844 : vector<1x1x128xf32> to vector<1x56x128xf32>
      %846 = arith.mulf %835, %845 : vector<1x56x128xf32>
      %847 = arith.addf %824, %846 : vector<1x56x128xf32>
      %848 = vector.extract_strided_slice %2 {offsets = [31, 0], sizes = [1, 128], strides = [1, 1]} : vector<49x128xf32> to vector<1x128xf32>
      %849 = vector.shape_cast %848 : vector<1x128xf32> to vector<128xf32>
      %850 = vector.shape_cast %849 : vector<128xf32> to vector<1x1x128xf32>
      %851 = vector.broadcast %850 : vector<1x1x128xf32> to vector<1x56x128xf32>
      %852 = arith.mulf %835, %851 : vector<1x56x128xf32>
      %853 = arith.addf %830, %852 : vector<1x56x128xf32>
      %854 = arith.addi %1, %5 : i32
      %c8_i32_151 = arith.constant 8 : i32
      %855 = arith.addi %854, %c8_i32_151 : i32
      %c0_152 = arith.constant 0 : index
      %856 = arith.index_cast %855 : i32 to index
      %c3_153 = arith.constant 3 : index
      %c0_154 = arith.constant 0 : index
      %857 = vector.load %arg2[%c0_152, %856, %c3_153, %c0_154] : memref<1x62x64x128xf32, #tpu.memory_space<vmem>>, vector<1x1x56x128xf32>
      %858 = vector.shape_cast %857 : vector<1x1x56x128xf32> to vector<1x56x128xf32>
      %859 = vector.extract_strided_slice %2 {offsets = [45, 0], sizes = [1, 128], strides = [1, 1]} : vector<49x128xf32> to vector<1x128xf32>
      %860 = vector.shape_cast %859 : vector<1x128xf32> to vector<128xf32>
      %861 = vector.shape_cast %860 : vector<128xf32> to vector<1x1x128xf32>
      %862 = vector.broadcast %861 : vector<1x1x128xf32> to vector<1x56x128xf32>
      %863 = arith.mulf %858, %862 : vector<1x56x128xf32>
      %864 = arith.addf %847, %863 : vector<1x56x128xf32>
      %865 = vector.extract_strided_slice %2 {offsets = [38, 0], sizes = [1, 128], strides = [1, 1]} : vector<49x128xf32> to vector<1x128xf32>
      %866 = vector.shape_cast %865 : vector<1x128xf32> to vector<128xf32>
      %867 = vector.shape_cast %866 : vector<128xf32> to vector<1x1x128xf32>
      %868 = vector.broadcast %867 : vector<1x1x128xf32> to vector<1x56x128xf32>
      %869 = arith.mulf %858, %868 : vector<1x56x128xf32>
      %870 = arith.addf %853, %869 : vector<1x56x128xf32>
      %871 = arith.addi %1, %5 : i32
      %c9_i32_155 = arith.constant 9 : i32
      %872 = arith.addi %871, %c9_i32_155 : i32
      %c0_156 = arith.constant 0 : index
      %873 = arith.index_cast %872 : i32 to index
      %c3_157 = arith.constant 3 : index
      %c0_158 = arith.constant 0 : index
      %874 = vector.load %arg2[%c0_156, %873, %c3_157, %c0_158] : memref<1x62x64x128xf32, #tpu.memory_space<vmem>>, vector<1x1x56x128xf32>
      %875 = vector.shape_cast %874 : vector<1x1x56x128xf32> to vector<1x56x128xf32>
      %876 = vector.extract_strided_slice %2 {offsets = [45, 0], sizes = [1, 128], strides = [1, 1]} : vector<49x128xf32> to vector<1x128xf32>
      %877 = vector.shape_cast %876 : vector<1x128xf32> to vector<128xf32>
      %878 = vector.shape_cast %877 : vector<128xf32> to vector<1x1x128xf32>
      %879 = vector.broadcast %878 : vector<1x1x128xf32> to vector<1x56x128xf32>
      %880 = arith.mulf %875, %879 : vector<1x56x128xf32>
      %881 = arith.addf %870, %880 : vector<1x56x128xf32>
      %882 = arith.addi %1, %5 : i32
      %c0_i32_159 = arith.constant 0 : i32
      %883 = arith.addi %882, %c0_i32_159 : i32
      %c0_160 = arith.constant 0 : index
      %884 = arith.index_cast %883 : i32 to index
      %c4 = arith.constant 4 : index
      %c0_161 = arith.constant 0 : index
      %885 = vector.load %arg2[%c0_160, %884, %c4, %c0_161] : memref<1x62x64x128xf32, #tpu.memory_space<vmem>>, vector<1x1x56x128xf32>
      %886 = vector.shape_cast %885 : vector<1x1x56x128xf32> to vector<1x56x128xf32>
      %887 = vector.extract_strided_slice %2 {offsets = [4, 0], sizes = [1, 128], strides = [1, 1]} : vector<49x128xf32> to vector<1x128xf32>
      %888 = vector.shape_cast %887 : vector<1x128xf32> to vector<128xf32>
      %889 = vector.shape_cast %888 : vector<128xf32> to vector<1x1x128xf32>
      %890 = vector.broadcast %889 : vector<1x1x128xf32> to vector<1x56x128xf32>
      %891 = arith.mulf %886, %890 : vector<1x56x128xf32>
      %892 = arith.addf %812, %891 : vector<1x56x128xf32>
      %893 = arith.addi %1, %5 : i32
      %c1_i32_162 = arith.constant 1 : i32
      %894 = arith.addi %893, %c1_i32_162 : i32
      %c0_163 = arith.constant 0 : index
      %895 = arith.index_cast %894 : i32 to index
      %c4_164 = arith.constant 4 : index
      %c0_165 = arith.constant 0 : index
      %896 = vector.load %arg2[%c0_163, %895, %c4_164, %c0_165] : memref<1x62x64x128xf32, #tpu.memory_space<vmem>>, vector<1x1x56x128xf32>
      %897 = vector.shape_cast %896 : vector<1x1x56x128xf32> to vector<1x56x128xf32>
      %898 = vector.extract_strided_slice %2 {offsets = [11, 0], sizes = [1, 128], strides = [1, 1]} : vector<49x128xf32> to vector<1x128xf32>
      %899 = vector.shape_cast %898 : vector<1x128xf32> to vector<128xf32>
      %900 = vector.shape_cast %899 : vector<128xf32> to vector<1x1x128xf32>
      %901 = vector.broadcast %900 : vector<1x1x128xf32> to vector<1x56x128xf32>
      %902 = arith.mulf %897, %901 : vector<1x56x128xf32>
      %903 = arith.addf %892, %902 : vector<1x56x128xf32>
      %904 = vector.extract_strided_slice %2 {offsets = [4, 0], sizes = [1, 128], strides = [1, 1]} : vector<49x128xf32> to vector<1x128xf32>
      %905 = vector.shape_cast %904 : vector<1x128xf32> to vector<128xf32>
      %906 = vector.shape_cast %905 : vector<128xf32> to vector<1x1x128xf32>
      %907 = vector.broadcast %906 : vector<1x1x128xf32> to vector<1x56x128xf32>
      %908 = arith.mulf %897, %907 : vector<1x56x128xf32>
      %909 = arith.addf %841, %908 : vector<1x56x128xf32>
      %910 = arith.addi %1, %5 : i32
      %c2_i32_166 = arith.constant 2 : i32
      %911 = arith.addi %910, %c2_i32_166 : i32
      %c0_167 = arith.constant 0 : index
      %912 = arith.index_cast %911 : i32 to index
      %c4_168 = arith.constant 4 : index
      %c0_169 = arith.constant 0 : index
      %913 = vector.load %arg2[%c0_167, %912, %c4_168, %c0_169] : memref<1x62x64x128xf32, #tpu.memory_space<vmem>>, vector<1x1x56x128xf32>
      %914 = vector.shape_cast %913 : vector<1x1x56x128xf32> to vector<1x56x128xf32>
      %915 = vector.extract_strided_slice %2 {offsets = [18, 0], sizes = [1, 128], strides = [1, 1]} : vector<49x128xf32> to vector<1x128xf32>
      %916 = vector.shape_cast %915 : vector<1x128xf32> to vector<128xf32>
      %917 = vector.shape_cast %916 : vector<128xf32> to vector<1x1x128xf32>
      %918 = vector.broadcast %917 : vector<1x1x128xf32> to vector<1x56x128xf32>
      %919 = arith.mulf %914, %918 : vector<1x56x128xf32>
      %920 = arith.addf %903, %919 : vector<1x56x128xf32>
      %921 = vector.extract_strided_slice %2 {offsets = [11, 0], sizes = [1, 128], strides = [1, 1]} : vector<49x128xf32> to vector<1x128xf32>
      %922 = vector.shape_cast %921 : vector<1x128xf32> to vector<128xf32>
      %923 = vector.shape_cast %922 : vector<128xf32> to vector<1x1x128xf32>
      %924 = vector.broadcast %923 : vector<1x1x128xf32> to vector<1x56x128xf32>
      %925 = arith.mulf %914, %924 : vector<1x56x128xf32>
      %926 = arith.addf %909, %925 : vector<1x56x128xf32>
      %927 = vector.extract_strided_slice %2 {offsets = [4, 0], sizes = [1, 128], strides = [1, 1]} : vector<49x128xf32> to vector<1x128xf32>
      %928 = vector.shape_cast %927 : vector<1x128xf32> to vector<128xf32>
      %929 = vector.shape_cast %928 : vector<128xf32> to vector<1x1x128xf32>
      %930 = vector.broadcast %929 : vector<1x1x128xf32> to vector<1x56x128xf32>
      %931 = arith.mulf %914, %930 : vector<1x56x128xf32>
      %932 = arith.addf %864, %931 : vector<1x56x128xf32>
      %933 = arith.addi %1, %5 : i32
      %c3_i32_170 = arith.constant 3 : i32
      %934 = arith.addi %933, %c3_i32_170 : i32
      %c0_171 = arith.constant 0 : index
      %935 = arith.index_cast %934 : i32 to index
      %c4_172 = arith.constant 4 : index
      %c0_173 = arith.constant 0 : index
      %936 = vector.load %arg2[%c0_171, %935, %c4_172, %c0_173] : memref<1x62x64x128xf32, #tpu.memory_space<vmem>>, vector<1x1x56x128xf32>
      %937 = vector.shape_cast %936 : vector<1x1x56x128xf32> to vector<1x56x128xf32>
      %938 = vector.extract_strided_slice %2 {offsets = [25, 0], sizes = [1, 128], strides = [1, 1]} : vector<49x128xf32> to vector<1x128xf32>
      %939 = vector.shape_cast %938 : vector<1x128xf32> to vector<128xf32>
      %940 = vector.shape_cast %939 : vector<128xf32> to vector<1x1x128xf32>
      %941 = vector.broadcast %940 : vector<1x1x128xf32> to vector<1x56x128xf32>
      %942 = arith.mulf %937, %941 : vector<1x56x128xf32>
      %943 = arith.addf %920, %942 : vector<1x56x128xf32>
      %944 = vector.extract_strided_slice %2 {offsets = [18, 0], sizes = [1, 128], strides = [1, 1]} : vector<49x128xf32> to vector<1x128xf32>
      %945 = vector.shape_cast %944 : vector<1x128xf32> to vector<128xf32>
      %946 = vector.shape_cast %945 : vector<128xf32> to vector<1x1x128xf32>
      %947 = vector.broadcast %946 : vector<1x1x128xf32> to vector<1x56x128xf32>
      %948 = arith.mulf %937, %947 : vector<1x56x128xf32>
      %949 = arith.addf %926, %948 : vector<1x56x128xf32>
      %950 = vector.extract_strided_slice %2 {offsets = [11, 0], sizes = [1, 128], strides = [1, 1]} : vector<49x128xf32> to vector<1x128xf32>
      %951 = vector.shape_cast %950 : vector<1x128xf32> to vector<128xf32>
      %952 = vector.shape_cast %951 : vector<128xf32> to vector<1x1x128xf32>
      %953 = vector.broadcast %952 : vector<1x1x128xf32> to vector<1x56x128xf32>
      %954 = arith.mulf %937, %953 : vector<1x56x128xf32>
      %955 = arith.addf %932, %954 : vector<1x56x128xf32>
      %956 = vector.extract_strided_slice %2 {offsets = [4, 0], sizes = [1, 128], strides = [1, 1]} : vector<49x128xf32> to vector<1x128xf32>
      %957 = vector.shape_cast %956 : vector<1x128xf32> to vector<128xf32>
      %958 = vector.shape_cast %957 : vector<128xf32> to vector<1x1x128xf32>
      %959 = vector.broadcast %958 : vector<1x1x128xf32> to vector<1x56x128xf32>
      %960 = arith.mulf %937, %959 : vector<1x56x128xf32>
      %961 = arith.addf %881, %960 : vector<1x56x128xf32>
      %962 = arith.addi %1, %5 : i32
      %c4_i32_174 = arith.constant 4 : i32
      %963 = arith.addi %962, %c4_i32_174 : i32
      %c0_175 = arith.constant 0 : index
      %964 = arith.index_cast %963 : i32 to index
      %c4_176 = arith.constant 4 : index
      %c0_177 = arith.constant 0 : index
      %965 = vector.load %arg2[%c0_175, %964, %c4_176, %c0_177] : memref<1x62x64x128xf32, #tpu.memory_space<vmem>>, vector<1x1x56x128xf32>
      %966 = vector.shape_cast %965 : vector<1x1x56x128xf32> to vector<1x56x128xf32>
      %967 = vector.extract_strided_slice %2 {offsets = [32, 0], sizes = [1, 128], strides = [1, 1]} : vector<49x128xf32> to vector<1x128xf32>
      %968 = vector.shape_cast %967 : vector<1x128xf32> to vector<128xf32>
      %969 = vector.shape_cast %968 : vector<128xf32> to vector<1x1x128xf32>
      %970 = vector.broadcast %969 : vector<1x1x128xf32> to vector<1x56x128xf32>
      %971 = arith.mulf %966, %970 : vector<1x56x128xf32>
      %972 = arith.addf %943, %971 : vector<1x56x128xf32>
      %973 = vector.extract_strided_slice %2 {offsets = [25, 0], sizes = [1, 128], strides = [1, 1]} : vector<49x128xf32> to vector<1x128xf32>
      %974 = vector.shape_cast %973 : vector<1x128xf32> to vector<128xf32>
      %975 = vector.shape_cast %974 : vector<128xf32> to vector<1x1x128xf32>
      %976 = vector.broadcast %975 : vector<1x1x128xf32> to vector<1x56x128xf32>
      %977 = arith.mulf %966, %976 : vector<1x56x128xf32>
      %978 = arith.addf %949, %977 : vector<1x56x128xf32>
      %979 = vector.extract_strided_slice %2 {offsets = [18, 0], sizes = [1, 128], strides = [1, 1]} : vector<49x128xf32> to vector<1x128xf32>
      %980 = vector.shape_cast %979 : vector<1x128xf32> to vector<128xf32>
      %981 = vector.shape_cast %980 : vector<128xf32> to vector<1x1x128xf32>
      %982 = vector.broadcast %981 : vector<1x1x128xf32> to vector<1x56x128xf32>
      %983 = arith.mulf %966, %982 : vector<1x56x128xf32>
      %984 = arith.addf %955, %983 : vector<1x56x128xf32>
      %985 = vector.extract_strided_slice %2 {offsets = [11, 0], sizes = [1, 128], strides = [1, 1]} : vector<49x128xf32> to vector<1x128xf32>
      %986 = vector.shape_cast %985 : vector<1x128xf32> to vector<128xf32>
      %987 = vector.shape_cast %986 : vector<128xf32> to vector<1x1x128xf32>
      %988 = vector.broadcast %987 : vector<1x1x128xf32> to vector<1x56x128xf32>
      %989 = arith.mulf %966, %988 : vector<1x56x128xf32>
      %990 = arith.addf %961, %989 : vector<1x56x128xf32>
      %991 = arith.addi %1, %5 : i32
      %c5_i32_178 = arith.constant 5 : i32
      %992 = arith.addi %991, %c5_i32_178 : i32
      %c0_179 = arith.constant 0 : index
      %993 = arith.index_cast %992 : i32 to index
      %c4_180 = arith.constant 4 : index
      %c0_181 = arith.constant 0 : index
      %994 = vector.load %arg2[%c0_179, %993, %c4_180, %c0_181] : memref<1x62x64x128xf32, #tpu.memory_space<vmem>>, vector<1x1x56x128xf32>
      %995 = vector.shape_cast %994 : vector<1x1x56x128xf32> to vector<1x56x128xf32>
      %996 = vector.extract_strided_slice %2 {offsets = [39, 0], sizes = [1, 128], strides = [1, 1]} : vector<49x128xf32> to vector<1x128xf32>
      %997 = vector.shape_cast %996 : vector<1x128xf32> to vector<128xf32>
      %998 = vector.shape_cast %997 : vector<128xf32> to vector<1x1x128xf32>
      %999 = vector.broadcast %998 : vector<1x1x128xf32> to vector<1x56x128xf32>
      %1000 = arith.mulf %995, %999 : vector<1x56x128xf32>
      %1001 = arith.addf %972, %1000 : vector<1x56x128xf32>
      %1002 = vector.extract_strided_slice %2 {offsets = [32, 0], sizes = [1, 128], strides = [1, 1]} : vector<49x128xf32> to vector<1x128xf32>
      %1003 = vector.shape_cast %1002 : vector<1x128xf32> to vector<128xf32>
      %1004 = vector.shape_cast %1003 : vector<128xf32> to vector<1x1x128xf32>
      %1005 = vector.broadcast %1004 : vector<1x1x128xf32> to vector<1x56x128xf32>
      %1006 = arith.mulf %995, %1005 : vector<1x56x128xf32>
      %1007 = arith.addf %978, %1006 : vector<1x56x128xf32>
      %1008 = vector.extract_strided_slice %2 {offsets = [25, 0], sizes = [1, 128], strides = [1, 1]} : vector<49x128xf32> to vector<1x128xf32>
      %1009 = vector.shape_cast %1008 : vector<1x128xf32> to vector<128xf32>
      %1010 = vector.shape_cast %1009 : vector<128xf32> to vector<1x1x128xf32>
      %1011 = vector.broadcast %1010 : vector<1x1x128xf32> to vector<1x56x128xf32>
      %1012 = arith.mulf %995, %1011 : vector<1x56x128xf32>
      %1013 = arith.addf %984, %1012 : vector<1x56x128xf32>
      %1014 = vector.extract_strided_slice %2 {offsets = [18, 0], sizes = [1, 128], strides = [1, 1]} : vector<49x128xf32> to vector<1x128xf32>
      %1015 = vector.shape_cast %1014 : vector<1x128xf32> to vector<128xf32>
      %1016 = vector.shape_cast %1015 : vector<128xf32> to vector<1x1x128xf32>
      %1017 = vector.broadcast %1016 : vector<1x1x128xf32> to vector<1x56x128xf32>
      %1018 = arith.mulf %995, %1017 : vector<1x56x128xf32>
      %1019 = arith.addf %990, %1018 : vector<1x56x128xf32>
      %1020 = arith.addi %1, %5 : i32
      %c6_i32_182 = arith.constant 6 : i32
      %1021 = arith.addi %1020, %c6_i32_182 : i32
      %c0_183 = arith.constant 0 : index
      %1022 = arith.index_cast %1021 : i32 to index
      %c4_184 = arith.constant 4 : index
      %c0_185 = arith.constant 0 : index
      %1023 = vector.load %arg2[%c0_183, %1022, %c4_184, %c0_185] : memref<1x62x64x128xf32, #tpu.memory_space<vmem>>, vector<1x1x56x128xf32>
      %1024 = vector.shape_cast %1023 : vector<1x1x56x128xf32> to vector<1x56x128xf32>
      %1025 = vector.extract_strided_slice %2 {offsets = [46, 0], sizes = [1, 128], strides = [1, 1]} : vector<49x128xf32> to vector<1x128xf32>
      %1026 = vector.shape_cast %1025 : vector<1x128xf32> to vector<128xf32>
      %1027 = vector.shape_cast %1026 : vector<128xf32> to vector<1x1x128xf32>
      %1028 = vector.broadcast %1027 : vector<1x1x128xf32> to vector<1x56x128xf32>
      %1029 = arith.mulf %1024, %1028 : vector<1x56x128xf32>
      %1030 = arith.addf %1001, %1029 : vector<1x56x128xf32>
      %1031 = vector.extract_strided_slice %2 {offsets = [39, 0], sizes = [1, 128], strides = [1, 1]} : vector<49x128xf32> to vector<1x128xf32>
      %1032 = vector.shape_cast %1031 : vector<1x128xf32> to vector<128xf32>
      %1033 = vector.shape_cast %1032 : vector<128xf32> to vector<1x1x128xf32>
      %1034 = vector.broadcast %1033 : vector<1x1x128xf32> to vector<1x56x128xf32>
      %1035 = arith.mulf %1024, %1034 : vector<1x56x128xf32>
      %1036 = arith.addf %1007, %1035 : vector<1x56x128xf32>
      %1037 = vector.extract_strided_slice %2 {offsets = [32, 0], sizes = [1, 128], strides = [1, 1]} : vector<49x128xf32> to vector<1x128xf32>
      %1038 = vector.shape_cast %1037 : vector<1x128xf32> to vector<128xf32>
      %1039 = vector.shape_cast %1038 : vector<128xf32> to vector<1x1x128xf32>
      %1040 = vector.broadcast %1039 : vector<1x1x128xf32> to vector<1x56x128xf32>
      %1041 = arith.mulf %1024, %1040 : vector<1x56x128xf32>
      %1042 = arith.addf %1013, %1041 : vector<1x56x128xf32>
      %1043 = vector.extract_strided_slice %2 {offsets = [25, 0], sizes = [1, 128], strides = [1, 1]} : vector<49x128xf32> to vector<1x128xf32>
      %1044 = vector.shape_cast %1043 : vector<1x128xf32> to vector<128xf32>
      %1045 = vector.shape_cast %1044 : vector<128xf32> to vector<1x1x128xf32>
      %1046 = vector.broadcast %1045 : vector<1x1x128xf32> to vector<1x56x128xf32>
      %1047 = arith.mulf %1024, %1046 : vector<1x56x128xf32>
      %1048 = arith.addf %1019, %1047 : vector<1x56x128xf32>
      %1049 = arith.addi %1, %5 : i32
      %c7_i32_186 = arith.constant 7 : i32
      %1050 = arith.addi %1049, %c7_i32_186 : i32
      %c0_187 = arith.constant 0 : index
      %1051 = arith.index_cast %1050 : i32 to index
      %c4_188 = arith.constant 4 : index
      %c0_189 = arith.constant 0 : index
      %1052 = vector.load %arg2[%c0_187, %1051, %c4_188, %c0_189] : memref<1x62x64x128xf32, #tpu.memory_space<vmem>>, vector<1x1x56x128xf32>
      %1053 = vector.shape_cast %1052 : vector<1x1x56x128xf32> to vector<1x56x128xf32>
      %1054 = vector.extract_strided_slice %2 {offsets = [46, 0], sizes = [1, 128], strides = [1, 1]} : vector<49x128xf32> to vector<1x128xf32>
      %1055 = vector.shape_cast %1054 : vector<1x128xf32> to vector<128xf32>
      %1056 = vector.shape_cast %1055 : vector<128xf32> to vector<1x1x128xf32>
      %1057 = vector.broadcast %1056 : vector<1x1x128xf32> to vector<1x56x128xf32>
      %1058 = arith.mulf %1053, %1057 : vector<1x56x128xf32>
      %1059 = arith.addf %1036, %1058 : vector<1x56x128xf32>
      %1060 = vector.extract_strided_slice %2 {offsets = [39, 0], sizes = [1, 128], strides = [1, 1]} : vector<49x128xf32> to vector<1x128xf32>
      %1061 = vector.shape_cast %1060 : vector<1x128xf32> to vector<128xf32>
      %1062 = vector.shape_cast %1061 : vector<128xf32> to vector<1x1x128xf32>
      %1063 = vector.broadcast %1062 : vector<1x1x128xf32> to vector<1x56x128xf32>
      %1064 = arith.mulf %1053, %1063 : vector<1x56x128xf32>
      %1065 = arith.addf %1042, %1064 : vector<1x56x128xf32>
      %1066 = vector.extract_strided_slice %2 {offsets = [32, 0], sizes = [1, 128], strides = [1, 1]} : vector<49x128xf32> to vector<1x128xf32>
      %1067 = vector.shape_cast %1066 : vector<1x128xf32> to vector<128xf32>
      %1068 = vector.shape_cast %1067 : vector<128xf32> to vector<1x1x128xf32>
      %1069 = vector.broadcast %1068 : vector<1x1x128xf32> to vector<1x56x128xf32>
      %1070 = arith.mulf %1053, %1069 : vector<1x56x128xf32>
      %1071 = arith.addf %1048, %1070 : vector<1x56x128xf32>
      %1072 = arith.addi %1, %5 : i32
      %c8_i32_190 = arith.constant 8 : i32
      %1073 = arith.addi %1072, %c8_i32_190 : i32
      %c0_191 = arith.constant 0 : index
      %1074 = arith.index_cast %1073 : i32 to index
      %c4_192 = arith.constant 4 : index
      %c0_193 = arith.constant 0 : index
      %1075 = vector.load %arg2[%c0_191, %1074, %c4_192, %c0_193] : memref<1x62x64x128xf32, #tpu.memory_space<vmem>>, vector<1x1x56x128xf32>
      %1076 = vector.shape_cast %1075 : vector<1x1x56x128xf32> to vector<1x56x128xf32>
      %1077 = vector.extract_strided_slice %2 {offsets = [46, 0], sizes = [1, 128], strides = [1, 1]} : vector<49x128xf32> to vector<1x128xf32>
      %1078 = vector.shape_cast %1077 : vector<1x128xf32> to vector<128xf32>
      %1079 = vector.shape_cast %1078 : vector<128xf32> to vector<1x1x128xf32>
      %1080 = vector.broadcast %1079 : vector<1x1x128xf32> to vector<1x56x128xf32>
      %1081 = arith.mulf %1076, %1080 : vector<1x56x128xf32>
      %1082 = arith.addf %1065, %1081 : vector<1x56x128xf32>
      %1083 = vector.extract_strided_slice %2 {offsets = [39, 0], sizes = [1, 128], strides = [1, 1]} : vector<49x128xf32> to vector<1x128xf32>
      %1084 = vector.shape_cast %1083 : vector<1x128xf32> to vector<128xf32>
      %1085 = vector.shape_cast %1084 : vector<128xf32> to vector<1x1x128xf32>
      %1086 = vector.broadcast %1085 : vector<1x1x128xf32> to vector<1x56x128xf32>
      %1087 = arith.mulf %1076, %1086 : vector<1x56x128xf32>
      %1088 = arith.addf %1071, %1087 : vector<1x56x128xf32>
      %1089 = arith.addi %1, %5 : i32
      %c9_i32_194 = arith.constant 9 : i32
      %1090 = arith.addi %1089, %c9_i32_194 : i32
      %c0_195 = arith.constant 0 : index
      %1091 = arith.index_cast %1090 : i32 to index
      %c4_196 = arith.constant 4 : index
      %c0_197 = arith.constant 0 : index
      %1092 = vector.load %arg2[%c0_195, %1091, %c4_196, %c0_197] : memref<1x62x64x128xf32, #tpu.memory_space<vmem>>, vector<1x1x56x128xf32>
      %1093 = vector.shape_cast %1092 : vector<1x1x56x128xf32> to vector<1x56x128xf32>
      %1094 = vector.extract_strided_slice %2 {offsets = [46, 0], sizes = [1, 128], strides = [1, 1]} : vector<49x128xf32> to vector<1x128xf32>
      %1095 = vector.shape_cast %1094 : vector<1x128xf32> to vector<128xf32>
      %1096 = vector.shape_cast %1095 : vector<128xf32> to vector<1x1x128xf32>
      %1097 = vector.broadcast %1096 : vector<1x1x128xf32> to vector<1x56x128xf32>
      %1098 = arith.mulf %1093, %1097 : vector<1x56x128xf32>
      %1099 = arith.addf %1088, %1098 : vector<1x56x128xf32>
      %1100 = arith.addi %1, %5 : i32
      %c0_i32_198 = arith.constant 0 : i32
      %1101 = arith.addi %1100, %c0_i32_198 : i32
      %c0_199 = arith.constant 0 : index
      %1102 = arith.index_cast %1101 : i32 to index
      %c5 = arith.constant 5 : index
      %c0_200 = arith.constant 0 : index
      %1103 = vector.load %arg2[%c0_199, %1102, %c5, %c0_200] : memref<1x62x64x128xf32, #tpu.memory_space<vmem>>, vector<1x1x56x128xf32>
      %1104 = vector.shape_cast %1103 : vector<1x1x56x128xf32> to vector<1x56x128xf32>
      %1105 = vector.extract_strided_slice %2 {offsets = [5, 0], sizes = [1, 128], strides = [1, 1]} : vector<49x128xf32> to vector<1x128xf32>
      %1106 = vector.shape_cast %1105 : vector<1x128xf32> to vector<128xf32>
      %1107 = vector.shape_cast %1106 : vector<128xf32> to vector<1x1x128xf32>
      %1108 = vector.broadcast %1107 : vector<1x1x128xf32> to vector<1x56x128xf32>
      %1109 = arith.mulf %1104, %1108 : vector<1x56x128xf32>
      %1110 = arith.addf %1030, %1109 : vector<1x56x128xf32>
      %1111 = arith.addi %1, %5 : i32
      %c1_i32_201 = arith.constant 1 : i32
      %1112 = arith.addi %1111, %c1_i32_201 : i32
      %c0_202 = arith.constant 0 : index
      %1113 = arith.index_cast %1112 : i32 to index
      %c5_203 = arith.constant 5 : index
      %c0_204 = arith.constant 0 : index
      %1114 = vector.load %arg2[%c0_202, %1113, %c5_203, %c0_204] : memref<1x62x64x128xf32, #tpu.memory_space<vmem>>, vector<1x1x56x128xf32>
      %1115 = vector.shape_cast %1114 : vector<1x1x56x128xf32> to vector<1x56x128xf32>
      %1116 = vector.extract_strided_slice %2 {offsets = [12, 0], sizes = [1, 128], strides = [1, 1]} : vector<49x128xf32> to vector<1x128xf32>
      %1117 = vector.shape_cast %1116 : vector<1x128xf32> to vector<128xf32>
      %1118 = vector.shape_cast %1117 : vector<128xf32> to vector<1x1x128xf32>
      %1119 = vector.broadcast %1118 : vector<1x1x128xf32> to vector<1x56x128xf32>
      %1120 = arith.mulf %1115, %1119 : vector<1x56x128xf32>
      %1121 = arith.addf %1110, %1120 : vector<1x56x128xf32>
      %1122 = vector.extract_strided_slice %2 {offsets = [5, 0], sizes = [1, 128], strides = [1, 1]} : vector<49x128xf32> to vector<1x128xf32>
      %1123 = vector.shape_cast %1122 : vector<1x128xf32> to vector<128xf32>
      %1124 = vector.shape_cast %1123 : vector<128xf32> to vector<1x1x128xf32>
      %1125 = vector.broadcast %1124 : vector<1x1x128xf32> to vector<1x56x128xf32>
      %1126 = arith.mulf %1115, %1125 : vector<1x56x128xf32>
      %1127 = arith.addf %1059, %1126 : vector<1x56x128xf32>
      %1128 = arith.addi %1, %5 : i32
      %c2_i32_205 = arith.constant 2 : i32
      %1129 = arith.addi %1128, %c2_i32_205 : i32
      %c0_206 = arith.constant 0 : index
      %1130 = arith.index_cast %1129 : i32 to index
      %c5_207 = arith.constant 5 : index
      %c0_208 = arith.constant 0 : index
      %1131 = vector.load %arg2[%c0_206, %1130, %c5_207, %c0_208] : memref<1x62x64x128xf32, #tpu.memory_space<vmem>>, vector<1x1x56x128xf32>
      %1132 = vector.shape_cast %1131 : vector<1x1x56x128xf32> to vector<1x56x128xf32>
      %1133 = vector.extract_strided_slice %2 {offsets = [19, 0], sizes = [1, 128], strides = [1, 1]} : vector<49x128xf32> to vector<1x128xf32>
      %1134 = vector.shape_cast %1133 : vector<1x128xf32> to vector<128xf32>
      %1135 = vector.shape_cast %1134 : vector<128xf32> to vector<1x1x128xf32>
      %1136 = vector.broadcast %1135 : vector<1x1x128xf32> to vector<1x56x128xf32>
      %1137 = arith.mulf %1132, %1136 : vector<1x56x128xf32>
      %1138 = arith.addf %1121, %1137 : vector<1x56x128xf32>
      %1139 = vector.extract_strided_slice %2 {offsets = [12, 0], sizes = [1, 128], strides = [1, 1]} : vector<49x128xf32> to vector<1x128xf32>
      %1140 = vector.shape_cast %1139 : vector<1x128xf32> to vector<128xf32>
      %1141 = vector.shape_cast %1140 : vector<128xf32> to vector<1x1x128xf32>
      %1142 = vector.broadcast %1141 : vector<1x1x128xf32> to vector<1x56x128xf32>
      %1143 = arith.mulf %1132, %1142 : vector<1x56x128xf32>
      %1144 = arith.addf %1127, %1143 : vector<1x56x128xf32>
      %1145 = vector.extract_strided_slice %2 {offsets = [5, 0], sizes = [1, 128], strides = [1, 1]} : vector<49x128xf32> to vector<1x128xf32>
      %1146 = vector.shape_cast %1145 : vector<1x128xf32> to vector<128xf32>
      %1147 = vector.shape_cast %1146 : vector<128xf32> to vector<1x1x128xf32>
      %1148 = vector.broadcast %1147 : vector<1x1x128xf32> to vector<1x56x128xf32>
      %1149 = arith.mulf %1132, %1148 : vector<1x56x128xf32>
      %1150 = arith.addf %1082, %1149 : vector<1x56x128xf32>
      %1151 = arith.addi %1, %5 : i32
      %c3_i32_209 = arith.constant 3 : i32
      %1152 = arith.addi %1151, %c3_i32_209 : i32
      %c0_210 = arith.constant 0 : index
      %1153 = arith.index_cast %1152 : i32 to index
      %c5_211 = arith.constant 5 : index
      %c0_212 = arith.constant 0 : index
      %1154 = vector.load %arg2[%c0_210, %1153, %c5_211, %c0_212] : memref<1x62x64x128xf32, #tpu.memory_space<vmem>>, vector<1x1x56x128xf32>
      %1155 = vector.shape_cast %1154 : vector<1x1x56x128xf32> to vector<1x56x128xf32>
      %1156 = vector.extract_strided_slice %2 {offsets = [26, 0], sizes = [1, 128], strides = [1, 1]} : vector<49x128xf32> to vector<1x128xf32>
      %1157 = vector.shape_cast %1156 : vector<1x128xf32> to vector<128xf32>
      %1158 = vector.shape_cast %1157 : vector<128xf32> to vector<1x1x128xf32>
      %1159 = vector.broadcast %1158 : vector<1x1x128xf32> to vector<1x56x128xf32>
      %1160 = arith.mulf %1155, %1159 : vector<1x56x128xf32>
      %1161 = arith.addf %1138, %1160 : vector<1x56x128xf32>
      %1162 = vector.extract_strided_slice %2 {offsets = [19, 0], sizes = [1, 128], strides = [1, 1]} : vector<49x128xf32> to vector<1x128xf32>
      %1163 = vector.shape_cast %1162 : vector<1x128xf32> to vector<128xf32>
      %1164 = vector.shape_cast %1163 : vector<128xf32> to vector<1x1x128xf32>
      %1165 = vector.broadcast %1164 : vector<1x1x128xf32> to vector<1x56x128xf32>
      %1166 = arith.mulf %1155, %1165 : vector<1x56x128xf32>
      %1167 = arith.addf %1144, %1166 : vector<1x56x128xf32>
      %1168 = vector.extract_strided_slice %2 {offsets = [12, 0], sizes = [1, 128], strides = [1, 1]} : vector<49x128xf32> to vector<1x128xf32>
      %1169 = vector.shape_cast %1168 : vector<1x128xf32> to vector<128xf32>
      %1170 = vector.shape_cast %1169 : vector<128xf32> to vector<1x1x128xf32>
      %1171 = vector.broadcast %1170 : vector<1x1x128xf32> to vector<1x56x128xf32>
      %1172 = arith.mulf %1155, %1171 : vector<1x56x128xf32>
      %1173 = arith.addf %1150, %1172 : vector<1x56x128xf32>
      %1174 = vector.extract_strided_slice %2 {offsets = [5, 0], sizes = [1, 128], strides = [1, 1]} : vector<49x128xf32> to vector<1x128xf32>
      %1175 = vector.shape_cast %1174 : vector<1x128xf32> to vector<128xf32>
      %1176 = vector.shape_cast %1175 : vector<128xf32> to vector<1x1x128xf32>
      %1177 = vector.broadcast %1176 : vector<1x1x128xf32> to vector<1x56x128xf32>
      %1178 = arith.mulf %1155, %1177 : vector<1x56x128xf32>
      %1179 = arith.addf %1099, %1178 : vector<1x56x128xf32>
      %1180 = arith.addi %1, %5 : i32
      %c4_i32_213 = arith.constant 4 : i32
      %1181 = arith.addi %1180, %c4_i32_213 : i32
      %c0_214 = arith.constant 0 : index
      %1182 = arith.index_cast %1181 : i32 to index
      %c5_215 = arith.constant 5 : index
      %c0_216 = arith.constant 0 : index
      %1183 = vector.load %arg2[%c0_214, %1182, %c5_215, %c0_216] : memref<1x62x64x128xf32, #tpu.memory_space<vmem>>, vector<1x1x56x128xf32>
      %1184 = vector.shape_cast %1183 : vector<1x1x56x128xf32> to vector<1x56x128xf32>
      %1185 = vector.extract_strided_slice %2 {offsets = [33, 0], sizes = [1, 128], strides = [1, 1]} : vector<49x128xf32> to vector<1x128xf32>
      %1186 = vector.shape_cast %1185 : vector<1x128xf32> to vector<128xf32>
      %1187 = vector.shape_cast %1186 : vector<128xf32> to vector<1x1x128xf32>
      %1188 = vector.broadcast %1187 : vector<1x1x128xf32> to vector<1x56x128xf32>
      %1189 = arith.mulf %1184, %1188 : vector<1x56x128xf32>
      %1190 = arith.addf %1161, %1189 : vector<1x56x128xf32>
      %1191 = vector.extract_strided_slice %2 {offsets = [26, 0], sizes = [1, 128], strides = [1, 1]} : vector<49x128xf32> to vector<1x128xf32>
      %1192 = vector.shape_cast %1191 : vector<1x128xf32> to vector<128xf32>
      %1193 = vector.shape_cast %1192 : vector<128xf32> to vector<1x1x128xf32>
      %1194 = vector.broadcast %1193 : vector<1x1x128xf32> to vector<1x56x128xf32>
      %1195 = arith.mulf %1184, %1194 : vector<1x56x128xf32>
      %1196 = arith.addf %1167, %1195 : vector<1x56x128xf32>
      %1197 = vector.extract_strided_slice %2 {offsets = [19, 0], sizes = [1, 128], strides = [1, 1]} : vector<49x128xf32> to vector<1x128xf32>
      %1198 = vector.shape_cast %1197 : vector<1x128xf32> to vector<128xf32>
      %1199 = vector.shape_cast %1198 : vector<128xf32> to vector<1x1x128xf32>
      %1200 = vector.broadcast %1199 : vector<1x1x128xf32> to vector<1x56x128xf32>
      %1201 = arith.mulf %1184, %1200 : vector<1x56x128xf32>
      %1202 = arith.addf %1173, %1201 : vector<1x56x128xf32>
      %1203 = vector.extract_strided_slice %2 {offsets = [12, 0], sizes = [1, 128], strides = [1, 1]} : vector<49x128xf32> to vector<1x128xf32>
      %1204 = vector.shape_cast %1203 : vector<1x128xf32> to vector<128xf32>
      %1205 = vector.shape_cast %1204 : vector<128xf32> to vector<1x1x128xf32>
      %1206 = vector.broadcast %1205 : vector<1x1x128xf32> to vector<1x56x128xf32>
      %1207 = arith.mulf %1184, %1206 : vector<1x56x128xf32>
      %1208 = arith.addf %1179, %1207 : vector<1x56x128xf32>
      %1209 = arith.addi %1, %5 : i32
      %c5_i32_217 = arith.constant 5 : i32
      %1210 = arith.addi %1209, %c5_i32_217 : i32
      %c0_218 = arith.constant 0 : index
      %1211 = arith.index_cast %1210 : i32 to index
      %c5_219 = arith.constant 5 : index
      %c0_220 = arith.constant 0 : index
      %1212 = vector.load %arg2[%c0_218, %1211, %c5_219, %c0_220] : memref<1x62x64x128xf32, #tpu.memory_space<vmem>>, vector<1x1x56x128xf32>
      %1213 = vector.shape_cast %1212 : vector<1x1x56x128xf32> to vector<1x56x128xf32>
      %1214 = vector.extract_strided_slice %2 {offsets = [40, 0], sizes = [1, 128], strides = [1, 1]} : vector<49x128xf32> to vector<1x128xf32>
      %1215 = vector.shape_cast %1214 : vector<1x128xf32> to vector<128xf32>
      %1216 = vector.shape_cast %1215 : vector<128xf32> to vector<1x1x128xf32>
      %1217 = vector.broadcast %1216 : vector<1x1x128xf32> to vector<1x56x128xf32>
      %1218 = arith.mulf %1213, %1217 : vector<1x56x128xf32>
      %1219 = arith.addf %1190, %1218 : vector<1x56x128xf32>
      %1220 = vector.extract_strided_slice %2 {offsets = [33, 0], sizes = [1, 128], strides = [1, 1]} : vector<49x128xf32> to vector<1x128xf32>
      %1221 = vector.shape_cast %1220 : vector<1x128xf32> to vector<128xf32>
      %1222 = vector.shape_cast %1221 : vector<128xf32> to vector<1x1x128xf32>
      %1223 = vector.broadcast %1222 : vector<1x1x128xf32> to vector<1x56x128xf32>
      %1224 = arith.mulf %1213, %1223 : vector<1x56x128xf32>
      %1225 = arith.addf %1196, %1224 : vector<1x56x128xf32>
      %1226 = vector.extract_strided_slice %2 {offsets = [26, 0], sizes = [1, 128], strides = [1, 1]} : vector<49x128xf32> to vector<1x128xf32>
      %1227 = vector.shape_cast %1226 : vector<1x128xf32> to vector<128xf32>
      %1228 = vector.shape_cast %1227 : vector<128xf32> to vector<1x1x128xf32>
      %1229 = vector.broadcast %1228 : vector<1x1x128xf32> to vector<1x56x128xf32>
      %1230 = arith.mulf %1213, %1229 : vector<1x56x128xf32>
      %1231 = arith.addf %1202, %1230 : vector<1x56x128xf32>
      %1232 = vector.extract_strided_slice %2 {offsets = [19, 0], sizes = [1, 128], strides = [1, 1]} : vector<49x128xf32> to vector<1x128xf32>
      %1233 = vector.shape_cast %1232 : vector<1x128xf32> to vector<128xf32>
      %1234 = vector.shape_cast %1233 : vector<128xf32> to vector<1x1x128xf32>
      %1235 = vector.broadcast %1234 : vector<1x1x128xf32> to vector<1x56x128xf32>
      %1236 = arith.mulf %1213, %1235 : vector<1x56x128xf32>
      %1237 = arith.addf %1208, %1236 : vector<1x56x128xf32>
      %1238 = arith.addi %1, %5 : i32
      %c6_i32_221 = arith.constant 6 : i32
      %1239 = arith.addi %1238, %c6_i32_221 : i32
      %c0_222 = arith.constant 0 : index
      %1240 = arith.index_cast %1239 : i32 to index
      %c5_223 = arith.constant 5 : index
      %c0_224 = arith.constant 0 : index
      %1241 = vector.load %arg2[%c0_222, %1240, %c5_223, %c0_224] : memref<1x62x64x128xf32, #tpu.memory_space<vmem>>, vector<1x1x56x128xf32>
      %1242 = vector.shape_cast %1241 : vector<1x1x56x128xf32> to vector<1x56x128xf32>
      %1243 = vector.extract_strided_slice %2 {offsets = [47, 0], sizes = [1, 128], strides = [1, 1]} : vector<49x128xf32> to vector<1x128xf32>
      %1244 = vector.shape_cast %1243 : vector<1x128xf32> to vector<128xf32>
      %1245 = vector.shape_cast %1244 : vector<128xf32> to vector<1x1x128xf32>
      %1246 = vector.broadcast %1245 : vector<1x1x128xf32> to vector<1x56x128xf32>
      %1247 = arith.mulf %1242, %1246 : vector<1x56x128xf32>
      %1248 = arith.addf %1219, %1247 : vector<1x56x128xf32>
      %1249 = vector.extract_strided_slice %2 {offsets = [40, 0], sizes = [1, 128], strides = [1, 1]} : vector<49x128xf32> to vector<1x128xf32>
      %1250 = vector.shape_cast %1249 : vector<1x128xf32> to vector<128xf32>
      %1251 = vector.shape_cast %1250 : vector<128xf32> to vector<1x1x128xf32>
      %1252 = vector.broadcast %1251 : vector<1x1x128xf32> to vector<1x56x128xf32>
      %1253 = arith.mulf %1242, %1252 : vector<1x56x128xf32>
      %1254 = arith.addf %1225, %1253 : vector<1x56x128xf32>
      %1255 = vector.extract_strided_slice %2 {offsets = [33, 0], sizes = [1, 128], strides = [1, 1]} : vector<49x128xf32> to vector<1x128xf32>
      %1256 = vector.shape_cast %1255 : vector<1x128xf32> to vector<128xf32>
      %1257 = vector.shape_cast %1256 : vector<128xf32> to vector<1x1x128xf32>
      %1258 = vector.broadcast %1257 : vector<1x1x128xf32> to vector<1x56x128xf32>
      %1259 = arith.mulf %1242, %1258 : vector<1x56x128xf32>
      %1260 = arith.addf %1231, %1259 : vector<1x56x128xf32>
      %1261 = vector.extract_strided_slice %2 {offsets = [26, 0], sizes = [1, 128], strides = [1, 1]} : vector<49x128xf32> to vector<1x128xf32>
      %1262 = vector.shape_cast %1261 : vector<1x128xf32> to vector<128xf32>
      %1263 = vector.shape_cast %1262 : vector<128xf32> to vector<1x1x128xf32>
      %1264 = vector.broadcast %1263 : vector<1x1x128xf32> to vector<1x56x128xf32>
      %1265 = arith.mulf %1242, %1264 : vector<1x56x128xf32>
      %1266 = arith.addf %1237, %1265 : vector<1x56x128xf32>
      %1267 = arith.addi %1, %5 : i32
      %c7_i32_225 = arith.constant 7 : i32
      %1268 = arith.addi %1267, %c7_i32_225 : i32
      %c0_226 = arith.constant 0 : index
      %1269 = arith.index_cast %1268 : i32 to index
      %c5_227 = arith.constant 5 : index
      %c0_228 = arith.constant 0 : index
      %1270 = vector.load %arg2[%c0_226, %1269, %c5_227, %c0_228] : memref<1x62x64x128xf32, #tpu.memory_space<vmem>>, vector<1x1x56x128xf32>
      %1271 = vector.shape_cast %1270 : vector<1x1x56x128xf32> to vector<1x56x128xf32>
      %1272 = vector.extract_strided_slice %2 {offsets = [47, 0], sizes = [1, 128], strides = [1, 1]} : vector<49x128xf32> to vector<1x128xf32>
      %1273 = vector.shape_cast %1272 : vector<1x128xf32> to vector<128xf32>
      %1274 = vector.shape_cast %1273 : vector<128xf32> to vector<1x1x128xf32>
      %1275 = vector.broadcast %1274 : vector<1x1x128xf32> to vector<1x56x128xf32>
      %1276 = arith.mulf %1271, %1275 : vector<1x56x128xf32>
      %1277 = arith.addf %1254, %1276 : vector<1x56x128xf32>
      %1278 = vector.extract_strided_slice %2 {offsets = [40, 0], sizes = [1, 128], strides = [1, 1]} : vector<49x128xf32> to vector<1x128xf32>
      %1279 = vector.shape_cast %1278 : vector<1x128xf32> to vector<128xf32>
      %1280 = vector.shape_cast %1279 : vector<128xf32> to vector<1x1x128xf32>
      %1281 = vector.broadcast %1280 : vector<1x1x128xf32> to vector<1x56x128xf32>
      %1282 = arith.mulf %1271, %1281 : vector<1x56x128xf32>
      %1283 = arith.addf %1260, %1282 : vector<1x56x128xf32>
      %1284 = vector.extract_strided_slice %2 {offsets = [33, 0], sizes = [1, 128], strides = [1, 1]} : vector<49x128xf32> to vector<1x128xf32>
      %1285 = vector.shape_cast %1284 : vector<1x128xf32> to vector<128xf32>
      %1286 = vector.shape_cast %1285 : vector<128xf32> to vector<1x1x128xf32>
      %1287 = vector.broadcast %1286 : vector<1x1x128xf32> to vector<1x56x128xf32>
      %1288 = arith.mulf %1271, %1287 : vector<1x56x128xf32>
      %1289 = arith.addf %1266, %1288 : vector<1x56x128xf32>
      %1290 = arith.addi %1, %5 : i32
      %c8_i32_229 = arith.constant 8 : i32
      %1291 = arith.addi %1290, %c8_i32_229 : i32
      %c0_230 = arith.constant 0 : index
      %1292 = arith.index_cast %1291 : i32 to index
      %c5_231 = arith.constant 5 : index
      %c0_232 = arith.constant 0 : index
      %1293 = vector.load %arg2[%c0_230, %1292, %c5_231, %c0_232] : memref<1x62x64x128xf32, #tpu.memory_space<vmem>>, vector<1x1x56x128xf32>
      %1294 = vector.shape_cast %1293 : vector<1x1x56x128xf32> to vector<1x56x128xf32>
      %1295 = vector.extract_strided_slice %2 {offsets = [47, 0], sizes = [1, 128], strides = [1, 1]} : vector<49x128xf32> to vector<1x128xf32>
      %1296 = vector.shape_cast %1295 : vector<1x128xf32> to vector<128xf32>
      %1297 = vector.shape_cast %1296 : vector<128xf32> to vector<1x1x128xf32>
      %1298 = vector.broadcast %1297 : vector<1x1x128xf32> to vector<1x56x128xf32>
      %1299 = arith.mulf %1294, %1298 : vector<1x56x128xf32>
      %1300 = arith.addf %1283, %1299 : vector<1x56x128xf32>
      %1301 = vector.extract_strided_slice %2 {offsets = [40, 0], sizes = [1, 128], strides = [1, 1]} : vector<49x128xf32> to vector<1x128xf32>
      %1302 = vector.shape_cast %1301 : vector<1x128xf32> to vector<128xf32>
      %1303 = vector.shape_cast %1302 : vector<128xf32> to vector<1x1x128xf32>
      %1304 = vector.broadcast %1303 : vector<1x1x128xf32> to vector<1x56x128xf32>
      %1305 = arith.mulf %1294, %1304 : vector<1x56x128xf32>
      %1306 = arith.addf %1289, %1305 : vector<1x56x128xf32>
      %1307 = arith.addi %1, %5 : i32
      %c9_i32_233 = arith.constant 9 : i32
      %1308 = arith.addi %1307, %c9_i32_233 : i32
      %c0_234 = arith.constant 0 : index
      %1309 = arith.index_cast %1308 : i32 to index
      %c5_235 = arith.constant 5 : index
      %c0_236 = arith.constant 0 : index
      %1310 = vector.load %arg2[%c0_234, %1309, %c5_235, %c0_236] : memref<1x62x64x128xf32, #tpu.memory_space<vmem>>, vector<1x1x56x128xf32>
      %1311 = vector.shape_cast %1310 : vector<1x1x56x128xf32> to vector<1x56x128xf32>
      %1312 = vector.extract_strided_slice %2 {offsets = [47, 0], sizes = [1, 128], strides = [1, 1]} : vector<49x128xf32> to vector<1x128xf32>
      %1313 = vector.shape_cast %1312 : vector<1x128xf32> to vector<128xf32>
      %1314 = vector.shape_cast %1313 : vector<128xf32> to vector<1x1x128xf32>
      %1315 = vector.broadcast %1314 : vector<1x1x128xf32> to vector<1x56x128xf32>
      %1316 = arith.mulf %1311, %1315 : vector<1x56x128xf32>
      %1317 = arith.addf %1306, %1316 : vector<1x56x128xf32>
      %1318 = arith.addi %1, %5 : i32
      %c0_i32_237 = arith.constant 0 : i32
      %1319 = arith.addi %1318, %c0_i32_237 : i32
      %c0_238 = arith.constant 0 : index
      %1320 = arith.index_cast %1319 : i32 to index
      %c6 = arith.constant 6 : index
      %c0_239 = arith.constant 0 : index
      %1321 = vector.load %arg2[%c0_238, %1320, %c6, %c0_239] : memref<1x62x64x128xf32, #tpu.memory_space<vmem>>, vector<1x1x56x128xf32>
      %1322 = vector.shape_cast %1321 : vector<1x1x56x128xf32> to vector<1x56x128xf32>
      %1323 = vector.extract_strided_slice %2 {offsets = [6, 0], sizes = [1, 128], strides = [1, 1]} : vector<49x128xf32> to vector<1x128xf32>
      %1324 = vector.shape_cast %1323 : vector<1x128xf32> to vector<128xf32>
      %1325 = vector.shape_cast %1324 : vector<128xf32> to vector<1x1x128xf32>
      %1326 = vector.broadcast %1325 : vector<1x1x128xf32> to vector<1x56x128xf32>
      %1327 = arith.mulf %1322, %1326 : vector<1x56x128xf32>
      %1328 = arith.addf %1248, %1327 : vector<1x56x128xf32>
      %1329 = arith.addi %1, %5 : i32
      %c1_i32_240 = arith.constant 1 : i32
      %1330 = arith.addi %1329, %c1_i32_240 : i32
      %c0_241 = arith.constant 0 : index
      %1331 = arith.index_cast %1330 : i32 to index
      %c6_242 = arith.constant 6 : index
      %c0_243 = arith.constant 0 : index
      %1332 = vector.load %arg2[%c0_241, %1331, %c6_242, %c0_243] : memref<1x62x64x128xf32, #tpu.memory_space<vmem>>, vector<1x1x56x128xf32>
      %1333 = vector.shape_cast %1332 : vector<1x1x56x128xf32> to vector<1x56x128xf32>
      %1334 = vector.extract_strided_slice %2 {offsets = [13, 0], sizes = [1, 128], strides = [1, 1]} : vector<49x128xf32> to vector<1x128xf32>
      %1335 = vector.shape_cast %1334 : vector<1x128xf32> to vector<128xf32>
      %1336 = vector.shape_cast %1335 : vector<128xf32> to vector<1x1x128xf32>
      %1337 = vector.broadcast %1336 : vector<1x1x128xf32> to vector<1x56x128xf32>
      %1338 = arith.mulf %1333, %1337 : vector<1x56x128xf32>
      %1339 = arith.addf %1328, %1338 : vector<1x56x128xf32>
      %1340 = vector.extract_strided_slice %2 {offsets = [6, 0], sizes = [1, 128], strides = [1, 1]} : vector<49x128xf32> to vector<1x128xf32>
      %1341 = vector.shape_cast %1340 : vector<1x128xf32> to vector<128xf32>
      %1342 = vector.shape_cast %1341 : vector<128xf32> to vector<1x1x128xf32>
      %1343 = vector.broadcast %1342 : vector<1x1x128xf32> to vector<1x56x128xf32>
      %1344 = arith.mulf %1333, %1343 : vector<1x56x128xf32>
      %1345 = arith.addf %1277, %1344 : vector<1x56x128xf32>
      %1346 = arith.addi %1, %5 : i32
      %c2_i32_244 = arith.constant 2 : i32
      %1347 = arith.addi %1346, %c2_i32_244 : i32
      %c0_245 = arith.constant 0 : index
      %1348 = arith.index_cast %1347 : i32 to index
      %c6_246 = arith.constant 6 : index
      %c0_247 = arith.constant 0 : index
      %1349 = vector.load %arg2[%c0_245, %1348, %c6_246, %c0_247] : memref<1x62x64x128xf32, #tpu.memory_space<vmem>>, vector<1x1x56x128xf32>
      %1350 = vector.shape_cast %1349 : vector<1x1x56x128xf32> to vector<1x56x128xf32>
      %1351 = vector.extract_strided_slice %2 {offsets = [20, 0], sizes = [1, 128], strides = [1, 1]} : vector<49x128xf32> to vector<1x128xf32>
      %1352 = vector.shape_cast %1351 : vector<1x128xf32> to vector<128xf32>
      %1353 = vector.shape_cast %1352 : vector<128xf32> to vector<1x1x128xf32>
      %1354 = vector.broadcast %1353 : vector<1x1x128xf32> to vector<1x56x128xf32>
      %1355 = arith.mulf %1350, %1354 : vector<1x56x128xf32>
      %1356 = arith.addf %1339, %1355 : vector<1x56x128xf32>
      %1357 = vector.extract_strided_slice %2 {offsets = [13, 0], sizes = [1, 128], strides = [1, 1]} : vector<49x128xf32> to vector<1x128xf32>
      %1358 = vector.shape_cast %1357 : vector<1x128xf32> to vector<128xf32>
      %1359 = vector.shape_cast %1358 : vector<128xf32> to vector<1x1x128xf32>
      %1360 = vector.broadcast %1359 : vector<1x1x128xf32> to vector<1x56x128xf32>
      %1361 = arith.mulf %1350, %1360 : vector<1x56x128xf32>
      %1362 = arith.addf %1345, %1361 : vector<1x56x128xf32>
      %1363 = vector.extract_strided_slice %2 {offsets = [6, 0], sizes = [1, 128], strides = [1, 1]} : vector<49x128xf32> to vector<1x128xf32>
      %1364 = vector.shape_cast %1363 : vector<1x128xf32> to vector<128xf32>
      %1365 = vector.shape_cast %1364 : vector<128xf32> to vector<1x1x128xf32>
      %1366 = vector.broadcast %1365 : vector<1x1x128xf32> to vector<1x56x128xf32>
      %1367 = arith.mulf %1350, %1366 : vector<1x56x128xf32>
      %1368 = arith.addf %1300, %1367 : vector<1x56x128xf32>
      %1369 = arith.addi %1, %5 : i32
      %c3_i32_248 = arith.constant 3 : i32
      %1370 = arith.addi %1369, %c3_i32_248 : i32
      %c0_249 = arith.constant 0 : index
      %1371 = arith.index_cast %1370 : i32 to index
      %c6_250 = arith.constant 6 : index
      %c0_251 = arith.constant 0 : index
      %1372 = vector.load %arg2[%c0_249, %1371, %c6_250, %c0_251] : memref<1x62x64x128xf32, #tpu.memory_space<vmem>>, vector<1x1x56x128xf32>
      %1373 = vector.shape_cast %1372 : vector<1x1x56x128xf32> to vector<1x56x128xf32>
      %1374 = vector.extract_strided_slice %2 {offsets = [27, 0], sizes = [1, 128], strides = [1, 1]} : vector<49x128xf32> to vector<1x128xf32>
      %1375 = vector.shape_cast %1374 : vector<1x128xf32> to vector<128xf32>
      %1376 = vector.shape_cast %1375 : vector<128xf32> to vector<1x1x128xf32>
      %1377 = vector.broadcast %1376 : vector<1x1x128xf32> to vector<1x56x128xf32>
      %1378 = arith.mulf %1373, %1377 : vector<1x56x128xf32>
      %1379 = arith.addf %1356, %1378 : vector<1x56x128xf32>
      %1380 = vector.extract_strided_slice %2 {offsets = [20, 0], sizes = [1, 128], strides = [1, 1]} : vector<49x128xf32> to vector<1x128xf32>
      %1381 = vector.shape_cast %1380 : vector<1x128xf32> to vector<128xf32>
      %1382 = vector.shape_cast %1381 : vector<128xf32> to vector<1x1x128xf32>
      %1383 = vector.broadcast %1382 : vector<1x1x128xf32> to vector<1x56x128xf32>
      %1384 = arith.mulf %1373, %1383 : vector<1x56x128xf32>
      %1385 = arith.addf %1362, %1384 : vector<1x56x128xf32>
      %1386 = vector.extract_strided_slice %2 {offsets = [13, 0], sizes = [1, 128], strides = [1, 1]} : vector<49x128xf32> to vector<1x128xf32>
      %1387 = vector.shape_cast %1386 : vector<1x128xf32> to vector<128xf32>
      %1388 = vector.shape_cast %1387 : vector<128xf32> to vector<1x1x128xf32>
      %1389 = vector.broadcast %1388 : vector<1x1x128xf32> to vector<1x56x128xf32>
      %1390 = arith.mulf %1373, %1389 : vector<1x56x128xf32>
      %1391 = arith.addf %1368, %1390 : vector<1x56x128xf32>
      %1392 = vector.extract_strided_slice %2 {offsets = [6, 0], sizes = [1, 128], strides = [1, 1]} : vector<49x128xf32> to vector<1x128xf32>
      %1393 = vector.shape_cast %1392 : vector<1x128xf32> to vector<128xf32>
      %1394 = vector.shape_cast %1393 : vector<128xf32> to vector<1x1x128xf32>
      %1395 = vector.broadcast %1394 : vector<1x1x128xf32> to vector<1x56x128xf32>
      %1396 = arith.mulf %1373, %1395 : vector<1x56x128xf32>
      %1397 = arith.addf %1317, %1396 : vector<1x56x128xf32>
      %1398 = arith.addi %1, %5 : i32
      %c4_i32_252 = arith.constant 4 : i32
      %1399 = arith.addi %1398, %c4_i32_252 : i32
      %c0_253 = arith.constant 0 : index
      %1400 = arith.index_cast %1399 : i32 to index
      %c6_254 = arith.constant 6 : index
      %c0_255 = arith.constant 0 : index
      %1401 = vector.load %arg2[%c0_253, %1400, %c6_254, %c0_255] : memref<1x62x64x128xf32, #tpu.memory_space<vmem>>, vector<1x1x56x128xf32>
      %1402 = vector.shape_cast %1401 : vector<1x1x56x128xf32> to vector<1x56x128xf32>
      %1403 = vector.extract_strided_slice %2 {offsets = [34, 0], sizes = [1, 128], strides = [1, 1]} : vector<49x128xf32> to vector<1x128xf32>
      %1404 = vector.shape_cast %1403 : vector<1x128xf32> to vector<128xf32>
      %1405 = vector.shape_cast %1404 : vector<128xf32> to vector<1x1x128xf32>
      %1406 = vector.broadcast %1405 : vector<1x1x128xf32> to vector<1x56x128xf32>
      %1407 = arith.mulf %1402, %1406 : vector<1x56x128xf32>
      %1408 = arith.addf %1379, %1407 : vector<1x56x128xf32>
      %1409 = vector.extract_strided_slice %2 {offsets = [27, 0], sizes = [1, 128], strides = [1, 1]} : vector<49x128xf32> to vector<1x128xf32>
      %1410 = vector.shape_cast %1409 : vector<1x128xf32> to vector<128xf32>
      %1411 = vector.shape_cast %1410 : vector<128xf32> to vector<1x1x128xf32>
      %1412 = vector.broadcast %1411 : vector<1x1x128xf32> to vector<1x56x128xf32>
      %1413 = arith.mulf %1402, %1412 : vector<1x56x128xf32>
      %1414 = arith.addf %1385, %1413 : vector<1x56x128xf32>
      %1415 = vector.extract_strided_slice %2 {offsets = [20, 0], sizes = [1, 128], strides = [1, 1]} : vector<49x128xf32> to vector<1x128xf32>
      %1416 = vector.shape_cast %1415 : vector<1x128xf32> to vector<128xf32>
      %1417 = vector.shape_cast %1416 : vector<128xf32> to vector<1x1x128xf32>
      %1418 = vector.broadcast %1417 : vector<1x1x128xf32> to vector<1x56x128xf32>
      %1419 = arith.mulf %1402, %1418 : vector<1x56x128xf32>
      %1420 = arith.addf %1391, %1419 : vector<1x56x128xf32>
      %1421 = vector.extract_strided_slice %2 {offsets = [13, 0], sizes = [1, 128], strides = [1, 1]} : vector<49x128xf32> to vector<1x128xf32>
      %1422 = vector.shape_cast %1421 : vector<1x128xf32> to vector<128xf32>
      %1423 = vector.shape_cast %1422 : vector<128xf32> to vector<1x1x128xf32>
      %1424 = vector.broadcast %1423 : vector<1x1x128xf32> to vector<1x56x128xf32>
      %1425 = arith.mulf %1402, %1424 : vector<1x56x128xf32>
      %1426 = arith.addf %1397, %1425 : vector<1x56x128xf32>
      %1427 = arith.addi %1, %5 : i32
      %c5_i32_256 = arith.constant 5 : i32
      %1428 = arith.addi %1427, %c5_i32_256 : i32
      %c0_257 = arith.constant 0 : index
      %1429 = arith.index_cast %1428 : i32 to index
      %c6_258 = arith.constant 6 : index
      %c0_259 = arith.constant 0 : index
      %1430 = vector.load %arg2[%c0_257, %1429, %c6_258, %c0_259] : memref<1x62x64x128xf32, #tpu.memory_space<vmem>>, vector<1x1x56x128xf32>
      %1431 = vector.shape_cast %1430 : vector<1x1x56x128xf32> to vector<1x56x128xf32>
      %1432 = vector.extract_strided_slice %2 {offsets = [41, 0], sizes = [1, 128], strides = [1, 1]} : vector<49x128xf32> to vector<1x128xf32>
      %1433 = vector.shape_cast %1432 : vector<1x128xf32> to vector<128xf32>
      %1434 = vector.shape_cast %1433 : vector<128xf32> to vector<1x1x128xf32>
      %1435 = vector.broadcast %1434 : vector<1x1x128xf32> to vector<1x56x128xf32>
      %1436 = arith.mulf %1431, %1435 : vector<1x56x128xf32>
      %1437 = arith.addf %1408, %1436 : vector<1x56x128xf32>
      %1438 = vector.extract_strided_slice %2 {offsets = [34, 0], sizes = [1, 128], strides = [1, 1]} : vector<49x128xf32> to vector<1x128xf32>
      %1439 = vector.shape_cast %1438 : vector<1x128xf32> to vector<128xf32>
      %1440 = vector.shape_cast %1439 : vector<128xf32> to vector<1x1x128xf32>
      %1441 = vector.broadcast %1440 : vector<1x1x128xf32> to vector<1x56x128xf32>
      %1442 = arith.mulf %1431, %1441 : vector<1x56x128xf32>
      %1443 = arith.addf %1414, %1442 : vector<1x56x128xf32>
      %1444 = vector.extract_strided_slice %2 {offsets = [27, 0], sizes = [1, 128], strides = [1, 1]} : vector<49x128xf32> to vector<1x128xf32>
      %1445 = vector.shape_cast %1444 : vector<1x128xf32> to vector<128xf32>
      %1446 = vector.shape_cast %1445 : vector<128xf32> to vector<1x1x128xf32>
      %1447 = vector.broadcast %1446 : vector<1x1x128xf32> to vector<1x56x128xf32>
      %1448 = arith.mulf %1431, %1447 : vector<1x56x128xf32>
      %1449 = arith.addf %1420, %1448 : vector<1x56x128xf32>
      %1450 = vector.extract_strided_slice %2 {offsets = [20, 0], sizes = [1, 128], strides = [1, 1]} : vector<49x128xf32> to vector<1x128xf32>
      %1451 = vector.shape_cast %1450 : vector<1x128xf32> to vector<128xf32>
      %1452 = vector.shape_cast %1451 : vector<128xf32> to vector<1x1x128xf32>
      %1453 = vector.broadcast %1452 : vector<1x1x128xf32> to vector<1x56x128xf32>
      %1454 = arith.mulf %1431, %1453 : vector<1x56x128xf32>
      %1455 = arith.addf %1426, %1454 : vector<1x56x128xf32>
      %1456 = arith.addi %1, %5 : i32
      %c6_i32_260 = arith.constant 6 : i32
      %1457 = arith.addi %1456, %c6_i32_260 : i32
      %c0_261 = arith.constant 0 : index
      %1458 = arith.index_cast %1457 : i32 to index
      %c6_262 = arith.constant 6 : index
      %c0_263 = arith.constant 0 : index
      %1459 = vector.load %arg2[%c0_261, %1458, %c6_262, %c0_263] : memref<1x62x64x128xf32, #tpu.memory_space<vmem>>, vector<1x1x56x128xf32>
      %1460 = vector.shape_cast %1459 : vector<1x1x56x128xf32> to vector<1x56x128xf32>
      %1461 = vector.extract_strided_slice %2 {offsets = [48, 0], sizes = [1, 128], strides = [1, 1]} : vector<49x128xf32> to vector<1x128xf32>
      %1462 = vector.shape_cast %1461 : vector<1x128xf32> to vector<128xf32>
      %1463 = vector.shape_cast %1462 : vector<128xf32> to vector<1x1x128xf32>
      %1464 = vector.broadcast %1463 : vector<1x1x128xf32> to vector<1x56x128xf32>
      %1465 = arith.mulf %1460, %1464 : vector<1x56x128xf32>
      %1466 = arith.addf %1437, %1465 : vector<1x56x128xf32>
      %1467 = vector.extract_strided_slice %2 {offsets = [41, 0], sizes = [1, 128], strides = [1, 1]} : vector<49x128xf32> to vector<1x128xf32>
      %1468 = vector.shape_cast %1467 : vector<1x128xf32> to vector<128xf32>
      %1469 = vector.shape_cast %1468 : vector<128xf32> to vector<1x1x128xf32>
      %1470 = vector.broadcast %1469 : vector<1x1x128xf32> to vector<1x56x128xf32>
      %1471 = arith.mulf %1460, %1470 : vector<1x56x128xf32>
      %1472 = arith.addf %1443, %1471 : vector<1x56x128xf32>
      %1473 = vector.extract_strided_slice %2 {offsets = [34, 0], sizes = [1, 128], strides = [1, 1]} : vector<49x128xf32> to vector<1x128xf32>
      %1474 = vector.shape_cast %1473 : vector<1x128xf32> to vector<128xf32>
      %1475 = vector.shape_cast %1474 : vector<128xf32> to vector<1x1x128xf32>
      %1476 = vector.broadcast %1475 : vector<1x1x128xf32> to vector<1x56x128xf32>
      %1477 = arith.mulf %1460, %1476 : vector<1x56x128xf32>
      %1478 = arith.addf %1449, %1477 : vector<1x56x128xf32>
      %1479 = vector.extract_strided_slice %2 {offsets = [27, 0], sizes = [1, 128], strides = [1, 1]} : vector<49x128xf32> to vector<1x128xf32>
      %1480 = vector.shape_cast %1479 : vector<1x128xf32> to vector<128xf32>
      %1481 = vector.shape_cast %1480 : vector<128xf32> to vector<1x1x128xf32>
      %1482 = vector.broadcast %1481 : vector<1x1x128xf32> to vector<1x56x128xf32>
      %1483 = arith.mulf %1460, %1482 : vector<1x56x128xf32>
      %1484 = arith.addf %1455, %1483 : vector<1x56x128xf32>
      %1485 = arith.addi %1, %5 : i32
      %c7_i32_264 = arith.constant 7 : i32
      %1486 = arith.addi %1485, %c7_i32_264 : i32
      %c0_265 = arith.constant 0 : index
      %1487 = arith.index_cast %1486 : i32 to index
      %c6_266 = arith.constant 6 : index
      %c0_267 = arith.constant 0 : index
      %1488 = vector.load %arg2[%c0_265, %1487, %c6_266, %c0_267] : memref<1x62x64x128xf32, #tpu.memory_space<vmem>>, vector<1x1x56x128xf32>
      %1489 = vector.shape_cast %1488 : vector<1x1x56x128xf32> to vector<1x56x128xf32>
      %1490 = vector.extract_strided_slice %2 {offsets = [48, 0], sizes = [1, 128], strides = [1, 1]} : vector<49x128xf32> to vector<1x128xf32>
      %1491 = vector.shape_cast %1490 : vector<1x128xf32> to vector<128xf32>
      %1492 = vector.shape_cast %1491 : vector<128xf32> to vector<1x1x128xf32>
      %1493 = vector.broadcast %1492 : vector<1x1x128xf32> to vector<1x56x128xf32>
      %1494 = arith.mulf %1489, %1493 : vector<1x56x128xf32>
      %1495 = arith.addf %1472, %1494 : vector<1x56x128xf32>
      %1496 = vector.extract_strided_slice %2 {offsets = [41, 0], sizes = [1, 128], strides = [1, 1]} : vector<49x128xf32> to vector<1x128xf32>
      %1497 = vector.shape_cast %1496 : vector<1x128xf32> to vector<128xf32>
      %1498 = vector.shape_cast %1497 : vector<128xf32> to vector<1x1x128xf32>
      %1499 = vector.broadcast %1498 : vector<1x1x128xf32> to vector<1x56x128xf32>
      %1500 = arith.mulf %1489, %1499 : vector<1x56x128xf32>
      %1501 = arith.addf %1478, %1500 : vector<1x56x128xf32>
      %1502 = vector.extract_strided_slice %2 {offsets = [34, 0], sizes = [1, 128], strides = [1, 1]} : vector<49x128xf32> to vector<1x128xf32>
      %1503 = vector.shape_cast %1502 : vector<1x128xf32> to vector<128xf32>
      %1504 = vector.shape_cast %1503 : vector<128xf32> to vector<1x1x128xf32>
      %1505 = vector.broadcast %1504 : vector<1x1x128xf32> to vector<1x56x128xf32>
      %1506 = arith.mulf %1489, %1505 : vector<1x56x128xf32>
      %1507 = arith.addf %1484, %1506 : vector<1x56x128xf32>
      %1508 = arith.addi %1, %5 : i32
      %c8_i32_268 = arith.constant 8 : i32
      %1509 = arith.addi %1508, %c8_i32_268 : i32
      %c0_269 = arith.constant 0 : index
      %1510 = arith.index_cast %1509 : i32 to index
      %c6_270 = arith.constant 6 : index
      %c0_271 = arith.constant 0 : index
      %1511 = vector.load %arg2[%c0_269, %1510, %c6_270, %c0_271] : memref<1x62x64x128xf32, #tpu.memory_space<vmem>>, vector<1x1x56x128xf32>
      %1512 = vector.shape_cast %1511 : vector<1x1x56x128xf32> to vector<1x56x128xf32>
      %1513 = vector.extract_strided_slice %2 {offsets = [48, 0], sizes = [1, 128], strides = [1, 1]} : vector<49x128xf32> to vector<1x128xf32>
      %1514 = vector.shape_cast %1513 : vector<1x128xf32> to vector<128xf32>
      %1515 = vector.shape_cast %1514 : vector<128xf32> to vector<1x1x128xf32>
      %1516 = vector.broadcast %1515 : vector<1x1x128xf32> to vector<1x56x128xf32>
      %1517 = arith.mulf %1512, %1516 : vector<1x56x128xf32>
      %1518 = arith.addf %1501, %1517 : vector<1x56x128xf32>
      %1519 = vector.extract_strided_slice %2 {offsets = [41, 0], sizes = [1, 128], strides = [1, 1]} : vector<49x128xf32> to vector<1x128xf32>
      %1520 = vector.shape_cast %1519 : vector<1x128xf32> to vector<128xf32>
      %1521 = vector.shape_cast %1520 : vector<128xf32> to vector<1x1x128xf32>
      %1522 = vector.broadcast %1521 : vector<1x1x128xf32> to vector<1x56x128xf32>
      %1523 = arith.mulf %1512, %1522 : vector<1x56x128xf32>
      %1524 = arith.addf %1507, %1523 : vector<1x56x128xf32>
      %1525 = arith.addi %1, %5 : i32
      %c9_i32_272 = arith.constant 9 : i32
      %1526 = arith.addi %1525, %c9_i32_272 : i32
      %c0_273 = arith.constant 0 : index
      %1527 = arith.index_cast %1526 : i32 to index
      %c6_274 = arith.constant 6 : index
      %c0_275 = arith.constant 0 : index
      %1528 = vector.load %arg2[%c0_273, %1527, %c6_274, %c0_275] : memref<1x62x64x128xf32, #tpu.memory_space<vmem>>, vector<1x1x56x128xf32>
      %1529 = vector.shape_cast %1528 : vector<1x1x56x128xf32> to vector<1x56x128xf32>
      %1530 = vector.extract_strided_slice %2 {offsets = [48, 0], sizes = [1, 128], strides = [1, 1]} : vector<49x128xf32> to vector<1x128xf32>
      %1531 = vector.shape_cast %1530 : vector<1x128xf32> to vector<128xf32>
      %1532 = vector.shape_cast %1531 : vector<128xf32> to vector<1x1x128xf32>
      %1533 = vector.broadcast %1532 : vector<1x1x128xf32> to vector<1x56x128xf32>
      %1534 = arith.mulf %1529, %1533 : vector<1x56x128xf32>
      %1535 = arith.addf %1524, %1534 : vector<1x56x128xf32>
      %1536 = vector.shape_cast %3 : vector<1x128xf32> to vector<1x1x128xf32>
      %1537 = vector.broadcast %1536 : vector<1x1x128xf32> to vector<1x56x128xf32>
      %1538 = arith.addf %1466, %1537 : vector<1x56x128xf32>
      %c0_i32_276 = arith.constant 0 : i32
      %1539 = arith.addi %5, %c0_i32_276 : i32
      %c0_277 = arith.constant 0 : index
      %1540 = arith.index_cast %1539 : i32 to index
      %c0_278 = arith.constant 0 : index
      %c0_279 = arith.constant 0 : index
      %1541 = vector.load %arg5[%c0_277, %1540, %c0_278, %c0_279] : memref<1x8x56x128xf32, #tpu.memory_space<vmem>>, vector<1x1x56x128xf32>
      %1542 = vector.shape_cast %1541 : vector<1x1x56x128xf32> to vector<1x56x128xf32>
      %1543 = vector.shape_cast %1538 : vector<1x56x128xf32> to vector<1x1x56x128xf32>
      tpu.vector_store %arg5[%c0_277, %1540, %c0_278, %c0_279], %1543 {strides = array<i32>} : memref<1x8x56x128xf32, #tpu.memory_space<vmem>>, vector<1x1x56x128xf32>,
      %1544 = vector.shape_cast %3 : vector<1x128xf32> to vector<1x1x128xf32>
      %1545 = vector.broadcast %1544 : vector<1x1x128xf32> to vector<1x56x128xf32>
      %1546 = arith.addf %1495, %1545 : vector<1x56x128xf32>
      %c1_i32_280 = arith.constant 1 : i32
      %1547 = arith.addi %5, %c1_i32_280 : i32
      %c0_281 = arith.constant 0 : index
      %1548 = arith.index_cast %1547 : i32 to index
      %c0_282 = arith.constant 0 : index
      %c0_283 = arith.constant 0 : index
      %1549 = vector.load %arg5[%c0_281, %1548, %c0_282, %c0_283] : memref<1x8x56x128xf32, #tpu.memory_space<vmem>>, vector<1x1x56x128xf32>
      %1550 = vector.shape_cast %1549 : vector<1x1x56x128xf32> to vector<1x56x128xf32>
      %1551 = vector.shape_cast %1546 : vector<1x56x128xf32> to vector<1x1x56x128xf32>
      tpu.vector_store %arg5[%c0_281, %1548, %c0_282, %c0_283], %1551 {strides = array<i32>} : memref<1x8x56x128xf32, #tpu.memory_space<vmem>>, vector<1x1x56x128xf32>,
      %1552 = vector.shape_cast %3 : vector<1x128xf32> to vector<1x1x128xf32>
      %1553 = vector.broadcast %1552 : vector<1x1x128xf32> to vector<1x56x128xf32>
      %1554 = arith.addf %1518, %1553 : vector<1x56x128xf32>
      %c2_i32_284 = arith.constant 2 : i32
      %1555 = arith.addi %5, %c2_i32_284 : i32
      %c0_285 = arith.constant 0 : index
      %1556 = arith.index_cast %1555 : i32 to index
      %c0_286 = arith.constant 0 : index
      %c0_287 = arith.constant 0 : index
      %1557 = vector.load %arg5[%c0_285, %1556, %c0_286, %c0_287] : memref<1x8x56x128xf32, #tpu.memory_space<vmem>>, vector<1x1x56x128xf32>
      %1558 = vector.shape_cast %1557 : vector<1x1x56x128xf32> to vector<1x56x128xf32>
      %1559 = vector.shape_cast %1554 : vector<1x56x128xf32> to vector<1x1x56x128xf32>
      tpu.vector_store %arg5[%c0_285, %1556, %c0_286, %c0_287], %1559 {strides = array<i32>} : memref<1x8x56x128xf32, #tpu.memory_space<vmem>>, vector<1x1x56x128xf32>,
      %1560 = vector.shape_cast %3 : vector<1x128xf32> to vector<1x1x128xf32>
      %1561 = vector.broadcast %1560 : vector<1x1x128xf32> to vector<1x56x128xf32>
      %1562 = arith.addf %1535, %1561 : vector<1x56x128xf32>
      %c3_i32_288 = arith.constant 3 : i32
      %1563 = arith.addi %5, %c3_i32_288 : i32
      %c0_289 = arith.constant 0 : index
      %1564 = arith.index_cast %1563 : i32 to index
      %c0_290 = arith.constant 0 : index
      %c0_291 = arith.constant 0 : index
      %1565 = vector.load %arg5[%c0_289, %1564, %c0_290, %c0_291] : memref<1x8x56x128xf32, #tpu.memory_space<vmem>>, vector<1x1x56x128xf32>
      %1566 = vector.shape_cast %1565 : vector<1x1x56x128xf32> to vector<1x56x128xf32>
      %1567 = vector.shape_cast %1562 : vector<1x56x128xf32> to vector<1x1x56x128xf32>
      tpu.vector_store %arg5[%c0_289, %1564, %c0_290, %c0_291], %1567 {strides = array<i32>} : memref<1x8x56x128xf32, #tpu.memory_space<vmem>>, vector<1x1x56x128xf32>,
    }
    %c2_i32_3 = arith.constant 2 : i32
    return
  }
  func.func @transform_0(%arg0: i32, %arg1: i32) -> (i32, i32, i32, i32) {
    %c0_i32 = arith.constant 0 : i32
    %c0_i32_0 = arith.constant 0 : i32
    %c0_i32_1 = arith.constant 0 : i32
    %c0_i32_2 = arith.constant 0 : i32
    return %arg0, %c0_i32, %c0_i32_0, %c0_i32_1 : i32, i32, i32, i32
  }
  func.func @transform_1(%arg0: i32, %arg1: i32) -> (i32, i32) {
    %c0_i32 = arith.constant 0 : i32
    %c0_i32_0 = arith.constant 0 : i32
    %c0_i32_1 = arith.constant 0 : i32
    return %c0_i32, %c0_i32_0 : i32, i32
  }
  func.func @transform_2(%arg0: i32, %arg1: i32) -> (i32, i32) {
    %c0_i32 = arith.constant 0 : i32
    %c0_i32_0 = arith.constant 0 : i32
    %c0_i32_1 = arith.constant 0 : i32
    return %c0_i32, %c0_i32_0 : i32, i32
  }
  func.func @transform_3(%arg0: i32, %arg1: i32) -> (i32, i32, i32, i32) {
    %c0_i32 = arith.constant 0 : i32
    %c0_i32_0 = arith.constant 0 : i32
    %c0_i32_1 = arith.constant 0 : i32
    return %arg0, %arg1, %c0_i32, %c0_i32_0 : i32, i32, i32, i32
  }
}

</mosaic_0001>

<bundles_post_ra>
// kernel: tpu_custom_call.1
= control target key start
LH: loop header
LB: loop body
LE: loop exit
PB: predicated region body
PF: predicated region fallthrough
CT: control target
= control target key end

     0   :  { %s9533_s0 = inlined_call_operand.hbm [shape: f32[2,62,64,128], index: 0, kind: input, shape index: {}]   ;;  %s9534_s1 = inlined_call_operand.hbm [shape: f32[49,128], index: 1, kind: input, shape index: {}]   ;;  %s9535_s2 = inlined_call_operand.hbm [shape: f32[1,128], index: 2, kind: input, shape index: {}]   ;;  %s9536_s3 = inlined_call_operand.hbm [shape: f32[2,56,56,128], index: 3, kind: output, shape index: {}]  }
   0x1   :  { %9577 = sst [smem:[#allocation34_spill]] %s9534_s1 }
   0x2   :  { %9578 = sst [smem:[#allocation35_spill]] %s9535_s2 }
   0x3   :  { %9579 = sst [smem:[#allocation36_spill]] %s9536_s3 }
   0x4   :  { %8 = vsyncpa [#allocation3], 0 }
   0x5   :  { %10 = vsyncpa [#allocation3 + $0x1], 0 }
   0x6   :  { %11 = vsyncpa [#allocation6], 0 }
   0x7   :  { %12 = vsyncpa [#allocation4], 0 }
   0x8   :  { %14 = vsyncpa [#allocation4 + $0x1], 0  ;;  %s4880_s12 = smov 0   ;;  %s4882_s13 = smov 0  }
   0x9   :  { %s4884_s14 = smov 0   ;;  %s4886_s15 = smov 0  }
   0xa   :  { %s4888_s16 = smov 0   ;;  %s4890_s17 = smov 0  }
   0xb   :  { %s4892_s18 = smov 0   ;;  %s4894_s19 = smov 0  }
   0xc   :  { %s4896_s20 = smov 0   ;;  %s4898_s21 = smov 0  }
   0xd   :  { %s4900_s22 = smov 0  }
   0xe LB: > { %9580 = sst [smem:[#allocation12_spill]] %s4806_s12  ;;  %s3981_s23 = sadd.s32 4294967295, %s4846_s22   ;;  %s4846_s22 = sphi %s4900_s22, %s20_s22   ;;  %s4842_s21 = sphi %s4898_s21, %s9689_s21   ;;  %s4838_s20 = sphi %s4896_s20, %s9688_s20   ;;  %s4834_s19 = sphi %s4894_s19, %s9687_s19   ;;  %s4830_s18 = sphi %s4892_s18, %s9678_s18   ;;  %s4826_s17 = sphi %s4890_s17, %s9686_s17   ;;  %s4822_s16 = sphi %s4888_s16, %s9685_s16   ;;  %s4818_s15 = sphi %s4886_s15, %s9684_s15   ;;  %s4814_s14 = sphi %s4884_s14, %s9683_s14   ;;  %s4810_s13 = sphi %s4882_s13, %s9682_s13   ;;  %s4806_s12 = sphi %s4880_s12, %s9681_s12  }
   0xf   : > { %9581 = sst [smem:[#allocation13_spill]] %s4838_s20  ;;  %s3982_s24 = sadd.s32 4294967294, %s4846_s22  }
  0x10   : > { %p52_p0 = scmp.ne.s32.totalorder %s4822_s16, %s4818_s15  ;;  %p4936_p1 = scmp.eq.s32.totalorder %s3981_s23, 0 }
  0x11   : > { %p119_p2 = scmp.ne.s32.totalorder %s4814_s14, %s4810_s13  ;;  %p120_p4 = scmp.eq.s32.totalorder %s3981_s23, 13 }
  0x12   : > { %p4945_p3 = por %p4936_p1, %p52_p0  ;;  %p125_p5 = scmp.ne.s32.totalorder %s4810_s13, %s4806_s12 }
  0x13   : > { %p126_p6 = scmp.eq.s32.totalorder %s3982_s24, 13  ;;  %p4951_p7 = por %p120_p4, %p119_p2 }
  0x14   : > { %p3983_p8 = scmp.ge.s32.totalorder %s4846_s22, 1  ;;  %p133_p10 = scmp.lt.s32.totalorder %s4846_s22, 15 }
  0x15   : > { %p4956_p9 = por %p126_p6, %p125_p5  ;;  %s4852_s4 = smov [#allocation5]  }
  0x16   : > { %p4961_p11 = pnand %p3983_p8, %p133_p10  ;;  %s145_s5 = sshll.u32 %s4852_s4, 4  ;;  %s146_s5 = int_to_ptr.vmem [resolvable:$true] %s145_s5 }
  0x17   : > { %s9585_s29 = scalar_select %p4956_p9, 1, 0 }
  0x18   : > { %p4515_p12 = pneg %p4961_p11  ;;  %s4853_s7 = smov [#allocation7]  }
  0x19   : > { %9586 = sst [smem:[#allocation14_spill]] %s9585_s29  ;;  %s159_s8 = sshll.u32 %s4853_s7, 4  ;;  %s160_s8 = int_to_ptr.vmem [resolvable:$true] %s159_s8 }
  0x1a   : > { %p4969_p13 = pnand %p4515_p12, %p4936_p1  ;;  %s4649_s9 = scalar_lea.vmem %s146_s5, 896 }
  0x1b   : > { %p4650_p2 = scmp.ne.s32.totalorder %s146_s5, %s4649_s9  ;;  %p4657_p6 = scmp.lt.s32.totalorder %s146_s5, %s146_s5 }
  0x1c   : > { %p4640_p0 = pneg %p4969_p13  ;;  %p4658_p8 = scmp.lt.s32.totalorder %s4649_s9, %s4649_s9 }
  0x1e   : > { %p4652_p4 = pnand %p4650_p2, %p4640_p0  ;;  %p4659_p10 = por %p4658_p8, %p4657_p6 }
  0x20   : > { %p4653_p5 = pneg %p4652_p4 }
  0x22   : > { %p4660_p12 = pnand %p4659_p10, %p4653_p5 }
  0x24   : > { %4663 = shalt.err (!%p4660_p12)
}
  0x25   : > { %s9537_s10 = smov 128   ;;  %s9538_s11 = smov 8  }
  0x26   : > { %s9589_s1 = sld [smem:[#allocation34_spill]]  ;;  %s4675_s24 = scalar_lea.vmem %s160_s8, 16 }
  0x27   : > { %p4676_p2 = scmp.ne.s32.totalorder %s160_s8, %s4675_s24  ;;  %s4682_s4 = scalar_lea.vmem %s160_s8, 32 }
  0x28   : > { %p4683_p5 = scmp.lt.s32.totalorder %s160_s8, %s160_s8  ;;  %p4684_p8 = scmp.lt.s32.totalorder %s4682_s4, %s4675_s24 }
  0x29   : > { %p4678_p4 = pnand %p4676_p2, %p4640_p0 }
  0x2a   : > { %p4685_p10 = por %p4684_p8, %p4683_p5 }
  0x2b   : > { %p4679_p6 = pneg %p4678_p4 }
  0x2c   : > { %4518 = dma.hbm_to_vmem [thread:$0]  (!%p4969_p13), %s9589_s1, 896, %s146_s5, [#allocation6], %s9537_s10, %s9537_s10, %s9538_s11  }
  0x2d   : > { %p4686_p12 = pnand %p4685_p10, %p4679_p6 }
  0x2f   : > { %4689 = shalt.err (!%p4686_p12)
}
  0x30   : > { %s9590_s2 = sld [smem:[#allocation35_spill]]  ;;  %s29_s5 = sadd.s32 1, %s4838_s20 }
  0x31   : > { %s32_s15 = sadd.s32 1, %s4842_s21  ;;  %p30_p0 = scmp.ge.s32.totalorder %s29_s5, 7 }
  0x32   : > { %s39_s6 = sadd.s32 1, %s4826_s17  ;;  %p46_p2 = scmp.ne.s32.totalorder %s4826_s17, %s4822_s16 }
  0x33   : > { %p47_p4 = scmp.eq.s32.totalorder %s4846_s22, 0  ;;  %s9691_s5 = smov (%p30_p0, %s29_s5), 0 }
  0x34   : > { %9591 = sst [smem:[#allocation15_spill]] %s9691_s5  ;;  %s9693_s15 = smov (!%p30_p0, %s32_s15), %s4842_s21 }
  0x35   : > { %p5003_p6 = por %p47_p4, %p46_p2  ;;  %s105_s24 = ssub.s32 %s4838_s20, %s9691_s5 }
  0x36   : > { %4521 = dma.hbm_to_vmem [thread:$0]  (!%p4969_p13), %s9590_s2, 16, %s160_s8, [#allocation6]  }
  0x37   : > { %p34_p13 = scmp.ge.s32.totalorder %s9693_s15, 2  ;;  %p4532_p5 = scmp.lt.s32.totalorder %s4846_s22, 14 }
  0x38   : > { %s170_s8 = sand.u32 1, %s4826_s17   ;;  %s4498_s4 = smul.u32 63488, %s4842_s21 }
  0x39   : > { %s9695_s15 = smov (%p34_p13, %s9693_s15), 0  ;;  %s4497_s7 = smul.u32 3968, %s170_s8 }
  0x3a   : > { %s36_s9 = ssub.s32 %s4842_s21, %s9695_s15  ;;  %s5019_s26 = scalar_lea.hbm %s9533_s0, %s4498_s4 }
  0x3b   : > { %p37_p8 = scmp.eq.s32.totalorder %s36_s9, 0  ;;  %s106_s1 = sor.u32 %s105_s24, %s36_s9 }
  0x3c   : > { %p107_p10 = scmp.eq.s32.totalorder %s106_s1, 0  ;;  %s9593_s5 = sadd.s32 1, %s4814_s14 }
  0x3d   : > { %s5022_s2 = scalar_select %p37_p8, %s4826_s17, %s39_s6  }
  0x3e   : > { %s5027_s20 = scalar_select %p107_p10, %s4814_s14, %s9593_s5  }
  0x3f   : > { %s174_s29 = scalar_lea.vmem [#allocation2], %s4497_s7  ;;  %p5033_p12 = pnand %p4532_p5, %p5003_p6 }
  0x40   : > { %s181_s12 = sshll.u32 %s174_s29, 4  ;;  %s171_s10 = scalar_lea.sflag [#allocation3], %s170_s8  ;;  %s182_s12 = int_to_ptr.vmem [resolvable:$true] %s181_s12 }
  0x41   : > { %p4692_p0 = pneg %p5033_p12  ;;  %s4703_s11 = scalar_lea.vmem %s182_s12, 63488 }
  0x42   : > { %p4704_p2 = scmp.ne.s32.totalorder %s182_s12, %s4703_s11  ;;  %s4856_s1 = smov [#allocation2]  }
  0x43   : > { %s4708_s5 = sshll.u32 %s4856_s1, 4  ;;  %s4709_s5 = int_to_ptr.vmem [resolvable:$false] %s4708_s5 }
  0x44   : > { %p4706_p4 = pnand %p4704_p2, %p4692_p0  ;;  %s4710_s6 = scalar_lea.vmem %s4709_s5, 126976 }
  0x45   : > { %p4711_p8 = scmp.lt.s32.totalorder %s182_s12, %s4709_s5  ;;  %p4712_p10 = scmp.lt.s32.totalorder %s4710_s6, %s4703_s11 }
  0x46   : > { %p4707_p13 = pneg %p4706_p4 }
  0x47   : > { %p4713_p9 = por %p4712_p10, %p4711_p8 }
  0x49   : > { %p4714_p6 = pnand %p4713_p9, %p4707_p13 }
  0x4b   : > { %4717 = shalt.err (!%p4714_p6)
}
  0x4c   : > { %s9595_s29 = smov 8   ;;  %s9596_s23 = smov 128  }
  0x4d   : > { %4525 = dma.hbm_to_vmem [thread:$0]  (!%p5033_p12), %s5019_s26, 63488, %s182_s12, %s171_s10, %s9596_s23, %s9596_s23, %s9595_s29  }
  0x4e   : > { %193 = sbr.rel (%p4961_p11) target bundleno = 823 (0x337), region = 32 }
  0x53   : > { %s195_s24 = sand.u32 1, %s4822_s16  }
  0x54   : > { %s5048_s8 = smul.u32 3968, %s195_s24  ;;  %s196_s4 = scalar_lea.sflag [#allocation3], %s195_s24 }
  0x56   : > { %s199_s7 = scalar_lea.vmem [#allocation2], %s5048_s8 }
  0x57   : > { %4793 = dma.done.wait (%p4945_p3), %s196_s4, 63488  }
  0x58   : > { %4795 = vsyncadd (%p4945_p3), %s196_s4, 4294903808 }
  0x59   : > { %4797 = dma.done.wait (%p4936_p1), [#allocation6], 912  }
  0x5a   : > { %4799 = vsyncadd (%p4936_p1), [#allocation6], 4294966384  ;;  %s227_s3 = sand.u32 1, %s4810_s13   ;;  %s3991_s12 = sshll.u32 %s4830_s18, 3  ;;  %v5065_v0 = vld [vmem:[#allocation5] sm:$0xff]  ;;  %v5067_v1 = vld [vmem:[#allocation5 + $0x8] sm:$0xff] }
  0x5b   : > { %s5063_s26 = smul.u32 448, %s227_s3  ;;  %9597 = vst [vmem:[#allocation16_spill] sm:$0xff] %v5065_v0  ;;  %9598 = vst [vmem:[#allocation17_spill] sm:$0xff] %v5067_v1  ;;  %v5069_v2 = vld [vmem:[#allocation5 + $0x10] sm:$0xff]  ;;  %v5071_v3 = vld [vmem:[#allocation5 + $0x18] sm:$0xff]  ;;  %s5082_s27 = smov 0  }
  0x5c   : > { %9599 = vst [vmem:[#allocation18_spill] sm:$0xff] %v5069_v2  ;;  %9600 = vst [vmem:[#allocation19_spill] sm:$0xff] %v5071_v3  ;;  %v5073_v4 = vld [vmem:[#allocation5 + $0x20] sm:$0xff]  ;;  %v5075_v5 = vld [vmem:[#allocation5 + $0x28] sm:$0xff] }
  0x5d   : > { %9601 = vst [vmem:[#allocation20_spill] sm:$0xff] %v5073_v4  ;;  %9602 = vst [vmem:[#allocation21_spill] sm:$0xff] %v5075_v5  ;;  %v5077_v6 = vld [vmem:[#allocation5 + $0x30] ss:$0 sm:$0xff]  ;;  %v5079_v7 = vld [vmem:[#allocation7] ss:$0 sm:$0xff] }
  0x5e   : > { %9603 = vst [vmem:[#allocation22_spill] sm:$0xff] %v5077_v6  ;;  %9604 = vst [vmem:[#allocation23_spill] sm:$0xff] %v5079_v7  ;;  %s229_s25 = scalar_lea.vmem [#allocation8], %s5063_s26 }
  0x5f LB: >> { %v257_v8 = vlaneseq  ;;  %s3992_s30 = sshll.u32 %s4850_s27, 2  ;;  %s4464_s1 = smul.u32 224, %s4850_s27  ;;  %s4850_s27 = sphi %s5082_s27, %s245_s27  }
  0x60   : >> { %s247_s9 = sadd.s32 %s3992_s30, %s3991_s12  ;;  %s245_s27 = sadd.s32 1, %s4850_s27  }
  0x61   : >> { %v258_v9 = vshrl.u32 %v257_v8, 7  ;;  %s3993_s10 = sshll.u32 %s247_s9, 6  ;;  %s9377_s5 = scalar_lea.vmem %s229_s25, %s4464_s1 [#allocation8] }
  0x62   : >> { %v9605_v1 = vld [vmem:[#allocation17_spill] sm:$0xff]  ;;  %v9606_v0 = vld [vmem:[#allocation16_spill] sm:$0xff]  ;;  %s5100_s11 = scalar_lea.vmem %s199_s7, %s3993_s10 [#allocation2]  ;;  %p242_p1 = scmp.ge.s32.totalorder %s245_s27, 2  }
  0x63   : >> { %v5090_v10 = vsub.s32 0, %v258_v9  ;;  %v5092_v11 = vsub.s32 7, %v258_v9  ;;  %v5094_v12 = vsub.s32 6, %v258_v9  ;;  %v5096_v13 = vsub.s32 5, %v258_v9  ;;  %v250_v18 = vld [vmem:[%s5100_s11] sm:$0xff]  ;;  %v251_v19 = vld [vmem:[%s5100_s11 + $0x8] sm:$0xff] }
  0x64   : >> { %v5102_v14 = vsub.s32 4, %v258_v9  ;;  %v5104_v15 = vsub.s32 3, %v258_v9  ;;  %v5106_v16 = vsub.s32 2, %v258_v9  ;;  %v5108_v17 = vsub.s32 1, %v258_v9  ;;  %v252_v20 = vld [vmem:[%s5100_s11 + $0x10] sm:$0xff]  ;;  %v253_v25 = vld [vmem:[%s5100_s11 + $0x18] sm:$0xff] }
  0x65   : >> { %9607 = vst [vmem:[#allocation24_spill] sm:$0xff] %v5090_v10  ;;  %9608 = vst [vmem:[#allocation25_spill] sm:$0xff] %v5092_v11  ;;  %v5115_v21 = vrot.slane %v9606_v0, %v5090_v10  ;;  %v5119_v22 = vrot.slane %v9606_v0, %v5092_v11  ;;  %v5123_v23 = vrot.slane %v9605_v1, %v5094_v12  ;;  %v9615_v2 = vld [vmem:[#allocation18_spill] sm:$0xff]  ;;  %v254_v26 = vld [vmem:[%s5100_s11 + $0x20] sm:$0xff]  ;;  %s4501_s6 = smul.u32 (%p242_p1), 56, %s4830_s18  ;;  %s3797_s23 = sshll.u32 (%p242_p1), %s229_s25, 4  ;;  %s9464_s23 = int_to_ptr.vmem [resolvable:$true] %s3797_s23 }
  0x66   : >> { %9609 = vst [vmem:[#allocation26_spill] sm:$0xff] %v5094_v12  ;;  %9610 = vst [vmem:[#allocation27_spill] sm:$0xff] %v5096_v13  ;;  %v5127_v24 = vrot.slane %v9615_v2, %v5096_v13  ;;  %v255_v27 = vld [vmem:[%s5100_s11 + $0x28] sm:$0xff]  ;;  %v9616_v3 = vld [vmem:[#allocation19_spill] sm:$0xff]  ;;  %v5146_v31 = vrot.slane %v9606_v0, %v5108_v17  ;;  %s4502_s29 = smul.u32 (%p242_p1), 392, %s4834_s19  ;;  %s9674_s27 = sld [smem:[#allocation36_spill]] (%p242_p1) }
  0x67   : >> { %9611 = vst [vmem:[#allocation28_spill] sm:$0xff] %v5102_v14  ;;  %9612 = vst [vmem:[#allocation29_spill] sm:$0xff] %v5104_v15  ;;  %v5134_v28 = vrot.slane %v9616_v3, %v5102_v14  ;;  %v9617_v4 = vld [vmem:[#allocation20_spill] sm:$0xff]  ;;  %v9618_v5 = vld [vmem:[#allocation21_spill] sm:$0xff]  ;;  %v261_v33 = vmul.f32 %v5115_v21, %v250_v18  ;;  %v262_v34 = vmul.f32 %v5115_v21, %v251_v19  ;;  %s9473_s8 = scalar_lea.sflag (%p242_p1), [#allocation4], %s227_s3  ;;  %s4718_s7 = scalar_lea.vmem (%p242_p1), %s9464_s23, 7168 }
  0x68   : >> { %9613 = vst [vmem:[#allocation30_spill] sm:$0xff] %v5106_v16  ;;  %9614 = vst [vmem:[#allocation31_spill] sm:$0xff] %v5108_v17  ;;  %v5138_v29 = vrot.slane %v9617_v4, %v5104_v15  ;;  %v5142_v30 = vrot.slane %v9618_v5, %v5106_v16  ;;  %v256_v32 = vld [vmem:[%s5100_s11 + $0x30] sm:$0xff]  ;;  %v263_v35 = vmul.f32 %v5115_v21, %v252_v20  ;;  %v3997_v37 = vld [vmem:[%s5100_s11 + $0x40] sm:$0xff]  ;;  %s3794_s24 = sadd.s32 (%p242_p1), %s4502_s29, %s4501_s6  ;;  %p4719_p3 = scmp.ne.s32.totalorder (%p242_p1), %s9464_s23, %s4718_s7 }
  0x69   : >> { %v264_v36 = vmul.f32 %v5115_v21, %v253_v25  ;;  %v3998_v38 = vld [vmem:[%s5100_s11 + $0x48] sm:$0xff]  ;;  %v265_v39 = vmul.f32 %v5115_v21, %v254_v26  ;;  %v266_v40 = vmul.f32 %v5115_v21, %v255_v27  ;;  %v267_v41 = vmul.f32 %v5115_v21, %v256_v32  ;;  %v3999_v42 = vld [vmem:[%s5100_s11 + $0x50] sm:$0xff]  ;;  %v4000_v43 = vld [vmem:[%s5100_s11 + $0x58] sm:$0xff]  ;;  %s4494_s4 = sshll.u32 (%p242_p1), %s3794_s24, 7  ;;  %s4857_s18 = smov (%p242_p1), [#allocation8]  }
  0x6a   : >> { %v4001_v44 = vld [vmem:[%s5100_s11 + $0x60] sm:$0xff]  ;;  %v289_v45 = vmul.f32 %v3997_v37, %v5119_v22  ;;  %v4002_v46 = vld [vmem:[%s5100_s11 + $0x68] sm:$0xff]  ;;  %v4003_v47 = vld [vmem:[%s5100_s11 + $0x70] sm:$0xff]  ;;  %v290_v48 = vmul.f32 %v3998_v38, %v5119_v22  ;;  %v291_v49 = vmul.f32 %v3999_v42, %v5119_v22  ;;  %v292_v50 = vmul.f32 %v4000_v43, %v5119_v22  ;;  %p4720_p9 = pnand (%p242_p1), %p4719_p3, %p4951_p7  ;;  %s4722_s19 = sshll.u32 (%p242_p1), %s4857_s18, 4  ;;  %s4723_s19 = int_to_ptr.vmem [resolvable:$false] %s4722_s19 }
  0x6b   : >> { %v293_v51 = vmul.f32 %v4001_v44, %v5119_v22  ;;  %v294_v52 = vmul.f32 %v4002_v46, %v5119_v22  ;;  %v295_v53 = vmul.f32 %v4003_v47, %v5119_v22  ;;  %v303_v55 = vmul.f32 %v3997_v37, %v5115_v21  ;;  %v4007_v8 = vld [vmem:[%s5100_s11 + $0x80] sm:$0xff]  ;;  %v4008_v25 = vld [vmem:[%s5100_s11 + $0x88] sm:$0xff]  ;;  %v4009_v26 = vld [vmem:[%s5100_s11 + $0x90] sm:$0xff]  ;;  %s4724_s12 = scalar_lea.vmem (%p242_p1), %s4723_s19, 14336  ;;  %p4725_p5 = scmp.lt.s32.totalorder (%p242_p1), %s9464_s23, %s4723_s19 }
  0x6c   : >> { %v296_v54 = vadd.f32 %v289_v45, %v261_v33  ;;  %v297_v56 = vadd.f32 %v290_v48, %v262_v34  ;;  %v298_v57 = vadd.f32 %v291_v49, %v263_v35  ;;  %v299_v58 = vadd.f32 %v292_v50, %v264_v36  ;;  %v4010_v27 = vld [vmem:[%s5100_s11 + $0x98] sm:$0xff]  ;;  %v4011_v32 = vld [vmem:[%s5100_s11 + $0xa0] sm:$0xff]  ;;  %v4012_v33 = vld [vmem:[%s5100_s11 + $0xa8] sm:$0xff]  ;;  %s9469_s10 = scalar_lea.hbm (%p242_p1), %s9674_s27, %s4494_s4  ;;  %p4721_p11 = pneg (%p242_p1), %p4720_p9 }
  0x6d   : >> { %v300_v59 = vadd.f32 %v293_v51, %v265_v39  ;;  %v301_v60 = vadd.f32 %v294_v52, %v266_v40  ;;  %v302_v61 = vadd.f32 %v295_v53, %v267_v41  ;;  %v304_v62 = vmul.f32 %v3998_v38, %v5115_v21  ;;  %v4013_v34 = vld [vmem:[%s5100_s11 + $0xb0] sm:$0xff]  ;;  %p4726_p12 = scmp.lt.s32.totalorder (%p242_p1), %s4724_s12, %s4718_s7 }
  0x6e   : >> { %v305_v63 = vmul.f32 %v3999_v42, %v5115_v21  ;;  %v306_v9 = vmul.f32 %v4000_v43, %v5115_v21  ;;  %v307_v18 = vmul.f32 %v4001_v44, %v5115_v21  ;;  %v308_v19 = vmul.f32 %v4002_v46, %v5115_v21 }
  0x6f   : >> { %v309_v20 = vmul.f32 %v4003_v47, %v5115_v21  ;;  %v331_v35 = vmul.f32 %v4007_v8, %v5123_v23  ;;  %v332_v36 = vmul.f32 %v4008_v25, %v5123_v23  ;;  %v333_v37 = vmul.f32 %v4009_v26, %v5123_v23  ;;  %p4727_p0 = por (%p242_p1), %p4726_p12, %p4725_p5 }
  0x70   : >> { %v334_v38 = vmul.f32 %v4010_v27, %v5123_v23  ;;  %v335_v39 = vmul.f32 %v4011_v32, %v5123_v23  ;;  %v336_v40 = vmul.f32 %v4012_v33, %v5123_v23  ;;  %v337_v41 = vmul.f32 %v4013_v34, %v5123_v23 }
  0x71   : >> { %v345_v42 = vmul.f32 %v4007_v8, %v5119_v22  ;;  %v338_v43 = vadd.f32 %v331_v35, %v296_v54  ;;  %v339_v44 = vadd.f32 %v332_v36, %v297_v56  ;;  %v340_v45 = vadd.f32 %v333_v37, %v298_v57  ;;  %p4728_p2 = pnand (%p242_p1), %p4727_p0, %p4721_p11 }
  0x72   : >> { %v341_v46 = vadd.f32 %v334_v38, %v299_v58  ;;  %v342_v47 = vadd.f32 %v335_v39, %v300_v59  ;;  %v343_v48 = vadd.f32 %v336_v40, %v301_v60  ;;  %v344_v49 = vadd.f32 %v337_v41, %v302_v61  ;;  %v4018_v40 = vld [vmem:[%s5100_s11 + $0xc8] sm:$0xff]  ;;  %v4020_v41 = vld [vmem:[%s5100_s11 + $0xd8] sm:$0xff] }
  0x73   : >> { %v346_v50 = vmul.f32 %v4008_v25, %v5119_v22  ;;  %v347_v51 = vmul.f32 %v4009_v26, %v5119_v22  ;;  %v348_v52 = vmul.f32 %v4010_v27, %v5119_v22  ;;  %v349_v53 = vmul.f32 %v4011_v32, %v5119_v22 }
  0x74   : >> { %v350_v7 = vmul.f32 %v4012_v33, %v5119_v22  ;;  %v351_v54 = vmul.f32 %v4013_v34, %v5119_v22  ;;  %v352_v56 = vadd.f32 %v345_v42, %v303_v55  ;;  %v359_v58 = vmul.f32 %v4007_v8, %v5115_v21  ;;  %v4017_v55 = vld [vmem:[%s5100_s11 + $0xc0] sm:$0xff] }
  0x75   : >> { %v353_v57 = vadd.f32 %v346_v50, %v304_v62  ;;  %v354_v59 = vadd.f32 %v347_v51, %v305_v63  ;;  %v355_v60 = vadd.f32 %v348_v52, %v306_v9  ;;  %v356_v61 = vadd.f32 %v349_v53, %v307_v18  ;;  %v4019_v9 = vld [vmem:[%s5100_s11 + $0xd0] sm:$0xff]  ;;  %v4021_v18 = vld [vmem:[%s5100_s11 + $0xe0] sm:$0xff] }
  0x76   : >> { %v357_v35 = vadd.f32 %v350_v7, %v308_v19  ;;  %v358_v36 = vadd.f32 %v351_v54, %v309_v20  ;;  %v360_v37 = vmul.f32 %v4008_v25, %v5115_v21  ;;  %v361_v38 = vmul.f32 %v4009_v26, %v5115_v21  ;;  %v4022_v19 = vld [vmem:[%s5100_s11 + $0xe8] sm:$0xff]  ;;  %v4023_v20 = vld [vmem:[%s5100_s11 + $0xf0] sm:$0xff] }
  0x77   : >> { %v362_v39 = vmul.f32 %v4010_v27, %v5115_v21  ;;  %v363_v62 = vmul.f32 %v4011_v32, %v5115_v21  ;;  %v364_v8 = vmul.f32 %v4012_v33, %v5115_v21  ;;  %v365_v63 = vmul.f32 %v4013_v34, %v5115_v21 }
  0x78   : >> { %v387_v7 = vmul.f32 %v4017_v55, %v5127_v24  ;;  %v388_v25 = vmul.f32 %v4018_v40, %v5127_v24  ;;  %v389_v26 = vmul.f32 %v4019_v9, %v5127_v24  ;;  %v390_v27 = vmul.f32 %v4020_v41, %v5127_v24 }
  0x79   : >> { %v391_v42 = vmul.f32 %v4021_v18, %v5127_v24  ;;  %v392_v32 = vmul.f32 %v4022_v19, %v5127_v24  ;;  %v393_v33 = vmul.f32 %v4023_v20, %v5127_v24  ;;  %v401_v50 = vmul.f32 %v4017_v55, %v5123_v23 }
  0x7a   : >> { %v394_v34 = vadd.f32 %v387_v7, %v338_v43  ;;  %v395_v51 = vadd.f32 %v388_v25, %v339_v44  ;;  %v396_v52 = vadd.f32 %v389_v26, %v340_v45  ;;  %v397_v53 = vadd.f32 %v390_v27, %v341_v46 }
  0x7b   : >> { %v398_v54 = vadd.f32 %v391_v42, %v342_v47  ;;  %v399_v6 = vadd.f32 %v392_v32, %v343_v48  ;;  %v400_v17 = vadd.f32 %v393_v33, %v344_v49  ;;  %v402_v0 = vmul.f32 %v4018_v40, %v5123_v23 }
  0x7c   : >> { %v403_v16 = vmul.f32 %v4019_v9, %v5123_v23  ;;  %v404_v5 = vmul.f32 %v4020_v41, %v5123_v23  ;;  %v405_v15 = vmul.f32 %v4021_v18, %v5123_v23  ;;  %v406_v4 = vmul.f32 %v4022_v19, %v5123_v23 }
  0x7d   : >> { %v407_v43 = vmul.f32 %v4023_v20, %v5123_v23  ;;  %v408_v7 = vadd.f32 %v401_v50, %v352_v56  ;;  %v409_v14 = vadd.f32 %v402_v0, %v353_v57  ;;  %v415_v45 = vmul.f32 %v4017_v55, %v5119_v22 }
  0x7e   : >> { %v410_v44 = vadd.f32 %v403_v16, %v354_v59  ;;  %v411_v46 = vadd.f32 %v404_v5, %v355_v60  ;;  %v412_v47 = vadd.f32 %v405_v15, %v356_v61  ;;  %v413_v48 = vadd.f32 %v406_v4, %v357_v35 }
  0x7f   : >> { %v414_v49 = vadd.f32 %v407_v43, %v358_v36  ;;  %v416_v25 = vmul.f32 %v4018_v40, %v5119_v22  ;;  %v417_v26 = vmul.f32 %v4019_v9, %v5119_v22  ;;  %v418_v27 = vmul.f32 %v4020_v41, %v5119_v22 }
  0x80   : >> { %v419_v42 = vmul.f32 %v4021_v18, %v5119_v22  ;;  %v420_v32 = vmul.f32 %v4022_v19, %v5119_v22  ;;  %v421_v0 = vmul.f32 %v4023_v20, %v5119_v22  ;;  %v422_v16 = vadd.f32 %v415_v45, %v359_v58  ;;  %v4027_v58 = vld [vmem:[%s5100_s11 + $0x100] sm:$0xff] }
  0x81   : >> { %v5234_v5 = vmul.f32 %v4017_v55, %v5115_v21  ;;  %v423_v4 = vadd.f32 %v416_v25, %v360_v37  ;;  %v424_v15 = vadd.f32 %v417_v26, %v361_v38  ;;  %v425_v56 = vadd.f32 %v418_v27, %v362_v39  ;;  %v4028_v55 = vld [vmem:[%s5100_s11 + $0x108] sm:$0xff] }
  0x82   : >> { %v426_v57 = vadd.f32 %v419_v42, %v363_v62  ;;  %v427_v59 = vadd.f32 %v420_v32, %v364_v8  ;;  %v428_v60 = vadd.f32 %v421_v0, %v365_v63  ;;  %v5237_v61 = vmul.f32 %v4018_v40, %v5115_v21  ;;  %v4029_v62 = vld [vmem:[%s5100_s11 + $0x110] sm:$0xff]  ;;  %v4030_v40 = vld [vmem:[%s5100_s11 + $0x118] sm:$0xff]  ;;  %v4031_v8 = vld [vmem:[%s5100_s11 + $0x120] sm:$0xff] }
  0x83   : >> { %v5240_v35 = vmul.f32 %v4019_v9, %v5115_v21  ;;  %v5244_v36 = vmul.f32 %v4020_v41, %v5115_v21  ;;  %v5247_v37 = vmul.f32 %v4021_v18, %v5115_v21  ;;  %v5250_v38 = vmul.f32 %v4022_v19, %v5115_v21  ;;  %v4032_v63 = vld [vmem:[%s5100_s11 + $0x128] sm:$0xff]  ;;  %v4033_v9 = vld [vmem:[%s5100_s11 + $0x130] sm:$0xff] }
  0x84   : >> { %v5253_v39 = vmul.f32 %v4023_v20, %v5115_v21  ;;  %v457_v33 = vmul.f32 %v4027_v58, %v5134_v28  ;;  %v458_v41 = vmul.f32 %v4028_v55, %v5134_v28  ;;  %v459_v50 = vmul.f32 %v4029_v62, %v5134_v28 }
  0x85   : >> { %v460_v18 = vmul.f32 %v4030_v40, %v5134_v28  ;;  %v461_v19 = vmul.f32 %v4031_v8, %v5134_v28  ;;  %v462_v43 = vmul.f32 %v4032_v63, %v5134_v28  ;;  %v463_v21 = vmul.f32 %v4033_v9, %v5134_v28 }
  0x86   : >> { %v471_v20 = vmul.f32 %v4027_v58, %v5127_v24  ;;  %v464_v45 = vadd.f32 %v457_v33, %v394_v34  ;;  %v465_v25 = vadd.f32 %v458_v41, %v395_v51  ;;  %v466_v26 = vadd.f32 %v459_v50, %v396_v52 }
  0x87   : >> { %v467_v27 = vadd.f32 %v460_v18, %v397_v53  ;;  %v5269_v42 = vadd.f32 %v461_v19, %v398_v54  ;;  %v5271_v32 = vadd.f32 %v462_v43, %v399_v6  ;;  %v5273_v0 = vadd.f32 %v463_v21, %v400_v17  ;;  %v4041_v43 = vld [vmem:[%s5100_s11 + $0x160] sm:$0xff]  ;;  %v4042_v21 = vld [vmem:[%s5100_s11 + $0x168] sm:$0xff] }
  0x88   : >> { %v472_v3 = vmul.f32 %v4028_v55, %v5127_v24  ;;  %v473_v13 = vmul.f32 %v4029_v62, %v5127_v24  ;;  %v474_v2 = vmul.f32 %v4030_v40, %v5127_v24  ;;  %v475_v12 = vmul.f32 %v4031_v8, %v5127_v24 }
  0x89   : >> { %v476_v11 = vmul.f32 %v4032_v63, %v5127_v24  ;;  %v477_v34 = vmul.f32 %v4033_v9, %v5127_v24  ;;  %v5281_v51 = vadd.f32 %v471_v20, %v408_v7  ;;  %v485_v6 = vmul.f32 %v4027_v58, %v5123_v23  ;;  %v4043_v20 = vld [vmem:[%s5100_s11 + $0x170] sm:$0xff] }
  0x8a   : >> { %v5283_v52 = vadd.f32 %v472_v3, %v409_v14  ;;  %v5286_v17 = vadd.f32 %v473_v13, %v410_v44  ;;  %v5288_v53 = vadd.f32 %v474_v2, %v411_v46  ;;  %v5290_v54 = vadd.f32 %v475_v12, %v412_v47 }
  0x8b   : >> { %v5292_v33 = vadd.f32 %v476_v11, %v413_v48  ;;  %v5294_v41 = vadd.f32 %v477_v34, %v414_v49  ;;  %v486_v50 = vmul.f32 %v4028_v55, %v5123_v23  ;;  %v487_v18 = vmul.f32 %v4029_v62, %v5123_v23 }
  0x8c   : >> { %v488_v7 = vmul.f32 %v4030_v40, %v5123_v23  ;;  %v489_v3 = vmul.f32 %v4031_v8, %v5123_v23  ;;  %v490_v13 = vmul.f32 %v4032_v63, %v5123_v23  ;;  %v491_v2 = vmul.f32 %v4033_v9, %v5123_v23 }
  0x8d   : >> { %v5302_v14 = vadd.f32 %v485_v6, %v422_v16  ;;  %v5304_v12 = vadd.f32 %v486_v50, %v423_v4  ;;  %v5306_v11 = vadd.f32 %v487_v18, %v424_v15  ;;  %v499_v46 = vmul.f32 %v4027_v58, %v5119_v22 }
  0x8e   : >> { %v5308_v44 = vadd.f32 %v488_v7, %v425_v56  ;;  %v5311_v47 = vadd.f32 %v489_v3, %v426_v57  ;;  %v5313_v48 = vadd.f32 %v490_v13, %v427_v59  ;;  %v5315_v49 = vadd.f32 %v491_v2, %v428_v60  ;;  %v4037_v57 = vld [vmem:[%s5100_s11 + $0x140] sm:$0xff] }
  0x8f   : >> { %v500_v19 = vmul.f32 %v4028_v55, %v5119_v22  ;;  %v501_v16 = vmul.f32 %v4029_v62, %v5119_v22  ;;  %v502_v4 = vmul.f32 %v4030_v40, %v5119_v22  ;;  %v503_v15 = vmul.f32 %v4031_v8, %v5119_v22 }
  0x90   : >> { %v504_v56 = vmul.f32 %v4032_v63, %v5119_v22  ;;  %v505_v59 = vmul.f32 %v4033_v9, %v5119_v22  ;;  %v5325_v60 = vadd.f32 %v499_v46, %v5234_v5  ;;  %v527_v55 = vmul.f32 %v4037_v57, %v5138_v29  ;;  %v4038_v22 = vld [vmem:[%s5100_s11 + $0x148] sm:$0xff]  ;;  %v4039_v5 = vld [vmem:[%s5100_s11 + $0x150] sm:$0xff]  ;;  %v4040_v9 = vld [vmem:[%s5100_s11 + $0x158] sm:$0xff] }
  0x91   : >> { %v5328_v58 = vadd.f32 %v500_v19, %v5237_v61  ;;  %v5332_v62 = vadd.f32 %v501_v16, %v5240_v35  ;;  %v5335_v40 = vadd.f32 %v502_v4, %v5244_v36  ;;  %v5338_v8 = vadd.f32 %v503_v15, %v5247_v37 }
  0x92   : >> { %v5341_v63 = vadd.f32 %v504_v56, %v5250_v38  ;;  %v5347_v61 = vadd.f32 %v505_v59, %v5253_v39  ;;  %v528_v35 = vmul.f32 %v4038_v22, %v5138_v29  ;;  %v529_v36 = vmul.f32 %v4039_v5, %v5138_v29 }
  0x93   : >> { %v530_v34 = vmul.f32 %v4040_v9, %v5138_v29  ;;  %v531_v37 = vmul.f32 %v4041_v43, %v5138_v29  ;;  %v532_v38 = vmul.f32 %v4042_v21, %v5138_v29  ;;  %v533_v6 = vmul.f32 %v4043_v20, %v5138_v29 }
  0x94   : >> { %v5358_v50 = vadd.f32 %v527_v55, %v464_v45  ;;  %v5360_v18 = vadd.f32 %v528_v35, %v465_v25  ;;  %v5362_v39 = vadd.f32 %v529_v36, %v466_v26  ;;  %v541_v3 = vmul.f32 %v4037_v57, %v5134_v28 }
  0x95   : >> { %v5364_v7 = vadd.f32 %v530_v34, %v467_v27  ;;  %v5368_v13 = vadd.f32 %v531_v37, %v5269_v42  ;;  %v5371_v2 = vadd.f32 %v532_v38, %v5271_v32  ;;  %v5374_v46 = vadd.f32 %v533_v6, %v5273_v0 }
  0x96   : >> { %v542_v45 = vmul.f32 %v4038_v22, %v5134_v28  ;;  %v543_v25 = vmul.f32 %v4039_v5, %v5134_v28  ;;  %v544_v26 = vmul.f32 %v4040_v9, %v5134_v28  ;;  %v545_v27 = vmul.f32 %v4041_v43, %v5134_v28 }
  0x97   : >> { %v546_v19 = vmul.f32 %v4042_v21, %v5134_v28  ;;  %v547_v16 = vmul.f32 %v4043_v20, %v5134_v28  ;;  %v5383_v42 = vadd.f32 %v541_v3, %v5281_v51  ;;  %v555_v0 = vmul.f32 %v4037_v57, %v5127_v24 }
  0x98   : >> { %v5386_v32 = vadd.f32 %v542_v45, %v5283_v52  ;;  %v5390_v4 = vadd.f32 %v543_v25, %v5286_v17  ;;  %v5393_v15 = vadd.f32 %v544_v26, %v5288_v53  ;;  %v5396_v56 = vadd.f32 %v545_v27, %v5290_v54  ;;  %v4051_v25 = vld [vmem:[%s5100_s11 + $0x1a0] sm:$0xff]  ;;  %v4052_v26 = vld [vmem:[%s5100_s11 + $0x1a8] sm:$0xff]  ;;  %v4053_v27 = vld [vmem:[%s5100_s11 + $0x1b0] sm:$0xff] }
  0x99   : >> { %v5399_v59 = vadd.f32 %v546_v19, %v5292_v33  ;;  %v5402_v51 = vadd.f32 %v547_v16, %v5294_v41  ;;  %v556_v52 = vmul.f32 %v4038_v22, %v5127_v24  ;;  %v557_v55 = vmul.f32 %v4039_v5, %v5127_v24 }
  0x9a   : >> { %v558_v35 = vmul.f32 %v4040_v9, %v5127_v24  ;;  %v559_v17 = vmul.f32 %v4041_v43, %v5127_v24  ;;  %v560_v53 = vmul.f32 %v4042_v21, %v5127_v24  ;;  %v561_v54 = vmul.f32 %v4043_v20, %v5127_v24 }
  0x9b   : >> { %v5411_v36 = vadd.f32 %v555_v0, %v5302_v14  ;;  %v5414_v33 = vadd.f32 %v556_v52, %v5304_v12  ;;  %v5417_v41 = vadd.f32 %v557_v55, %v5306_v11  ;;  %v569_v37 = vmul.f32 %v4037_v57, %v5123_v23 }
  0x9c   : >> { %v5420_v34 = vadd.f32 %v558_v35, %v5308_v44  ;;  %v5424_v38 = vadd.f32 %v559_v17, %v5311_v47  ;;  %v5427_v6 = vadd.f32 %v560_v53, %v5313_v48  ;;  %v5430_v14 = vadd.f32 %v561_v54, %v5315_v49  ;;  %v4047_v48 = vld [vmem:[%s5100_s11 + $0x180] sm:$0xff] }
  0x9d   : >> { %v570_v12 = vmul.f32 %v4038_v22, %v5123_v23  ;;  %v571_v11 = vmul.f32 %v4039_v5, %v5123_v23  ;;  %v572_v44 = vmul.f32 %v4040_v9, %v5123_v23  ;;  %v573_v57 = vmul.f32 %v4041_v43, %v5123_v23 }
  0x9e   : >> { %v574_v47 = vmul.f32 %v4042_v21, %v5123_v23  ;;  %v575_v3 = vmul.f32 %v4043_v20, %v5123_v23  ;;  %v5440_v49 = vadd.f32 %v569_v37, %v5325_v60  ;;  %v597_v5 = vmul.f32 %v4047_v48, %v5142_v30  ;;  %v4048_v23 = vld [vmem:[%s5100_s11 + $0x188] sm:$0xff]  ;;  %v4049_v60 = vld [vmem:[%s5100_s11 + $0x190] sm:$0xff]  ;;  %v4050_v20 = vld [vmem:[%s5100_s11 + $0x198] sm:$0xff] }
  0x9f   : >> { %v5443_v22 = vadd.f32 %v570_v12, %v5328_v58  ;;  %v5447_v9 = vadd.f32 %v571_v11, %v5332_v62  ;;  %v5450_v43 = vadd.f32 %v572_v44, %v5335_v40  ;;  %v5453_v21 = vadd.f32 %v573_v57, %v5338_v8 }
  0xa0   : >> { %v5456_v45 = vadd.f32 %v574_v47, %v5341_v63  ;;  %v5462_v58 = vadd.f32 %v575_v3, %v5347_v61  ;;  %v598_v62 = vmul.f32 %v4048_v23, %v5142_v30  ;;  %v599_v40 = vmul.f32 %v4049_v60, %v5142_v30 }
  0xa1   : >> { %v600_v19 = vmul.f32 %v4050_v20, %v5142_v30  ;;  %v601_v8 = vmul.f32 %v4051_v25, %v5142_v30  ;;  %v602_v63 = vmul.f32 %v4052_v26, %v5142_v30  ;;  %v603_v16 = vmul.f32 %v4053_v27, %v5142_v30 }
  0xa2   : >> { %v5474_v0 = vadd.f32 %v597_v5, %v5358_v50  ;;  %v5477_v61 = vadd.f32 %v598_v62, %v5360_v18  ;;  %v5480_v52 = vadd.f32 %v599_v40, %v5362_v39  ;;  %v611_v35 = vmul.f32 %v4047_v48, %v5138_v29 }
  0xa3   : >> { %v5483_v55 = vadd.f32 %v600_v19, %v5364_v7  ;;  %v5487_v17 = vadd.f32 %v601_v8, %v5368_v13  ;;  %v5490_v53 = vadd.f32 %v602_v63, %v5371_v2  ;;  %v5493_v50 = vadd.f32 %v603_v16, %v5374_v46 }
  0xa4   : >> { %v612_v18 = vmul.f32 %v4048_v23, %v5138_v29  ;;  %v613_v54 = vmul.f32 %v4049_v60, %v5138_v29  ;;  %v614_v39 = vmul.f32 %v4050_v20, %v5138_v29  ;;  %v615_v7 = vmul.f32 %v4051_v25, %v5138_v29 }
  0xa5   : >> { %v616_v37 = vmul.f32 %v4052_v26, %v5138_v29  ;;  %v617_v12 = vmul.f32 %v4053_v27, %v5138_v29  ;;  %v618_v13 = vadd.f32 %v611_v35, %v5383_v42  ;;  %v625_v11 = vmul.f32 %v4047_v48, %v5134_v28 }
  0xa6   : >> { %v619_v2 = vadd.f32 %v612_v18, %v5386_v32  ;;  %v620_v46 = vadd.f32 %v613_v54, %v5390_v4  ;;  %v621_v44 = vadd.f32 %v614_v39, %v5393_v15  ;;  %v622_v57 = vadd.f32 %v615_v7, %v5396_v56  ;;  %v4058_v54 = vld [vmem:[%s5100_s11 + $0x1c8] sm:$0xff]  ;;  %v4060_v39 = vld [vmem:[%s5100_s11 + $0x1d8] sm:$0xff] }
  0xa7   : >> { %v623_v47 = vadd.f32 %v616_v37, %v5399_v59  ;;  %v624_v3 = vadd.f32 %v617_v12, %v5402_v51  ;;  %v626_v5 = vmul.f32 %v4048_v23, %v5134_v28  ;;  %v627_v62 = vmul.f32 %v4049_v60, %v5134_v28 }
  0xa8   : >> { %v628_v42 = vmul.f32 %v4050_v20, %v5134_v28  ;;  %v629_v32 = vmul.f32 %v4051_v25, %v5134_v28  ;;  %v630_v40 = vmul.f32 %v4052_v26, %v5134_v28  ;;  %v631_v4 = vmul.f32 %v4053_v27, %v5134_v28 }
  0xa9   : >> { %v632_v15 = vadd.f32 %v625_v11, %v5411_v36  ;;  %v633_v56 = vadd.f32 %v626_v5, %v5414_v33  ;;  %v634_v59 = vadd.f32 %v627_v62, %v5417_v41  ;;  %v639_v19 = vmul.f32 %v4047_v48, %v5127_v24 }
  0xaa   : >> { %v635_v51 = vadd.f32 %v628_v42, %v5420_v34  ;;  %v636_v8 = vadd.f32 %v629_v32, %v5424_v38  ;;  %v637_v63 = vadd.f32 %v630_v40, %v5427_v6  ;;  %v638_v16 = vadd.f32 %v631_v4, %v5430_v14  ;;  %v4057_v38 = vld [vmem:[%s5100_s11 + $0x1c0] sm:$0xff] }
  0xab   : >> { %v640_v35 = vmul.f32 %v4048_v23, %v5127_v24  ;;  %v641_v36 = vmul.f32 %v4049_v60, %v5127_v24  ;;  %v642_v33 = vmul.f32 %v4050_v20, %v5127_v24  ;;  %v643_v41 = vmul.f32 %v4051_v25, %v5127_v24 }
  0xac   : >> { %v644_v34 = vmul.f32 %v4052_v26, %v5127_v24  ;;  %v645_v6 = vmul.f32 %v4053_v27, %v5127_v24  ;;  %v646_v14 = vadd.f32 %v639_v19, %v5440_v49  ;;  %v663_v23 = vmul.f32 %v4057_v38, %v5142_v30  ;;  %v4059_v26 = vld [vmem:[%s5100_s11 + $0x1d0] sm:$0xff]  ;;  %v4061_v24 = vld [vmem:[%s5100_s11 + $0x1e0] sm:$0xff]  ;;  %v4062_v27 = vld [vmem:[%s5100_s11 + $0x1e8] sm:$0xff] }
  0xad   : >> { %v647_v48 = vadd.f32 %v640_v35, %v5443_v22  ;;  %v648_v60 = vadd.f32 %v641_v36, %v5447_v9  ;;  %v649_v20 = vadd.f32 %v642_v33, %v5450_v43  ;;  %v650_v18 = vadd.f32 %v643_v41, %v5453_v21  ;;  %v4063_v49 = vld [vmem:[%s5100_s11 + $0x1f0] sm:$0xff] }
  0xae   : >> { %v651_v25 = vadd.f32 %v644_v34, %v5456_v45  ;;  %v652_v7 = vadd.f32 %v645_v6, %v5462_v58  ;;  %v664_v22 = vmul.f32 %v4058_v54, %v5142_v30  ;;  %v665_v37 = vmul.f32 %v4059_v26, %v5142_v30 }
  0xaf   : >> { %v666_v9 = vmul.f32 %v4060_v39, %v5142_v30  ;;  %v667_v43 = vmul.f32 %v4061_v24, %v5142_v30  ;;  %v668_v21 = vmul.f32 %v4062_v27, %v5142_v30  ;;  %v669_v45 = vmul.f32 %v4063_v49, %v5142_v30 }
  0xb0   : >> { %v5550_v12 = vadd.f32 %v663_v23, %v618_v13  ;;  %v5552_v11 = vadd.f32 %v664_v22, %v619_v2  ;;  %v5554_v58 = vadd.f32 %v665_v37, %v620_v46  ;;  %v677_v62 = vmul.f32 %v4057_v38, %v5138_v29  ;;  %v4069_v37 = vld [vmem:[%s5100_s11 + $0x210] sm:$0xff] }
  0xb1   : >> { %v5556_v5 = vadd.f32 %v666_v9, %v621_v44  ;;  %v5559_v42 = vadd.f32 %v667_v43, %v622_v57  ;;  %v5561_v32 = vadd.f32 %v668_v21, %v623_v47  ;;  %v5563_v40 = vadd.f32 %v669_v45, %v624_v3  ;;  %v4070_v21 = vld [vmem:[%s5100_s11 + $0x218] sm:$0xff]  ;;  %v4072_v45 = vld [vmem:[%s5100_s11 + $0x228] sm:$0xff] }
  0xb2   : >> { %v678_v4 = vmul.f32 %v4058_v54, %v5138_v29  ;;  %v679_v19 = vmul.f32 %v4059_v26, %v5138_v29  ;;  %v680_v13 = vmul.f32 %v4060_v39, %v5138_v29  ;;  %v681_v2 = vmul.f32 %v4061_v24, %v5138_v29 }
  0xb3   : >> { %v682_v46 = vmul.f32 %v4062_v27, %v5138_v29  ;;  %v683_v44 = vmul.f32 %v4063_v49, %v5138_v29  ;;  %v684_v35 = vadd.f32 %v677_v62, %v632_v15  ;;  %v691_v47 = vmul.f32 %v4057_v38, %v5134_v28 }
  0xb4   : >> { %v685_v57 = vadd.f32 %v678_v4, %v633_v56  ;;  %v686_v36 = vadd.f32 %v679_v19, %v634_v59  ;;  %v687_v3 = vadd.f32 %v680_v13, %v635_v51  ;;  %v688_v33 = vadd.f32 %v681_v2, %v636_v8  ;;  %v4067_v8 = vld [vmem:[%s5100_s11 + $0x200] sm:$0xff] }
  0xb5   : >> { %v689_v41 = vadd.f32 %v682_v46, %v637_v63  ;;  %v690_v34 = vadd.f32 %v683_v44, %v638_v16  ;;  %v692_v6 = vmul.f32 %v4058_v54, %v5134_v28  ;;  %v693_v23 = vmul.f32 %v4059_v26, %v5134_v28  ;;  %v4068_v54 = vld [vmem:[%s5100_s11 + $0x208] sm:$0xff]  ;;  %v4077_v2 = vld [vmem:[%s5100_s11 + $0x240] sm:$0xff] }
  0xb6   : >> { %v694_v22 = vmul.f32 %v4060_v39, %v5134_v28  ;;  %v695_v15 = vmul.f32 %v4061_v24, %v5134_v28  ;;  %v696_v56 = vmul.f32 %v4062_v27, %v5134_v28  ;;  %v697_v59 = vmul.f32 %v4063_v49, %v5134_v28  ;;  %v4071_v24 = vld [vmem:[%s5100_s11 + $0x220] sm:$0xff]  ;;  %v4073_v28 = vld [vmem:[%s5100_s11 + $0x230] sm:$0xff] }
  0xb7   : >> { %v698_v51 = vadd.f32 %v691_v47, %v646_v14  ;;  %v699_v63 = vadd.f32 %v692_v6, %v647_v48  ;;  %v700_v16 = vadd.f32 %v693_v23, %v648_v60  ;;  %v715_v26 = vmul.f32 %v4067_v8, %v5142_v30  ;;  %v4078_v47 = vld [vmem:[%s5100_s11 + $0x248] sm:$0xff]  ;;  %v4080_v23 = vld [vmem:[%s5100_s11 + $0x258] sm:$0xff] }
  0xb8   : >> { %v701_v38 = vadd.f32 %v694_v22, %v649_v20  ;;  %v702_v9 = vadd.f32 %v695_v15, %v650_v18  ;;  %v703_v39 = vadd.f32 %v696_v56, %v651_v25  ;;  %v704_v43 = vadd.f32 %v697_v59, %v652_v7  ;;  %v4082_v22 = vld [vmem:[%s5100_s11 + $0x268] sm:$0xff] }
  0xb9   : >> { %v716_v27 = vmul.f32 %v4068_v54, %v5142_v30  ;;  %v717_v14 = vmul.f32 %v4069_v37, %v5142_v30  ;;  %v718_v48 = vmul.f32 %v4070_v21, %v5142_v30  ;;  %v719_v60 = vmul.f32 %v4071_v24, %v5142_v30 }
  0xba   : >> { %v720_v20 = vmul.f32 %v4072_v45, %v5142_v30  ;;  %v721_v18 = vmul.f32 %v4073_v28, %v5142_v30  ;;  %v5592_v25 = vadd.f32 %v715_v26, %v684_v35  ;;  %v729_v49 = vmul.f32 %v4067_v8, %v5138_v29  ;;  %v4083_v8 = vld [vmem:[%s5100_s11 + $0x270] sm:$0xff] }
  0xbb   : >> { %v5594_v7 = vadd.f32 %v716_v27, %v685_v57  ;;  %v5597_v62 = vadd.f32 %v717_v14, %v686_v36  ;;  %v5599_v4 = vadd.f32 %v718_v48, %v687_v3  ;;  %v5601_v19 = vadd.f32 %v719_v60, %v688_v33  ;;  %v4079_v36 = vld [vmem:[%s5100_s11 + $0x250] sm:$0xff] }
  0xbc   : >> { %v5603_v13 = vadd.f32 %v720_v20, %v689_v41  ;;  %v5606_v46 = vadd.f32 %v721_v18, %v690_v34  ;;  %v730_v44 = vmul.f32 %v4068_v54, %v5138_v29  ;;  %v731_v35 = vmul.f32 %v4069_v37, %v5138_v29  ;;  %v4081_v34 = vld [vmem:[%s5100_s11 + $0x260] sm:$0xff]  ;;  %v769_v27 = vld [vmem:[%s5100_s11 + $0x11] sm:$0xff]  ;;  %v772_v48 = vld [vmem:[%s5100_s11 + $0x29] sm:$0xff] }
  0xbd   : >> { %v732_v57 = vmul.f32 %v4070_v21, %v5138_v29  ;;  %v733_v3 = vmul.f32 %v4071_v24, %v5138_v29  ;;  %v734_v33 = vmul.f32 %v4072_v45, %v5138_v29  ;;  %v735_v41 = vmul.f32 %v4073_v28, %v5138_v29  ;;  %v767_v37 = vld [vmem:[%s5100_s11 + $0x1] sm:$0xff]  ;;  %v770_v28 = vld [vmem:[%s5100_s11 + $0x19] sm:$0xff]  ;;  %v773_v60 = vld [vmem:[%s5100_s11 + $0x31] sm:$0xff] }
  0xbe   : >> { %v736_v6 = vadd.f32 %v729_v49, %v698_v51  ;;  %v737_v15 = vadd.f32 %v730_v44, %v699_v63  ;;  %v738_v56 = vadd.f32 %v731_v35, %v700_v16  ;;  %v753_v54 = vmul.f32 %v4077_v2, %v5142_v30 }
  0xbf   : >> { %v739_v59 = vadd.f32 %v732_v57, %v701_v38  ;;  %v740_v26 = vadd.f32 %v733_v3, %v702_v9  ;;  %v741_v21 = vadd.f32 %v734_v33, %v703_v39  ;;  %v742_v29 = vadd.f32 %v735_v41, %v704_v43  ;;  %v768_v38 = vld [vmem:[%s5100_s11 + $0x9] sm:$0xff]  ;;  %v771_v43 = vld [vmem:[%s5100_s11 + $0x21] sm:$0xff] }
  0xc0   : >> { %v754_v51 = vmul.f32 %v4078_v47, %v5142_v30  ;;  %v755_v24 = vmul.f32 %v4079_v36, %v5142_v30  ;;  %v756_v45 = vmul.f32 %v4080_v23, %v5142_v30  ;;  %v757_v63 = vmul.f32 %v4081_v34, %v5142_v30  ;;  %v4084_v36 = vld [vmem:[%s5100_s11 + $0x41] sm:$0xff] }
  0xc1   : >> { %v758_v16 = vmul.f32 %v4082_v22, %v5142_v30  ;;  %v759_v14 = vmul.f32 %v4083_v8, %v5142_v30  ;;  %v5631_v9 = vadd.f32 %v753_v54, %v736_v6  ;;  %v778_v20 = vmul.f32 %v5146_v31, %v767_v37  ;;  %v4086_v37 = vld [vmem:[%s5100_s11 + $0x51] sm:$0xff] }
  0xc2   : >> { %v5633_v39 = vadd.f32 %v754_v51, %v737_v15  ;;  %v5639_v18 = vadd.f32 %v755_v24, %v738_v56  ;;  %v5641_v49 = vadd.f32 %v756_v45, %v739_v59  ;;  %v5643_v2 = vadd.f32 %v757_v63, %v740_v26  ;;  %v4085_v15 = vld [vmem:[%s5100_s11 + $0x49] sm:$0xff]  ;;  %v4087_v26 = vld [vmem:[%s5100_s11 + $0x59] sm:$0xff] }
  0xc3   : >> { %v5645_v44 = vadd.f32 %v758_v16, %v741_v21  ;;  %v5647_v35 = vadd.f32 %v759_v14, %v742_v29  ;;  %v779_v30 = vmul.f32 %v5146_v31, %v768_v38  ;;  %v780_v57 = vmul.f32 %v5146_v31, %v769_v27  ;;  %v4089_v21 = vld [vmem:[%s5100_s11 + $0x69] sm:$0xff] }
  0xc4   : >> { %v781_v47 = vmul.f32 %v5146_v31, %v770_v28  ;;  %v782_v3 = vmul.f32 %v5146_v31, %v771_v43  ;;  %v783_v33 = vmul.f32 %v5146_v31, %v772_v48  ;;  %v784_v41 = vmul.f32 %v5146_v31, %v773_v60 }
  0xc5   : >> { %v785_v6 = vadd.f32 %v778_v20, %v5474_v0  ;;  %v786_v23 = vadd.f32 %v779_v30, %v5477_v61  ;;  %v787_v34 = vadd.f32 %v780_v57, %v5480_v52  ;;  %v5663_v56 = vrot.slane %v9605_v1, %v5090_v10  ;;  %v4088_v61 = vld [vmem:[%s5100_s11 + $0x61] sm:$0xff]  ;;  %v4090_v52 = vld [vmem:[%s5100_s11 + $0x71] sm:$0xff] }
  0xc6   : >> { %v788_v22 = vadd.f32 %v781_v47, %v5483_v55  ;;  %v789_v59 = vadd.f32 %v782_v3, %v5487_v17  ;;  %v790_v8 = vadd.f32 %v783_v33, %v5490_v53  ;;  %v791_v54 = vadd.f32 %v784_v41, %v5493_v50  ;;  %v4091_v33 = vld [vmem:[%s5100_s11 + $0x81] sm:$0xff] }
  0xc7   : >> { %v817_v0 = vmul.f32 %v4084_v36, %v5146_v31  ;;  %v803_v55 = vmul.f32 %v4084_v36, %v5663_v56  ;;  %v804_v29 = vmul.f32 %v4085_v15, %v5663_v56  ;;  %v805_v51 = vmul.f32 %v4086_v37, %v5663_v56  ;;  %v9619_v41 = vld [vmem:[#allocation25_spill] sm:$0xff] }
  0xc8   : >> { %v806_v24 = vmul.f32 %v4087_v26, %v5663_v56  ;;  %v807_v17 = vmul.f32 %v4088_v61, %v5663_v56  ;;  %v808_v53 = vmul.f32 %v4089_v21, %v5663_v56  ;;  %v809_v50 = vmul.f32 %v4090_v52, %v5663_v56 }
  0xc9   : >> { %v818_v45 = vmul.f32 %v4085_v15, %v5146_v31  ;;  %v810_v63 = vadd.f32 %v803_v55, %v785_v6  ;;  %v811_v16 = vadd.f32 %v804_v29, %v786_v23  ;;  %v812_v38 = vadd.f32 %v805_v51, %v787_v34 }
  0xca   : >> { %v813_v27 = vadd.f32 %v806_v24, %v788_v22  ;;  %v814_v28 = vadd.f32 %v807_v17, %v789_v59  ;;  %v815_v14 = vadd.f32 %v808_v53, %v790_v8  ;;  %v816_v43 = vadd.f32 %v809_v50, %v791_v54  ;;  %v4092_v59 = vld [vmem:[%s5100_s11 + $0x89] sm:$0xff]  ;;  %v4093_v8 = vld [vmem:[%s5100_s11 + $0x91] sm:$0xff]  ;;  %v4095_v54 = vld [vmem:[%s5100_s11 + $0xa1] sm:$0xff] }
  0xcb   : >> { %v819_v48 = vmul.f32 %v4086_v37, %v5146_v31  ;;  %v820_v60 = vmul.f32 %v4087_v26, %v5146_v31  ;;  %v821_v20 = vmul.f32 %v4088_v61, %v5146_v31  ;;  %v822_v30 = vmul.f32 %v4089_v21, %v5146_v31  ;;  %v4097_v37 = vld [vmem:[%s5100_s11 + $0xb1] sm:$0xff] }
  0xcc   : >> { %v823_v57 = vmul.f32 %v4090_v52, %v5146_v31  ;;  %v824_v47 = vadd.f32 %v817_v0, %v5550_v12  ;;  %v825_v36 = vadd.f32 %v818_v45, %v5552_v11  ;;  %v5693_v6 = vrot.slane %v9605_v1, %v9619_v41  ;;  %v4094_v12 = vld [vmem:[%s5100_s11 + $0x99] sm:$0xff]  ;;  %v4096_v11 = vld [vmem:[%s5100_s11 + $0xa9] sm:$0xff] }
  0xcd   : >> { %v826_v3 = vadd.f32 %v819_v48, %v5554_v58  ;;  %v827_v23 = vadd.f32 %v820_v60, %v5556_v5  ;;  %v828_v34 = vadd.f32 %v821_v20, %v5559_v42  ;;  %v829_v22 = vadd.f32 %v822_v30, %v5561_v32 }
  0xce   : >> { %v830_v15 = vadd.f32 %v823_v57, %v5563_v40  ;;  %v842_v58 = vmul.f32 %v4091_v33, %v5693_v6  ;;  %v843_v26 = vmul.f32 %v4092_v59, %v5693_v6  ;;  %v844_v0 = vmul.f32 %v4093_v8, %v5693_v6 }
  0xcf   : >> { %v845_v5 = vmul.f32 %v4094_v12, %v5693_v6  ;;  %v846_v42 = vmul.f32 %v4095_v54, %v5693_v6  ;;  %v847_v32 = vmul.f32 %v4096_v11, %v5693_v6  ;;  %v848_v40 = vmul.f32 %v4097_v37, %v5693_v6 }
  0xd0   : >> { %v856_v61 = vmul.f32 %v4091_v33, %v5663_v56  ;;  %v849_v21 = vadd.f32 %v842_v58, %v810_v63  ;;  %v850_v52 = vadd.f32 %v843_v26, %v811_v16  ;;  %v851_v55 = vadd.f32 %v844_v0, %v812_v38  ;;  %v4099_v0 = vld [vmem:[%s5100_s11 + $0xc9] sm:$0xff] }
  0xd1   : >> { %v852_v29 = vadd.f32 %v845_v5, %v813_v27  ;;  %v853_v51 = vadd.f32 %v846_v42, %v814_v28  ;;  %v854_v24 = vadd.f32 %v847_v32, %v815_v14  ;;  %v855_v17 = vadd.f32 %v848_v40, %v816_v43  ;;  %v4100_v5 = vld [vmem:[%s5100_s11 + $0xd1] sm:$0xff]  ;;  %v4102_v42 = vld [vmem:[%s5100_s11 + $0xe1] sm:$0xff] }
  0xd2   : >> { %v857_v53 = vmul.f32 %v4092_v59, %v5663_v56  ;;  %v858_v50 = vmul.f32 %v4093_v8, %v5663_v56  ;;  %v859_v45 = vmul.f32 %v4094_v12, %v5663_v56  ;;  %v860_v48 = vmul.f32 %v4095_v54, %v5663_v56  ;;  %v4104_v32 = vld [vmem:[%s5100_s11 + $0xf1] sm:$0xff] }
  0xd3   : >> { %v861_v60 = vmul.f32 %v4096_v11, %v5663_v56  ;;  %v862_v20 = vmul.f32 %v4097_v37, %v5663_v56  ;;  %v863_v30 = vadd.f32 %v856_v61, %v824_v47  ;;  %v870_v16 = vmul.f32 %v4091_v33, %v5146_v31 }
  0xd4   : >> { %v864_v63 = vadd.f32 %v857_v53, %v825_v36  ;;  %v865_v38 = vadd.f32 %v858_v50, %v826_v3  ;;  %v866_v27 = vadd.f32 %v859_v45, %v827_v23  ;;  %v867_v28 = vadd.f32 %v860_v48, %v828_v34 }
  0xd5   : >> { %v868_v14 = vadd.f32 %v861_v60, %v829_v22  ;;  %v869_v43 = vadd.f32 %v862_v20, %v830_v15  ;;  %v871_v57 = vmul.f32 %v4092_v59, %v5146_v31  ;;  %v872_v58 = vmul.f32 %v4093_v8, %v5146_v31  ;;  %v4098_v15 = vld [vmem:[%s5100_s11 + $0xc1] sm:$0xff]  ;;  %v9620_v59 = vld [vmem:[#allocation26_spill] sm:$0xff] }
  0xd6   : >> { %v873_v26 = vmul.f32 %v4094_v12, %v5146_v31  ;;  %v874_v47 = vmul.f32 %v4095_v54, %v5146_v31  ;;  %v875_v36 = vmul.f32 %v4096_v11, %v5146_v31  ;;  %v876_v3 = vmul.f32 %v4097_v37, %v5146_v31  ;;  %v9621_v8 = vld [vmem:[#allocation18_spill] sm:$0xff] }
  0xd7   : >> { %v877_v33 = vadd.f32 %v870_v16, %v5592_v25  ;;  %v878_v23 = vadd.f32 %v871_v57, %v5594_v7  ;;  %v879_v34 = vadd.f32 %v872_v58, %v5597_v62  ;;  %v5733_v12 = vrot.slane %v9621_v8, %v9620_v59  ;;  %v4101_v25 = vld [vmem:[%s5100_s11 + $0xd9] sm:$0xff]  ;;  %v4103_v62 = vld [vmem:[%s5100_s11 + $0xe9] sm:$0xff] }
  0xd8   : >> { %v880_v22 = vadd.f32 %v873_v26, %v5599_v4  ;;  %v881_v54 = vadd.f32 %v874_v47, %v5601_v19  ;;  %v882_v11 = vadd.f32 %v875_v36, %v5603_v13  ;;  %v883_v37 = vadd.f32 %v876_v3, %v5606_v46 }
  0xd9   : >> { %v909_v7 = vmul.f32 %v4098_v15, %v5693_v6  ;;  %v895_v4 = vmul.f32 %v4098_v15, %v5733_v12  ;;  %v896_v40 = vmul.f32 %v4099_v0, %v5733_v12  ;;  %v897_v61 = vmul.f32 %v4100_v5, %v5733_v12 }
  0xda   : >> { %v898_v19 = vmul.f32 %v4101_v25, %v5733_v12  ;;  %v899_v13 = vmul.f32 %v4102_v42, %v5733_v12  ;;  %v900_v46 = vmul.f32 %v4103_v62, %v5733_v12  ;;  %v901_v53 = vmul.f32 %v4104_v32, %v5733_v12 }
  0xdb   : >> { %v910_v50 = vmul.f32 %v4099_v0, %v5693_v6  ;;  %v5753_v45 = vadd.f32 %v895_v4, %v849_v21  ;;  %v5755_v48 = vadd.f32 %v896_v40, %v850_v52  ;;  %v5757_v60 = vadd.f32 %v897_v61, %v851_v55 }
  0xdc   : >> { %v5759_v20 = vadd.f32 %v898_v19, %v852_v29  ;;  %v5761_v16 = vadd.f32 %v899_v13, %v853_v51  ;;  %v5763_v57 = vadd.f32 %v900_v46, %v854_v24  ;;  %v5765_v58 = vadd.f32 %v901_v53, %v855_v17 }
  0xdd   : >> { %v911_v26 = vmul.f32 %v4100_v5, %v5693_v6  ;;  %v912_v47 = vmul.f32 %v4101_v25, %v5693_v6  ;;  %v913_v36 = vmul.f32 %v4102_v42, %v5693_v6  ;;  %v914_v21 = vmul.f32 %v4103_v62, %v5693_v6 }
  0xde   : >> { %v915_v52 = vmul.f32 %v4104_v32, %v5693_v6  ;;  %v5772_v55 = vadd.f32 %v909_v7, %v863_v30  ;;  %v5774_v29 = vadd.f32 %v910_v50, %v864_v63  ;;  %v923_v24 = vmul.f32 %v4098_v15, %v5663_v56 }
  0xdf   : >> { %v5776_v51 = vadd.f32 %v911_v26, %v865_v38  ;;  %v5779_v17 = vadd.f32 %v912_v47, %v866_v27  ;;  %v5781_v3 = vadd.f32 %v913_v36, %v867_v28  ;;  %v5783_v4 = vadd.f32 %v914_v21, %v868_v14  ;;  %v4109_v36 = vld [vmem:[%s5100_s11 + $0x121] sm:$0xff]  ;;  %v4110_v21 = vld [vmem:[%s5100_s11 + $0x129] sm:$0xff] }
  0xe0   : >> { %v5785_v40 = vadd.f32 %v915_v52, %v869_v43  ;;  %v924_v61 = vmul.f32 %v4099_v0, %v5663_v56  ;;  %v925_v19 = vmul.f32 %v4100_v5, %v5663_v56  ;;  %v926_v30 = vmul.f32 %v4101_v25, %v5663_v56  ;;  %v4111_v52 = vld [vmem:[%s5100_s11 + $0x131] sm:$0xff] }
  0xe1   : >> { %v927_v63 = vmul.f32 %v4102_v42, %v5663_v56  ;;  %v928_v38 = vmul.f32 %v4103_v62, %v5663_v56  ;;  %v929_v7 = vmul.f32 %v4104_v32, %v5663_v56  ;;  %v5793_v27 = vadd.f32 %v923_v24, %v877_v33 }
  0xe2   : >> { %v937_v28 = vmul.f32 %v4098_v15, %v5146_v31  ;;  %v5796_v14 = vadd.f32 %v924_v61, %v878_v23  ;;  %v5798_v43 = vadd.f32 %v925_v19, %v879_v34  ;;  %v5800_v13 = vadd.f32 %v926_v30, %v880_v22 }
  0xe3   : >> { %v5802_v46 = vadd.f32 %v927_v63, %v881_v54  ;;  %v5804_v53 = vadd.f32 %v928_v38, %v882_v11  ;;  %v5806_v50 = vadd.f32 %v929_v7, %v883_v37  ;;  %v938_v26 = vmul.f32 %v4099_v0, %v5146_v31  ;;  %v4105_v0 = vld [vmem:[%s5100_s11 + $0x101] sm:$0xff] }
  0xe4   : >> { %v939_v33 = vmul.f32 %v4100_v5, %v5146_v31  ;;  %v940_v23 = vmul.f32 %v4101_v25, %v5146_v31  ;;  %v941_v34 = vmul.f32 %v4102_v42, %v5146_v31  ;;  %v942_v22 = vmul.f32 %v4103_v62, %v5146_v31  ;;  %v9622_v5 = vld [vmem:[#allocation27_spill] sm:$0xff] }
  0xe5   : >> { %v943_v15 = vmul.f32 %v4104_v32, %v5146_v31  ;;  %v5815_v54 = vadd.f32 %v937_v28, %v5631_v9  ;;  %v5818_v11 = vadd.f32 %v938_v26, %v5633_v39  ;;  %v9623_v25 = vld [vmem:[#allocation19_spill] sm:$0xff]  ;;  %v4106_v39 = vld [vmem:[%s5100_s11 + $0x109] sm:$0xff]  ;;  %v976_v30 = vmul.f32 %v4105_v0, %v5733_v12 }
  0xe6   : >> { %v5821_v37 = vadd.f32 %v939_v33, %v5639_v18  ;;  %v5826_v47 = vrot.slane %v9623_v25, %v9622_v5  ;;  %v5829_v42 = vadd.f32 %v940_v23, %v5641_v49  ;;  %v5832_v62 = vadd.f32 %v941_v34, %v5643_v2  ;;  %v4107_v18 = vld [vmem:[%s5100_s11 + $0x111] sm:$0xff]  ;;  %v4108_v32 = vld [vmem:[%s5100_s11 + $0x119] sm:$0xff] }
  0xe7   : >> { %v5835_v31 = vadd.f32 %v942_v22, %v5645_v44  ;;  %v5838_v9 = vadd.f32 %v943_v15, %v5647_v35  ;;  %v979_v34 = vmul.f32 %v4108_v32, %v5733_v12  ;;  %v982_v22 = vmul.f32 %v4111_v52, %v5733_v12 }
  0xe8   : >> { %v962_v24 = vmul.f32 %v4105_v0, %v5826_v47  ;;  %v963_v49 = vmul.f32 %v4106_v39, %v5826_v47  ;;  %v964_v61 = vmul.f32 %v4107_v18, %v5826_v47  ;;  %v965_v2 = vmul.f32 %v4108_v32, %v5826_v47 }
  0xe9   : >> { %v966_v44 = vmul.f32 %v4109_v36, %v5826_v47  ;;  %v967_v19 = vmul.f32 %v4110_v21, %v5826_v47  ;;  %v968_v35 = vmul.f32 %v4111_v52, %v5826_v47 }
  0xea   : >> { %v5855_v63 = vadd.f32 %v962_v24, %v5753_v45  ;;  %v5858_v38 = vadd.f32 %v963_v49, %v5755_v48  ;;  %v5861_v7 = vadd.f32 %v964_v61, %v5757_v60  ;;  %v5864_v28 = vadd.f32 %v965_v2, %v5759_v20 }
  0xeb   : >> { %v5867_v26 = vadd.f32 %v966_v44, %v5761_v16  ;;  %v5870_v33 = vadd.f32 %v967_v19, %v5763_v57  ;;  %v5873_v23 = vadd.f32 %v968_v35, %v5765_v58  ;;  %v977_v45 = vmul.f32 %v4106_v39, %v5733_v12 }
  0xec   : >> { %v978_v48 = vmul.f32 %v4107_v18, %v5733_v12  ;;  %v980_v60 = vmul.f32 %v4109_v36, %v5733_v12  ;;  %v981_v20 = vmul.f32 %v4110_v21, %v5733_v12  ;;  %v5882_v16 = vadd.f32 %v976_v30, %v5772_v55 }
  0xed   : >> { %v5885_v57 = vadd.f32 %v977_v45, %v5774_v29  ;;  %v990_v58 = vmul.f32 %v4105_v0, %v5693_v6  ;;  %v5892_v24 = vadd.f32 %v979_v34, %v5779_v17  ;;  %v5901_v55 = vadd.f32 %v982_v22, %v5785_v40 }
  0xee   : >> { %v5889_v15 = vadd.f32 %v978_v48, %v5776_v51  ;;  %v5895_v49 = vadd.f32 %v980_v60, %v5781_v3  ;;  %v5898_v61 = vadd.f32 %v981_v20, %v5783_v4  ;;  %v991_v29 = vmul.f32 %v4106_v39, %v5693_v6  ;;  %v9624_v60 = vld [vmem:[#allocation28_spill] sm:$0xff] }
  0xef   : >> { %v992_v2 = vmul.f32 %v4107_v18, %v5693_v6  ;;  %v993_v44 = vmul.f32 %v4108_v32, %v5693_v6  ;;  %v994_v51 = vmul.f32 %v4109_v36, %v5693_v6  ;;  %v995_v17 = vmul.f32 %v4110_v21, %v5693_v6 }
  0xf0   : >> { %v996_v19 = vmul.f32 %v4111_v52, %v5693_v6  ;;  %v5910_v3 = vadd.f32 %v990_v58, %v5793_v27  ;;  %v5913_v4 = vadd.f32 %v991_v29, %v5796_v14  ;;  %v1004_v30 = vmul.f32 %v4105_v0, %v5663_v56  ;;  %v4116_v58 = vld [vmem:[%s5100_s11 + $0x161] sm:$0xff]  ;;  %v4117_v29 = vld [vmem:[%s5100_s11 + $0x169] sm:$0xff] }
  0xf1   : >> { %v5916_v40 = vadd.f32 %v992_v2, %v5798_v43  ;;  %v5919_v35 = vadd.f32 %v993_v44, %v5800_v13  ;;  %v5923_v45 = vadd.f32 %v994_v51, %v5802_v46  ;;  %v5926_v48 = vadd.f32 %v995_v17, %v5804_v53  ;;  %v4118_v2 = vld [vmem:[%s5100_s11 + $0x171] sm:$0xff] }
  0xf2   : >> { %v5929_v27 = vadd.f32 %v996_v19, %v5806_v50  ;;  %v1005_v14 = vmul.f32 %v4106_v39, %v5663_v56  ;;  %v1006_v43 = vmul.f32 %v4107_v18, %v5663_v56  ;;  %v1007_v13 = vmul.f32 %v4108_v32, %v5663_v56  ;;  %v4112_v39 = vld [vmem:[%s5100_s11 + $0x141] sm:$0xff] }
  0xf3   : >> { %v1008_v0 = vmul.f32 %v4109_v36, %v5663_v56  ;;  %v1009_v46 = vmul.f32 %v4110_v21, %v5663_v56  ;;  %v1010_v53 = vmul.f32 %v4111_v52, %v5663_v56  ;;  %v5938_v50 = vadd.f32 %v1004_v30, %v5815_v54  ;;  %v9625_v18 = vld [vmem:[#allocation20_spill] sm:$0xff]  ;;  %v4113_v54 = vld [vmem:[%s5100_s11 + $0x149] sm:$0xff] }
  0xf4   : >> { %v5941_v34 = vadd.f32 %v1005_v14, %v5818_v11  ;;  %v5946_v20 = vrot.slane %v9625_v18, %v9624_v60  ;;  %v5949_v32 = vadd.f32 %v1006_v43, %v5821_v37  ;;  %v5952_v36 = vadd.f32 %v1007_v13, %v5829_v42  ;;  %v4114_v11 = vld [vmem:[%s5100_s11 + $0x151] sm:$0xff]  ;;  %v4115_v52 = vld [vmem:[%s5100_s11 + $0x159] sm:$0xff] }
  0xf5   : >> { %v5955_v21 = vadd.f32 %v1008_v0, %v5832_v62  ;;  %v5958_v56 = vadd.f32 %v1009_v46, %v5835_v31  ;;  %v5964_v22 = vadd.f32 %v1010_v53, %v5838_v9  ;;  %v1043_v14 = vmul.f32 %v4112_v39, %v5826_v47 }
  0xf6   : >> { %v1029_v37 = vmul.f32 %v4112_v39, %v5946_v20  ;;  %v1030_v42 = vmul.f32 %v4113_v54, %v5946_v20  ;;  %v1031_v44 = vmul.f32 %v4114_v11, %v5946_v20  ;;  %v1032_v62 = vmul.f32 %v4115_v52, %v5946_v20 }
  0xf7   : >> { %v1033_v31 = vmul.f32 %v4116_v58, %v5946_v20  ;;  %v1034_v51 = vmul.f32 %v4117_v29, %v5946_v20  ;;  %v1035_v17 = vmul.f32 %v4118_v2, %v5946_v20  ;;  %v1045_v46 = vmul.f32 %v4114_v11, %v5826_v47 }
  0xf8   : >> { %v5977_v9 = vadd.f32 %v1029_v37, %v5855_v63  ;;  %v5980_v19 = vadd.f32 %v1030_v42, %v5858_v38  ;;  %v5983_v30 = vadd.f32 %v1031_v44, %v5861_v7  ;;  %v5987_v43 = vadd.f32 %v1032_v62, %v5864_v28 }
  0xf9   : >> { %v5990_v13 = vadd.f32 %v1033_v31, %v5867_v26  ;;  %v5993_v0 = vadd.f32 %v1034_v51, %v5870_v33  ;;  %v5996_v63 = vadd.f32 %v1035_v17, %v5873_v23  ;;  %v1044_v38 = vmul.f32 %v4113_v54, %v5826_v47 }
  0xfa   : >> { %v1046_v7 = vmul.f32 %v4115_v52, %v5826_v47  ;;  %v1047_v53 = vmul.f32 %v4116_v58, %v5826_v47  ;;  %v1048_v28 = vmul.f32 %v4117_v29, %v5826_v47  ;;  %v1049_v37 = vmul.f32 %v4118_v2, %v5826_v47 }
  0xfb   : >> { %v6005_v26 = vadd.f32 %v1043_v14, %v5882_v16  ;;  %v1057_v33 = vmul.f32 %v4112_v39, %v5733_v12  ;;  %v6009_v23 = vadd.f32 %v1044_v38, %v5885_v57  ;;  %v6012_v42 = vadd.f32 %v1045_v46, %v5889_v15 }
  0xfc   : >> { %v6015_v44 = vadd.f32 %v1046_v7, %v5892_v24  ;;  %v6018_v62 = vadd.f32 %v1047_v53, %v5895_v49  ;;  %v6021_v31 = vadd.f32 %v1048_v28, %v5898_v61  ;;  %v6024_v16 = vadd.f32 %v1049_v37, %v5901_v55  ;;  %v9627_v37 = vld [vmem:[#allocation21_spill] sm:$0xff] }
  0xfd   : >> { %v1058_v51 = vmul.f32 %v4113_v54, %v5733_v12  ;;  %v1059_v57 = vmul.f32 %v4114_v11, %v5733_v12  ;;  %v1060_v17 = vmul.f32 %v4115_v52, %v5733_v12  ;;  %v1061_v15 = vmul.f32 %v4116_v58, %v5733_v12 }
  0xfe   : >> { %v1062_v24 = vmul.f32 %v4117_v29, %v5733_v12  ;;  %v1063_v14 = vmul.f32 %v4118_v2, %v5733_v12  ;;  %v6033_v49 = vadd.f32 %v1057_v33, %v5910_v3  ;;  %v1071_v38 = vmul.f32 %v4112_v39, %v5693_v6 }
  0xff   : >> { %v6036_v61 = vadd.f32 %v1058_v51, %v5913_v4  ;;  %v6039_v55 = vadd.f32 %v1059_v57, %v5916_v40  ;;  %v6043_v46 = vadd.f32 %v1060_v17, %v5919_v35  ;;  %v6046_v7 = vadd.f32 %v1061_v15, %v5923_v45  ;;  %v4123_v57 = vld [vmem:[%s5100_s11 + $0x1a1] sm:$0xff]  ;;  %v4124_v17 = vld [vmem:[%s5100_s11 + $0x1a9] sm:$0xff]  ;;  %v4125_v15 = vld [vmem:[%s5100_s11 + $0x1b1] sm:$0xff] }
 0x100   : >> { %v6049_v53 = vadd.f32 %v1062_v24, %v5926_v48  ;;  %v6052_v3 = vadd.f32 %v1063_v14, %v5929_v27  ;;  %v1072_v4 = vmul.f32 %v4113_v54, %v5693_v6  ;;  %v1073_v40 = vmul.f32 %v4114_v11, %v5693_v6  ;;  %v9626_v27 = vld [vmem:[#allocation29_spill] sm:$0xff] }
 0x101   : >> { %v1074_v35 = vmul.f32 %v4115_v52, %v5693_v6  ;;  %v1075_v39 = vmul.f32 %v4116_v58, %v5693_v6  ;;  %v1076_v45 = vmul.f32 %v4117_v29, %v5693_v6  ;;  %v1077_v48 = vmul.f32 %v4118_v2, %v5693_v6  ;;  %v4119_v6 = vld [vmem:[%s5100_s11 + $0x181] sm:$0xff]  ;;  %v4121_v2 = vld [vmem:[%s5100_s11 + $0x191] sm:$0xff] }
 0x102   : >> { %v6061_v28 = vadd.f32 %v1071_v38, %v5938_v50  ;;  %v6065_v54 = vrot.slane %v9627_v37, %v9626_v27  ;;  %v6068_v11 = vadd.f32 %v1072_v4, %v5941_v34  ;;  %v6071_v52 = vadd.f32 %v1073_v40, %v5949_v32  ;;  %v4120_v50 = vld [vmem:[%s5100_s11 + $0x189] sm:$0xff]  ;;  %v4122_v34 = vld [vmem:[%s5100_s11 + $0x199] sm:$0xff] }
 0x103   : >> { %v6074_v58 = vadd.f32 %v1074_v35, %v5952_v36  ;;  %v6077_v29 = vadd.f32 %v1075_v39, %v5955_v21  ;;  %v6083_v33 = vadd.f32 %v1076_v45, %v5958_v56  ;;  %v6086_v51 = vadd.f32 %v1077_v48, %v5964_v22 }
 0x104   : >> { %v1096_v32 = vmul.f32 %v4119_v6, %v6065_v54  ;;  %v1097_v36 = vmul.f32 %v4120_v50, %v6065_v54  ;;  %v1098_v21 = vmul.f32 %v4121_v2, %v6065_v54  ;;  %v1099_v24 = vmul.f32 %v4122_v34, %v6065_v54 }
 0x105   : >> { %v1100_v14 = vmul.f32 %v4123_v57, %v6065_v54  ;;  %v1101_v56 = vmul.f32 %v4124_v17, %v6065_v54  ;;  %v1102_v38 = vmul.f32 %v4125_v15, %v6065_v54  ;;  %v1110_v40 = vmul.f32 %v4119_v6, %v5946_v20 }
 0x106   : >> { %v6100_v22 = vadd.f32 %v1096_v32, %v5977_v9  ;;  %v6103_v4 = vadd.f32 %v1097_v36, %v5980_v19  ;;  %v6107_v35 = vadd.f32 %v1098_v21, %v5983_v30  ;;  %v6110_v39 = vadd.f32 %v1099_v24, %v5987_v43 }
 0x107   : >> { %v6113_v45 = vadd.f32 %v1100_v14, %v5990_v13  ;;  %v6116_v48 = vadd.f32 %v1101_v56, %v5993_v0  ;;  %v6119_v9 = vadd.f32 %v1102_v38, %v5996_v63  ;;  %v1111_v19 = vmul.f32 %v4120_v50, %v5946_v20 }
 0x108   : >> { %v1112_v32 = vmul.f32 %v4121_v2, %v5946_v20  ;;  %v1113_v36 = vmul.f32 %v4122_v34, %v5946_v20  ;;  %v1114_v30 = vmul.f32 %v4123_v57, %v5946_v20  ;;  %v1115_v43 = vmul.f32 %v4124_v17, %v5946_v20 }
 0x109   : >> { %v1116_v21 = vmul.f32 %v4125_v15, %v5946_v20  ;;  %v1117_v13 = vadd.f32 %v1110_v40, %v6005_v26  ;;  %v1118_v0 = vadd.f32 %v1111_v19, %v6009_v23  ;;  %v1124_v14 = vmul.f32 %v4119_v6, %v5826_v47 }
 0x10a   : >> { %v1119_v24 = vadd.f32 %v1112_v32, %v6012_v42  ;;  %v1120_v63 = vadd.f32 %v1113_v36, %v6015_v44  ;;  %v1121_v56 = vadd.f32 %v1114_v30, %v6018_v62  ;;  %v1122_v38 = vadd.f32 %v1115_v43, %v6021_v31 }
 0x10b   : >> { %v1123_v27 = vadd.f32 %v1116_v21, %v6024_v16  ;;  %v1125_v37 = vmul.f32 %v4120_v50, %v5826_v47  ;;  %v1126_v60 = vmul.f32 %v4121_v2, %v5826_v47  ;;  %v1127_v26 = vmul.f32 %v4122_v34, %v5826_v47  ;;  %v4130_v21 = vld [vmem:[%s5100_s11 + $0x1e1] sm:$0xff] }
 0x10c   : >> { %v1128_v23 = vmul.f32 %v4123_v57, %v5826_v47  ;;  %v1129_v42 = vmul.f32 %v4124_v17, %v5826_v47  ;;  %v1130_v44 = vmul.f32 %v4125_v15, %v5826_v47  ;;  %v1131_v40 = vadd.f32 %v1124_v14, %v6033_v49 }
 0x10d   : >> { %v1132_v62 = vadd.f32 %v1125_v37, %v6036_v61  ;;  %v1138_v31 = vmul.f32 %v4119_v6, %v5733_v12  ;;  %v1133_v16 = vadd.f32 %v1126_v60, %v6039_v55  ;;  %v1134_v19 = vadd.f32 %v1127_v26, %v6043_v46 }
 0x10e   : >> { %v1135_v32 = vadd.f32 %v1128_v23, %v6046_v7  ;;  %v1136_v36 = vadd.f32 %v1129_v42, %v6049_v53  ;;  %v1137_v30 = vadd.f32 %v1130_v44, %v6052_v3  ;;  %v1139_v43 = vmul.f32 %v4120_v50, %v5733_v12  ;;  %v4126_v53 = vld [vmem:[%s5100_s11 + $0x1c1] sm:$0xff]  ;;  %v4127_v50 = vld [vmem:[%s5100_s11 + $0x1c9] sm:$0xff] }
 0x10f   : >> { %v1140_v49 = vmul.f32 %v4121_v2, %v5733_v12  ;;  %v1141_v61 = vmul.f32 %v4122_v34, %v5733_v12  ;;  %v1142_v60 = vmul.f32 %v4123_v57, %v5733_v12  ;;  %v1143_v55 = vmul.f32 %v4124_v17, %v5733_v12  ;;  %v4128_v2 = vld [vmem:[%s5100_s11 + $0x1d1] sm:$0xff] }
 0x110   : >> { %v1144_v46 = vmul.f32 %v4125_v15, %v5733_v12  ;;  %v1145_v7 = vadd.f32 %v1138_v31, %v6061_v28  ;;  %v1146_v3 = vadd.f32 %v1139_v43, %v6068_v11  ;;  %v1159_v34 = vmul.f32 %v4126_v53, %v6065_v54  ;;  %v4129_v15 = vld [vmem:[%s5100_s11 + $0x1d9] sm:$0xff]  ;;  %v4131_v28 = vld [vmem:[%s5100_s11 + $0x1e9] sm:$0xff]  ;;  %v4132_v11 = vld [vmem:[%s5100_s11 + $0x1f1] sm:$0xff] }
 0x111   : >> { %v1147_v37 = vadd.f32 %v1140_v49, %v6071_v52  ;;  %v1148_v6 = vadd.f32 %v1141_v61, %v6074_v58  ;;  %v1149_v57 = vadd.f32 %v1142_v60, %v6077_v29  ;;  %v1150_v17 = vadd.f32 %v1143_v55, %v6083_v33 }
 0x112   : >> { %v1151_v12 = vadd.f32 %v1144_v46, %v6086_v51  ;;  %v1160_v14 = vmul.f32 %v4127_v50, %v6065_v54  ;;  %v1161_v52 = vmul.f32 %v4128_v2, %v6065_v54  ;;  %v1162_v58 = vmul.f32 %v4129_v15, %v6065_v54 }
 0x113   : >> { %v1163_v26 = vmul.f32 %v4130_v21, %v6065_v54  ;;  %v1164_v23 = vmul.f32 %v4131_v28, %v6065_v54  ;;  %v1165_v29 = vmul.f32 %v4132_v11, %v6065_v54  ;;  %v6176_v42 = vadd.f32 %v1159_v34, %v1117_v13 }
 0x114   : >> { %v6178_v33 = vadd.f32 %v1160_v14, %v1118_v0  ;;  %v1173_v51 = vmul.f32 %v4126_v53, %v5946_v20  ;;  %v6181_v44 = vadd.f32 %v1161_v52, %v1119_v24  ;;  %v6183_v31 = vadd.f32 %v1162_v58, %v1120_v63 }
 0x115   : >> { %v6185_v43 = vadd.f32 %v1163_v26, %v1121_v56  ;;  %v6187_v49 = vadd.f32 %v1164_v23, %v1122_v38  ;;  %v6189_v61 = vadd.f32 %v1165_v29, %v1123_v27  ;;  %v1174_v60 = vmul.f32 %v4127_v50, %v5946_v20 }
 0x116   : >> { %v1175_v55 = vmul.f32 %v4128_v2, %v5946_v20  ;;  %v1176_v13 = vmul.f32 %v4129_v15, %v5946_v20  ;;  %v1177_v0 = vmul.f32 %v4130_v21, %v5946_v20  ;;  %v1178_v24 = vmul.f32 %v4131_v28, %v5946_v20 }
 0x117   : >> { %v1179_v63 = vmul.f32 %v4132_v11, %v5946_v20  ;;  %v1180_v46 = vadd.f32 %v1173_v51, %v1131_v40  ;;  %v1181_v56 = vadd.f32 %v1174_v60, %v1132_v62  ;;  %v1187_v27 = vmul.f32 %v4126_v53, %v5826_v47  ;;  %v4134_v60 = vld [vmem:[%s5100_s11 + $0x209] sm:$0xff] }
 0x118   : >> { %v1182_v34 = vadd.f32 %v1175_v55, %v1133_v16  ;;  %v1183_v38 = vadd.f32 %v1176_v13, %v1134_v19  ;;  %v1184_v14 = vadd.f32 %v1177_v0, %v1135_v32  ;;  %v1185_v52 = vadd.f32 %v1178_v24, %v1136_v36  ;;  %v4133_v16 = vld [vmem:[%s5100_s11 + $0x201] sm:$0xff]  ;;  %v4136_v55 = vld [vmem:[%s5100_s11 + $0x219] sm:$0xff]  ;;  %v4138_v0 = vld [vmem:[%s5100_s11 + $0x229] sm:$0xff] }
 0x119   : >> { %v1186_v58 = vadd.f32 %v1179_v63, %v1137_v30  ;;  %v1188_v26 = vmul.f32 %v4127_v50, %v5826_v47  ;;  %v1189_v23 = vmul.f32 %v4128_v2, %v5826_v47  ;;  %v1190_v29 = vmul.f32 %v4129_v15, %v5826_v47  ;;  %v4135_v15 = vld [vmem:[%s5100_s11 + $0x211] sm:$0xff]  ;;  %v4137_v13 = vld [vmem:[%s5100_s11 + $0x221] sm:$0xff] }
 0x11a   : >> { %v1191_v40 = vmul.f32 %v4130_v21, %v5826_v47  ;;  %v1192_v62 = vmul.f32 %v4131_v28, %v5826_v47  ;;  %v1193_v19 = vmul.f32 %v4132_v11, %v5826_v47  ;;  %v1194_v32 = vadd.f32 %v1187_v27, %v1145_v7  ;;  %v4139_v28 = vld [vmem:[%s5100_s11 + $0x231] sm:$0xff]  ;;  %v4140_v27 = vld [vmem:[%s5100_s11 + $0x241] sm:$0xff] }
 0x11b   : >> { %v1195_v36 = vadd.f32 %v1188_v26, %v1146_v3  ;;  %v1208_v30 = vmul.f32 %v4133_v16, %v6065_v54  ;;  %v1196_v53 = vadd.f32 %v1189_v23, %v1147_v37  ;;  %v1197_v50 = vadd.f32 %v1190_v29, %v1148_v6 }
 0x11c   : >> { %v1198_v51 = vadd.f32 %v1191_v40, %v1149_v57  ;;  %v1199_v2 = vadd.f32 %v1192_v62, %v1150_v17  ;;  %v1200_v21 = vadd.f32 %v1193_v19, %v1151_v12  ;;  %v1209_v24 = vmul.f32 %v4134_v60, %v6065_v54  ;;  %v4141_v62 = vld [vmem:[%s5100_s11 + $0x249] sm:$0xff]  ;;  %v4143_v19 = vld [vmem:[%s5100_s11 + $0x259] sm:$0xff] }
 0x11d   : >> { %v1210_v47 = vmul.f32 %v4135_v15, %v6065_v54  ;;  %v1211_v7 = vmul.f32 %v4136_v55, %v6065_v54  ;;  %v1212_v3 = vmul.f32 %v4137_v13, %v6065_v54  ;;  %v1213_v37 = vmul.f32 %v4138_v0, %v6065_v54 }
 0x11e   : >> { %v1214_v6 = vmul.f32 %v4139_v28, %v6065_v54  ;;  %v6218_v57 = vadd.f32 %v1208_v30, %v1180_v46  ;;  %v6220_v17 = vadd.f32 %v1209_v24, %v1181_v56  ;;  %v1222_v63 = vmul.f32 %v4133_v16, %v5946_v20  ;;  %v4142_v16 = vld [vmem:[%s5100_s11 + $0x251] sm:$0xff]  ;;  %v4145_v24 = vld [vmem:[%s5100_s11 + $0x269] sm:$0xff] }
 0x11f   : >> { %v6222_v12 = vadd.f32 %v1210_v47, %v1182_v34  ;;  %v6224_v11 = vadd.f32 %v1211_v7, %v1183_v38  ;;  %v6228_v26 = vadd.f32 %v1212_v3, %v1184_v14  ;;  %v6230_v23 = vadd.f32 %v1213_v37, %v1185_v52 }
 0x120   : >> { %v6232_v29 = vadd.f32 %v1214_v6, %v1186_v58  ;;  %v1223_v46 = vmul.f32 %v4134_v60, %v5946_v20  ;;  %v1224_v56 = vmul.f32 %v4135_v15, %v5946_v20  ;;  %v1225_v34 = vmul.f32 %v4136_v55, %v5946_v20  ;;  %v4144_v58 = vld [vmem:[%s5100_s11 + $0x261] sm:$0xff]  ;;  %v4146_v60 = vld [vmem:[%s5100_s11 + $0x271] sm:$0xff] }
 0x121   : >> { %v1226_v38 = vmul.f32 %v4137_v13, %v5946_v20  ;;  %v1227_v40 = vmul.f32 %v4138_v0, %v5946_v20  ;;  %v1228_v14 = vmul.f32 %v4139_v28, %v5946_v20  ;;  %v1229_v52 = vadd.f32 %v1222_v63, %v1194_v32 }
 0x122   : >> { %v1230_v30 = vadd.f32 %v1223_v46, %v1195_v36  ;;  %v1243_v15 = vmul.f32 %v4140_v27, %v6065_v54  ;;  %v1231_v55 = vadd.f32 %v1224_v56, %v1196_v53  ;;  %v1232_v13 = vadd.f32 %v1225_v34, %v1197_v50  ;;  %v1257_v36 = vld [vmem:[%s5100_s11 + $0x2] sm:$0xff]  ;;  %v1262_v56 = vld [vmem:[%s5100_s11 + $0x2a] sm:$0xff]  ;;  %v1263_v34 = vld [vmem:[%s5100_s11 + $0x32] sm:$0xff] }
 0x123   : >> { %v1233_v47 = vadd.f32 %v1226_v38, %v1198_v51  ;;  %v1234_v0 = vadd.f32 %v1227_v40, %v1199_v2  ;;  %v1235_v7 = vadd.f32 %v1228_v14, %v1200_v21  ;;  %v1244_v3 = vmul.f32 %v4141_v62, %v6065_v54  ;;  %v1258_v51 = vld [vmem:[%s5100_s11 + $0xa] sm:$0xff]  ;;  %v1259_v2 = vld [vmem:[%s5100_s11 + $0x12] sm:$0xff]  ;;  %v1260_v21 = vld [vmem:[%s5100_s11 + $0x1a] sm:$0xff] }
 0x124   : >> { %v1245_v20 = vmul.f32 %v4142_v16, %v6065_v54  ;;  %v1246_v32 = vmul.f32 %v4143_v19, %v6065_v54  ;;  %v1247_v28 = vmul.f32 %v4144_v58, %v6065_v54  ;;  %v1248_v37 = vmul.f32 %v4145_v24, %v6065_v54  ;;  %v1261_v46 = vld [vmem:[%s5100_s11 + $0x22] sm:$0xff]  ;;  %v9628_v38 = vld [vmem:[#allocation30_spill] sm:$0xff]  ;;  %v9629_v40 = vld [vmem:[#allocation16_spill] sm:$0xff] }
 0x125   : >> { %v1249_v53 = vmul.f32 %v4146_v60, %v6065_v54  ;;  %v6254_v50 = vadd.f32 %v1243_v15, %v1229_v52  ;;  %v6259_v6 = vadd.f32 %v1244_v3, %v1230_v30  ;;  %v6270_v62 = vrot.slane %v9629_v40, %v9628_v38  ;;  %v9632_v14 = vld [vmem:[#allocation31_spill] sm:$0xff]  ;;  %v4147_v15 = vld [vmem:[%s5100_s11 + $0x42] sm:$0xff] }
 0x126   : >> { %v6261_v63 = vadd.f32 %v1245_v20, %v1231_v55  ;;  %v6263_v27 = vadd.f32 %v1246_v32, %v1232_v13  ;;  %v6272_v54 = vadd.f32 %v1247_v28, %v1233_v47  ;;  %v6274_v16 = vadd.f32 %v1248_v37, %v1234_v0  ;;  %v4149_v28 = vld [vmem:[%s5100_s11 + $0x52] sm:$0xff] }
 0x127   : >> { %v6276_v19 = vadd.f32 %v1249_v53, %v1235_v7  ;;  %v6280_v52 = vrot.slane %v9605_v1, %v9632_v14  ;;  %v1268_v30 = vmul.f32 %v6270_v62, %v1257_v36  ;;  %v1269_v58 = vmul.f32 %v6270_v62, %v1258_v51  ;;  %v4148_v36 = vld [vmem:[%s5100_s11 + $0x4a] sm:$0xff] }
 0x128   : >> { %9630 = vst [vmem:[#allocation32_spill] sm:$0xff] %v6274_v16  ;;  %v1270_v24 = vmul.f32 %v6270_v62, %v1259_v2  ;;  %v1271_v60 = vmul.f32 %v6270_v62, %v1260_v21  ;;  %v1272_v55 = vmul.f32 %v6270_v62, %v1261_v46  ;;  %v1273_v13 = vmul.f32 %v6270_v62, %v1262_v56  ;;  %v4150_v2 = vld [vmem:[%s5100_s11 + $0x5a] sm:$0xff]  ;;  %v4151_v21 = vld [vmem:[%s5100_s11 + $0x62] sm:$0xff]  ;;  %v4152_v46 = vld [vmem:[%s5100_s11 + $0x6a] sm:$0xff] }
 0x129   : >> { %9631 = vst [vmem:[#allocation33_spill] sm:$0xff] %v6276_v19  ;;  %v1274_v47 = vmul.f32 %v6270_v62, %v1263_v34  ;;  %v1293_v0 = vmul.f32 %v4147_v15, %v6280_v52  ;;  %v1275_v7 = vadd.f32 %v1268_v30, %v6100_v22  ;;  %v1276_v3 = vadd.f32 %v1269_v58, %v6103_v4  ;;  %v4153_v22 = vld [vmem:[%s5100_s11 + $0x72] sm:$0xff] }
 0x12a   : >> { %v1277_v20 = vadd.f32 %v1270_v24, %v6107_v35  ;;  %v1278_v32 = vadd.f32 %v1271_v60, %v6110_v39  ;;  %v1279_v37 = vadd.f32 %v1272_v55, %v6113_v45  ;;  %v1280_v53 = vadd.f32 %v1273_v13, %v6116_v48 }
 0x12b   : >> { %v1281_v51 = vadd.f32 %v1274_v47, %v6119_v9  ;;  %v1294_v56 = vmul.f32 %v4148_v36, %v6280_v52  ;;  %v1295_v4 = vmul.f32 %v4149_v28, %v6280_v52  ;;  %v1296_v35 = vmul.f32 %v4150_v2, %v6280_v52 }
 0x12c   : >> { %v1297_v39 = vmul.f32 %v4151_v21, %v6280_v52  ;;  %v1298_v34 = vmul.f32 %v4152_v46, %v6280_v52  ;;  %v1299_v45 = vmul.f32 %v4153_v22, %v6280_v52  ;;  %v1300_v30 = vadd.f32 %v1293_v0, %v1275_v7 }
 0x12d   : >> { %v1301_v48 = vadd.f32 %v1294_v56, %v1276_v3  ;;  %v1307_v9 = vmul.f32 %v4147_v15, %v6270_v62  ;;  %v1302_v58 = vadd.f32 %v1295_v4, %v1277_v20  ;;  %v1303_v24 = vadd.f32 %v1296_v35, %v1278_v32  ;;  %v4158_v56 = vld [vmem:[%s5100_s11 + $0xa2] sm:$0xff] }
 0x12e   : >> { %v1304_v60 = vadd.f32 %v1297_v39, %v1279_v37  ;;  %v1305_v55 = vadd.f32 %v1298_v34, %v1280_v53  ;;  %v1306_v13 = vadd.f32 %v1299_v45, %v1281_v51  ;;  %v1308_v47 = vmul.f32 %v4148_v36, %v6270_v62 }
 0x12f   : >> { %v1309_v14 = vmul.f32 %v4149_v28, %v6270_v62  ;;  %v1310_v1 = vmul.f32 %v4150_v2, %v6270_v62  ;;  %v1311_v0 = vmul.f32 %v4151_v21, %v6270_v62  ;;  %v1312_v15 = vmul.f32 %v4152_v46, %v6270_v62  ;;  %v4154_v28 = vld [vmem:[%s5100_s11 + $0x82] sm:$0xff]  ;;  %v4155_v21 = vld [vmem:[%s5100_s11 + $0x8a] sm:$0xff]  ;;  %v4156_v46 = vld [vmem:[%s5100_s11 + $0x92] sm:$0xff] }
 0x130   : >> { %v1313_v7 = vmul.f32 %v4153_v22, %v6270_v62  ;;  %v1314_v3 = vadd.f32 %v1307_v9, %v6176_v42  ;;  %v1315_v20 = vadd.f32 %v1308_v47, %v6178_v33  ;;  %v6324_v37 = vrot.slane %v9621_v8, %v5090_v10  ;;  %v4157_v42 = vld [vmem:[%s5100_s11 + $0x9a] sm:$0xff] }
 0x131   : >> { %v1316_v32 = vadd.f32 %v1309_v14, %v6181_v44  ;;  %v1317_v36 = vadd.f32 %v1310_v1, %v6183_v31  ;;  %v1318_v53 = vadd.f32 %v1311_v0, %v6185_v43  ;;  %v1319_v51 = vadd.f32 %v1312_v15, %v6187_v49  ;;  %v4159_v44 = vld [vmem:[%s5100_s11 + $0xaa] sm:$0xff]  ;;  %v4160_v14 = vld [vmem:[%s5100_s11 + $0xb2] sm:$0xff] }
 0x132   : >> { %v1320_v2 = vadd.f32 %v1313_v7, %v6189_v61  ;;  %v1346_v33 = vmul.f32 %v4154_v28, %v6280_v52  ;;  %v1332_v1 = vmul.f32 %v4154_v28, %v6324_v37  ;;  %v1333_v31 = vmul.f32 %v4155_v21, %v6324_v37 }
 0x133   : >> { %v1334_v22 = vmul.f32 %v4156_v46, %v6324_v37  ;;  %v1335_v43 = vmul.f32 %v4157_v42, %v6324_v37  ;;  %v1336_v49 = vmul.f32 %v4158_v56, %v6324_v37  ;;  %v1337_v61 = vmul.f32 %v4159_v44, %v6324_v37 }
 0x134   : >> { %v1338_v4 = vmul.f32 %v4160_v14, %v6324_v37  ;;  %v1347_v35 = vmul.f32 %v4155_v21, %v6280_v52  ;;  %v1339_v39 = vadd.f32 %v1332_v1, %v1300_v30  ;;  %v1340_v34 = vadd.f32 %v1333_v31, %v1301_v48 }
 0x135   : >> { %v1341_v45 = vadd.f32 %v1334_v22, %v1302_v58  ;;  %v1342_v9 = vadd.f32 %v1335_v43, %v1303_v24  ;;  %v1343_v47 = vadd.f32 %v1336_v49, %v1304_v60  ;;  %v1344_v0 = vadd.f32 %v1337_v61, %v1305_v55 }
 0x136   : >> { %v1345_v15 = vadd.f32 %v1338_v4, %v1306_v13  ;;  %v1348_v7 = vmul.f32 %v4156_v46, %v6280_v52  ;;  %v1349_v10 = vmul.f32 %v4157_v42, %v6280_v52  ;;  %v1350_v38 = vmul.f32 %v4158_v56, %v6280_v52 }
 0x137   : >> { %v1351_v40 = vmul.f32 %v4159_v44, %v6280_v52  ;;  %v1352_v18 = vmul.f32 %v4160_v14, %v6280_v52  ;;  %v1353_v5 = vadd.f32 %v1346_v33, %v1314_v3  ;;  %v1354_v19 = vadd.f32 %v1347_v35, %v1315_v20  ;;  %v4166_v33 = vld [vmem:[%s5100_s11 + $0xea] sm:$0xff] }
 0x138   : >> { %v1355_v16 = vadd.f32 %v1348_v7, %v1316_v32  ;;  %v1360_v30 = vmul.f32 %v4154_v28, %v6270_v62  ;;  %v1356_v48 = vadd.f32 %v1349_v10, %v1317_v36  ;;  %v1357_v58 = vadd.f32 %v1350_v38, %v1318_v53  ;;  %v4161_v53 = vld [vmem:[%s5100_s11 + $0xc2] sm:$0xff] }
 0x139   : >> { %v1358_v24 = vadd.f32 %v1351_v40, %v1319_v51  ;;  %v1359_v60 = vadd.f32 %v1352_v18, %v1320_v2  ;;  %v1361_v55 = vmul.f32 %v4155_v21, %v6270_v62  ;;  %v1362_v13 = vmul.f32 %v4156_v46, %v6270_v62  ;;  %v4162_v51 = vld [vmem:[%s5100_s11 + $0xca] sm:$0xff]  ;;  %v4163_v2 = vld [vmem:[%s5100_s11 + $0xd2] sm:$0xff]  ;;  %v4164_v46 = vld [vmem:[%s5100_s11 + $0xda] sm:$0xff] }
 0x13a   : >> { %v1363_v1 = vmul.f32 %v4157_v42, %v6270_v62  ;;  %v1364_v3 = vmul.f32 %v4158_v56, %v6270_v62  ;;  %v1365_v20 = vmul.f32 %v4159_v44, %v6270_v62  ;;  %v1366_v10 = vmul.f32 %v4160_v14, %v6270_v62  ;;  %v4165_v42 = vld [vmem:[%s5100_s11 + $0xe2] sm:$0xff]  ;;  %v4167_v44 = vld [vmem:[%s5100_s11 + $0xf2] sm:$0xff] }
 0x13b   : >> { %v1367_v38 = vadd.f32 %v1360_v30, %v6218_v57  ;;  %v6359_v18 = vrot.slane %v9621_v8, %v9619_v41  ;;  %v1368_v40 = vadd.f32 %v1361_v55, %v6220_v17  ;;  %v1369_v32 = vadd.f32 %v1362_v13, %v6222_v12 }
 0x13c   : >> { %v1370_v36 = vadd.f32 %v1363_v1, %v6224_v11  ;;  %v1371_v28 = vadd.f32 %v1364_v3, %v6228_v26  ;;  %v1372_v21 = vadd.f32 %v1365_v20, %v6230_v23  ;;  %v1373_v57 = vadd.f32 %v1366_v10, %v6232_v29 }
 0x13d   : >> { %v1385_v56 = vmul.f32 %v4161_v53, %v6359_v18  ;;  %v1386_v17 = vmul.f32 %v4162_v51, %v6359_v18  ;;  %v1387_v12 = vmul.f32 %v4163_v2, %v6359_v18  ;;  %v1388_v11 = vmul.f32 %v4164_v46, %v6359_v18 }
 0x13e   : >> { %v1389_v26 = vmul.f32 %v4165_v42, %v6359_v18  ;;  %v1390_v14 = vmul.f32 %v4166_v33, %v6359_v18  ;;  %v1391_v23 = vmul.f32 %v4167_v44, %v6359_v18  ;;  %v1399_v22 = vmul.f32 %v4161_v53, %v6324_v37 }
 0x13f   : >> { %v6381_v31 = vadd.f32 %v1385_v56, %v1339_v39  ;;  %v6383_v29 = vadd.f32 %v1386_v17, %v1340_v34  ;;  %v6386_v43 = vadd.f32 %v1387_v12, %v1341_v45  ;;  %v6388_v49 = vadd.f32 %v1388_v11, %v1342_v9 }
 0x140   : >> { %v6390_v61 = vadd.f32 %v1389_v26, %v1343_v47  ;;  %v6392_v4 = vadd.f32 %v1390_v14, %v1344_v0  ;;  %v6394_v35 = vadd.f32 %v1391_v23, %v1345_v15  ;;  %v1400_v7 = vmul.f32 %v4162_v51, %v6324_v37 }
 0x141   : >> { %v1401_v30 = vmul.f32 %v4163_v2, %v6324_v37  ;;  %v1402_v39 = vmul.f32 %v4164_v46, %v6324_v37  ;;  %v1403_v34 = vmul.f32 %v4165_v42, %v6324_v37  ;;  %v1404_v55 = vmul.f32 %v4166_v33, %v6324_v37 }
 0x142   : >> { %v1405_v45 = vmul.f32 %v4167_v44, %v6324_v37  ;;  %v6402_v9 = vadd.f32 %v1399_v22, %v1353_v5  ;;  %v6404_v47 = vadd.f32 %v1400_v7, %v1354_v19  ;;  %v1413_v13 = vmul.f32 %v4161_v53, %v6280_v52  ;;  %v4171_v22 = vld [vmem:[%s5100_s11 + $0x11a] sm:$0xff]  ;;  %v4172_v7 = vld [vmem:[%s5100_s11 + $0x122] sm:$0xff] }
 0x143   : >> { %v6406_v0 = vadd.f32 %v1401_v30, %v1355_v16  ;;  %v6408_v15 = vadd.f32 %v1402_v39, %v1356_v48  ;;  %v6411_v1 = vadd.f32 %v1403_v34, %v1357_v58  ;;  %v6413_v3 = vadd.f32 %v1404_v55, %v1358_v24  ;;  %v4173_v30 = vld [vmem:[%s5100_s11 + $0x12a] sm:$0xff]  ;;  %v4174_v39 = vld [vmem:[%s5100_s11 + $0x132] sm:$0xff] }
 0x144   : >> { %v6415_v20 = vadd.f32 %v1405_v45, %v1359_v60  ;;  %v1414_v10 = vmul.f32 %v4162_v51, %v6280_v52  ;;  %v1415_v56 = vmul.f32 %v4163_v2, %v6280_v52  ;;  %v1416_v5 = vmul.f32 %v4164_v46, %v6280_v52 }
 0x145   : >> { %v1417_v19 = vmul.f32 %v4165_v42, %v6280_v52  ;;  %v1418_v16 = vmul.f32 %v4166_v33, %v6280_v52  ;;  %v1419_v48 = vmul.f32 %v4167_v44, %v6280_v52  ;;  %v6423_v17 = vadd.f32 %v1413_v13, %v1367_v38 }
 0x146   : >> { %v6425_v58 = vadd.f32 %v1414_v10, %v1368_v40  ;;  %v1427_v24 = vmul.f32 %v4161_v53, %v6270_v62  ;;  %v6428_v60 = vadd.f32 %v1415_v56, %v1369_v32  ;;  %v6430_v12 = vadd.f32 %v1416_v5, %v1370_v36 }
 0x147   : >> { %v6432_v11 = vadd.f32 %v1417_v19, %v1371_v28  ;;  %v6434_v26 = vadd.f32 %v1418_v16, %v1372_v21  ;;  %v6436_v14 = vadd.f32 %v1419_v48, %v1373_v57  ;;  %v1428_v23 = vmul.f32 %v4162_v51, %v6270_v62  ;;  %v4168_v57 = vld [vmem:[%s5100_s11 + $0x102] sm:$0xff] }
 0x148   : >> { %v1429_v38 = vmul.f32 %v4163_v2, %v6270_v62  ;;  %v1430_v40 = vmul.f32 %v4164_v46, %v6270_v62  ;;  %v1431_v32 = vmul.f32 %v4165_v42, %v6270_v62  ;;  %v1432_v36 = vmul.f32 %v4166_v33, %v6270_v62  ;;  %v9633_v42 = vld [vmem:[#allocation32_spill] sm:$0xff]  ;;  %v9634_v33 = vld [vmem:[#allocation33_spill] sm:$0xff] }
 0x149   : >> { %v1433_v28 = vmul.f32 %v4167_v44, %v6270_v62  ;;  %v6445_v53 = vadd.f32 %v1427_v24, %v6254_v50  ;;  %v6448_v51 = vadd.f32 %v1428_v23, %v6259_v6  ;;  %v6459_v46 = vrot.slane %v9623_v25, %v9620_v59  ;;  %v4169_v44 = vld [vmem:[%s5100_s11 + $0x10a] sm:$0xff] }
 0x14a   : >> { %v6451_v2 = vadd.f32 %v1429_v38, %v6261_v63  ;;  %v6454_v21 = vadd.f32 %v1430_v40, %v6263_v27  ;;  %v6462_v62 = vadd.f32 %v1431_v32, %v6272_v54  ;;  %v6465_v50 = vadd.f32 %v1432_v36, %v9633_v42  ;;  %v4170_v63 = vld [vmem:[%s5100_s11 + $0x112] sm:$0xff] }
 0x14b   : >> { %v6468_v6 = vadd.f32 %v1433_v28, %v9634_v33  ;;  %v1466_v27 = vmul.f32 %v4168_v57, %v6359_v18  ;;  %v1452_v34 = vmul.f32 %v4168_v57, %v6459_v46  ;;  %v1453_v55 = vmul.f32 %v4169_v44, %v6459_v46 }
 0x14c   : >> { %v1454_v54 = vmul.f32 %v4170_v63, %v6459_v46  ;;  %v1455_v45 = vmul.f32 %v4171_v22, %v6459_v46  ;;  %v1456_v13 = vmul.f32 %v4172_v7, %v6459_v46  ;;  %v1457_v10 = vmul.f32 %v4173_v30, %v6459_v46 }
 0x14d   : >> { %v1458_v56 = vmul.f32 %v4174_v39, %v6459_v46  ;;  %v1467_v5 = vmul.f32 %v4169_v44, %v6359_v18  ;;  %v6486_v19 = vadd.f32 %v1452_v34, %v6381_v31  ;;  %v6489_v16 = vadd.f32 %v1453_v55, %v6383_v29 }
 0x14e   : >> { %v6492_v48 = vadd.f32 %v1454_v54, %v6386_v43  ;;  %v6495_v24 = vadd.f32 %v1455_v45, %v6388_v49  ;;  %v6498_v23 = vadd.f32 %v1456_v13, %v6390_v61  ;;  %v6501_v38 = vadd.f32 %v1457_v10, %v6392_v4 }
 0x14f   : >> { %v6504_v40 = vadd.f32 %v1458_v56, %v6394_v35  ;;  %v1468_v31 = vmul.f32 %v4170_v63, %v6359_v18  ;;  %v1469_v29 = vmul.f32 %v4171_v22, %v6359_v18  ;;  %v1470_v32 = vmul.f32 %v4172_v7, %v6359_v18  ;;  %v4175_v56 = vld [vmem:[%s5100_s11 + $0x142] sm:$0xff] }
 0x150   : >> { %v1471_v43 = vmul.f32 %v4173_v30, %v6359_v18  ;;  %v1472_v49 = vmul.f32 %v4174_v39, %v6359_v18  ;;  %v6512_v36 = vadd.f32 %v1466_v27, %v6402_v9  ;;  %v6515_v61 = vadd.f32 %v1467_v5, %v6404_v47  ;;  %v9636_v5 = vld [vmem:[#allocation20_spill] sm:$0xff] }
 0x151   : >> { %v6518_v4 = vadd.f32 %v1468_v31, %v6406_v0  ;;  %v1480_v35 = vmul.f32 %v4168_v57, %v6324_v37  ;;  %v6522_v28 = vadd.f32 %v1469_v29, %v6408_v15  ;;  %v6525_v42 = vadd.f32 %v1470_v32, %v6411_v1  ;;  %v4179_v29 = vld [vmem:[%s5100_s11 + $0x162] sm:$0xff]  ;;  %v4180_v32 = vld [vmem:[%s5100_s11 + $0x16a] sm:$0xff] }
 0x152   : >> { %v6528_v33 = vadd.f32 %v1471_v43, %v6413_v3  ;;  %v6531_v9 = vadd.f32 %v1472_v49, %v6415_v20  ;;  %v1481_v47 = vmul.f32 %v4169_v44, %v6324_v37  ;;  %v1482_v27 = vmul.f32 %v4170_v63, %v6324_v37  ;;  %v4181_v43 = vld [vmem:[%s5100_s11 + $0x172] sm:$0xff] }
 0x153   : >> { %v1483_v0 = vmul.f32 %v4171_v22, %v6324_v37  ;;  %v1484_v34 = vmul.f32 %v4172_v7, %v6324_v37  ;;  %v1485_v15 = vmul.f32 %v4173_v30, %v6324_v37  ;;  %v1486_v55 = vmul.f32 %v4174_v39, %v6324_v37 }
 0x154   : >> { %v6540_v1 = vadd.f32 %v1480_v35, %v6423_v17  ;;  %v1494_v3 = vmul.f32 %v4168_v57, %v6280_v52  ;;  %v6544_v20 = vadd.f32 %v1481_v47, %v6425_v58  ;;  %v6547_v54 = vadd.f32 %v1482_v27, %v6428_v60 }
 0x155   : >> { %v6550_v45 = vadd.f32 %v1483_v0, %v6430_v12  ;;  %v6553_v13 = vadd.f32 %v1484_v34, %v6432_v11  ;;  %v6556_v10 = vadd.f32 %v1485_v15, %v6434_v26  ;;  %v6559_v17 = vadd.f32 %v1486_v55, %v6436_v14 }
 0x156   : >> { %v1495_v57 = vmul.f32 %v4169_v44, %v6280_v52  ;;  %v1496_v58 = vmul.f32 %v4170_v63, %v6280_v52  ;;  %v1497_v60 = vmul.f32 %v4171_v22, %v6280_v52  ;;  %v1498_v12 = vmul.f32 %v4172_v7, %v6280_v52  ;;  %v9635_v22 = vld [vmem:[#allocation27_spill] sm:$0xff] }
 0x157   : >> { %v1499_v11 = vmul.f32 %v4173_v30, %v6280_v52  ;;  %v1500_v26 = vmul.f32 %v4174_v39, %v6280_v52  ;;  %v6568_v14 = vadd.f32 %v1494_v3, %v6445_v53  ;;  %v6579_v31 = vrot.slane %v9636_v5, %v9635_v22  ;;  %v4178_v39 = vld [vmem:[%s5100_s11 + $0x15a] sm:$0xff] }
 0x158   : >> { %v6571_v44 = vadd.f32 %v1495_v57, %v6448_v51  ;;  %v6574_v63 = vadd.f32 %v1496_v58, %v6451_v2  ;;  %v6582_v7 = vadd.f32 %v1497_v60, %v6454_v21  ;;  %v6585_v30 = vadd.f32 %v1498_v12, %v6462_v62  ;;  %v4176_v51 = vld [vmem:[%s5100_s11 + $0x14a] sm:$0xff]  ;;  %v4177_v2 = vld [vmem:[%s5100_s11 + $0x152] sm:$0xff] }
 0x159   : >> { %v6588_v52 = vadd.f32 %v1499_v11, %v6465_v50  ;;  %v6591_v53 = vadd.f32 %v1500_v26, %v6468_v6  ;;  %v1519_v49 = vmul.f32 %v4175_v56, %v6579_v31  ;;  %v1520_v21 = vmul.f32 %v4176_v51, %v6579_v31 }
 0x15a   : >> { %v1521_v35 = vmul.f32 %v4177_v2, %v6579_v31  ;;  %v1522_v62 = vmul.f32 %v4178_v39, %v6579_v31  ;;  %v1523_v50 = vmul.f32 %v4179_v29, %v6579_v31  ;;  %v1524_v47 = vmul.f32 %v4180_v32, %v6579_v31 }
 0x15b   : >> { %v1525_v6 = vmul.f32 %v4181_v43, %v6579_v31  ;;  %v1533_v27 = vmul.f32 %v4175_v56, %v6459_v46  ;;  %v6608_v0 = vadd.f32 %v1519_v49, %v6486_v19  ;;  %v6611_v34 = vadd.f32 %v1520_v21, %v6489_v16 }
 0x15c   : >> { %v6614_v15 = vadd.f32 %v1521_v35, %v6492_v48  ;;  %v6617_v55 = vadd.f32 %v1522_v62, %v6495_v24  ;;  %v6620_v3 = vadd.f32 %v1523_v50, %v6498_v23  ;;  %v6623_v57 = vadd.f32 %v1524_v47, %v6501_v38 }
 0x15d   : >> { %v6626_v58 = vadd.f32 %v1525_v6, %v6504_v40  ;;  %v1534_v19 = vmul.f32 %v4176_v51, %v6459_v46  ;;  %v1535_v16 = vmul.f32 %v4177_v2, %v6459_v46  ;;  %v1536_v60 = vmul.f32 %v4178_v39, %v6459_v46 }
 0x15e   : >> { %v1537_v48 = vmul.f32 %v4179_v29, %v6459_v46  ;;  %v1538_v24 = vmul.f32 %v4180_v32, %v6459_v46  ;;  %v1539_v12 = vmul.f32 %v4181_v43, %v6459_v46  ;;  %v6635_v23 = vadd.f32 %v1533_v27, %v6512_v36 }
 0x15f   : >> { %v6638_v38 = vadd.f32 %v1534_v19, %v6515_v61  ;;  %v1547_v40 = vmul.f32 %v4175_v56, %v6359_v18  ;;  %v6642_v11 = vadd.f32 %v1535_v16, %v6518_v4  ;;  %v6645_v26 = vadd.f32 %v1536_v60, %v6522_v28  ;;  %v9637_v60 = vld [vmem:[#allocation28_spill] sm:$0xff] }
 0x160   : >> { %v6648_v49 = vadd.f32 %v1537_v48, %v6525_v42  ;;  %v6651_v21 = vadd.f32 %v1538_v24, %v6528_v33  ;;  %v6654_v36 = vadd.f32 %v1539_v12, %v6531_v9  ;;  %v1548_v61 = vmul.f32 %v4176_v51, %v6359_v18  ;;  %v4186_v12 = vld [vmem:[%s5100_s11 + $0x1a2] sm:$0xff] }
 0x161   : >> { %v1549_v35 = vmul.f32 %v4177_v2, %v6359_v18  ;;  %v1550_v62 = vmul.f32 %v4178_v39, %v6359_v18  ;;  %v1551_v4 = vmul.f32 %v4179_v29, %v6359_v18  ;;  %v1552_v28 = vmul.f32 %v4180_v32, %v6359_v18 }
 0x162   : >> { %v1553_v50 = vmul.f32 %v4181_v43, %v6359_v18  ;;  %v6663_v42 = vadd.f32 %v1547_v40, %v6540_v1  ;;  %v6666_v33 = vadd.f32 %v1548_v61, %v6544_v20  ;;  %v1561_v6 = vmul.f32 %v4175_v56, %v6324_v37  ;;  %v4187_v40 = vld [vmem:[%s5100_s11 + $0x1aa] sm:$0xff]  ;;  %v4188_v61 = vld [vmem:[%s5100_s11 + $0x1b2] sm:$0xff] }
 0x163   : >> { %v6669_v9 = vadd.f32 %v1549_v35, %v6547_v54  ;;  %v6672_v47 = vadd.f32 %v1550_v62, %v6550_v45  ;;  %v6676_v27 = vadd.f32 %v1551_v4, %v6553_v13  ;;  %v6679_v19 = vadd.f32 %v1552_v28, %v6556_v10 }
 0x164   : >> { %v6682_v1 = vadd.f32 %v1553_v50, %v6559_v17  ;;  %v1562_v20 = vmul.f32 %v4176_v51, %v6324_v37  ;;  %v1563_v54 = vmul.f32 %v4177_v2, %v6324_v37  ;;  %v1564_v45 = vmul.f32 %v4178_v39, %v6324_v37  ;;  %v4182_v51 = vld [vmem:[%s5100_s11 + $0x182] sm:$0xff] }
 0x165   : >> { %v1565_v56 = vmul.f32 %v4179_v29, %v6324_v37  ;;  %v1566_v13 = vmul.f32 %v4180_v32, %v6324_v37  ;;  %v1567_v10 = vmul.f32 %v4181_v43, %v6324_v37  ;;  %v6691_v17 = vadd.f32 %v1561_v6, %v6568_v14  ;;  %v9638_v2 = vld [vmem:[#allocation21_spill] sm:$0xff]  ;;  %v4183_v14 = vld [vmem:[%s5100_s11 + $0x18a] sm:$0xff]  ;;  %v4185_v43 = vld [vmem:[%s5100_s11 + $0x19a] sm:$0xff] }
 0x166   : >> { %v6694_v16 = vadd.f32 %v1562_v20, %v6571_v44  ;;  %v6699_v48 = vrot.slane %v9638_v2, %v9637_v60  ;;  %v6702_v39 = vadd.f32 %v1563_v54, %v6574_v63  ;;  %v6705_v29 = vadd.f32 %v1564_v45, %v6582_v7  ;;  %v4184_v44 = vld [vmem:[%s5100_s11 + $0x192] sm:$0xff] }
 0x167   : >> { %v6708_v32 = vadd.f32 %v1565_v56, %v6585_v30  ;;  %v6711_v37 = vadd.f32 %v1566_v13, %v6588_v52  ;;  %v6717_v24 = vadd.f32 %v1567_v10, %v6591_v53  ;;  %v1600_v6 = vmul.f32 %v4182_v51, %v6579_v31 }
 0x168   : >> { %v1586_v63 = vmul.f32 %v4182_v51, %v6699_v48  ;;  %v1587_v7 = vmul.f32 %v4183_v14, %v6699_v48  ;;  %v1588_v35 = vmul.f32 %v4184_v44, %v6699_v48  ;;  %v1589_v30 = vmul.f32 %v4185_v43, %v6699_v48 }
 0x169   : >> { %v1590_v52 = vmul.f32 %v4186_v12, %v6699_v48  ;;  %v1591_v62 = vmul.f32 %v4187_v40, %v6699_v48  ;;  %v1592_v4 = vmul.f32 %v4188_v61, %v6699_v48  ;;  %v1602_v56 = vmul.f32 %v4184_v44, %v6579_v31 }
 0x16a   : >> { %v6730_v53 = vadd.f32 %v1586_v63, %v6608_v0  ;;  %v6733_v28 = vadd.f32 %v1587_v7, %v6611_v34  ;;  %v6736_v50 = vadd.f32 %v1588_v35, %v6614_v15  ;;  %v6740_v20 = vadd.f32 %v1589_v30, %v6617_v55 }
 0x16b   : >> { %v6743_v54 = vadd.f32 %v1590_v52, %v6620_v3  ;;  %v6746_v45 = vadd.f32 %v1591_v62, %v6623_v57  ;;  %v6749_v0 = vadd.f32 %v1592_v4, %v6626_v58  ;;  %v1601_v34 = vmul.f32 %v4183_v14, %v6579_v31 }
 0x16c   : >> { %v1603_v15 = vmul.f32 %v4185_v43, %v6579_v31  ;;  %v1604_v13 = vmul.f32 %v4186_v12, %v6579_v31  ;;  %v1605_v55 = vmul.f32 %v4187_v40, %v6579_v31  ;;  %v1606_v10 = vmul.f32 %v4188_v61, %v6579_v31 }
 0x16d   : >> { %v1607_v3 = vadd.f32 %v1600_v6, %v6635_v23  ;;  %v1614_v57 = vmul.f32 %v4182_v51, %v6459_v46  ;;  %v1608_v63 = vadd.f32 %v1601_v34, %v6638_v38  ;;  %v1609_v58 = vadd.f32 %v1602_v56, %v6642_v11 }
 0x16e   : >> { %v1610_v7 = vadd.f32 %v1603_v15, %v6645_v26  ;;  %v1611_v35 = vadd.f32 %v1604_v13, %v6648_v49  ;;  %v1612_v30 = vadd.f32 %v1605_v55, %v6651_v21  ;;  %v1613_v52 = vadd.f32 %v1606_v10, %v6654_v36 }
 0x16f   : >> { %v1615_v62 = vmul.f32 %v4183_v14, %v6459_v46  ;;  %v1616_v4 = vmul.f32 %v4184_v44, %v6459_v46  ;;  %v1617_v23 = vmul.f32 %v4185_v43, %v6459_v46  ;;  %v1618_v6 = vmul.f32 %v4186_v12, %v6459_v46 }
 0x170   : >> { %v1619_v38 = vmul.f32 %v4187_v40, %v6459_v46  ;;  %v1620_v11 = vmul.f32 %v4188_v61, %v6459_v46  ;;  %v1621_v26 = vadd.f32 %v1614_v57, %v6663_v42  ;;  %v1628_v36 = vmul.f32 %v4182_v51, %v6359_v18  ;;  %v4191_v57 = vld [vmem:[%s5100_s11 + $0x1d2] sm:$0xff] }
 0x171   : >> { %v1622_v49 = vadd.f32 %v1615_v62, %v6666_v33  ;;  %v1623_v21 = vadd.f32 %v1616_v4, %v6669_v9  ;;  %v1624_v34 = vadd.f32 %v1617_v23, %v6672_v47  ;;  %v1625_v56 = vadd.f32 %v1618_v6, %v6676_v27  ;;  %v4189_v47 = vld [vmem:[%s5100_s11 + $0x1c2] sm:$0xff]  ;;  %v4192_v62 = vld [vmem:[%s5100_s11 + $0x1da] sm:$0xff] }
 0x172   : >> { %v1626_v15 = vadd.f32 %v1619_v38, %v6679_v19  ;;  %v1627_v13 = vadd.f32 %v1620_v11, %v6682_v1  ;;  %v1629_v55 = vmul.f32 %v4183_v14, %v6359_v18  ;;  %v1630_v42 = vmul.f32 %v4184_v44, %v6359_v18 }
 0x173   : >> { %v1631_v33 = vmul.f32 %v4185_v43, %v6359_v18  ;;  %v1632_v9 = vmul.f32 %v4186_v12, %v6359_v18  ;;  %v1633_v27 = vmul.f32 %v4187_v40, %v6359_v18  ;;  %v1634_v19 = vmul.f32 %v4188_v61, %v6359_v18  ;;  %v4190_v12 = vld [vmem:[%s5100_s11 + $0x1ca] sm:$0xff]  ;;  %v4193_v18 = vld [vmem:[%s5100_s11 + $0x1e2] sm:$0xff] }
 0x174   : >> { %v1635_v51 = vadd.f32 %v1628_v36, %v6691_v17  ;;  %v1649_v1 = vmul.f32 %v4189_v47, %v6699_v48  ;;  %v1636_v14 = vadd.f32 %v1629_v55, %v6694_v16  ;;  %v1637_v44 = vadd.f32 %v1630_v42, %v6702_v39  ;;  %v4194_v61 = vld [vmem:[%s5100_s11 + $0x1ea] sm:$0xff]  ;;  %v4195_v17 = vld [vmem:[%s5100_s11 + $0x1f2] sm:$0xff] }
 0x175   : >> { %v1638_v43 = vadd.f32 %v1631_v33, %v6705_v29  ;;  %v1639_v10 = vadd.f32 %v1632_v9, %v6708_v32  ;;  %v1640_v4 = vadd.f32 %v1633_v27, %v6711_v37  ;;  %v1641_v40 = vadd.f32 %v1634_v19, %v6717_v24 }
 0x176   : >> { %v1650_v23 = vmul.f32 %v4190_v12, %v6699_v48  ;;  %v1651_v16 = vmul.f32 %v4191_v57, %v6699_v48  ;;  %v1652_v39 = vmul.f32 %v4192_v62, %v6699_v48  ;;  %v1653_v29 = vmul.f32 %v4193_v18, %v6699_v48 }
 0x177   : >> { %v1654_v32 = vmul.f32 %v4194_v61, %v6699_v48  ;;  %v1655_v6 = vmul.f32 %v4195_v17, %v6699_v48  ;;  %v6806_v38 = vadd.f32 %v1649_v1, %v1607_v3  ;;  %v1663_v11 = vmul.f32 %v4189_v47, %v6579_v31 }
 0x178   : >> { %v6808_v37 = vadd.f32 %v1650_v23, %v1608_v63  ;;  %v6810_v24 = vadd.f32 %v1651_v16, %v1609_v58  ;;  %v6813_v36 = vadd.f32 %v1652_v39, %v1610_v7  ;;  %v6815_v55 = vadd.f32 %v1653_v29, %v1611_v35 }
 0x179   : >> { %v6817_v42 = vadd.f32 %v1654_v32, %v1612_v30  ;;  %v6819_v33 = vadd.f32 %v1655_v6, %v1613_v52  ;;  %v1664_v9 = vmul.f32 %v4190_v12, %v6579_v31  ;;  %v1665_v27 = vmul.f32 %v4191_v57, %v6579_v31 }
 0x17a   : >> { %v1666_v3 = vmul.f32 %v4192_v62, %v6579_v31  ;;  %v1667_v63 = vmul.f32 %v4193_v18, %v6579_v31  ;;  %v1668_v58 = vmul.f32 %v4194_v61, %v6579_v31  ;;  %v1669_v7 = vmul.f32 %v4195_v17, %v6579_v31 }
 0x17b   : >> { %v1670_v19 = vadd.f32 %v1663_v11, %v1621_v26  ;;  %v1677_v35 = vmul.f32 %v4189_v47, %v6459_v46  ;;  %v1671_v30 = vadd.f32 %v1664_v9, %v1622_v49  ;;  %v1672_v52 = vadd.f32 %v1665_v27, %v1623_v21  ;;  %v4197_v47 = vld [vmem:[%s5100_s11 + $0x20a] sm:$0xff]  ;;  %v4198_v27 = vld [vmem:[%s5100_s11 + $0x212] sm:$0xff] }
 0x17c   : >> { %v1673_v1 = vadd.f32 %v1666_v3, %v1624_v34  ;;  %v1674_v23 = vadd.f32 %v1667_v63, %v1625_v56  ;;  %v1675_v16 = vadd.f32 %v1668_v58, %v1626_v15  ;;  %v1676_v39 = vadd.f32 %v1669_v7, %v1627_v13  ;;  %v4196_v34 = vld [vmem:[%s5100_s11 + $0x202] sm:$0xff]  ;;  %v4199_v3 = vld [vmem:[%s5100_s11 + $0x21a] sm:$0xff]  ;;  %v4201_v63 = vld [vmem:[%s5100_s11 + $0x22a] sm:$0xff] }
 0x17d   : >> { %v1678_v29 = vmul.f32 %v4190_v12, %v6459_v46  ;;  %v1679_v32 = vmul.f32 %v4191_v57, %v6459_v46  ;;  %v1680_v6 = vmul.f32 %v4192_v62, %v6459_v46  ;;  %v1681_v26 = vmul.f32 %v4193_v18, %v6459_v46  ;;  %v4200_v18 = vld [vmem:[%s5100_s11 + $0x222] sm:$0xff] }
 0x17e   : >> { %v1682_v49 = vmul.f32 %v4194_v61, %v6459_v46  ;;  %v1683_v21 = vmul.f32 %v4195_v17, %v6459_v46  ;;  %v1684_v56 = vadd.f32 %v1677_v35, %v1635_v51  ;;  %v1698_v12 = vmul.f32 %v4196_v34, %v6699_v48  ;;  %v4202_v61 = vld [vmem:[%s5100_s11 + $0x232] sm:$0xff] }
 0x17f   : >> { %v1685_v15 = vadd.f32 %v1678_v29, %v1636_v14  ;;  %v1686_v13 = vadd.f32 %v1679_v32, %v1637_v44  ;;  %v1687_v57 = vadd.f32 %v1680_v6, %v1638_v43  ;;  %v1688_v11 = vadd.f32 %v1681_v26, %v1639_v10  ;;  %v4203_v29 = vld [vmem:[%s5100_s11 + $0x242] sm:$0xff] }
 0x180   : >> { %v1689_v9 = vadd.f32 %v1682_v49, %v1640_v4  ;;  %v1690_v62 = vadd.f32 %v1683_v21, %v1641_v40  ;;  %v1699_v58 = vmul.f32 %v4197_v47, %v6699_v48  ;;  %v1700_v46 = vmul.f32 %v4198_v27, %v6699_v48  ;;  %v4205_v21 = vld [vmem:[%s5100_s11 + $0x252] sm:$0xff] }
 0x181   : >> { %v1701_v51 = vmul.f32 %v4199_v3, %v6699_v48  ;;  %v1702_v14 = vmul.f32 %v4200_v18, %v6699_v48  ;;  %v1703_v44 = vmul.f32 %v4201_v63, %v6699_v48  ;;  %v1704_v43 = vmul.f32 %v4202_v61, %v6699_v48 }
 0x182   : >> { %v6848_v10 = vadd.f32 %v1698_v12, %v1670_v19  ;;  %v1712_v4 = vmul.f32 %v4196_v34, %v6579_v31  ;;  %v6851_v40 = vadd.f32 %v1699_v58, %v1671_v30  ;;  %v6853_v17 = vadd.f32 %v1700_v46, %v1672_v52  ;;  %v4204_v30 = vld [vmem:[%s5100_s11 + $0x24a] sm:$0xff]  ;;  %v4206_v34 = vld [vmem:[%s5100_s11 + $0x25a] sm:$0xff] }
 0x183   : >> { %v6855_v7 = vadd.f32 %v1701_v51, %v1673_v1  ;;  %v6857_v35 = vadd.f32 %v1702_v14, %v1674_v23  ;;  %v6860_v32 = vadd.f32 %v1703_v44, %v1675_v16  ;;  %v6862_v19 = vadd.f32 %v1704_v43, %v1676_v39  ;;  %v4207_v16 = vld [vmem:[%s5100_s11 + $0x262] sm:$0xff]  ;;  %v4208_v58 = vld [vmem:[%s5100_s11 + $0x26a] sm:$0xff]  ;;  %v1749_v44 = vld [vmem:[%s5100_s11 + $0x13] sm:$0xff] }
 0x184   : >> { %v1713_v6 = vmul.f32 %v4197_v47, %v6579_v31  ;;  %v1714_v26 = vmul.f32 %v4198_v27, %v6579_v31  ;;  %v1715_v49 = vmul.f32 %v4199_v3, %v6579_v31  ;;  %v1716_v52 = vmul.f32 %v4200_v18, %v6579_v31  ;;  %v4209_v27 = vld [vmem:[%s5100_s11 + $0x272] sm:$0xff] }
 0x185   : >> { %v1717_v1 = vmul.f32 %v4201_v63, %v6579_v31  ;;  %v1718_v23 = vmul.f32 %v4202_v61, %v6579_v31  ;;  %v1719_v39 = vadd.f32 %v1712_v4, %v1684_v56  ;;  %v1733_v3 = vmul.f32 %v4203_v29, %v6699_v48  ;;  %v1748_v14 = vld [vmem:[%s5100_s11 + $0xb] sm:$0xff]  ;;  %v9639_v29 = vld [vmem:[#allocation29_spill] sm:$0xff] }
 0x186   : >> { %v1720_v12 = vadd.f32 %v1713_v6, %v1685_v15  ;;  %v1721_v47 = vadd.f32 %v1714_v26, %v1686_v13  ;;  %v1722_v18 = vadd.f32 %v1715_v49, %v1687_v57  ;;  %v1723_v63 = vadd.f32 %v1716_v52, %v1688_v11  ;;  %v1747_v13 = vld [vmem:[%s5100_s11 + $0x3] sm:$0xff]  ;;  %v1750_v11 = vld [vmem:[%s5100_s11 + $0x1b] sm:$0xff] }
 0x187   : >> { %v1724_v46 = vadd.f32 %v1717_v1, %v1689_v9  ;;  %v1725_v31 = vadd.f32 %v1718_v23, %v1690_v62  ;;  %v1734_v61 = vmul.f32 %v4204_v30, %v6699_v48  ;;  %v1735_v51 = vmul.f32 %v4205_v21, %v6699_v48  ;;  %v1751_v9 = vld [vmem:[%s5100_s11 + $0x23] sm:$0xff]  ;;  %v1752_v62 = vld [vmem:[%s5100_s11 + $0x2b] sm:$0xff]  ;;  %v9640_v6 = vld [vmem:[#allocation16_spill] sm:$0xff] }
 0x188   : >> { %v1736_v56 = vmul.f32 %v4206_v34, %v6699_v48  ;;  %v1737_v15 = vmul.f32 %v4207_v16, %v6699_v48  ;;  %v1738_v43 = vmul.f32 %v4208_v58, %v6699_v48  ;;  %v1739_v57 = vmul.f32 %v4209_v27, %v6699_v48  ;;  %v1753_v23 = vld [vmem:[%s5100_s11 + $0x33] sm:$0xff] }
 0x189   : >> { %v6886_v4 = vadd.f32 %v1733_v3, %v1719_v39  ;;  %v6893_v26 = vrot.slane %v9640_v6, %v9639_v29  ;;  %v6895_v30 = vadd.f32 %v1734_v61, %v1720_v12  ;;  %v6897_v49 = vadd.f32 %v1735_v51, %v1721_v47 }
 0x18a   : >> { %v6899_v52 = vadd.f32 %v1736_v56, %v1722_v18  ;;  %v6901_v1 = vadd.f32 %v1737_v15, %v1723_v63  ;;  %v6904_v48 = vadd.f32 %v1738_v43, %v1724_v46  ;;  %v6906_v21 = vadd.f32 %v1739_v57, %v1725_v31  ;;  %v4210_v63 = vld [vmem:[%s5100_s11 + $0x43] sm:$0xff]  ;;  %v4213_v43 = vld [vmem:[%s5100_s11 + $0x5b] sm:$0xff] }
 0x18b   : >> { %v1758_v34 = vmul.f32 %v6893_v26, %v1747_v13  ;;  %v1759_v16 = vmul.f32 %v6893_v26, %v1748_v14  ;;  %v1760_v39 = vmul.f32 %v6893_v26, %v1749_v44  ;;  %v1761_v12 = vmul.f32 %v6893_v26, %v1750_v11  ;;  %v9641_v46 = vld [vmem:[#allocation30_spill] sm:$0xff]  ;;  %v9642_v31 = vld [vmem:[#allocation17_spill] sm:$0xff]  ;;  %v4212_v44 = vld [vmem:[%s5100_s11 + $0x53] sm:$0xff] }
 0x18c   : >> { %v1762_v47 = vmul.f32 %v6893_v26, %v1751_v9  ;;  %v1763_v58 = vmul.f32 %v6893_v26, %v1752_v62  ;;  %v1764_v27 = vmul.f32 %v6893_v26, %v1753_v23  ;;  %v6920_v61 = vrot.slane %v9642_v31, %v9641_v46  ;;  %v4211_v14 = vld [vmem:[%s5100_s11 + $0x4b] sm:$0xff]  ;;  %v4214_v57 = vld [vmem:[%s5100_s11 + $0x63] sm:$0xff]  ;;  %v4216_v11 = vld [vmem:[%s5100_s11 + $0x73] sm:$0xff] }
 0x18d   : >> { %v1765_v3 = vadd.f32 %v1758_v34, %v6730_v53  ;;  %v1766_v18 = vadd.f32 %v1759_v16, %v6733_v28  ;;  %v1767_v51 = vadd.f32 %v1760_v39, %v6736_v50  ;;  %v1768_v56 = vadd.f32 %v1761_v12, %v6740_v20  ;;  %v4215_v28 = vld [vmem:[%s5100_s11 + $0x6b] sm:$0xff] }
 0x18e   : >> { %v1769_v15 = vadd.f32 %v1762_v47, %v6743_v54  ;;  %v1770_v13 = vadd.f32 %v1763_v58, %v6746_v45  ;;  %v1771_v53 = vadd.f32 %v1764_v27, %v6749_v0  ;;  %v1783_v9 = vmul.f32 %v4210_v63, %v6920_v61 }
 0x18f   : >> { %v1784_v62 = vmul.f32 %v4211_v14, %v6920_v61  ;;  %v1785_v50 = vmul.f32 %v4212_v44, %v6920_v61  ;;  %v1786_v20 = vmul.f32 %v4213_v43, %v6920_v61  ;;  %v1787_v54 = vmul.f32 %v4214_v57, %v6920_v61 }
 0x190   : >> { %v1788_v45 = vmul.f32 %v4215_v28, %v6920_v61  ;;  %v1789_v23 = vmul.f32 %v4216_v11, %v6920_v61  ;;  %v1790_v34 = vadd.f32 %v1783_v9, %v1765_v3  ;;  %v1797_v39 = vmul.f32 %v4210_v63, %v6893_v26  ;;  %v4220_v9 = vld [vmem:[%s5100_s11 + $0x9b] sm:$0xff] }
 0x191   : >> { %v1791_v16 = vadd.f32 %v1784_v62, %v1766_v18  ;;  %v1792_v0 = vadd.f32 %v1785_v50, %v1767_v51  ;;  %v1793_v12 = vadd.f32 %v1786_v20, %v1768_v56  ;;  %v1794_v47 = vadd.f32 %v1787_v54, %v1769_v15  ;;  %v9643_v56 = vld [vmem:[#allocation31_spill] sm:$0xff]  ;;  %v4221_v62 = vld [vmem:[%s5100_s11 + $0xa3] sm:$0xff] }
 0x192   : >> { %v1795_v58 = vadd.f32 %v1788_v45, %v1770_v13  ;;  %v1796_v27 = vadd.f32 %v1789_v23, %v1771_v53  ;;  %v1798_v46 = vmul.f32 %v4211_v14, %v6893_v26  ;;  %v1799_v31 = vmul.f32 %v4212_v44, %v6893_v26  ;;  %v4217_v53 = vld [vmem:[%s5100_s11 + $0x83] sm:$0xff]  ;;  %v4222_v50 = vld [vmem:[%s5100_s11 + $0xab] sm:$0xff] }
 0x193   : >> { %v1800_v29 = vmul.f32 %v4213_v43, %v6893_v26  ;;  %v1801_v3 = vmul.f32 %v4214_v57, %v6893_v26  ;;  %v1802_v18 = vmul.f32 %v4215_v28, %v6893_v26  ;;  %v1803_v63 = vmul.f32 %v4216_v11, %v6893_v26  ;;  %v4218_v57 = vld [vmem:[%s5100_s11 + $0x8b] sm:$0xff]  ;;  %v4219_v28 = vld [vmem:[%s5100_s11 + $0x93] sm:$0xff] }
 0x194   : >> { %v1804_v51 = vadd.f32 %v1797_v39, %v6806_v38  ;;  %v6950_v15 = vrot.slane %v9621_v8, %v9643_v56  ;;  %v1805_v13 = vadd.f32 %v1798_v46, %v6808_v37  ;;  %v1806_v14 = vadd.f32 %v1799_v31, %v6810_v24  ;;  %v4223_v46 = vld [vmem:[%s5100_s11 + $0xb3] sm:$0xff] }
 0x195   : >> { %v1807_v44 = vadd.f32 %v1800_v29, %v6813_v36  ;;  %v1808_v43 = vadd.f32 %v1801_v3, %v6815_v55  ;;  %v1809_v11 = vadd.f32 %v1802_v18, %v6817_v42  ;;  %v1810_v38 = vadd.f32 %v1803_v63, %v6819_v33 }
 0x196   : >> { %v1822_v20 = vmul.f32 %v4217_v53, %v6950_v15  ;;  %v1823_v37 = vmul.f32 %v4218_v57, %v6950_v15  ;;  %v1824_v24 = vmul.f32 %v4219_v28, %v6950_v15  ;;  %v1825_v36 = vmul.f32 %v4220_v9, %v6950_v15 }
 0x197   : >> { %v1826_v55 = vmul.f32 %v4221_v62, %v6950_v15  ;;  %v1827_v29 = vmul.f32 %v4222_v50, %v6950_v15  ;;  %v1828_v42 = vmul.f32 %v4223_v46, %v6950_v15  ;;  %v1836_v54 = vmul.f32 %v4217_v53, %v6920_v61 }
 0x198   : >> { %v1829_v31 = vadd.f32 %v1822_v20, %v1790_v34  ;;  %v1830_v33 = vadd.f32 %v1823_v37, %v1791_v16  ;;  %v1831_v45 = vadd.f32 %v1824_v24, %v1792_v0  ;;  %v1832_v23 = vadd.f32 %v1825_v36, %v1793_v12 }
 0x199   : >> { %v1833_v39 = vadd.f32 %v1826_v55, %v1794_v47  ;;  %v1834_v3 = vadd.f32 %v1827_v29, %v1795_v58  ;;  %v1835_v18 = vadd.f32 %v1828_v42, %v1796_v27  ;;  %v1837_v63 = vmul.f32 %v4218_v57, %v6920_v61 }
 0x19a   : >> { %v1838_v56 = vmul.f32 %v4219_v28, %v6920_v61  ;;  %v1839_v8 = vmul.f32 %v4220_v9, %v6920_v61  ;;  %v1840_v6 = vmul.f32 %v4221_v62, %v6920_v61  ;;  %v1841_v60 = vmul.f32 %v4222_v50, %v6920_v61 }
 0x19b   : >> { %v1842_v34 = vmul.f32 %v4223_v46, %v6920_v61  ;;  %v1843_v16 = vadd.f32 %v1836_v54, %v1804_v51  ;;  %v1844_v20 = vadd.f32 %v1837_v63, %v1805_v13  ;;  %v1850_v47 = vmul.f32 %v4217_v53, %v6893_v26  ;;  %v4224_v13 = vld [vmem:[%s5100_s11 + $0xc3] sm:$0xff] }
 0x19c   : >> { %v1845_v0 = vadd.f32 %v1838_v56, %v1806_v14  ;;  %v1846_v12 = vadd.f32 %v1839_v8, %v1807_v44  ;;  %v1847_v58 = vadd.f32 %v1840_v6, %v1808_v43  ;;  %v1848_v27 = vadd.f32 %v1841_v60, %v1809_v11  ;;  %v9644_v14 = vld [vmem:[#allocation24_spill] sm:$0xff]  ;;  %v4225_v11 = vld [vmem:[%s5100_s11 + $0xcb] sm:$0xff] }
 0x19d   : >> { %v1849_v37 = vadd.f32 %v1842_v34, %v1810_v38  ;;  %v1851_v24 = vmul.f32 %v4218_v57, %v6893_v26  ;;  %v1852_v36 = vmul.f32 %v4219_v28, %v6893_v26  ;;  %v1853_v55 = vmul.f32 %v4220_v9, %v6893_v26  ;;  %v4226_v38 = vld [vmem:[%s5100_s11 + $0xd3] sm:$0xff]  ;;  %v4227_v9 = vld [vmem:[%s5100_s11 + $0xdb] sm:$0xff] }
 0x19e   : >> { %v1854_v51 = vmul.f32 %v4221_v62, %v6893_v26  ;;  %v1855_v8 = vmul.f32 %v4222_v50, %v6893_v26  ;;  %v1856_v6 = vmul.f32 %v4223_v46, %v6893_v26  ;;  %v1857_v60 = vadd.f32 %v1850_v47, %v6848_v10  ;;  %v4228_v62 = vld [vmem:[%s5100_s11 + $0xe3] sm:$0xff]  ;;  %v4230_v50 = vld [vmem:[%s5100_s11 + $0xf3] sm:$0xff] }
 0x19f   : >> { %v1858_v56 = vadd.f32 %v1851_v24, %v6851_v40  ;;  %v6991_v44 = vrot.slane %v9623_v25, %v9644_v14  ;;  %v1859_v43 = vadd.f32 %v1852_v36, %v6853_v17  ;;  %v1860_v53 = vadd.f32 %v1853_v55, %v6855_v7  ;;  %v4229_v40 = vld [vmem:[%s5100_s11 + $0xeb] sm:$0xff] }
 0x1a0   : >> { %v1861_v57 = vadd.f32 %v1854_v51, %v6857_v35  ;;  %v1862_v28 = vadd.f32 %v1855_v8, %v6860_v32  ;;  %v1863_v10 = vadd.f32 %v1856_v6, %v6862_v19  ;;  %v1889_v34 = vmul.f32 %v4224_v13, %v6950_v15 }
 0x1a1   : >> { %v1875_v46 = vmul.f32 %v4224_v13, %v6991_v44  ;;  %v1876_v29 = vmul.f32 %v4225_v11, %v6991_v44  ;;  %v1877_v17 = vmul.f32 %v4226_v38, %v6991_v44  ;;  %v1878_v7 = vmul.f32 %v4227_v9, %v6991_v44 }
 0x1a2   : >> { %v1879_v35 = vmul.f32 %v4228_v62, %v6991_v44  ;;  %v1880_v32 = vmul.f32 %v4229_v40, %v6991_v44  ;;  %v1881_v42 = vmul.f32 %v4230_v50, %v6991_v44  ;;  %v1890_v51 = vmul.f32 %v4225_v11, %v6950_v15 }
 0x1a3   : >> { %v7011_v54 = vadd.f32 %v1875_v46, %v1829_v31  ;;  %v7013_v19 = vadd.f32 %v1876_v29, %v1830_v33  ;;  %v7015_v63 = vadd.f32 %v1877_v17, %v1831_v45  ;;  %v7018_v47 = vadd.f32 %v1878_v7, %v1832_v23 }
 0x1a4   : >> { %v7020_v24 = vadd.f32 %v1879_v35, %v1833_v39  ;;  %v7022_v36 = vadd.f32 %v1880_v32, %v1834_v3  ;;  %v7024_v55 = vadd.f32 %v1881_v42, %v1835_v18  ;;  %v1891_v8 = vmul.f32 %v4226_v38, %v6950_v15 }
 0x1a5   : >> { %v1892_v31 = vmul.f32 %v4227_v9, %v6950_v15  ;;  %v1893_v33 = vmul.f32 %v4228_v62, %v6950_v15  ;;  %v1894_v45 = vmul.f32 %v4229_v40, %v6950_v15  ;;  %v1895_v6 = vmul.f32 %v4230_v50, %v6950_v15 }
 0x1a6   : >> { %v7032_v23 = vadd.f32 %v1889_v34, %v1843_v16  ;;  %v1903_v39 = vmul.f32 %v4224_v13, %v6920_v61  ;;  %v7035_v3 = vadd.f32 %v1890_v51, %v1844_v20  ;;  %v7037_v18 = vadd.f32 %v1891_v8, %v1845_v0 }
 0x1a7   : >> { %v7039_v46 = vadd.f32 %v1892_v31, %v1846_v12  ;;  %v7041_v29 = vadd.f32 %v1893_v33, %v1847_v58  ;;  %v7043_v17 = vadd.f32 %v1894_v45, %v1848_v27  ;;  %v7045_v7 = vadd.f32 %v1895_v6, %v1849_v37  ;;  %v4234_v45 = vld [vmem:[%s5100_s11 + $0x11b] sm:$0xff]  ;;  %v4235_v6 = vld [vmem:[%s5100_s11 + $0x123] sm:$0xff] }
 0x1a8   : >> { %v1904_v35 = vmul.f32 %v4225_v11, %v6920_v61  ;;  %v1905_v32 = vmul.f32 %v4226_v38, %v6920_v61  ;;  %v1906_v16 = vmul.f32 %v4227_v9, %v6920_v61  ;;  %v1907_v42 = vmul.f32 %v4228_v62, %v6920_v61 }
 0x1a9   : >> { %v1908_v20 = vmul.f32 %v4229_v40, %v6920_v61  ;;  %v1909_v0 = vmul.f32 %v4230_v50, %v6920_v61  ;;  %v7053_v12 = vadd.f32 %v1903_v39, %v1857_v60  ;;  %v1917_v37 = vmul.f32 %v4224_v13, %v6893_v26 }
 0x1aa   : >> { %v7055_v58 = vadd.f32 %v1904_v35, %v1858_v56  ;;  %v7057_v27 = vadd.f32 %v1905_v32, %v1859_v43  ;;  %v7060_v34 = vadd.f32 %v1906_v16, %v1860_v53  ;;  %v7062_v51 = vadd.f32 %v1907_v42, %v1861_v57  ;;  %v4237_v35 = vld [vmem:[%s5100_s11 + $0x133] sm:$0xff] }
 0x1ab   : >> { %v7064_v8 = vadd.f32 %v1908_v20, %v1862_v28  ;;  %v7066_v31 = vadd.f32 %v1909_v0, %v1863_v10  ;;  %v1918_v60 = vmul.f32 %v4225_v11, %v6893_v26  ;;  %v1919_v56 = vmul.f32 %v4226_v38, %v6893_v26 }
 0x1ac   : >> { %v1920_v43 = vmul.f32 %v4227_v9, %v6893_v26  ;;  %v1921_v13 = vmul.f32 %v4228_v62, %v6893_v26  ;;  %v1922_v53 = vmul.f32 %v4229_v40, %v6893_v26  ;;  %v1923_v57 = vmul.f32 %v4230_v50, %v6893_v26  ;;  %v4231_v26 = vld [vmem:[%s5100_s11 + $0x103] sm:$0xff]  ;;  %v4233_v40 = vld [vmem:[%s5100_s11 + $0x113] sm:$0xff] }
 0x1ad   : >> { %v7075_v28 = vadd.f32 %v1917_v37, %v6886_v4  ;;  %v7079_v11 = vrot.slane %v9623_v25, %v9619_v41  ;;  %v7082_v38 = vadd.f32 %v1918_v60, %v6895_v30  ;;  %v7085_v9 = vadd.f32 %v1919_v56, %v6897_v49  ;;  %v4232_v4 = vld [vmem:[%s5100_s11 + $0x10b] sm:$0xff] }
 0x1ae   : >> { %v7088_v10 = vadd.f32 %v1920_v43, %v6899_v52  ;;  %v7091_v62 = vadd.f32 %v1921_v13, %v6901_v1  ;;  %v1929_v50 = vadd.f32 %v1922_v53, %v6904_v48  ;;  %v1930_v33 = vadd.f32 %v1923_v57, %v6906_v21  ;;  %v4236_v30 = vld [vmem:[%s5100_s11 + $0x12b] sm:$0xff] }
 0x1af   : >> { %v1942_v39 = vmul.f32 %v4231_v26, %v7079_v11  ;;  %v1943_v49 = vmul.f32 %v4232_v4, %v7079_v11  ;;  %v1944_v52 = vmul.f32 %v4233_v40, %v7079_v11  ;;  %v1945_v1 = vmul.f32 %v4234_v45, %v7079_v11 }
 0x1b0   : >> { %v1946_v32 = vmul.f32 %v4235_v6, %v7079_v11  ;;  %v1947_v16 = vmul.f32 %v4236_v30, %v7079_v11  ;;  %v1948_v48 = vmul.f32 %v4237_v35, %v7079_v11  ;;  %v1956_v20 = vmul.f32 %v4231_v26, %v6991_v44 }
 0x1b1   : >> { %v7110_v21 = vadd.f32 %v1942_v39, %v7011_v54  ;;  %v7113_v42 = vadd.f32 %v1943_v49, %v7013_v19  ;;  %v7117_v0 = vadd.f32 %v1944_v52, %v7015_v63  ;;  %v7120_v37 = vadd.f32 %v1945_v1, %v7018_v47 }
 0x1b2   : >> { %v7123_v60 = vadd.f32 %v1946_v32, %v7020_v24  ;;  %v7126_v56 = vadd.f32 %v1947_v16, %v7022_v36  ;;  %v7129_v54 = vadd.f32 %v1948_v48, %v7024_v55  ;;  %v1957_v19 = vmul.f32 %v4232_v4, %v6991_v44 }
 0x1b3   : >> { %v1958_v43 = vmul.f32 %v4233_v40, %v6991_v44  ;;  %v1959_v13 = vmul.f32 %v4234_v45, %v6991_v44  ;;  %v1960_v63 = vmul.f32 %v4235_v6, %v6991_v44  ;;  %v1961_v47 = vmul.f32 %v4236_v30, %v6991_v44 }
 0x1b4   : >> { %v1962_v53 = vmul.f32 %v4237_v35, %v6991_v44  ;;  %v7138_v24 = vadd.f32 %v1956_v20, %v7032_v23  ;;  %v7141_v36 = vadd.f32 %v1957_v19, %v7035_v3  ;;  %v1970_v39 = vmul.f32 %v4231_v26, %v6950_v15 }
 0x1b5   : >> { %v7144_v55 = vadd.f32 %v1958_v43, %v7037_v18  ;;  %v7147_v57 = vadd.f32 %v1959_v13, %v7039_v46  ;;  %v7151_v49 = vadd.f32 %v1960_v63, %v7041_v29  ;;  %v7154_v52 = vadd.f32 %v1961_v47, %v7043_v17  ;;  %v4240_v13 = vld [vmem:[%s5100_s11 + $0x153] sm:$0xff]  ;;  %v4241_v63 = vld [vmem:[%s5100_s11 + $0x15b] sm:$0xff]  ;;  %v4242_v47 = vld [vmem:[%s5100_s11 + $0x163] sm:$0xff] }
 0x1b6   : >> { %v7157_v23 = vadd.f32 %v1962_v53, %v7045_v7  ;;  %v1971_v3 = vmul.f32 %v4232_v4, %v6950_v15  ;;  %v1972_v1 = vmul.f32 %v4233_v40, %v6950_v15  ;;  %v1973_v18 = vmul.f32 %v4234_v45, %v6950_v15  ;;  %v4244_v53 = vld [vmem:[%s5100_s11 + $0x173] sm:$0xff] }
 0x1b7   : >> { %v1974_v46 = vmul.f32 %v4235_v6, %v6950_v15  ;;  %v1975_v32 = vmul.f32 %v4236_v30, %v6950_v15  ;;  %v1976_v16 = vmul.f32 %v4237_v35, %v6950_v15  ;;  %v7166_v29 = vadd.f32 %v1970_v39, %v7053_v12 }
 0x1b8   : >> { %v7169_v17 = vadd.f32 %v1971_v3, %v7055_v58  ;;  %v1984_v7 = vmul.f32 %v4231_v26, %v6920_v61  ;;  %v7173_v48 = vadd.f32 %v1972_v1, %v7057_v27  ;;  %v7176_v20 = vadd.f32 %v1973_v18, %v7060_v34 }
 0x1b9   : >> { %v7179_v19 = vadd.f32 %v1974_v46, %v7062_v51  ;;  %v7182_v43 = vadd.f32 %v1975_v32, %v7064_v8  ;;  %v7185_v12 = vadd.f32 %v1976_v16, %v7066_v31  ;;  %v1985_v58 = vmul.f32 %v4232_v4, %v6920_v61 }
 0x1ba   : >> { %v1986_v26 = vmul.f32 %v4233_v40, %v6920_v61  ;;  %v1987_v27 = vmul.f32 %v4234_v45, %v6920_v61  ;;  %v1988_v34 = vmul.f32 %v4235_v6, %v6920_v61  ;;  %v1989_v51 = vmul.f32 %v4236_v30, %v6920_v61  ;;  %v4238_v6 = vld [vmem:[%s5100_s11 + $0x143] sm:$0xff] }
 0x1bb   : >> { %v1990_v8 = vmul.f32 %v4237_v35, %v6920_v61  ;;  %v7194_v31 = vadd.f32 %v1984_v7, %v7075_v28  ;;  %v7197_v4 = vadd.f32 %v1985_v58, %v7082_v38  ;;  %v7208_v30 = vrot.slane %v9636_v5, %v9620_v59  ;;  %v4239_v38 = vld [vmem:[%s5100_s11 + $0x14b] sm:$0xff] }
 0x1bc   : >> { %v7200_v40 = vadd.f32 %v1986_v26, %v7085_v9  ;;  %v7203_v45 = vadd.f32 %v1987_v27, %v7088_v10  ;;  %v7211_v61 = vadd.f32 %v1988_v34, %v7091_v62  ;;  %v7213_v35 = vadd.f32 %v1989_v51, %v1929_v50  ;;  %v4243_v10 = vld [vmem:[%s5100_s11 + $0x16b] sm:$0xff] }
 0x1bd   : >> { %v7215_v28 = vadd.f32 %v1990_v8, %v1930_v33  ;;  %v2023_v9 = vmul.f32 %v4238_v6, %v7079_v11  ;;  %v2009_v39 = vmul.f32 %v4238_v6, %v7208_v30  ;;  %v2010_v3 = vmul.f32 %v4239_v38, %v7208_v30 }
 0x1be   : >> { %v2011_v1 = vmul.f32 %v4240_v13, %v7208_v30  ;;  %v2012_v62 = vmul.f32 %v4241_v63, %v7208_v30  ;;  %v2013_v50 = vmul.f32 %v4242_v47, %v7208_v30  ;;  %v2014_v33 = vmul.f32 %v4243_v10, %v7208_v30 }
 0x1bf   : >> { %v2015_v18 = vmul.f32 %v4244_v53, %v7208_v30  ;;  %v2024_v46 = vmul.f32 %v4239_v38, %v7079_v11  ;;  %v7233_v32 = vadd.f32 %v2009_v39, %v7110_v21  ;;  %v7236_v16 = vadd.f32 %v2010_v3, %v7113_v42 }
 0x1c0   : >> { %v7239_v7 = vadd.f32 %v2011_v1, %v7117_v0  ;;  %v7242_v58 = vadd.f32 %v2012_v62, %v7120_v37  ;;  %v7245_v26 = vadd.f32 %v2013_v50, %v7123_v60  ;;  %v7248_v27 = vadd.f32 %v2014_v33, %v7126_v56 }
 0x1c1   : >> { %v7251_v34 = vadd.f32 %v2015_v18, %v7129_v54  ;;  %v2025_v21 = vmul.f32 %v4240_v13, %v7079_v11  ;;  %v2026_v42 = vmul.f32 %v4241_v63, %v7079_v11  ;;  %v2027_v51 = vmul.f32 %v4242_v47, %v7079_v11 }
 0x1c2   : >> { %v2028_v0 = vmul.f32 %v4243_v10, %v7079_v11  ;;  %v2029_v37 = vmul.f32 %v4244_v53, %v7079_v11  ;;  %v7259_v8 = vadd.f32 %v2023_v9, %v7138_v24  ;;  %v7262_v60 = vadd.f32 %v2024_v46, %v7141_v36 }
 0x1c3   : >> { %v7265_v56 = vadd.f32 %v2025_v21, %v7144_v55  ;;  %v2037_v54 = vmul.f32 %v4238_v6, %v6991_v44  ;;  %v7269_v39 = vadd.f32 %v2026_v42, %v7147_v57  ;;  %v7272_v3 = vadd.f32 %v2027_v51, %v7151_v49  ;;  %v4245_v42 = vld [vmem:[%s5100_s11 + $0x183] sm:$0xff] }
 0x1c4   : >> { %v7275_v1 = vadd.f32 %v2028_v0, %v7154_v52  ;;  %v7278_v24 = vadd.f32 %v2029_v37, %v7157_v23  ;;  %v2038_v36 = vmul.f32 %v4239_v38, %v6991_v44  ;;  %v2039_v9 = vmul.f32 %v4240_v13, %v6991_v44  ;;  %v4249_v51 = vld [vmem:[%s5100_s11 + $0x1a3] sm:$0xff]  ;;  %v4250_v0 = vld [vmem:[%s5100_s11 + $0x1ab] sm:$0xff]  ;;  %v4251_v37 = vld [vmem:[%s5100_s11 + $0x1b3] sm:$0xff] }
 0x1c5   : >> { %v2040_v55 = vmul.f32 %v4241_v63, %v6991_v44  ;;  %v2041_v62 = vmul.f32 %v4242_v47, %v6991_v44  ;;  %v2042_v57 = vmul.f32 %v4243_v10, %v6991_v44  ;;  %v2043_v50 = vmul.f32 %v4244_v53, %v6991_v44 }
 0x1c6   : >> { %v7287_v49 = vadd.f32 %v2037_v54, %v7166_v29  ;;  %v2051_v52 = vmul.f32 %v4238_v6, %v6950_v15  ;;  %v7291_v23 = vadd.f32 %v2038_v36, %v7169_v17  ;;  %v7294_v33 = vadd.f32 %v2039_v9, %v7173_v48 }
 0x1c7   : >> { %v7297_v18 = vadd.f32 %v2040_v55, %v7176_v20  ;;  %v7300_v46 = vadd.f32 %v2041_v62, %v7179_v19  ;;  %v7303_v21 = vadd.f32 %v2042_v57, %v7182_v43  ;;  %v7306_v29 = vadd.f32 %v2043_v50, %v7185_v12 }
 0x1c8   : >> { %v2052_v6 = vmul.f32 %v4239_v38, %v6950_v15  ;;  %v2053_v17 = vmul.f32 %v4240_v13, %v6950_v15  ;;  %v2054_v48 = vmul.f32 %v4241_v63, %v6950_v15  ;;  %v2055_v20 = vmul.f32 %v4242_v47, %v6950_v15 }
 0x1c9   : >> { %v2056_v19 = vmul.f32 %v4243_v10, %v6950_v15  ;;  %v2057_v43 = vmul.f32 %v4244_v53, %v6950_v15  ;;  %v7315_v12 = vadd.f32 %v2051_v52, %v7194_v31  ;;  %v7326_v63 = vrot.slane %v9638_v2, %v9635_v22  ;;  %v4248_v53 = vld [vmem:[%s5100_s11 + $0x19b] sm:$0xff] }
 0x1ca   : >> { %v7318_v38 = vadd.f32 %v2052_v6, %v7197_v4  ;;  %v7321_v13 = vadd.f32 %v2053_v17, %v7200_v40  ;;  %v7329_v47 = vadd.f32 %v2054_v48, %v7203_v45  ;;  %v7332_v10 = vadd.f32 %v2055_v20, %v7211_v61  ;;  %v4246_v4 = vld [vmem:[%s5100_s11 + $0x18b] sm:$0xff]  ;;  %v4247_v40 = vld [vmem:[%s5100_s11 + $0x193] sm:$0xff] }
 0x1cb   : >> { %v7335_v15 = vadd.f32 %v2056_v19, %v7213_v35  ;;  %v7338_v31 = vadd.f32 %v2057_v43, %v7215_v28  ;;  %v2076_v54 = vmul.f32 %v4245_v42, %v7326_v63  ;;  %v2077_v45 = vmul.f32 %v4246_v4, %v7326_v63 }
 0x1cc   : >> { %v2078_v36 = vmul.f32 %v4247_v40, %v7326_v63  ;;  %v2079_v61 = vmul.f32 %v4248_v53, %v7326_v63  ;;  %v2080_v35 = vmul.f32 %v4249_v51, %v7326_v63  ;;  %v2081_v9 = vmul.f32 %v4250_v0, %v7326_v63 }
 0x1cd   : >> { %v2082_v28 = vmul.f32 %v4251_v37, %v7326_v63  ;;  %v2090_v55 = vmul.f32 %v4245_v42, %v7208_v30  ;;  %v7355_v62 = vadd.f32 %v2076_v54, %v7233_v32  ;;  %v7358_v57 = vadd.f32 %v2077_v45, %v7236_v16 }
 0x1ce   : >> { %v7361_v50 = vadd.f32 %v2078_v36, %v7239_v7  ;;  %v7364_v52 = vadd.f32 %v2079_v61, %v7242_v58  ;;  %v7367_v6 = vadd.f32 %v2080_v35, %v7245_v26  ;;  %v7370_v17 = vadd.f32 %v2081_v9, %v7248_v27 }
 0x1cf   : >> { %v7373_v48 = vadd.f32 %v2082_v28, %v7251_v34  ;;  %v2091_v32 = vmul.f32 %v4246_v4, %v7208_v30  ;;  %v2092_v16 = vmul.f32 %v4247_v40, %v7208_v30  ;;  %v2093_v20 = vmul.f32 %v4248_v53, %v7208_v30 }
 0x1d0   : >> { %v2094_v7 = vmul.f32 %v4249_v51, %v7208_v30  ;;  %v2095_v58 = vmul.f32 %v4250_v0, %v7208_v30  ;;  %v2096_v19 = vmul.f32 %v4251_v37, %v7208_v30  ;;  %v2097_v26 = vadd.f32 %v2090_v55, %v7259_v8 }
 0x1d1   : >> { %v2098_v27 = vadd.f32 %v2091_v32, %v7262_v60  ;;  %v2104_v43 = vmul.f32 %v4245_v42, %v7079_v11  ;;  %v2099_v34 = vadd.f32 %v2092_v16, %v7265_v56  ;;  %v2100_v54 = vadd.f32 %v2093_v20, %v7269_v39 }
 0x1d2   : >> { %v2101_v45 = vadd.f32 %v2094_v7, %v7272_v3  ;;  %v2102_v36 = vadd.f32 %v2095_v58, %v7275_v1  ;;  %v2103_v61 = vadd.f32 %v2096_v19, %v7278_v24  ;;  %v2105_v35 = vmul.f32 %v4246_v4, %v7079_v11  ;;  %v4253_v19 = vld [vmem:[%s5100_s11 + $0x1cb] sm:$0xff] }
 0x1d3   : >> { %v2106_v9 = vmul.f32 %v4247_v40, %v7079_v11  ;;  %v2107_v8 = vmul.f32 %v4248_v53, %v7079_v11  ;;  %v2108_v60 = vmul.f32 %v4249_v51, %v7079_v11  ;;  %v2109_v28 = vmul.f32 %v4250_v0, %v7079_v11 }
 0x1d4   : >> { %v2110_v56 = vmul.f32 %v4251_v37, %v7079_v11  ;;  %v2111_v39 = vadd.f32 %v2104_v43, %v7287_v49  ;;  %v2112_v3 = vadd.f32 %v2105_v35, %v7291_v23  ;;  %v2118_v55 = vmul.f32 %v4245_v42, %v6991_v44  ;;  %v4255_v43 = vld [vmem:[%s5100_s11 + $0x1db] sm:$0xff] }
 0x1d5   : >> { %v2113_v1 = vadd.f32 %v2106_v9, %v7294_v33  ;;  %v2114_v24 = vadd.f32 %v2107_v8, %v7297_v18  ;;  %v2115_v32 = vadd.f32 %v2108_v60, %v7300_v46  ;;  %v2116_v16 = vadd.f32 %v2109_v28, %v7303_v21  ;;  %v4252_v46 = vld [vmem:[%s5100_s11 + $0x1c3] sm:$0xff] }
 0x1d6   : >> { %v2117_v20 = vadd.f32 %v2110_v56, %v7306_v29  ;;  %v2119_v7 = vmul.f32 %v4246_v4, %v6991_v44  ;;  %v2120_v49 = vmul.f32 %v4247_v40, %v6991_v44  ;;  %v2121_v23 = vmul.f32 %v4248_v53, %v6991_v44 }
 0x1d7   : >> { %v2122_v33 = vmul.f32 %v4249_v51, %v6991_v44  ;;  %v2123_v18 = vmul.f32 %v4250_v0, %v6991_v44  ;;  %v2124_v21 = vmul.f32 %v4251_v37, %v6991_v44  ;;  %v2125_v29 = vadd.f32 %v2118_v55, %v7315_v12  ;;  %v4254_v0 = vld [vmem:[%s5100_s11 + $0x1d3] sm:$0xff]  ;;  %v4256_v44 = vld [vmem:[%s5100_s11 + $0x1e3] sm:$0xff]  ;;  %v4257_v37 = vld [vmem:[%s5100_s11 + $0x1eb] sm:$0xff] }
 0x1d8   : >> { %v2126_v42 = vadd.f32 %v2119_v7, %v7318_v38  ;;  %v2139_v4 = vmul.f32 %v4252_v46, %v7326_v63  ;;  %v2127_v40 = vadd.f32 %v2120_v49, %v7321_v13  ;;  %v2128_v53 = vadd.f32 %v2121_v23, %v7329_v47  ;;  %v4258_v12 = vld [vmem:[%s5100_s11 + $0x1f3] sm:$0xff] }
 0x1d9   : >> { %v2129_v58 = vadd.f32 %v2122_v33, %v7332_v10  ;;  %v2130_v51 = vadd.f32 %v2123_v18, %v7335_v15  ;;  %v2131_v35 = vadd.f32 %v2124_v21, %v7338_v31  ;;  %v2140_v38 = vmul.f32 %v4253_v19, %v7326_v63 }
 0x1da   : >> { %v2141_v9 = vmul.f32 %v4254_v0, %v7326_v63  ;;  %v2142_v13 = vmul.f32 %v4255_v43, %v7326_v63  ;;  %v2143_v47 = vmul.f32 %v4256_v44, %v7326_v63  ;;  %v2144_v10 = vmul.f32 %v4257_v37, %v7326_v63 }
 0x1db   : >> { %v2145_v15 = vmul.f32 %v4258_v12, %v7326_v63  ;;  %v7430_v8 = vadd.f32 %v2139_v4, %v2097_v26  ;;  %v7432_v60 = vadd.f32 %v2140_v38, %v2098_v27  ;;  %v2153_v56 = vmul.f32 %v4252_v46, %v7208_v30 }
 0x1dc   : >> { %v7434_v31 = vadd.f32 %v2141_v9, %v2099_v34  ;;  %v7436_v28 = vadd.f32 %v2142_v13, %v2100_v54  ;;  %v7439_v55 = vadd.f32 %v2143_v47, %v2101_v45  ;;  %v7441_v7 = vadd.f32 %v2144_v10, %v2102_v36 }
 0x1dd   : >> { %v7443_v49 = vadd.f32 %v2145_v15, %v2103_v61  ;;  %v2154_v23 = vmul.f32 %v4253_v19, %v7208_v30  ;;  %v2155_v33 = vmul.f32 %v4254_v0, %v7208_v30  ;;  %v2156_v26 = vmul.f32 %v4255_v43, %v7208_v30  ;;  %v4261_v15 = vld [vmem:[%s5100_s11 + $0x213] sm:$0xff] }
 0x1de   : >> { %v2157_v27 = vmul.f32 %v4256_v44, %v7208_v30  ;;  %v2158_v34 = vmul.f32 %v4257_v37, %v7208_v30  ;;  %v2159_v54 = vmul.f32 %v4258_v12, %v7208_v30  ;;  %v2160_v18 = vadd.f32 %v2153_v56, %v2111_v39 }
 0x1df   : >> { %v2161_v45 = vadd.f32 %v2154_v23, %v2112_v3  ;;  %v2167_v36 = vmul.f32 %v4252_v46, %v7079_v11  ;;  %v2162_v21 = vadd.f32 %v2155_v33, %v2113_v1  ;;  %v2163_v61 = vadd.f32 %v2156_v26, %v2114_v24  ;;  %v4262_v33 = vld [vmem:[%s5100_s11 + $0x21b] sm:$0xff]  ;;  %v4264_v26 = vld [vmem:[%s5100_s11 + $0x22b] sm:$0xff] }
 0x1e0   : >> { %v2164_v4 = vadd.f32 %v2157_v27, %v2115_v32  ;;  %v2165_v38 = vadd.f32 %v2158_v34, %v2116_v16  ;;  %v2166_v9 = vadd.f32 %v2159_v54, %v2117_v20  ;;  %v2168_v13 = vmul.f32 %v4253_v19, %v7079_v11  ;;  %v4259_v32 = vld [vmem:[%s5100_s11 + $0x203] sm:$0xff]  ;;  %v4260_v19 = vld [vmem:[%s5100_s11 + $0x20b] sm:$0xff] }
 0x1e1   : >> { %v2169_v47 = vmul.f32 %v4254_v0, %v7079_v11  ;;  %v2170_v10 = vmul.f32 %v4255_v43, %v7079_v11  ;;  %v2171_v39 = vmul.f32 %v4256_v44, %v7079_v11  ;;  %v2172_v3 = vmul.f32 %v4257_v37, %v7079_v11  ;;  %v4263_v44 = vld [vmem:[%s5100_s11 + $0x223] sm:$0xff] }
 0x1e2   : >> { %v2173_v1 = vmul.f32 %v4258_v12, %v7079_v11  ;;  %v2174_v24 = vadd.f32 %v2167_v36, %v2125_v29  ;;  %v2175_v16 = vadd.f32 %v2168_v13, %v2126_v42  ;;  %v2188_v0 = vmul.f32 %v4259_v32, %v7326_v63  ;;  %v4265_v11 = vld [vmem:[%s5100_s11 + $0x233] sm:$0xff]  ;;  %v4266_v13 = vld [vmem:[%s5100_s11 + $0x243] sm:$0xff] }
 0x1e3   : >> { %v2176_v20 = vadd.f32 %v2169_v47, %v2127_v40  ;;  %v2177_v46 = vadd.f32 %v2170_v10, %v2128_v53  ;;  %v2178_v56 = vadd.f32 %v2171_v39, %v2129_v58  ;;  %v2179_v43 = vadd.f32 %v2172_v3, %v2130_v51  ;;  %v4268_v39 = vld [vmem:[%s5100_s11 + $0x253] sm:$0xff] }
 0x1e4   : >> { %v2180_v23 = vadd.f32 %v2173_v1, %v2131_v35  ;;  %v2189_v37 = vmul.f32 %v4260_v19, %v7326_v63  ;;  %v2190_v29 = vmul.f32 %v4261_v15, %v7326_v63  ;;  %v2191_v42 = vmul.f32 %v4262_v33, %v7326_v63  ;;  %v4269_v1 = vld [vmem:[%s5100_s11 + $0x25b] sm:$0xff] }
 0x1e5   : >> { %v2192_v40 = vmul.f32 %v4263_v44, %v7326_v63  ;;  %v2193_v53 = vmul.f32 %v4264_v26, %v7326_v63  ;;  %v2194_v58 = vmul.f32 %v4265_v11, %v7326_v63  ;;  %v7472_v51 = vadd.f32 %v2188_v0, %v2160_v18 }
 0x1e6   : >> { %v7474_v35 = vadd.f32 %v2189_v37, %v2161_v45  ;;  %v2202_v12 = vmul.f32 %v4259_v32, %v7208_v30  ;;  %v7477_v27 = vadd.f32 %v2190_v29, %v2162_v21  ;;  %v7479_v34 = vadd.f32 %v2191_v42, %v2163_v61  ;;  %v4267_v21 = vld [vmem:[%s5100_s11 + $0x24b] sm:$0xff] }
 0x1e7   : >> { %v7481_v54 = vadd.f32 %v2192_v40, %v2164_v4  ;;  %v7483_v36 = vadd.f32 %v2193_v53, %v2165_v38  ;;  %v7486_v47 = vadd.f32 %v2194_v58, %v2166_v9  ;;  %v2203_v18 = vmul.f32 %v4260_v19, %v7208_v30  ;;  %v4270_v9 = vld [vmem:[%s5100_s11 + $0x263] sm:$0xff]  ;;  %v4271_v32 = vld [vmem:[%s5100_s11 + $0x26b] sm:$0xff]  ;;  %v2239_v40 = vld [vmem:[%s5100_s11 + $0x14] sm:$0xff] }
 0x1e8   : >> { %v2204_v45 = vmul.f32 %v4261_v15, %v7208_v30  ;;  %v2205_v10 = vmul.f32 %v4262_v33, %v7208_v30  ;;  %v2206_v61 = vmul.f32 %v4263_v44, %v7208_v30  ;;  %v2207_v4 = vmul.f32 %v4264_v26, %v7208_v30  ;;  %v4272_v33 = vld [vmem:[%s5100_s11 + $0x273] sm:$0xff]  ;;  %v2240_v53 = vld [vmem:[%s5100_s11 + $0x1c] sm:$0xff] }
 0x1e9   : >> { %v2208_v38 = vmul.f32 %v4265_v11, %v7208_v30  ;;  %v2209_v3 = vadd.f32 %v2202_v12, %v2174_v24  ;;  %v2210_v19 = vadd.f32 %v2203_v18, %v2175_v16  ;;  %v2223_v37 = vmul.f32 %v4266_v13, %v7326_v63  ;;  %v2237_v24 = vld [vmem:[%s5100_s11 + $0x4] sm:$0xff]  ;;  %v2242_v12 = vld [vmem:[%s5100_s11 + $0x2c] sm:$0xff]  ;;  %v2243_v13 = vld [vmem:[%s5100_s11 + $0x34] sm:$0xff] }
 0x1ea   : >> { %v2211_v15 = vadd.f32 %v2204_v45, %v2176_v20  ;;  %v2212_v0 = vadd.f32 %v2205_v10, %v2177_v46  ;;  %v2213_v44 = vadd.f32 %v2206_v61, %v2178_v56  ;;  %v2214_v29 = vadd.f32 %v2207_v4, %v2179_v43  ;;  %v2238_v46 = vld [vmem:[%s5100_s11 + $0xc] sm:$0xff]  ;;  %v9645_v18 = vld [vmem:[#allocation28_spill] sm:$0xff] }
 0x1eb   : >> { %v2215_v26 = vadd.f32 %v2208_v38, %v2180_v23  ;;  %v2224_v30 = vmul.f32 %v4267_v21, %v7326_v63  ;;  %v2225_v11 = vmul.f32 %v4268_v39, %v7326_v63  ;;  %v2226_v42 = vmul.f32 %v4269_v1, %v7326_v63  ;;  %v2241_v23 = vld [vmem:[%s5100_s11 + $0x24] sm:$0xff]  ;;  %v9646_v45 = vld [vmem:[#allocation16_spill] sm:$0xff] }
 0x1ec   : >> { %v2227_v16 = vmul.f32 %v4270_v9, %v7326_v63  ;;  %v2228_v20 = vmul.f32 %v4271_v32, %v7326_v63  ;;  %v2229_v56 = vmul.f32 %v4272_v33, %v7326_v63  ;;  %v7511_v58 = vadd.f32 %v2223_v37, %v2209_v3 }
 0x1ed   : >> { %v7513_v43 = vadd.f32 %v2224_v30, %v2210_v19  ;;  %v7520_v10 = vrot.slane %v9646_v45, %v9645_v18  ;;  %v7522_v21 = vadd.f32 %v2225_v11, %v2211_v15  ;;  %v7524_v39 = vadd.f32 %v2226_v42, %v2212_v0 }
 0x1ee   : >> { %v7526_v61 = vadd.f32 %v2227_v16, %v2213_v44  ;;  %v7528_v4 = vadd.f32 %v2228_v20, %v2214_v29  ;;  %v7530_v63 = vadd.f32 %v2229_v56, %v2215_v26  ;;  %v4273_v44 = vld [vmem:[%s5100_s11 + $0x44] sm:$0xff]  ;;  %v4274_v20 = vld [vmem:[%s5100_s11 + $0x4c] sm:$0xff] }
 0x1ef   : >> { %v2248_v38 = vmul.f32 %v7520_v10, %v2237_v24  ;;  %v2249_v3 = vmul.f32 %v7520_v10, %v2238_v46  ;;  %v2250_v1 = vmul.f32 %v7520_v10, %v2239_v40  ;;  %v2251_v9 = vmul.f32 %v7520_v10, %v2240_v53  ;;  %v9647_v29 = vld [vmem:[#allocation29_spill] sm:$0xff]  ;;  %v4275_v46 = vld [vmem:[%s5100_s11 + $0x54] sm:$0xff] }
 0x1f0   : >> { %v2252_v32 = vmul.f32 %v7520_v10, %v2241_v23  ;;  %v2253_v19 = vmul.f32 %v7520_v10, %v2242_v12  ;;  %v2254_v15 = vmul.f32 %v7520_v10, %v2243_v13  ;;  %v9648_v26 = vld [vmem:[#allocation17_spill] sm:$0xff]  ;;  %v4279_v53 = vld [vmem:[%s5100_s11 + $0x74] sm:$0xff]  ;;  %v2287_v12 = vmul.f32 %v4273_v44, %v7520_v10 }
 0x1f1   : >> { %v2255_v0 = vadd.f32 %v2248_v38, %v7355_v62  ;;  %v2256_v33 = vadd.f32 %v2249_v3, %v7358_v57  ;;  %v2257_v37 = vadd.f32 %v2250_v1, %v7361_v50  ;;  %v7545_v30 = vrot.slane %v9648_v26, %v9647_v29  ;;  %v4276_v62 = vld [vmem:[%s5100_s11 + $0x5c] sm:$0xff]  ;;  %v4277_v40 = vld [vmem:[%s5100_s11 + $0x64] sm:$0xff]  ;;  %v4278_v57 = vld [vmem:[%s5100_s11 + $0x6c] sm:$0xff] }
 0x1f2   : >> { %v2258_v24 = vadd.f32 %v2251_v9, %v7364_v52  ;;  %v2259_v11 = vadd.f32 %v2252_v32, %v7367_v6  ;;  %v2260_v42 = vadd.f32 %v2253_v19, %v7370_v17  ;;  %v2261_v16 = vadd.f32 %v2254_v15, %v7373_v48 }
 0x1f3   : >> { %v2273_v50 = vmul.f32 %v4273_v44, %v7545_v30  ;;  %v2274_v56 = vmul.f32 %v4274_v20, %v7545_v30  ;;  %v2275_v23 = vmul.f32 %v4275_v46, %v7545_v30  ;;  %v2276_v52 = vmul.f32 %v4276_v62, %v7545_v30 }
 0x1f4   : >> { %v2277_v6 = vmul.f32 %v4277_v40, %v7545_v30  ;;  %v2278_v17 = vmul.f32 %v4278_v57, %v7545_v30  ;;  %v2279_v48 = vmul.f32 %v4279_v53, %v7545_v30  ;;  %v2288_v15 = vmul.f32 %v4274_v20, %v7520_v10 }
 0x1f5   : >> { %v2280_v13 = vadd.f32 %v2273_v50, %v2255_v0  ;;  %v2281_v38 = vadd.f32 %v2274_v56, %v2256_v33  ;;  %v2282_v3 = vadd.f32 %v2275_v23, %v2257_v37  ;;  %v2283_v1 = vadd.f32 %v2276_v52, %v2258_v24  ;;  %v4281_v50 = vld [vmem:[%s5100_s11 + $0x8c] sm:$0xff]  ;;  %v4282_v56 = vld [vmem:[%s5100_s11 + $0x94] sm:$0xff]  ;;  %v4284_v23 = vld [vmem:[%s5100_s11 + $0xa4] sm:$0xff] }
 0x1f6   : >> { %v2284_v9 = vadd.f32 %v2277_v6, %v2259_v11  ;;  %v2285_v32 = vadd.f32 %v2278_v17, %v2260_v42  ;;  %v2286_v19 = vadd.f32 %v2279_v48, %v2261_v16  ;;  %v2289_v29 = vmul.f32 %v4275_v46, %v7520_v10  ;;  %v4280_v11 = vld [vmem:[%s5100_s11 + $0x84] sm:$0xff]  ;;  %v4286_v52 = vld [vmem:[%s5100_s11 + $0xb4] sm:$0xff] }
 0x1f7   : >> { %v2290_v26 = vmul.f32 %v4276_v62, %v7520_v10  ;;  %v2291_v44 = vmul.f32 %v4277_v40, %v7520_v10  ;;  %v2292_v0 = vmul.f32 %v4278_v57, %v7520_v10  ;;  %v2293_v33 = vmul.f32 %v4279_v53, %v7520_v10  ;;  %v9649_v42 = vld [vmem:[#allocation30_spill] sm:$0xff]  ;;  %v4283_v53 = vld [vmem:[%s5100_s11 + $0x9c] sm:$0xff] }
 0x1f8   : >> { %v2294_v37 = vadd.f32 %v2287_v12, %v7430_v8  ;;  %v2295_v24 = vadd.f32 %v2288_v15, %v7432_v60  ;;  %v9650_v16 = vld [vmem:[#allocation18_spill] sm:$0xff]  ;;  %v2296_v46 = vadd.f32 %v2289_v29, %v7434_v31  ;;  %v2326_v12 = vmul.f32 %v4280_v11, %v7545_v30 }
 0x1f9   : >> { %v7576_v20 = vrot.slane %v9650_v16, %v9649_v42  ;;  %v2297_v62 = vadd.f32 %v2290_v26, %v7436_v28  ;;  %v2298_v40 = vadd.f32 %v2291_v44, %v7439_v55  ;;  %v2299_v57 = vadd.f32 %v2292_v0, %v7441_v7  ;;  %v4285_v60 = vld [vmem:[%s5100_s11 + $0xac] sm:$0xff] }
 0x1fa   : >> { %v2300_v8 = vadd.f32 %v2293_v33, %v7443_v49  ;;  %v2327_v42 = vmul.f32 %v4281_v50, %v7545_v30  ;;  %v2328_v16 = vmul.f32 %v4282_v56, %v7545_v30  ;;  %v2329_v18 = vmul.f32 %v4283_v53, %v7545_v30 }
 0x1fb   : >> { %v2312_v6 = vmul.f32 %v4280_v11, %v7576_v20  ;;  %v2313_v17 = vmul.f32 %v4281_v50, %v7576_v20  ;;  %v2314_v31 = vmul.f32 %v4282_v56, %v7576_v20  ;;  %v2315_v28 = vmul.f32 %v4283_v53, %v7576_v20 }
 0x1fc   : >> { %v2316_v55 = vmul.f32 %v4284_v23, %v7576_v20  ;;  %v2317_v7 = vmul.f32 %v4285_v60, %v7576_v20  ;;  %v2318_v29 = vmul.f32 %v4286_v52, %v7576_v20  ;;  %v2330_v45 = vmul.f32 %v4284_v23, %v7545_v30 }
 0x1fd   : >> { %v2319_v26 = vadd.f32 %v2312_v6, %v2280_v13  ;;  %v2320_v48 = vadd.f32 %v2313_v17, %v2281_v38  ;;  %v2321_v49 = vadd.f32 %v2314_v31, %v2282_v3  ;;  %v2322_v15 = vadd.f32 %v2315_v28, %v2283_v1 }
 0x1fe   : >> { %v2323_v44 = vadd.f32 %v2316_v55, %v2284_v9  ;;  %v2324_v0 = vadd.f32 %v2317_v7, %v2285_v32  ;;  %v2325_v33 = vadd.f32 %v2318_v29, %v2286_v19  ;;  %v2331_v22 = vmul.f32 %v4285_v60, %v7545_v30 }
 0x1ff   : >> { %v2332_v13 = vmul.f32 %v4286_v52, %v7545_v30  ;;  %v2333_v38 = vadd.f32 %v2326_v12, %v2294_v37  ;;  %v2340_v3 = vmul.f32 %v4280_v11, %v7520_v10  ;;  %v2334_v1 = vadd.f32 %v2327_v42, %v2295_v24  ;;  %v4287_v42 = vld [vmem:[%s5100_s11 + $0xc4] sm:$0xff] }
 0x200   : >> { %v2335_v9 = vadd.f32 %v2328_v16, %v2296_v46  ;;  %v2336_v32 = vadd.f32 %v2329_v18, %v2297_v62  ;;  %v2337_v19 = vadd.f32 %v2330_v45, %v2298_v40  ;;  %v2338_v6 = vadd.f32 %v2331_v22, %v2299_v57  ;;  %v9651_v16 = vld [vmem:[#allocation31_spill] sm:$0xff] }
 0x201   : >> { %v2339_v17 = vadd.f32 %v2332_v13, %v2300_v8  ;;  %v2341_v31 = vmul.f32 %v4281_v50, %v7520_v10  ;;  %v2342_v28 = vmul.f32 %v4282_v56, %v7520_v10  ;;  %v2343_v55 = vmul.f32 %v4283_v53, %v7520_v10  ;;  %v4288_v56 = vld [vmem:[%s5100_s11 + $0xcc] sm:$0xff]  ;;  %v4289_v53 = vld [vmem:[%s5100_s11 + $0xd4] sm:$0xff]  ;;  %v4291_v8 = vld [vmem:[%s5100_s11 + $0xe4] sm:$0xff] }
 0x202   : >> { %v2344_v37 = vmul.f32 %v4284_v23, %v7520_v10  ;;  %v2345_v24 = vmul.f32 %v4285_v60, %v7520_v10  ;;  %v2346_v18 = vmul.f32 %v4286_v52, %v7520_v10  ;;  %v2347_v22 = vadd.f32 %v2340_v3, %v7472_v51  ;;  %v4290_v51 = vld [vmem:[%s5100_s11 + $0xdc] sm:$0xff]  ;;  %v4293_v23 = vld [vmem:[%s5100_s11 + $0xf4] sm:$0xff] }
 0x203   : >> { %v2348_v45 = vadd.f32 %v2341_v31, %v7474_v35  ;;  %v2349_v11 = vadd.f32 %v2342_v28, %v7477_v27  ;;  %v7616_v46 = vrot.slane %v9623_v25, %v9651_v16  ;;  %v2350_v62 = vadd.f32 %v2343_v55, %v7479_v34  ;;  %v4292_v35 = vld [vmem:[%s5100_s11 + $0xec] sm:$0xff] }
 0x204   : >> { %v2351_v40 = vadd.f32 %v2344_v37, %v7481_v54  ;;  %v2352_v57 = vadd.f32 %v2345_v24, %v7483_v36  ;;  %v2353_v50 = vadd.f32 %v2346_v18, %v7486_v47  ;;  %v2379_v7 = vmul.f32 %v4287_v42, %v7576_v20 }
 0x205   : >> { %v2365_v27 = vmul.f32 %v4287_v42, %v7616_v46  ;;  %v2366_v60 = vmul.f32 %v4288_v56, %v7616_v46  ;;  %v2367_v52 = vmul.f32 %v4289_v53, %v7616_v46  ;;  %v2368_v34 = vmul.f32 %v4290_v51, %v7616_v46 }
 0x206   : >> { %v2369_v54 = vmul.f32 %v4291_v8, %v7616_v46  ;;  %v2370_v36 = vmul.f32 %v4292_v35, %v7616_v46  ;;  %v2371_v47 = vmul.f32 %v4293_v23, %v7616_v46  ;;  %v2380_v37 = vmul.f32 %v4288_v56, %v7576_v20 }
 0x207   : >> { %v7636_v29 = vadd.f32 %v2365_v27, %v2319_v26  ;;  %v7638_v12 = vadd.f32 %v2366_v60, %v2320_v48  ;;  %v7640_v13 = vadd.f32 %v2367_v52, %v2321_v49  ;;  %v7642_v3 = vadd.f32 %v2368_v34, %v2322_v15 }
 0x208   : >> { %v7644_v31 = vadd.f32 %v2369_v54, %v2323_v44  ;;  %v7646_v28 = vadd.f32 %v2370_v36, %v2324_v0  ;;  %v7648_v55 = vadd.f32 %v2371_v47, %v2325_v33  ;;  %v2381_v24 = vmul.f32 %v4289_v53, %v7576_v20 }
 0x209   : >> { %v2382_v18 = vmul.f32 %v4290_v51, %v7576_v20  ;;  %v2383_v26 = vmul.f32 %v4291_v8, %v7576_v20  ;;  %v2384_v48 = vmul.f32 %v4292_v35, %v7576_v20  ;;  %v2385_v49 = vmul.f32 %v4293_v23, %v7576_v20 }
 0x20a   : >> { %v7656_v15 = vadd.f32 %v2379_v7, %v2333_v38  ;;  %v7658_v44 = vadd.f32 %v2380_v37, %v2334_v1  ;;  %v2393_v0 = vmul.f32 %v4287_v42, %v7545_v30  ;;  %v7661_v33 = vadd.f32 %v2381_v24, %v2335_v9 }
 0x20b   : >> { %v7663_v27 = vadd.f32 %v2382_v18, %v2336_v32  ;;  %v7665_v60 = vadd.f32 %v2383_v26, %v2337_v19  ;;  %v7667_v52 = vadd.f32 %v2384_v48, %v2338_v6  ;;  %v7669_v34 = vadd.f32 %v2385_v49, %v2339_v17  ;;  %v4298_v48 = vld [vmem:[%s5100_s11 + $0x124] sm:$0xff]  ;;  %v4299_v49 = vld [vmem:[%s5100_s11 + $0x12c] sm:$0xff] }
 0x20c   : >> { %v2394_v54 = vmul.f32 %v4288_v56, %v7545_v30  ;;  %v2395_v36 = vmul.f32 %v4289_v53, %v7545_v30  ;;  %v2396_v38 = vmul.f32 %v4290_v51, %v7545_v30  ;;  %v2397_v1 = vmul.f32 %v4291_v8, %v7545_v30 }
 0x20d   : >> { %v2398_v47 = vmul.f32 %v4292_v35, %v7545_v30  ;;  %v2399_v9 = vmul.f32 %v4293_v23, %v7545_v30  ;;  %v7677_v32 = vadd.f32 %v2393_v0, %v2347_v22  ;;  %v2407_v7 = vmul.f32 %v4287_v42, %v7520_v10  ;;  %v4300_v0 = vld [vmem:[%s5100_s11 + $0x134] sm:$0xff] }
 0x20e   : >> { %v7679_v19 = vadd.f32 %v2394_v54, %v2348_v45  ;;  %v7681_v6 = vadd.f32 %v2395_v36, %v2349_v11  ;;  %v7683_v17 = vadd.f32 %v2396_v38, %v2350_v62  ;;  %v7686_v37 = vadd.f32 %v2397_v1, %v2351_v40 }
 0x20f   : >> { %v7688_v24 = vadd.f32 %v2398_v47, %v2352_v57  ;;  %v7690_v18 = vadd.f32 %v2399_v9, %v2353_v50  ;;  %v2408_v22 = vmul.f32 %v4288_v56, %v7520_v10  ;;  %v2409_v45 = vmul.f32 %v4289_v53, %v7520_v10  ;;  %v4294_v56 = vld [vmem:[%s5100_s11 + $0x104] sm:$0xff] }
 0x210   : >> { %v2410_v11 = vmul.f32 %v4290_v51, %v7520_v10  ;;  %v2411_v62 = vmul.f32 %v4291_v8, %v7520_v10  ;;  %v2412_v42 = vmul.f32 %v4292_v35, %v7520_v10  ;;  %v2413_v40 = vmul.f32 %v4293_v23, %v7520_v10  ;;  %v4295_v10 = vld [vmem:[%s5100_s11 + $0x10c] sm:$0xff]  ;;  %v4297_v23 = vld [vmem:[%s5100_s11 + $0x11c] sm:$0xff] }
 0x211   : >> { %v7699_v57 = vadd.f32 %v2407_v7, %v7511_v58  ;;  %v7702_v50 = vadd.f32 %v2408_v22, %v7513_v43  ;;  %v7707_v53 = vrot.slane %v9636_v5, %v9644_v14  ;;  %v7710_v51 = vadd.f32 %v2409_v45, %v7522_v21  ;;  %v4296_v43 = vld [vmem:[%s5100_s11 + $0x114] sm:$0xff] }
 0x212   : >> { %v7713_v8 = vadd.f32 %v2410_v11, %v7524_v39  ;;  %v7716_v35 = vadd.f32 %v2411_v62, %v7526_v61  ;;  %v7719_v58 = vadd.f32 %v2412_v42, %v7528_v4  ;;  %v7725_v26 = vadd.f32 %v2413_v40, %v7530_v63 }
 0x213   : >> { %v2432_v21 = vmul.f32 %v4294_v56, %v7707_v53  ;;  %v2433_v39 = vmul.f32 %v4295_v10, %v7707_v53  ;;  %v2434_v54 = vmul.f32 %v4296_v43, %v7707_v53  ;;  %v2435_v61 = vmul.f32 %v4297_v23, %v7707_v53 }
 0x214   : >> { %v2436_v4 = vmul.f32 %v4298_v48, %v7707_v53  ;;  %v2437_v36 = vmul.f32 %v4299_v49, %v7707_v53  ;;  %v2438_v38 = vmul.f32 %v4300_v0, %v7707_v53  ;;  %v2446_v9 = vmul.f32 %v4294_v56, %v7616_v46 }
 0x215   : >> { %v7738_v63 = vadd.f32 %v2432_v21, %v7636_v29  ;;  %v7741_v1 = vadd.f32 %v2433_v39, %v7638_v12  ;;  %v7744_v47 = vadd.f32 %v2434_v54, %v7640_v13  ;;  %v7748_v7 = vadd.f32 %v2435_v61, %v7642_v3 }
 0x216   : >> { %v7751_v22 = vadd.f32 %v2436_v4, %v7644_v31  ;;  %v7754_v45 = vadd.f32 %v2437_v36, %v7646_v28  ;;  %v7757_v29 = vadd.f32 %v2438_v38, %v7648_v55  ;;  %v2447_v12 = vmul.f32 %v4295_v10, %v7616_v46 }
 0x217   : >> { %v2448_v11 = vmul.f32 %v4296_v43, %v7616_v46  ;;  %v2449_v13 = vmul.f32 %v4297_v23, %v7616_v46  ;;  %v2450_v62 = vmul.f32 %v4298_v48, %v7616_v46  ;;  %v2451_v3 = vmul.f32 %v4299_v49, %v7616_v46 }
 0x218   : >> { %v2452_v42 = vmul.f32 %v4300_v0, %v7616_v46  ;;  %v7766_v31 = vadd.f32 %v2446_v9, %v7656_v15  ;;  %v2460_v28 = vmul.f32 %v4294_v56, %v7576_v20  ;;  %v7770_v55 = vadd.f32 %v2447_v12, %v7658_v44 }
 0x219   : >> { %v7773_v40 = vadd.f32 %v2448_v11, %v7661_v33  ;;  %v7776_v21 = vadd.f32 %v2449_v13, %v7663_v27  ;;  %v7779_v39 = vadd.f32 %v2450_v62, %v7665_v60  ;;  %v7782_v54 = vadd.f32 %v2451_v3, %v7667_v52  ;;  %v4304_v3 = vld [vmem:[%s5100_s11 + $0x15c] sm:$0xff] }
 0x21a   : >> { %v7785_v15 = vadd.f32 %v2452_v42, %v7669_v34  ;;  %v2461_v61 = vmul.f32 %v4295_v10, %v7576_v20  ;;  %v2462_v44 = vmul.f32 %v4296_v43, %v7576_v20  ;;  %v2463_v4 = vmul.f32 %v4297_v23, %v7576_v20  ;;  %v4305_v42 = vld [vmem:[%s5100_s11 + $0x164] sm:$0xff] }
 0x21b   : >> { %v2464_v33 = vmul.f32 %v4298_v48, %v7576_v20  ;;  %v2465_v27 = vmul.f32 %v4299_v49, %v7576_v20  ;;  %v2466_v36 = vmul.f32 %v4300_v0, %v7576_v20  ;;  %v7794_v60 = vadd.f32 %v2460_v28, %v7677_v32 }
 0x21c   : >> { %v7797_v52 = vadd.f32 %v2461_v61, %v7679_v19  ;;  %v7800_v34 = vadd.f32 %v2462_v44, %v7681_v6  ;;  %v2474_v38 = vmul.f32 %v4294_v56, %v7545_v30  ;;  %v7804_v9 = vadd.f32 %v2463_v4, %v7683_v17  ;;  %v4307_v61 = vld [vmem:[%s5100_s11 + $0x174] sm:$0xff] }
 0x21d   : >> { %v7807_v12 = vadd.f32 %v2464_v33, %v7686_v37  ;;  %v7810_v11 = vadd.f32 %v2465_v27, %v7688_v24  ;;  %v7813_v32 = vadd.f32 %v2466_v36, %v7690_v18  ;;  %v2475_v19 = vmul.f32 %v4295_v10, %v7545_v30 }
 0x21e   : >> { %v2476_v6 = vmul.f32 %v4296_v43, %v7545_v30  ;;  %v2477_v17 = vmul.f32 %v4297_v23, %v7545_v30  ;;  %v2478_v56 = vmul.f32 %v4298_v48, %v7545_v30  ;;  %v2479_v37 = vmul.f32 %v4299_v49, %v7545_v30  ;;  %v4303_v49 = vld [vmem:[%s5100_s11 + $0x154] sm:$0xff] }
 0x21f   : >> { %v2480_v24 = vmul.f32 %v4300_v0, %v7545_v30  ;;  %v7822_v13 = vadd.f32 %v2474_v38, %v7699_v57  ;;  %v7826_v18 = vrot.slane %v9636_v5, %v9619_v41  ;;  %v7829_v10 = vadd.f32 %v2475_v19, %v7702_v50  ;;  %v4301_v30 = vld [vmem:[%s5100_s11 + $0x144] sm:$0xff]  ;;  %v4302_v57 = vld [vmem:[%s5100_s11 + $0x14c] sm:$0xff] }
 0x220   : >> { %v7832_v43 = vadd.f32 %v2476_v6, %v7710_v51  ;;  %v7835_v23 = vadd.f32 %v2477_v17, %v7713_v8  ;;  %v7838_v48 = vadd.f32 %v2478_v56, %v7716_v35  ;;  %v2486_v0 = vadd.f32 %v2479_v37, %v7719_v58  ;;  %v4306_v50 = vld [vmem:[%s5100_s11 + $0x16c] sm:$0xff] }
 0x221   : >> { %v2487_v62 = vadd.f32 %v2480_v24, %v7725_v26  ;;  %v2499_v28 = vmul.f32 %v4301_v30, %v7826_v18  ;;  %v2500_v51 = vmul.f32 %v4302_v57, %v7826_v18  ;;  %v2501_v8 = vmul.f32 %v4303_v49, %v7826_v18 }
 0x222   : >> { %v2502_v35 = vmul.f32 %v4304_v3, %v7826_v18  ;;  %v2503_v44 = vmul.f32 %v4305_v42, %v7826_v18  ;;  %v2504_v4 = vmul.f32 %v4306_v50, %v7826_v18  ;;  %v2505_v58 = vmul.f32 %v4307_v61, %v7826_v18 }
 0x223   : >> { %v7857_v26 = vadd.f32 %v2499_v28, %v7738_v63  ;;  %v7860_v33 = vadd.f32 %v2500_v51, %v7741_v1  ;;  %v2513_v27 = vmul.f32 %v4301_v30, %v7707_v53  ;;  %v7864_v36 = vadd.f32 %v2501_v8, %v7744_v47 }
 0x224   : >> { %v7867_v38 = vadd.f32 %v2502_v35, %v7748_v7  ;;  %v7870_v19 = vadd.f32 %v2503_v44, %v7751_v22  ;;  %v7873_v6 = vadd.f32 %v2504_v4, %v7754_v45  ;;  %v7876_v63 = vadd.f32 %v2505_v58, %v7757_v29 }
 0x225   : >> { %v2514_v1 = vmul.f32 %v4302_v57, %v7707_v53  ;;  %v2515_v17 = vmul.f32 %v4303_v49, %v7707_v53  ;;  %v2516_v56 = vmul.f32 %v4304_v3, %v7707_v53  ;;  %v2517_v47 = vmul.f32 %v4305_v42, %v7707_v53 }
 0x226   : >> { %v2518_v7 = vmul.f32 %v4306_v50, %v7707_v53  ;;  %v2519_v37 = vmul.f32 %v4307_v61, %v7707_v53  ;;  %v7885_v22 = vadd.f32 %v2513_v27, %v7766_v31  ;;  %v2527_v28 = vmul.f32 %v4301_v30, %v7616_v46 }
 0x227   : >> { %v7888_v45 = vadd.f32 %v2514_v1, %v7770_v55  ;;  %v7891_v29 = vadd.f32 %v2515_v17, %v7773_v40  ;;  %v7894_v24 = vadd.f32 %v2516_v56, %v7776_v21  ;;  %v7898_v51 = vadd.f32 %v2517_v47, %v7779_v39  ;;  %v4310_v56 = vld [vmem:[%s5100_s11 + $0x194] sm:$0xff]  ;;  %v4311_v47 = vld [vmem:[%s5100_s11 + $0x19c] sm:$0xff] }
 0x228   : >> { %v7901_v8 = vadd.f32 %v2518_v7, %v7782_v54  ;;  %v7904_v31 = vadd.f32 %v2519_v37, %v7785_v15  ;;  %v2528_v55 = vmul.f32 %v4302_v57, %v7616_v46  ;;  %v2529_v35 = vmul.f32 %v4303_v49, %v7616_v46  ;;  %v4312_v7 = vld [vmem:[%s5100_s11 + $0x1a4] sm:$0xff]  ;;  %v4314_v37 = vld [vmem:[%s5100_s11 + $0x1b4] sm:$0xff] }
 0x229   : >> { %v2530_v40 = vmul.f32 %v4304_v3, %v7616_v46  ;;  %v2531_v21 = vmul.f32 %v4305_v42, %v7616_v46  ;;  %v2532_v44 = vmul.f32 %v4306_v50, %v7616_v46  ;;  %v2533_v4 = vmul.f32 %v4307_v61, %v7616_v46 }
 0x22a   : >> { %v7913_v39 = vadd.f32 %v2527_v28, %v7794_v60  ;;  %v7916_v54 = vadd.f32 %v2528_v55, %v7797_v52  ;;  %v2541_v15 = vmul.f32 %v4301_v30, %v7576_v20  ;;  %v7920_v58 = vadd.f32 %v2529_v35, %v7800_v34 }
 0x22b   : >> { %v7923_v27 = vadd.f32 %v2530_v40, %v7804_v9  ;;  %v7926_v1 = vadd.f32 %v2531_v21, %v7807_v12  ;;  %v7929_v17 = vadd.f32 %v2532_v44, %v7810_v11  ;;  %v7932_v60 = vadd.f32 %v2533_v4, %v7813_v32 }
 0x22c   : >> { %v2542_v52 = vmul.f32 %v4302_v57, %v7576_v20  ;;  %v2543_v30 = vmul.f32 %v4303_v49, %v7576_v20  ;;  %v2544_v34 = vmul.f32 %v4304_v3, %v7576_v20  ;;  %v2545_v9 = vmul.f32 %v4305_v42, %v7576_v20  ;;  %v4308_v42 = vld [vmem:[%s5100_s11 + $0x184] sm:$0xff] }
 0x22d   : >> { %v2546_v12 = vmul.f32 %v4306_v50, %v7576_v20  ;;  %v2547_v11 = vmul.f32 %v4307_v61, %v7576_v20  ;;  %v7941_v32 = vadd.f32 %v2541_v15, %v7822_v13  ;;  %v7955_v50 = vrot.slane %v9638_v2, %v9620_v59 }
 0x22e   : >> { %v7944_v57 = vadd.f32 %v2542_v52, %v7829_v10  ;;  %v7947_v49 = vadd.f32 %v2543_v30, %v7832_v43  ;;  %v7950_v3 = vadd.f32 %v2544_v34, %v7835_v23  ;;  %v7958_v20 = vadd.f32 %v2545_v9, %v7838_v48  ;;  %v4309_v10 = vld [vmem:[%s5100_s11 + $0x18c] sm:$0xff] }
 0x22f   : >> { %v7960_v61 = vadd.f32 %v2546_v12, %v2486_v0  ;;  %v7962_v13 = vadd.f32 %v2547_v11, %v2487_v62  ;;  %v2580_v43 = vmul.f32 %v4308_v42, %v7826_v18  ;;  %v4313_v23 = vld [vmem:[%s5100_s11 + $0x1ac] sm:$0xff]  ;;  %v2566_v28 = vmul.f32 %v4308_v42, %v7955_v50 }
 0x230   : >> { %v2567_v55 = vmul.f32 %v4309_v10, %v7955_v50  ;;  %v2568_v35 = vmul.f32 %v4310_v56, %v7955_v50  ;;  %v2569_v48 = vmul.f32 %v4311_v47, %v7955_v50  ;;  %v2570_v0 = vmul.f32 %v4312_v7, %v7955_v50 }
 0x231   : >> { %v2571_v62 = vmul.f32 %v4313_v23, %v7955_v50  ;;  %v2572_v40 = vmul.f32 %v4314_v37, %v7955_v50  ;;  %v2581_v21 = vmul.f32 %v4309_v10, %v7826_v18  ;;  %v7980_v44 = vadd.f32 %v2566_v28, %v7857_v26 }
 0x232   : >> { %v7983_v4 = vadd.f32 %v2567_v55, %v7860_v33  ;;  %v7986_v15 = vadd.f32 %v2568_v35, %v7864_v36  ;;  %v7989_v52 = vadd.f32 %v2569_v48, %v7867_v38  ;;  %v7992_v30 = vadd.f32 %v2570_v0, %v7870_v19 }
 0x233   : >> { %v7995_v34 = vadd.f32 %v2571_v62, %v7873_v6  ;;  %v7998_v9 = vadd.f32 %v2572_v40, %v7876_v63  ;;  %v2582_v26 = vmul.f32 %v4310_v56, %v7826_v18  ;;  %v2583_v33 = vmul.f32 %v4311_v47, %v7826_v18 }
 0x234   : >> { %v2584_v12 = vmul.f32 %v4312_v7, %v7826_v18  ;;  %v2585_v36 = vmul.f32 %v4313_v23, %v7826_v18  ;;  %v2586_v38 = vmul.f32 %v4314_v37, %v7826_v18  ;;  %v2587_v11 = vadd.f32 %v2580_v43, %v7885_v22 }
 0x235   : >> { %v2588_v19 = vadd.f32 %v2581_v21, %v7888_v45  ;;  %v2589_v6 = vadd.f32 %v2582_v26, %v7891_v29  ;;  %v2594_v28 = vmul.f32 %v4308_v42, %v7707_v53  ;;  %v2590_v63 = vadd.f32 %v2583_v33, %v7894_v24 }
 0x236   : >> { %v2591_v55 = vadd.f32 %v2584_v12, %v7898_v51  ;;  %v2592_v35 = vadd.f32 %v2585_v36, %v7901_v8  ;;  %v2593_v48 = vadd.f32 %v2586_v38, %v7904_v31  ;;  %v2595_v0 = vmul.f32 %v4309_v10, %v7707_v53 }
 0x237   : >> { %v2596_v62 = vmul.f32 %v4310_v56, %v7707_v53  ;;  %v2597_v22 = vmul.f32 %v4311_v47, %v7707_v53  ;;  %v2598_v45 = vmul.f32 %v4312_v7, %v7707_v53  ;;  %v2599_v29 = vmul.f32 %v4313_v23, %v7707_v53 }
 0x238   : >> { %v2600_v43 = vmul.f32 %v4314_v37, %v7707_v53  ;;  %v2601_v24 = vadd.f32 %v2594_v28, %v7913_v39  ;;  %v2608_v51 = vmul.f32 %v4308_v42, %v7616_v46  ;;  %v2602_v8 = vadd.f32 %v2595_v0, %v7916_v54  ;;  %v4317_v28 = vld [vmem:[%s5100_s11 + $0x1d4] sm:$0xff]  ;;  %v4320_v0 = vld [vmem:[%s5100_s11 + $0x1ec] sm:$0xff] }
 0x239   : >> { %v2603_v31 = vadd.f32 %v2596_v62, %v7920_v58  ;;  %v2604_v40 = vadd.f32 %v2597_v22, %v7923_v27  ;;  %v2605_v21 = vadd.f32 %v2598_v45, %v7926_v1  ;;  %v2606_v26 = vadd.f32 %v2599_v29, %v7929_v17  ;;  %v4315_v1 = vld [vmem:[%s5100_s11 + $0x1c4] sm:$0xff] }
 0x23a   : >> { %v2607_v33 = vadd.f32 %v2600_v43, %v7932_v60  ;;  %v2609_v12 = vmul.f32 %v4309_v10, %v7616_v46  ;;  %v2610_v39 = vmul.f32 %v4310_v56, %v7616_v46  ;;  %v2611_v42 = vmul.f32 %v4311_v47, %v7616_v46  ;;  %v4316_v56 = vld [vmem:[%s5100_s11 + $0x1cc] sm:$0xff] }
 0x23b   : >> { %v2612_v54 = vmul.f32 %v4312_v7, %v7616_v46  ;;  %v2613_v58 = vmul.f32 %v4313_v23, %v7616_v46  ;;  %v2614_v27 = vmul.f32 %v4314_v37, %v7616_v46  ;;  %v2615_v17 = vadd.f32 %v2608_v51, %v7941_v32  ;;  %v4318_v46 = vld [vmem:[%s5100_s11 + $0x1dc] sm:$0xff]  ;;  %v4319_v37 = vld [vmem:[%s5100_s11 + $0x1e4] sm:$0xff]  ;;  %v4321_v32 = vld [vmem:[%s5100_s11 + $0x1f4] sm:$0xff] }
 0x23c   : >> { %v2616_v60 = vadd.f32 %v2609_v12, %v7944_v57  ;;  %v2617_v10 = vadd.f32 %v2610_v39, %v7947_v49  ;;  %v2629_v36 = vmul.f32 %v4315_v1, %v7955_v50  ;;  %v2618_v47 = vadd.f32 %v2611_v42, %v7950_v3 }
 0x23d   : >> { %v2619_v7 = vadd.f32 %v2612_v54, %v7958_v20  ;;  %v2620_v38 = vadd.f32 %v2613_v58, %v7960_v61  ;;  %v2621_v23 = vadd.f32 %v2614_v27, %v7962_v13  ;;  %v2630_v57 = vmul.f32 %v4316_v56, %v7955_v50 }
 0x23e   : >> { %v2631_v49 = vmul.f32 %v4317_v28, %v7955_v50  ;;  %v2632_v62 = vmul.f32 %v4318_v46, %v7955_v50  ;;  %v2633_v22 = vmul.f32 %v4319_v37, %v7955_v50  ;;  %v2634_v3 = vmul.f32 %v4320_v0, %v7955_v50 }
 0x23f   : >> { %v2635_v20 = vmul.f32 %v4321_v32, %v7955_v50  ;;  %v8054_v61 = vadd.f32 %v2629_v36, %v2587_v11  ;;  %v2643_v13 = vmul.f32 %v4315_v1, %v7826_v18  ;;  %v8057_v45 = vadd.f32 %v2630_v57, %v2588_v19 }
 0x240   : >> { %v8059_v29 = vadd.f32 %v2631_v49, %v2589_v6  ;;  %v8061_v43 = vadd.f32 %v2632_v62, %v2590_v63  ;;  %v8063_v51 = vadd.f32 %v2633_v22, %v2591_v55  ;;  %v8065_v12 = vadd.f32 %v2634_v3, %v2592_v35 }
 0x241   : >> { %v8067_v39 = vadd.f32 %v2635_v20, %v2593_v48  ;;  %v2644_v42 = vmul.f32 %v4316_v56, %v7826_v18  ;;  %v2645_v54 = vmul.f32 %v4317_v28, %v7826_v18  ;;  %v2646_v11 = vmul.f32 %v4318_v46, %v7826_v18 }
 0x242   : >> { %v2647_v19 = vmul.f32 %v4319_v37, %v7826_v18  ;;  %v2648_v6 = vmul.f32 %v4320_v0, %v7826_v18  ;;  %v2649_v63 = vmul.f32 %v4321_v32, %v7826_v18  ;;  %v2650_v58 = vadd.f32 %v2643_v13, %v2601_v24  ;;  %v4324_v13 = vld [vmem:[%s5100_s11 + $0x214] sm:$0xff] }
 0x243   : >> { %v2651_v55 = vadd.f32 %v2644_v42, %v2602_v8  ;;  %v2652_v27 = vadd.f32 %v2645_v54, %v2603_v31  ;;  %v2657_v35 = vmul.f32 %v4315_v1, %v7707_v53  ;;  %v2653_v48 = vadd.f32 %v2646_v11, %v2604_v40  ;;  %v4322_v8 = vld [vmem:[%s5100_s11 + $0x204] sm:$0xff]  ;;  %v4327_v11 = vld [vmem:[%s5100_s11 + $0x22c] sm:$0xff] }
 0x244   : >> { %v2654_v36 = vadd.f32 %v2647_v19, %v2605_v21  ;;  %v2655_v57 = vadd.f32 %v2648_v6, %v2606_v26  ;;  %v2656_v49 = vadd.f32 %v2649_v63, %v2607_v33  ;;  %v2658_v62 = vmul.f32 %v4316_v56, %v7707_v53  ;;  %v4326_v54 = vld [vmem:[%s5100_s11 + $0x224] sm:$0xff]  ;;  %v4328_v19 = vld [vmem:[%s5100_s11 + $0x234] sm:$0xff] }
 0x245   : >> { %v2659_v22 = vmul.f32 %v4317_v28, %v7707_v53  ;;  %v2660_v3 = vmul.f32 %v4318_v46, %v7707_v53  ;;  %v2661_v24 = vmul.f32 %v4319_v37, %v7707_v53  ;;  %v2662_v31 = vmul.f32 %v4320_v0, %v7707_v53  ;;  %v4323_v28 = vld [vmem:[%s5100_s11 + $0x20c] sm:$0xff]  ;;  %v4325_v46 = vld [vmem:[%s5100_s11 + $0x21c] sm:$0xff]  ;;  %v4329_v6 = vld [vmem:[%s5100_s11 + $0x244] sm:$0xff] }
 0x246   : >> { %v2663_v40 = vmul.f32 %v4321_v32, %v7707_v53  ;;  %v2664_v21 = vadd.f32 %v2657_v35, %v2615_v17  ;;  %v2678_v26 = vmul.f32 %v4322_v8, %v7955_v50  ;;  %v2665_v33 = vadd.f32 %v2658_v62, %v2616_v60 }
 0x247   : >> { %v2666_v1 = vadd.f32 %v2659_v22, %v2617_v10  ;;  %v2667_v56 = vadd.f32 %v2660_v3, %v2618_v47  ;;  %v2668_v20 = vadd.f32 %v2661_v24, %v2619_v7  ;;  %v2669_v42 = vadd.f32 %v2662_v31, %v2620_v38  ;;  %v4330_v24 = vld [vmem:[%s5100_s11 + $0x24c] sm:$0xff]  ;;  %v4332_v31 = vld [vmem:[%s5100_s11 + $0x25c] sm:$0xff] }
 0x248   : >> { %v2670_v37 = vadd.f32 %v2663_v40, %v2621_v23  ;;  %v2679_v0 = vmul.f32 %v4323_v28, %v7955_v50  ;;  %v2680_v53 = vmul.f32 %v4324_v13, %v7955_v50  ;;  %v2681_v17 = vmul.f32 %v4325_v46, %v7955_v50  ;;  %v4333_v40 = vld [vmem:[%s5100_s11 + $0x264] sm:$0xff] }
 0x249   : >> { %v2682_v60 = vmul.f32 %v4326_v54, %v7955_v50  ;;  %v2683_v10 = vmul.f32 %v4327_v11, %v7955_v50  ;;  %v2684_v47 = vmul.f32 %v4328_v19, %v7955_v50  ;;  %v8096_v7 = vadd.f32 %v2678_v26, %v2650_v58  ;;  %v4335_v26 = vld [vmem:[%s5100_s11 + $0x274] sm:$0xff] }
 0x24a   : >> { %v8098_v38 = vadd.f32 %v2679_v0, %v2651_v55  ;;  %v8100_v23 = vadd.f32 %v2680_v53, %v2652_v27  ;;  %v2692_v32 = vmul.f32 %v4322_v8, %v7826_v18  ;;  %v8104_v63 = vadd.f32 %v2681_v17, %v2653_v48  ;;  %v4331_v8 = vld [vmem:[%s5100_s11 + $0x254] sm:$0xff] }
 0x24b   : >> { %v8106_v35 = vadd.f32 %v2682_v60, %v2654_v36  ;;  %v8108_v62 = vadd.f32 %v2683_v10, %v2655_v57  ;;  %v8110_v22 = vadd.f32 %v2684_v47, %v2656_v49  ;;  %v2693_v58 = vmul.f32 %v4323_v28, %v7826_v18  ;;  %v4334_v49 = vld [vmem:[%s5100_s11 + $0x26c] sm:$0xff] }
 0x24c   : >> { %v2694_v55 = vmul.f32 %v4324_v13, %v7826_v18  ;;  %v2695_v27 = vmul.f32 %v4325_v46, %v7826_v18  ;;  %v2696_v3 = vmul.f32 %v4326_v54, %v7826_v18  ;;  %v2697_v48 = vmul.f32 %v4327_v11, %v7826_v18  ;;  %v2727_v11 = vld [vmem:[%s5100_s11 + $0x5] sm:$0xff] }
 0x24d   : >> { %v2698_v36 = vmul.f32 %v4328_v19, %v7826_v18  ;;  %v2699_v57 = vadd.f32 %v2692_v32, %v2664_v21  ;;  %v2713_v28 = vmul.f32 %v4329_v6, %v7955_v50  ;;  %v2700_v13 = vadd.f32 %v2693_v58, %v2665_v33  ;;  %v2731_v32 = vld [vmem:[%s5100_s11 + $0x25] sm:$0xff]  ;;  %v2732_v6 = vld [vmem:[%s5100_s11 + $0x2d] sm:$0xff]  ;;  %v2733_v58 = vld [vmem:[%s5100_s11 + $0x35] sm:$0xff] }
 0x24e   : >> { %v2701_v46 = vadd.f32 %v2694_v55, %v2666_v1  ;;  %v2702_v54 = vadd.f32 %v2695_v27, %v2667_v56  ;;  %v2703_v0 = vadd.f32 %v2696_v3, %v2668_v20  ;;  %v2704_v53 = vadd.f32 %v2697_v48, %v2669_v42  ;;  %v2728_v1 = vld [vmem:[%s5100_s11 + $0xd] sm:$0xff]  ;;  %v2729_v56 = vld [vmem:[%s5100_s11 + $0x15] sm:$0xff]  ;;  %v2730_v20 = vld [vmem:[%s5100_s11 + $0x1d] sm:$0xff] }
 0x24f   : >> { %v2705_v17 = vadd.f32 %v2698_v36, %v2670_v37  ;;  %v2714_v18 = vmul.f32 %v4330_v24, %v7955_v50  ;;  %v2715_v21 = vmul.f32 %v4331_v8, %v7955_v50  ;;  %v2716_v19 = vmul.f32 %v4332_v31, %v7955_v50  ;;  %v9652_v55 = vld [vmem:[#allocation27_spill] sm:$0xff]  ;;  %v9653_v27 = vld [vmem:[#allocation16_spill] sm:$0xff] }
 0x250   : >> { %v2717_v60 = vmul.f32 %v4333_v40, %v7955_v50  ;;  %v2718_v10 = vmul.f32 %v4334_v49, %v7955_v50  ;;  %v2719_v33 = vmul.f32 %v4335_v26, %v7955_v50  ;;  %v8135_v42 = vadd.f32 %v2713_v28, %v2699_v57 }
 0x251   : >> { %v8137_v37 = vadd.f32 %v2714_v18, %v2700_v13  ;;  %v8139_v47 = vadd.f32 %v2715_v21, %v2701_v46  ;;  %v8146_v3 = vrot.slane %v9653_v27, %v9652_v55  ;;  %v8148_v24 = vadd.f32 %v2716_v19, %v2702_v54  ;;  %v9654_v13 = vld [vmem:[#allocation28_spill] sm:$0xff]  ;;  %v9655_v46 = vld [vmem:[#allocation17_spill] sm:$0xff] }
 0x252   : >> { %v8150_v50 = vadd.f32 %v2717_v60, %v2703_v0  ;;  %v8152_v8 = vadd.f32 %v2718_v10, %v2704_v53  ;;  %v8154_v31 = vadd.f32 %v2719_v33, %v2705_v17  ;;  %v8165_v54 = vrot.slane %v9655_v46, %v9654_v13  ;;  %v4336_v21 = vld [vmem:[%s5100_s11 + $0x45] sm:$0xff]  ;;  %v4338_v33 = vld [vmem:[%s5100_s11 + $0x55] sm:$0xff] }
 0x253   : >> { %v2738_v48 = vmul.f32 %v8146_v3, %v2727_v11  ;;  %v2739_v36 = vmul.f32 %v8146_v3, %v2728_v1  ;;  %v2740_v57 = vmul.f32 %v8146_v3, %v2729_v56  ;;  %v2741_v40 = vmul.f32 %v8146_v3, %v2730_v20  ;;  %v4337_v11 = vld [vmem:[%s5100_s11 + $0x4d] sm:$0xff]  ;;  %v4339_v1 = vld [vmem:[%s5100_s11 + $0x5d] sm:$0xff]  ;;  %v4340_v56 = vld [vmem:[%s5100_s11 + $0x65] sm:$0xff] }
 0x254   : >> { %v2742_v49 = vmul.f32 %v8146_v3, %v2731_v32  ;;  %v2743_v26 = vmul.f32 %v8146_v3, %v2732_v6  ;;  %v2744_v28 = vmul.f32 %v8146_v3, %v2733_v58  ;;  %v2763_v20 = vmul.f32 %v4336_v21, %v8165_v54  ;;  %v4342_v32 = vld [vmem:[%s5100_s11 + $0x75] sm:$0xff] }
 0x255   : >> { %v2745_v0 = vadd.f32 %v2738_v48, %v7980_v44  ;;  %v2746_v53 = vadd.f32 %v2739_v36, %v7983_v4  ;;  %v2747_v17 = vadd.f32 %v2740_v57, %v7986_v15  ;;  %v2748_v18 = vadd.f32 %v2741_v40, %v7989_v52  ;;  %v4341_v44 = vld [vmem:[%s5100_s11 + $0x6d] sm:$0xff] }
 0x256   : >> { %v2749_v19 = vadd.f32 %v2742_v49, %v7992_v30  ;;  %v2750_v60 = vadd.f32 %v2743_v26, %v7995_v34  ;;  %v2751_v10 = vadd.f32 %v2744_v28, %v7998_v9  ;;  %v2764_v4 = vmul.f32 %v4337_v11, %v8165_v54 }
 0x257   : >> { %v2765_v15 = vmul.f32 %v4338_v33, %v8165_v54  ;;  %v2766_v52 = vmul.f32 %v4339_v1, %v8165_v54  ;;  %v2767_v6 = vmul.f32 %v4340_v56, %v8165_v54  ;;  %v2768_v30 = vmul.f32 %v4341_v44, %v8165_v54 }
 0x258   : >> { %v2769_v34 = vmul.f32 %v4342_v32, %v8165_v54  ;;  %v2770_v9 = vadd.f32 %v2763_v20, %v2745_v0  ;;  %v2777_v58 = vmul.f32 %v4336_v21, %v8146_v3  ;;  %v2771_v48 = vadd.f32 %v2764_v4, %v2746_v53  ;;  %v4345_v4 = vld [vmem:[%s5100_s11 + $0x95] sm:$0xff] }
 0x259   : >> { %v2772_v36 = vadd.f32 %v2765_v15, %v2747_v17  ;;  %v2773_v57 = vadd.f32 %v2766_v52, %v2748_v18  ;;  %v2774_v40 = vadd.f32 %v2767_v6, %v2749_v19  ;;  %v2775_v49 = vadd.f32 %v2768_v30, %v2750_v60  ;;  %v4343_v19 = vld [vmem:[%s5100_s11 + $0x85] sm:$0xff]  ;;  %v4349_v52 = vld [vmem:[%s5100_s11 + $0xb5] sm:$0xff] }
 0x25a   : >> { %v2776_v26 = vadd.f32 %v2769_v34, %v2751_v10  ;;  %v2778_v28 = vmul.f32 %v4337_v11, %v8146_v3  ;;  %v2779_v13 = vmul.f32 %v4338_v33, %v8146_v3  ;;  %v2780_v46 = vmul.f32 %v4339_v1, %v8146_v3  ;;  %v9656_v60 = vld [vmem:[#allocation29_spill] sm:$0xff]  ;;  %v9657_v10 = vld [vmem:[#allocation18_spill] sm:$0xff] }
 0x25b   : >> { %v2781_v0 = vmul.f32 %v4340_v56, %v8146_v3  ;;  %v2782_v53 = vmul.f32 %v4341_v44, %v8146_v3  ;;  %v2783_v17 = vmul.f32 %v4342_v32, %v8146_v3  ;;  %v2784_v18 = vadd.f32 %v2777_v58, %v8054_v61  ;;  %v4344_v32 = vld [vmem:[%s5100_s11 + $0x8d] sm:$0xff]  ;;  %v4346_v61 = vld [vmem:[%s5100_s11 + $0x9d] sm:$0xff]  ;;  %v4347_v15 = vld [vmem:[%s5100_s11 + $0xa5] sm:$0xff] }
 0x25c   : >> { %v2785_v21 = vadd.f32 %v2778_v28, %v8057_v45  ;;  %v2786_v11 = vadd.f32 %v2779_v13, %v8059_v29  ;;  %v8201_v33 = vrot.slane %v9657_v10, %v9656_v60  ;;  %v2787_v1 = vadd.f32 %v2780_v46, %v8061_v43  ;;  %v4348_v45 = vld [vmem:[%s5100_s11 + $0xad] sm:$0xff] }
 0x25d   : >> { %v2788_v56 = vadd.f32 %v2781_v0, %v8063_v51  ;;  %v2789_v20 = vadd.f32 %v2782_v53, %v8065_v12  ;;  %v2790_v44 = vadd.f32 %v2783_v17, %v8067_v39  ;;  %v2816_v46 = vmul.f32 %v4343_v19, %v8165_v54 }
 0x25e   : >> { %v2802_v29 = vmul.f32 %v4343_v19, %v8201_v33  ;;  %v2803_v13 = vmul.f32 %v4344_v32, %v8201_v33  ;;  %v2804_v6 = vmul.f32 %v4345_v4, %v8201_v33  ;;  %v2805_v43 = vmul.f32 %v4346_v61, %v8201_v33 }
 0x25f   : >> { %v2806_v51 = vmul.f32 %v4347_v15, %v8201_v33  ;;  %v2807_v12 = vmul.f32 %v4348_v45, %v8201_v33  ;;  %v2808_v39 = vmul.f32 %v4349_v52, %v8201_v33  ;;  %v2817_v60 = vmul.f32 %v4344_v32, %v8165_v54 }
 0x260   : >> { %v2809_v30 = vadd.f32 %v2802_v29, %v2770_v9  ;;  %v2810_v34 = vadd.f32 %v2803_v13, %v2771_v48  ;;  %v2811_v58 = vadd.f32 %v2804_v6, %v2772_v36  ;;  %v2812_v28 = vadd.f32 %v2805_v43, %v2773_v57 }
 0x261   : >> { %v2813_v0 = vadd.f32 %v2806_v51, %v2774_v40  ;;  %v2814_v53 = vadd.f32 %v2807_v12, %v2775_v49  ;;  %v2815_v17 = vadd.f32 %v2808_v39, %v2776_v26  ;;  %v2818_v10 = vmul.f32 %v4345_v4, %v8165_v54 }
 0x262   : >> { %v2819_v55 = vmul.f32 %v4346_v61, %v8165_v54  ;;  %v2820_v27 = vmul.f32 %v4347_v15, %v8165_v54  ;;  %v2821_v59 = vmul.f32 %v4348_v45, %v8165_v54  ;;  %v2822_v41 = vmul.f32 %v4349_v52, %v8165_v54 }
 0x263   : >> { %v2823_v2 = vadd.f32 %v2816_v46, %v2784_v18  ;;  %v2824_v9 = vadd.f32 %v2817_v60, %v2785_v21  ;;  %v2830_v48 = vmul.f32 %v4343_v19, %v8146_v3  ;;  %v2825_v36 = vadd.f32 %v2818_v10, %v2786_v11  ;;  %v4350_v19 = vld [vmem:[%s5100_s11 + $0xc5] sm:$0xff] }
 0x264   : >> { %v2826_v57 = vadd.f32 %v2819_v55, %v2787_v1  ;;  %v2827_v40 = vadd.f32 %v2820_v27, %v2788_v56  ;;  %v2828_v49 = vadd.f32 %v2821_v59, %v2789_v20  ;;  %v2829_v26 = vadd.f32 %v2822_v41, %v2790_v44  ;;  %v9658_v60 = vld [vmem:[#allocation30_spill] sm:$0xff] }
 0x265   : >> { %v2831_v29 = vmul.f32 %v4344_v32, %v8146_v3  ;;  %v2832_v13 = vmul.f32 %v4345_v4, %v8146_v3  ;;  %v2833_v6 = vmul.f32 %v4346_v61, %v8146_v3  ;;  %v2834_v18 = vmul.f32 %v4347_v15, %v8146_v3  ;;  %v4351_v44 = vld [vmem:[%s5100_s11 + $0xcd] sm:$0xff]  ;;  %v4352_v32 = vld [vmem:[%s5100_s11 + $0xd5] sm:$0xff]  ;;  %v4354_v4 = vld [vmem:[%s5100_s11 + $0xe5] sm:$0xff] }
 0x266   : >> { %v2835_v21 = vmul.f32 %v4348_v45, %v8146_v3  ;;  %v2836_v55 = vmul.f32 %v4349_v52, %v8146_v3  ;;  %v2837_v41 = vadd.f32 %v2830_v48, %v8096_v7  ;;  %v8241_v10 = vrot.slane %v9623_v25, %v9658_v60  ;;  %v4353_v7 = vld [vmem:[%s5100_s11 + $0xdd] sm:$0xff]  ;;  %v4356_v61 = vld [vmem:[%s5100_s11 + $0xf5] sm:$0xff] }
 0x267   : >> { %v2838_v59 = vadd.f32 %v2831_v29, %v8098_v38  ;;  %v2839_v27 = vadd.f32 %v2832_v13, %v8100_v23  ;;  %v2840_v11 = vadd.f32 %v2833_v6, %v8104_v63  ;;  %v2841_v1 = vadd.f32 %v2834_v18, %v8106_v35  ;;  %v4355_v23 = vld [vmem:[%s5100_s11 + $0xed] sm:$0xff] }
 0x268   : >> { %v2842_v56 = vadd.f32 %v2835_v21, %v8108_v62  ;;  %v2843_v20 = vadd.f32 %v2836_v55, %v8110_v22  ;;  %v2869_v38 = vmul.f32 %v4350_v19, %v8201_v33  ;;  %v2855_v63 = vmul.f32 %v4350_v19, %v8241_v10 }
 0x269   : >> { %v2856_v15 = vmul.f32 %v4351_v44, %v8241_v10  ;;  %v2857_v45 = vmul.f32 %v4352_v32, %v8241_v10  ;;  %v2858_v35 = vmul.f32 %v4353_v7, %v8241_v10  ;;  %v2859_v62 = vmul.f32 %v4354_v4, %v8241_v10 }
 0x26a   : >> { %v2860_v22 = vmul.f32 %v4355_v23, %v8241_v10  ;;  %v2861_v52 = vmul.f32 %v4356_v61, %v8241_v10  ;;  %v2870_v43 = vmul.f32 %v4351_v44, %v8201_v33  ;;  %v8261_v51 = vadd.f32 %v2855_v63, %v2809_v30 }
 0x26b   : >> { %v8263_v12 = vadd.f32 %v2856_v15, %v2810_v34  ;;  %v8265_v39 = vadd.f32 %v2857_v45, %v2811_v58  ;;  %v8267_v46 = vadd.f32 %v2858_v35, %v2812_v28  ;;  %v8269_v48 = vadd.f32 %v2859_v62, %v2813_v0 }
 0x26c   : >> { %v8271_v29 = vadd.f32 %v2860_v22, %v2814_v53  ;;  %v8273_v13 = vadd.f32 %v2861_v52, %v2815_v17  ;;  %v2871_v6 = vmul.f32 %v4352_v32, %v8201_v33  ;;  %v2872_v18 = vmul.f32 %v4353_v7, %v8201_v33 }
 0x26d   : >> { %v2873_v21 = vmul.f32 %v4354_v4, %v8201_v33  ;;  %v2874_v30 = vmul.f32 %v4355_v23, %v8201_v33  ;;  %v2875_v34 = vmul.f32 %v4356_v61, %v8201_v33  ;;  %v8280_v58 = vadd.f32 %v2869_v38, %v2823_v2 }
 0x26e   : >> { %v8282_v28 = vadd.f32 %v2870_v43, %v2824_v9  ;;  %v8284_v0 = vadd.f32 %v2871_v6, %v2825_v36  ;;  %v2883_v53 = vmul.f32 %v4350_v19, %v8165_v54  ;;  %v8287_v17 = vadd.f32 %v2872_v18, %v2826_v57  ;;  %v4362_v18 = vld [vmem:[%s5100_s11 + $0x12d] sm:$0xff] }
 0x26f   : >> { %v8289_v55 = vadd.f32 %v2873_v21, %v2827_v40  ;;  %v8291_v63 = vadd.f32 %v2874_v30, %v2828_v49  ;;  %v8293_v15 = vadd.f32 %v2875_v34, %v2829_v26  ;;  %v2884_v45 = vmul.f32 %v4351_v44, %v8165_v54  ;;  %v4363_v21 = vld [vmem:[%s5100_s11 + $0x135] sm:$0xff] }
 0x270   : >> { %v2885_v35 = vmul.f32 %v4352_v32, %v8165_v54  ;;  %v2886_v2 = vmul.f32 %v4353_v7, %v8165_v54  ;;  %v2887_v9 = vmul.f32 %v4354_v4, %v8165_v54  ;;  %v2888_v36 = vmul.f32 %v4355_v23, %v8165_v54 }
 0x271   : >> { %v2889_v38 = vmul.f32 %v4356_v61, %v8165_v54  ;;  %v8301_v57 = vadd.f32 %v2883_v53, %v2837_v41  ;;  %v2897_v40 = vmul.f32 %v4350_v19, %v8146_v3  ;;  %v8304_v49 = vadd.f32 %v2884_v45, %v2838_v59 }
 0x272   : >> { %v8306_v26 = vadd.f32 %v2885_v35, %v2839_v27  ;;  %v8308_v62 = vadd.f32 %v2886_v2, %v2840_v11  ;;  %v8310_v22 = vadd.f32 %v2887_v9, %v2841_v1  ;;  %v8312_v52 = vadd.f32 %v2888_v36, %v2842_v56 }
 0x273   : >> { %v8314_v43 = vadd.f32 %v2889_v38, %v2843_v20  ;;  %v2898_v6 = vmul.f32 %v4351_v44, %v8146_v3  ;;  %v2899_v41 = vmul.f32 %v4352_v32, %v8146_v3  ;;  %v2900_v59 = vmul.f32 %v4353_v7, %v8146_v3  ;;  %v4357_v44 = vld [vmem:[%s5100_s11 + $0x105] sm:$0xff] }
 0x274   : >> { %v2901_v27 = vmul.f32 %v4354_v4, %v8146_v3  ;;  %v2902_v11 = vmul.f32 %v4355_v23, %v8146_v3  ;;  %v2903_v19 = vmul.f32 %v4356_v61, %v8146_v3  ;;  %v8323_v1 = vadd.f32 %v2897_v40, %v8135_v42  ;;  %v4358_v3 = vld [vmem:[%s5100_s11 + $0x10d] sm:$0xff]  ;;  %v4360_v23 = vld [vmem:[%s5100_s11 + $0x11d] sm:$0xff]  ;;  %v4361_v61 = vld [vmem:[%s5100_s11 + $0x125] sm:$0xff] }
 0x275   : >> { %v8326_v56 = vadd.f32 %v2898_v6, %v8137_v37  ;;  %v8329_v20 = vadd.f32 %v2899_v41, %v8139_v47  ;;  %v8334_v32 = vrot.slane %v9636_v5, %v9651_v16  ;;  %v8337_v7 = vadd.f32 %v2900_v59, %v8148_v24  ;;  %v4359_v47 = vld [vmem:[%s5100_s11 + $0x115] sm:$0xff] }
 0x276   : >> { %v8340_v4 = vadd.f32 %v2901_v27, %v8150_v50  ;;  %v8343_v42 = vadd.f32 %v2902_v11, %v8152_v8  ;;  %v8346_v37 = vadd.f32 %v2903_v19, %v8154_v31  ;;  %v2936_v45 = vmul.f32 %v4357_v44, %v8241_v10 }
 0x277   : >> { %v2922_v30 = vmul.f32 %v4357_v44, %v8334_v32  ;;  %v2923_v24 = vmul.f32 %v4358_v3, %v8334_v32  ;;  %v2924_v34 = vmul.f32 %v4359_v47, %v8334_v32  ;;  %v2925_v50 = vmul.f32 %v4360_v23, %v8334_v32 }
 0x278   : >> { %v2926_v8 = vmul.f32 %v4361_v61, %v8334_v32  ;;  %v2927_v53 = vmul.f32 %v4362_v18, %v8334_v32  ;;  %v2928_v31 = vmul.f32 %v4363_v21, %v8334_v32  ;;  %v2939_v41 = vmul.f32 %v4360_v23, %v8241_v10 }
 0x279   : >> { %v8363_v35 = vadd.f32 %v2922_v30, %v8261_v51  ;;  %v8366_v2 = vadd.f32 %v2923_v24, %v8263_v12  ;;  %v8369_v9 = vadd.f32 %v2924_v34, %v8265_v39  ;;  %v8372_v36 = vadd.f32 %v2925_v50, %v8267_v46 }
 0x27a   : >> { %v8375_v38 = vadd.f32 %v2926_v8, %v8269_v48  ;;  %v8378_v40 = vadd.f32 %v2927_v53, %v8271_v29  ;;  %v8381_v6 = vadd.f32 %v2928_v31, %v8273_v13  ;;  %v2937_v51 = vmul.f32 %v4358_v3, %v8241_v10 }
 0x27b   : >> { %v2938_v12 = vmul.f32 %v4359_v47, %v8241_v10  ;;  %v2940_v39 = vmul.f32 %v4361_v61, %v8241_v10  ;;  %v2941_v46 = vmul.f32 %v4362_v18, %v8241_v10  ;;  %v2942_v59 = vmul.f32 %v4363_v21, %v8241_v10 }
 0x27c   : >> { %v8390_v48 = vadd.f32 %v2936_v45, %v8280_v58  ;;  %v8393_v29 = vadd.f32 %v2937_v51, %v8282_v28  ;;  %v2950_v13 = vmul.f32 %v4357_v44, %v8201_v33  ;;  %v8400_v11 = vadd.f32 %v2939_v41, %v8287_v17 }
 0x27d   : >> { %v8397_v27 = vadd.f32 %v2938_v12, %v8284_v0  ;;  %v8403_v19 = vadd.f32 %v2940_v39, %v8289_v55  ;;  %v8406_v30 = vadd.f32 %v2941_v46, %v8291_v63  ;;  %v8409_v58 = vadd.f32 %v2942_v59, %v8293_v15  ;;  %v4369_v39 = vld [vmem:[%s5100_s11 + $0x16d] sm:$0xff]  ;;  %v4370_v46 = vld [vmem:[%s5100_s11 + $0x175] sm:$0xff] }
 0x27e   : >> { %v2951_v28 = vmul.f32 %v4358_v3, %v8201_v33  ;;  %v2952_v24 = vmul.f32 %v4359_v47, %v8201_v33  ;;  %v2953_v34 = vmul.f32 %v4360_v23, %v8201_v33  ;;  %v2954_v0 = vmul.f32 %v4361_v61, %v8201_v33 }
 0x27f   : >> { %v2955_v17 = vmul.f32 %v4362_v18, %v8201_v33  ;;  %v2956_v50 = vmul.f32 %v4363_v21, %v8201_v33  ;;  %v8418_v55 = vadd.f32 %v2950_v13, %v8301_v57  ;;  %v2964_v53 = vmul.f32 %v4357_v44, %v8165_v54 }
 0x280   : >> { %v8421_v63 = vadd.f32 %v2951_v28, %v8304_v49  ;;  %v8424_v15 = vadd.f32 %v2952_v24, %v8306_v26  ;;  %v8427_v8 = vadd.f32 %v2953_v34, %v8308_v62  ;;  %v8431_v31 = vadd.f32 %v2954_v0, %v8310_v22 }
 0x281   : >> { %v8434_v45 = vadd.f32 %v2955_v17, %v8312_v52  ;;  %v8437_v57 = vadd.f32 %v2956_v50, %v8314_v43  ;;  %v2965_v49 = vmul.f32 %v4358_v3, %v8165_v54  ;;  %v2966_v26 = vmul.f32 %v4359_v47, %v8165_v54  ;;  %v4364_v3 = vld [vmem:[%s5100_s11 + $0x145] sm:$0xff] }
 0x282   : >> { %v2967_v62 = vmul.f32 %v4360_v23, %v8165_v54  ;;  %v2968_v44 = vmul.f32 %v4361_v61, %v8165_v54  ;;  %v2969_v22 = vmul.f32 %v4362_v18, %v8165_v54  ;;  %v2970_v52 = vmul.f32 %v4363_v21, %v8165_v54  ;;  %v9659_v47 = vld [vmem:[#allocation21_spill] sm:$0xff] }
 0x283   : >> { %v8446_v43 = vadd.f32 %v2964_v53, %v8323_v1  ;;  %v8449_v51 = vadd.f32 %v2965_v49, %v8326_v56  ;;  %v8454_v12 = vrot.slane %v9659_v47, %v9644_v14  ;;  %v8457_v23 = vadd.f32 %v2966_v26, %v8329_v20  ;;  %v4365_v1 = vld [vmem:[%s5100_s11 + $0x14d] sm:$0xff]  ;;  %v4366_v56 = vld [vmem:[%s5100_s11 + $0x155] sm:$0xff]  ;;  %v4367_v21 = vld [vmem:[%s5100_s11 + $0x15d] sm:$0xff] }
 0x284   : >> { %v8460_v61 = vadd.f32 %v2967_v62, %v8337_v7  ;;  %v8463_v18 = vadd.f32 %v2968_v44, %v8340_v4  ;;  %v8466_v54 = vadd.f32 %v2969_v22, %v8343_v42  ;;  %v8472_v41 = vadd.f32 %v2970_v52, %v8346_v37  ;;  %v4368_v14 = vld [vmem:[%s5100_s11 + $0x165] sm:$0xff] }
 0x285   : >> { %v2989_v20 = vmul.f32 %v4364_v3, %v8454_v12  ;;  %v2990_v7 = vmul.f32 %v4365_v1, %v8454_v12  ;;  %v2991_v59 = vmul.f32 %v4366_v56, %v8454_v12  ;;  %v2992_v4 = vmul.f32 %v4367_v21, %v8454_v12 }
 0x286   : >> { %v2993_v42 = vmul.f32 %v4368_v14, %v8454_v12  ;;  %v2994_v13 = vmul.f32 %v4369_v39, %v8454_v12  ;;  %v2995_v28 = vmul.f32 %v4370_v46, %v8454_v12  ;;  %v3003_v0 = vmul.f32 %v4364_v3, %v8334_v32 }
 0x287   : >> { %v8485_v37 = vadd.f32 %v2989_v20, %v8363_v35  ;;  %v8488_v24 = vadd.f32 %v2990_v7, %v8366_v2  ;;  %v8491_v34 = vadd.f32 %v2991_v59, %v8369_v9  ;;  %v8495_v17 = vadd.f32 %v2992_v4, %v8372_v36 }
 0x288   : >> { %v8498_v50 = vadd.f32 %v2993_v42, %v8375_v38  ;;  %v8501_v53 = vadd.f32 %v2994_v13, %v8378_v40  ;;  %v8504_v35 = vadd.f32 %v2995_v28, %v8381_v6  ;;  %v3004_v2 = vmul.f32 %v4365_v1, %v8334_v32 }
 0x289   : >> { %v3005_v49 = vmul.f32 %v4366_v56, %v8334_v32  ;;  %v3006_v9 = vmul.f32 %v4367_v21, %v8334_v32  ;;  %v3007_v26 = vmul.f32 %v4368_v14, %v8334_v32  ;;  %v3008_v36 = vmul.f32 %v4369_v39, %v8334_v32 }
 0x28a   : >> { %v3009_v62 = vmul.f32 %v4370_v46, %v8334_v32  ;;  %v8513_v38 = vadd.f32 %v3003_v0, %v8390_v48  ;;  %v3017_v40 = vmul.f32 %v4364_v3, %v8241_v10  ;;  %v8517_v6 = vadd.f32 %v3004_v2, %v8393_v29 }
 0x28b   : >> { %v8520_v44 = vadd.f32 %v3005_v49, %v8397_v27  ;;  %v8523_v22 = vadd.f32 %v3006_v9, %v8400_v11  ;;  %v8526_v52 = vadd.f32 %v3007_v26, %v8403_v19  ;;  %v8529_v20 = vadd.f32 %v3008_v36, %v8406_v30  ;;  %v4375_v26 = vld [vmem:[%s5100_s11 + $0x1a5] sm:$0xff]  ;;  %v4376_v36 = vld [vmem:[%s5100_s11 + $0x1ad] sm:$0xff] }
 0x28c   : >> { %v8532_v48 = vadd.f32 %v3009_v62, %v8409_v58  ;;  %v3018_v7 = vmul.f32 %v4365_v1, %v8241_v10  ;;  %v3019_v29 = vmul.f32 %v4366_v56, %v8241_v10  ;;  %v3020_v59 = vmul.f32 %v4367_v21, %v8241_v10  ;;  %v4377_v62 = vld [vmem:[%s5100_s11 + $0x1b5] sm:$0xff] }
 0x28d   : >> { %v3021_v27 = vmul.f32 %v4368_v14, %v8241_v10  ;;  %v3022_v11 = vmul.f32 %v4369_v39, %v8241_v10  ;;  %v3023_v4 = vmul.f32 %v4370_v46, %v8241_v10  ;;  %v8541_v19 = vadd.f32 %v3017_v40, %v8418_v55 }
 0x28e   : >> { %v8544_v30 = vadd.f32 %v3018_v7, %v8421_v63  ;;  %v8547_v58 = vadd.f32 %v3019_v29, %v8424_v15  ;;  %v3031_v42 = vmul.f32 %v4364_v3, %v8201_v33  ;;  %v8551_v13 = vadd.f32 %v3020_v59, %v8427_v8 }
 0x28f   : >> { %v8554_v28 = vadd.f32 %v3021_v27, %v8431_v31  ;;  %v8557_v0 = vadd.f32 %v3022_v11, %v8434_v45  ;;  %v8560_v55 = vadd.f32 %v3023_v4, %v8437_v57  ;;  %v3032_v63 = vmul.f32 %v4365_v1, %v8201_v33  ;;  %v9660_v57 = vld [vmem:[#allocation25_spill] sm:$0xff] }
 0x290   : >> { %v3033_v15 = vmul.f32 %v4366_v56, %v8201_v33  ;;  %v3034_v8 = vmul.f32 %v4367_v21, %v8201_v33  ;;  %v3035_v3 = vmul.f32 %v4368_v14, %v8201_v33  ;;  %v3036_v31 = vmul.f32 %v4369_v39, %v8201_v33 }
 0x291   : >> { %v3037_v45 = vmul.f32 %v4370_v46, %v8201_v33  ;;  %v8569_v2 = vadd.f32 %v3031_v42, %v8446_v43  ;;  %v8573_v1 = vrot.slane %v9659_v47, %v9660_v57  ;;  %v8576_v56 = vadd.f32 %v3032_v63, %v8449_v51  ;;  %v4371_v33 = vld [vmem:[%s5100_s11 + $0x185] sm:$0xff]  ;;  %v4372_v43 = vld [vmem:[%s5100_s11 + $0x18d] sm:$0xff]  ;;  %v4373_v46 = vld [vmem:[%s5100_s11 + $0x195] sm:$0xff] }
 0x292   : >> { %v8579_v21 = vadd.f32 %v3033_v15, %v8457_v23  ;;  %v8582_v14 = vadd.f32 %v3034_v8, %v8460_v61  ;;  %v8585_v39 = vadd.f32 %v3035_v3, %v8463_v18  ;;  %v8591_v49 = vadd.f32 %v3036_v31, %v8466_v54  ;;  %v4374_v51 = vld [vmem:[%s5100_s11 + $0x19d] sm:$0xff] }
 0x293   : >> { %v8594_v9 = vadd.f32 %v3037_v45, %v8472_v41  ;;  %v3056_v23 = vmul.f32 %v4371_v33, %v8573_v1  ;;  %v3057_v61 = vmul.f32 %v4372_v43, %v8573_v1  ;;  %v3058_v18 = vmul.f32 %v4373_v46, %v8573_v1 }
 0x294   : >> { %v3059_v40 = vmul.f32 %v4374_v51, %v8573_v1  ;;  %v3060_v7 = vmul.f32 %v4375_v26, %v8573_v1  ;;  %v3061_v54 = vmul.f32 %v4376_v36, %v8573_v1  ;;  %v3062_v29 = vmul.f32 %v4377_v62, %v8573_v1 }
 0x295   : >> { %v8608_v41 = vadd.f32 %v3056_v23, %v8485_v37  ;;  %v8611_v59 = vadd.f32 %v3057_v61, %v8488_v24  ;;  %v3070_v27 = vmul.f32 %v4371_v33, %v8454_v12  ;;  %v8615_v11 = vadd.f32 %v3058_v18, %v8491_v34 }
 0x296   : >> { %v8618_v4 = vadd.f32 %v3059_v40, %v8495_v17  ;;  %v8621_v42 = vadd.f32 %v3060_v7, %v8498_v50  ;;  %v8624_v63 = vadd.f32 %v3061_v54, %v8501_v53  ;;  %v8627_v37 = vadd.f32 %v3062_v29, %v8504_v35 }
 0x297   : >> { %v3071_v24 = vmul.f32 %v4372_v43, %v8454_v12  ;;  %v3072_v15 = vmul.f32 %v4373_v46, %v8454_v12  ;;  %v3073_v8 = vmul.f32 %v4374_v51, %v8454_v12  ;;  %v3074_v34 = vmul.f32 %v4375_v26, %v8454_v12 }
 0x298   : >> { %v3075_v17 = vmul.f32 %v4376_v36, %v8454_v12  ;;  %v3076_v3 = vmul.f32 %v4377_v62, %v8454_v12  ;;  %v3077_v50 = vadd.f32 %v3070_v27, %v8513_v38  ;;  %v3084_v45 = vmul.f32 %v4371_v33, %v8334_v32 }
 0x299   : >> { %v3078_v53 = vadd.f32 %v3071_v24, %v8517_v6  ;;  %v3079_v31 = vadd.f32 %v3072_v15, %v8520_v44  ;;  %v3080_v35 = vadd.f32 %v3073_v8, %v8523_v22  ;;  %v3081_v57 = vadd.f32 %v3074_v34, %v8526_v52  ;;  %v4379_v8 = vld [vmem:[%s5100_s11 + $0x1cd] sm:$0xff] }
 0x29a   : >> { %v3082_v23 = vadd.f32 %v3075_v17, %v8529_v20  ;;  %v3083_v61 = vadd.f32 %v3076_v3, %v8532_v48  ;;  %v3085_v18 = vmul.f32 %v4372_v43, %v8334_v32  ;;  %v3086_v40 = vmul.f32 %v4373_v46, %v8334_v32  ;;  %v4382_v17 = vld [vmem:[%s5100_s11 + $0x1e5] sm:$0xff] }
 0x29b   : >> { %v3087_v38 = vmul.f32 %v4374_v51, %v8334_v32  ;;  %v3088_v6 = vmul.f32 %v4375_v26, %v8334_v32  ;;  %v3089_v44 = vmul.f32 %v4376_v36, %v8334_v32  ;;  %v3090_v22 = vmul.f32 %v4377_v62, %v8334_v32 }
 0x29c   : >> { %v3091_v7 = vadd.f32 %v3084_v45, %v8541_v19  ;;  %v3092_v52 = vadd.f32 %v3085_v18, %v8544_v30  ;;  %v3098_v20 = vmul.f32 %v4371_v33, %v8241_v10  ;;  %v3093_v48 = vadd.f32 %v3086_v40, %v8547_v58 }
 0x29d   : >> { %v3094_v54 = vadd.f32 %v3087_v38, %v8551_v13  ;;  %v3095_v29 = vadd.f32 %v3088_v6, %v8554_v28  ;;  %v3096_v27 = vadd.f32 %v3089_v44, %v8557_v0  ;;  %v3097_v24 = vadd.f32 %v3090_v22, %v8560_v55  ;;  %v4378_v0 = vld [vmem:[%s5100_s11 + $0x1c5] sm:$0xff] }
 0x29e   : >> { %v3099_v15 = vmul.f32 %v4372_v43, %v8241_v10  ;;  %v3100_v19 = vmul.f32 %v4373_v46, %v8241_v10  ;;  %v3101_v30 = vmul.f32 %v4374_v51, %v8241_v10  ;;  %v3102_v58 = vmul.f32 %v4375_v26, %v8241_v10  ;;  %v4380_v51 = vld [vmem:[%s5100_s11 + $0x1d5] sm:$0xff] }
 0x29f   : >> { %v3103_v13 = vmul.f32 %v4376_v36, %v8241_v10  ;;  %v3104_v33 = vmul.f32 %v4377_v62, %v8241_v10  ;;  %v3105_v28 = vadd.f32 %v3098_v20, %v8569_v2  ;;  %v3119_v34 = vmul.f32 %v4378_v0, %v8573_v1  ;;  %v4381_v62 = vld [vmem:[%s5100_s11 + $0x1dd] sm:$0xff]  ;;  %v4383_v2 = vld [vmem:[%s5100_s11 + $0x1ed] sm:$0xff] }
 0x2a0   : >> { %v3106_v55 = vadd.f32 %v3099_v15, %v8576_v56  ;;  %v3107_v43 = vadd.f32 %v3100_v19, %v8579_v21  ;;  %v3108_v46 = vadd.f32 %v3101_v30, %v8582_v14  ;;  %v3109_v26 = vadd.f32 %v3102_v58, %v8585_v39  ;;  %v4384_v56 = vld [vmem:[%s5100_s11 + $0x1f5] sm:$0xff] }
 0x2a1   : >> { %v3110_v36 = vadd.f32 %v3103_v13, %v8591_v49  ;;  %v3111_v10 = vadd.f32 %v3104_v33, %v8594_v9  ;;  %v3120_v3 = vmul.f32 %v4379_v8, %v8573_v1  ;;  %v3121_v21 = vmul.f32 %v4380_v51, %v8573_v1 }
 0x2a2   : >> { %v3122_v14 = vmul.f32 %v4381_v62, %v8573_v1  ;;  %v3123_v45 = vmul.f32 %v4382_v17, %v8573_v1  ;;  %v3124_v18 = vmul.f32 %v4383_v2, %v8573_v1  ;;  %v3125_v39 = vmul.f32 %v4384_v56, %v8573_v1 }
 0x2a3   : >> { %v8684_v40 = vadd.f32 %v3119_v34, %v3077_v50  ;;  %v8686_v49 = vadd.f32 %v3120_v3, %v3078_v53  ;;  %v3133_v9 = vmul.f32 %v4378_v0, %v8454_v12  ;;  %v8689_v38 = vadd.f32 %v3121_v21, %v3079_v31 }
 0x2a4   : >> { %v8691_v6 = vadd.f32 %v3122_v14, %v3080_v35  ;;  %v8693_v44 = vadd.f32 %v3123_v45, %v3081_v57  ;;  %v8695_v22 = vadd.f32 %v3124_v18, %v3082_v23  ;;  %v8697_v20 = vadd.f32 %v3125_v39, %v3083_v61  ;;  %v4386_v18 = vld [vmem:[%s5100_s11 + $0x20d] sm:$0xff]  ;;  %v4388_v39 = vld [vmem:[%s5100_s11 + $0x21d] sm:$0xff] }
 0x2a5   : >> { %v3134_v15 = vmul.f32 %v4379_v8, %v8454_v12  ;;  %v3135_v19 = vmul.f32 %v4380_v51, %v8454_v12  ;;  %v3136_v50 = vmul.f32 %v4381_v62, %v8454_v12  ;;  %v3137_v53 = vmul.f32 %v4382_v17, %v8454_v12 }
 0x2a6   : >> { %v3138_v31 = vmul.f32 %v4383_v2, %v8454_v12  ;;  %v3139_v35 = vmul.f32 %v4384_v56, %v8454_v12  ;;  %v3140_v30 = vadd.f32 %v3133_v9, %v3091_v7  ;;  %v3147_v61 = vmul.f32 %v4378_v0, %v8334_v32  ;;  %v4389_v9 = vld [vmem:[%s5100_s11 + $0x225] sm:$0xff] }
 0x2a7   : >> { %v3141_v57 = vadd.f32 %v3134_v15, %v3092_v52  ;;  %v3142_v58 = vadd.f32 %v3135_v19, %v3093_v48  ;;  %v3143_v23 = vadd.f32 %v3136_v50, %v3094_v54  ;;  %v3144_v13 = vadd.f32 %v3137_v53, %v3095_v29  ;;  %v4385_v48 = vld [vmem:[%s5100_s11 + $0x205] sm:$0xff]  ;;  %v4390_v15 = vld [vmem:[%s5100_s11 + $0x22d] sm:$0xff] }
 0x2a8   : >> { %v3145_v33 = vadd.f32 %v3138_v31, %v3096_v27  ;;  %v3146_v34 = vadd.f32 %v3139_v35, %v3097_v24  ;;  %v3148_v3 = vmul.f32 %v4379_v8, %v8334_v32  ;;  %v3149_v21 = vmul.f32 %v4380_v51, %v8334_v32  ;;  %v4392_v53 = vld [vmem:[%s5100_s11 + $0x245] sm:$0xff] }
 0x2a9   : >> { %v3150_v14 = vmul.f32 %v4381_v62, %v8334_v32  ;;  %v3151_v7 = vmul.f32 %v4382_v17, %v8334_v32  ;;  %v3152_v52 = vmul.f32 %v4383_v2, %v8334_v32  ;;  %v3153_v54 = vmul.f32 %v4384_v56, %v8334_v32  ;;  %v4387_v62 = vld [vmem:[%s5100_s11 + $0x215] sm:$0xff] }
 0x2aa   : >> { %v3154_v29 = vadd.f32 %v3147_v61, %v3105_v28  ;;  %v3155_v27 = vadd.f32 %v3148_v3, %v3106_v55  ;;  %v3168_v24 = vmul.f32 %v4385_v48, %v8573_v1  ;;  %v3156_v0 = vadd.f32 %v3149_v21, %v3107_v43  ;;  %v4391_v2 = vld [vmem:[%s5100_s11 + $0x235] sm:$0xff]  ;;  %v4393_v21 = vld [vmem:[%s5100_s11 + $0x24d] sm:$0xff] }
 0x2ab   : >> { %v3157_v8 = vadd.f32 %v3150_v14, %v3108_v46  ;;  %v3158_v45 = vadd.f32 %v3151_v7, %v3109_v26  ;;  %v3159_v51 = vadd.f32 %v3152_v52, %v3110_v36  ;;  %v3160_v17 = vadd.f32 %v3153_v54, %v3111_v10  ;;  %v4394_v14 = vld [vmem:[%s5100_s11 + $0x255] sm:$0xff]  ;;  %v4395_v7 = vld [vmem:[%s5100_s11 + $0x25d] sm:$0xff] }
 0x2ac   : >> { %v3169_v19 = vmul.f32 %v4386_v18, %v8573_v1  ;;  %v3170_v32 = vmul.f32 %v4387_v62, %v8573_v1  ;;  %v3171_v28 = vmul.f32 %v4388_v39, %v8573_v1  ;;  %v3172_v55 = vmul.f32 %v4389_v9, %v8573_v1  ;;  %v4398_v54 = vld [vmem:[%s5100_s11 + $0x275] sm:$0xff] }
 0x2ad   : >> { %v3173_v43 = vmul.f32 %v4390_v15, %v8573_v1  ;;  %v3174_v46 = vmul.f32 %v4391_v2, %v8573_v1  ;;  %v8726_v26 = vadd.f32 %v3168_v24, %v3140_v30  ;;  %v3182_v50 = vmul.f32 %v4385_v48, %v8454_v12  ;;  %v4397_v48 = vld [vmem:[%s5100_s11 + $0x26d] sm:$0xff] }
 0x2ae   : >> { %v8728_v36 = vadd.f32 %v3169_v19, %v3141_v57  ;;  %v8730_v10 = vadd.f32 %v3170_v32, %v3142_v58  ;;  %v8732_v56 = vadd.f32 %v3171_v28, %v3143_v23  ;;  %v8736_v31 = vadd.f32 %v3172_v55, %v3144_v13 }
 0x2af   : >> { %v8738_v35 = vadd.f32 %v3173_v43, %v3145_v33  ;;  %v8740_v61 = vadd.f32 %v3174_v46, %v3146_v34  ;;  %v3183_v30 = vmul.f32 %v4386_v18, %v8454_v12  ;;  %v3184_v57 = vmul.f32 %v4387_v62, %v8454_v12  ;;  %v4396_v34 = vld [vmem:[%s5100_s11 + $0x265] sm:$0xff] }
 0x2b0   : >> { %v3185_v58 = vmul.f32 %v4388_v39, %v8454_v12  ;;  %v3186_v23 = vmul.f32 %v4389_v9, %v8454_v12  ;;  %v3187_v3 = vmul.f32 %v4390_v15, %v8454_v12  ;;  %v3188_v13 = vmul.f32 %v4391_v2, %v8454_v12  ;;  %v3221_v46 = vld [vmem:[%s5100_s11 + $0x26] sm:$0xff] }
 0x2b1   : >> { %v3189_v33 = vadd.f32 %v3182_v50, %v3154_v29  ;;  %v3190_v52 = vadd.f32 %v3183_v30, %v3155_v27  ;;  %v3203_v24 = vmul.f32 %v4392_v53, %v8573_v1  ;;  %v3191_v18 = vadd.f32 %v3184_v57, %v3156_v0  ;;  %v3217_v27 = vld [vmem:[%s5100_s11 + $0x6] sm:$0xff]  ;;  %v3222_v50 = vld [vmem:[%s5100_s11 + $0x2e] sm:$0xff]  ;;  %v3223_v53 = vld [vmem:[%s5100_s11 + $0x36] sm:$0xff] }
 0x2b2   : >> { %v3192_v62 = vadd.f32 %v3185_v58, %v3157_v8  ;;  %v3193_v39 = vadd.f32 %v3186_v23, %v3158_v45  ;;  %v3194_v9 = vadd.f32 %v3187_v3, %v3159_v51  ;;  %v3195_v15 = vadd.f32 %v3188_v13, %v3160_v17  ;;  %v3218_v45 = vld [vmem:[%s5100_s11 + $0xe] sm:$0xff]  ;;  %v3219_v51 = vld [vmem:[%s5100_s11 + $0x16] sm:$0xff]  ;;  %v3220_v17 = vld [vmem:[%s5100_s11 + $0x1e] sm:$0xff] }
 0x2b3   : >> { %v3204_v19 = vmul.f32 %v4393_v21, %v8573_v1  ;;  %v3205_v12 = vmul.f32 %v4394_v14, %v8573_v1  ;;  %v3206_v29 = vmul.f32 %v4395_v7, %v8573_v1  ;;  %v3207_v2 = vmul.f32 %v4396_v34, %v8573_v1  ;;  %v9661_v30 = vld [vmem:[#allocation26_spill] sm:$0xff]  ;;  %v9662_v57 = vld [vmem:[#allocation16_spill] sm:$0xff]  ;;  %v9664_v21 = vld [vmem:[#allocation27_spill] sm:$0xff] }
 0x2b4   : >> { %v3208_v32 = vmul.f32 %v4397_v48, %v8573_v1  ;;  %v3209_v0 = vmul.f32 %v4398_v54, %v8573_v1  ;;  %v8762_v8 = vadd.f32 %v3203_v24, %v3189_v33  ;;  %v8778_v58 = vrot.slane %v9662_v57, %v9661_v30  ;;  %v9665_v14 = vld [vmem:[#allocation17_spill] sm:$0xff] }
 0x2b5   : >> { %v8767_v28 = vadd.f32 %v3204_v19, %v3190_v52  ;;  %v8769_v55 = vadd.f32 %v3205_v12, %v3191_v18  ;;  %v8771_v43 = vadd.f32 %v3206_v29, %v3192_v62  ;;  %v8780_v1 = vadd.f32 %v3207_v2, %v3193_v39  ;;  %v4399_v48 = vld [vmem:[%s5100_s11 + $0x46] sm:$0xff]  ;;  %v4400_v12 = vld [vmem:[%s5100_s11 + $0x4e] sm:$0xff]  ;;  %v4401_v29 = vld [vmem:[%s5100_s11 + $0x56] sm:$0xff] }
 0x2b6   : >> { %v8782_v23 = vadd.f32 %v3208_v32, %v3194_v9  ;;  %v8784_v3 = vadd.f32 %v3209_v0, %v3195_v15  ;;  %v8788_v7 = vrot.slane %v9665_v14, %v9664_v21  ;;  %v3228_v13 = vmul.f32 %v8778_v58, %v3217_v27  ;;  %v4402_v0 = vld [vmem:[%s5100_s11 + $0x5e] sm:$0xff] }
 0x2b7   : >> { %v3229_v33 = vmul.f32 %v8778_v58, %v3218_v45  ;;  %v3230_v52 = vmul.f32 %v8778_v58, %v3219_v51  ;;  %v3231_v34 = vmul.f32 %v8778_v58, %v3220_v17  ;;  %v3232_v54 = vmul.f32 %v8778_v58, %v3221_v46  ;;  %v4403_v45 = vld [vmem:[%s5100_s11 + $0x66] sm:$0xff]  ;;  %v4404_v51 = vld [vmem:[%s5100_s11 + $0x6e] sm:$0xff] }
 0x2b8   : >> { %9663 = vst [vmem:[#allocation32_spill] sm:$0xff] %v8784_v3  ;;  %v3233_v24 = vmul.f32 %v8778_v58, %v3222_v50  ;;  %v3234_v18 = vmul.f32 %v8778_v58, %v3223_v53  ;;  %v3253_v62 = vmul.f32 %v4399_v48, %v8788_v7  ;;  %v3235_v39 = vadd.f32 %v3228_v13, %v8608_v41  ;;  %v4405_v41 = vld [vmem:[%s5100_s11 + $0x76] sm:$0xff] }
 0x2b9   : >> { %v3236_v9 = vadd.f32 %v3229_v33, %v8611_v59  ;;  %v3237_v15 = vadd.f32 %v3230_v52, %v8615_v11  ;;  %v3238_v19 = vadd.f32 %v3231_v34, %v8618_v4  ;;  %v3239_v27 = vadd.f32 %v3232_v54, %v8621_v42 }
 0x2ba   : >> { %v3240_v2 = vadd.f32 %v3233_v24, %v8624_v63  ;;  %v3241_v32 = vadd.f32 %v3234_v18, %v8627_v37  ;;  %v3254_v17 = vmul.f32 %v4400_v12, %v8788_v7  ;;  %v3255_v59 = vmul.f32 %v4401_v29, %v8788_v7 }
 0x2bb   : >> { %v3256_v11 = vmul.f32 %v4402_v0, %v8788_v7  ;;  %v3257_v4 = vmul.f32 %v4403_v45, %v8788_v7  ;;  %v3258_v46 = vmul.f32 %v4404_v51, %v8788_v7  ;;  %v3259_v42 = vmul.f32 %v4405_v41, %v8788_v7 }
 0x2bc   : >> { %v3260_v50 = vadd.f32 %v3253_v62, %v3235_v39  ;;  %v3261_v63 = vadd.f32 %v3254_v17, %v3236_v9  ;;  %v3267_v37 = vmul.f32 %v4399_v48, %v8778_v58  ;;  %v3262_v53 = vadd.f32 %v3255_v59, %v3237_v15  ;;  %v4406_v9 = vld [vmem:[%s5100_s11 + $0x86] sm:$0xff]  ;;  %v9666_v15 = vld [vmem:[#allocation28_spill] sm:$0xff] }
 0x2bd   : >> { %v3263_v30 = vadd.f32 %v3256_v11, %v3238_v19  ;;  %v3264_v57 = vadd.f32 %v3257_v4, %v3239_v27  ;;  %v3265_v21 = vadd.f32 %v3258_v46, %v3240_v2  ;;  %v3266_v14 = vadd.f32 %v3259_v42, %v3241_v32  ;;  %v9667_v19 = vld [vmem:[#allocation18_spill] sm:$0xff] }
 0x2be   : >> { %v3268_v13 = vmul.f32 %v4400_v12, %v8778_v58  ;;  %v3269_v33 = vmul.f32 %v4401_v29, %v8778_v58  ;;  %v3270_v52 = vmul.f32 %v4402_v0, %v8778_v58  ;;  %v3271_v34 = vmul.f32 %v4403_v45, %v8778_v58  ;;  %v4407_v32 = vld [vmem:[%s5100_s11 + $0x8e] sm:$0xff]  ;;  %v4408_v0 = vld [vmem:[%s5100_s11 + $0x96] sm:$0xff]  ;;  %v4410_v45 = vld [vmem:[%s5100_s11 + $0xa6] sm:$0xff] }
 0x2bf   : >> { %v3272_v48 = vmul.f32 %v4404_v51, %v8778_v58  ;;  %v3273_v54 = vmul.f32 %v4405_v41, %v8778_v58  ;;  %v3274_v24 = vadd.f32 %v3267_v37, %v8684_v40  ;;  %v8832_v12 = vrot.slane %v9667_v19, %v9666_v15  ;;  %v4409_v40 = vld [vmem:[%s5100_s11 + $0x9e] sm:$0xff]  ;;  %v4412_v51 = vld [vmem:[%s5100_s11 + $0xb6] sm:$0xff] }
 0x2c0   : >> { %v3275_v18 = vadd.f32 %v3268_v13, %v8686_v49  ;;  %v3276_v62 = vadd.f32 %v3269_v33, %v8689_v38  ;;  %v3277_v39 = vadd.f32 %v3270_v52, %v8691_v6  ;;  %v3278_v29 = vadd.f32 %v3271_v34, %v8693_v44  ;;  %v4411_v38 = vld [vmem:[%s5100_s11 + $0xae] sm:$0xff] }
 0x2c1   : >> { %v3279_v27 = vadd.f32 %v3272_v48, %v8695_v22  ;;  %v3280_v2 = vadd.f32 %v3273_v54, %v8697_v20  ;;  %v3306_v49 = vmul.f32 %v4406_v9, %v8788_v7  ;;  %v3292_v6 = vmul.f32 %v4406_v9, %v8832_v12 }
 0x2c2   : >> { %v3293_v17 = vmul.f32 %v4407_v32, %v8832_v12  ;;  %v3294_v41 = vmul.f32 %v4408_v0, %v8832_v12  ;;  %v3295_v44 = vmul.f32 %v4409_v40, %v8832_v12  ;;  %v3296_v22 = vmul.f32 %v4410_v45, %v8832_v12 }
 0x2c3   : >> { %v3297_v20 = vmul.f32 %v4411_v38, %v8832_v12  ;;  %v3298_v59 = vmul.f32 %v4412_v51, %v8832_v12  ;;  %v3307_v11 = vmul.f32 %v4407_v32, %v8788_v7  ;;  %v3299_v4 = vadd.f32 %v3292_v6, %v3260_v50 }
 0x2c4   : >> { %v3300_v46 = vadd.f32 %v3293_v17, %v3261_v63  ;;  %v3301_v42 = vadd.f32 %v3294_v41, %v3262_v53  ;;  %v3302_v37 = vadd.f32 %v3295_v44, %v3263_v30  ;;  %v3303_v13 = vadd.f32 %v3296_v22, %v3264_v57  ;;  %v4417_v17 = vld [vmem:[%s5100_s11 + $0xe6] sm:$0xff]  ;;  %v4418_v41 = vld [vmem:[%s5100_s11 + $0xee] sm:$0xff]  ;;  %v4419_v44 = vld [vmem:[%s5100_s11 + $0xf6] sm:$0xff] }
 0x2c5   : >> { %v3304_v33 = vadd.f32 %v3297_v20, %v3265_v21  ;;  %v3305_v52 = vadd.f32 %v3298_v59, %v3266_v14  ;;  %v3308_v34 = vmul.f32 %v4408_v0, %v8788_v7  ;;  %v3309_v48 = vmul.f32 %v4409_v40, %v8788_v7 }
 0x2c6   : >> { %v3310_v54 = vmul.f32 %v4410_v45, %v8788_v7  ;;  %v3311_v15 = vmul.f32 %v4411_v38, %v8788_v7  ;;  %v3312_v19 = vmul.f32 %v4412_v51, %v8788_v7  ;;  %v3313_v47 = vadd.f32 %v3306_v49, %v3274_v24  ;;  %v4414_v49 = vld [vmem:[%s5100_s11 + $0xce] sm:$0xff] }
 0x2c7   : >> { %v3314_v16 = vadd.f32 %v3307_v11, %v3275_v18  ;;  %v3315_v3 = vadd.f32 %v3308_v34, %v3276_v62  ;;  %v3320_v50 = vmul.f32 %v4406_v9, %v8778_v58  ;;  %v3316_v63 = vadd.f32 %v3309_v48, %v3277_v39  ;;  %v9668_v9 = vld [vmem:[#allocation29_spill] sm:$0xff] }
 0x2c8   : >> { %v3317_v53 = vadd.f32 %v3310_v54, %v3278_v29  ;;  %v3318_v30 = vadd.f32 %v3311_v15, %v3279_v27  ;;  %v3319_v57 = vadd.f32 %v3312_v19, %v3280_v2  ;;  %v3321_v21 = vmul.f32 %v4407_v32, %v8778_v58 }
 0x2c9   : >> { %v3322_v14 = vmul.f32 %v4408_v0, %v8778_v58  ;;  %v3323_v6 = vmul.f32 %v4409_v40, %v8778_v58  ;;  %v3324_v24 = vmul.f32 %v4410_v45, %v8778_v58  ;;  %v3325_v18 = vmul.f32 %v4411_v38, %v8778_v58  ;;  %v4413_v40 = vld [vmem:[%s5100_s11 + $0xc6] sm:$0xff]  ;;  %v4415_v45 = vld [vmem:[%s5100_s11 + $0xd6] sm:$0xff] }
 0x2ca   : >> { %v3326_v62 = vmul.f32 %v4412_v51, %v8778_v58  ;;  %v3327_v39 = vadd.f32 %v3320_v50, %v8726_v26  ;;  %v8867_v29 = vrot.slane %v9623_v25, %v9668_v9  ;;  %v3328_v27 = vadd.f32 %v3321_v21, %v8728_v36  ;;  %v4416_v51 = vld [vmem:[%s5100_s11 + $0xde] sm:$0xff] }
 0x2cb   : >> { %v3329_v2 = vadd.f32 %v3322_v14, %v8730_v10  ;;  %v3330_v32 = vadd.f32 %v3323_v6, %v8732_v56  ;;  %v3331_v0 = vadd.f32 %v3324_v24, %v8736_v31  ;;  %v3332_v38 = vadd.f32 %v3325_v18, %v8738_v35 }
 0x2cc   : >> { %v3333_v26 = vadd.f32 %v3326_v62, %v8740_v61  ;;  %v3345_v25 = vmul.f32 %v4413_v40, %v8867_v29  ;;  %v3346_v36 = vmul.f32 %v4414_v49, %v8867_v29  ;;  %v3347_v10 = vmul.f32 %v4415_v45, %v8867_v29 }
 0x2cd   : >> { %v3348_v56 = vmul.f32 %v4416_v51, %v8867_v29  ;;  %v3349_v31 = vmul.f32 %v4417_v17, %v8867_v29  ;;  %v3350_v22 = vmul.f32 %v4418_v41, %v8867_v29  ;;  %v3351_v35 = vmul.f32 %v4419_v44, %v8867_v29 }
 0x2ce   : >> { %v8889_v20 = vadd.f32 %v3345_v25, %v3299_v4  ;;  %v8891_v61 = vadd.f32 %v3346_v36, %v3300_v46  ;;  %v3359_v59 = vmul.f32 %v4413_v40, %v8832_v12  ;;  %v8894_v11 = vadd.f32 %v3347_v10, %v3301_v42 }
 0x2cf   : >> { %v8896_v34 = vadd.f32 %v3348_v56, %v3302_v37  ;;  %v8898_v48 = vadd.f32 %v3349_v31, %v3303_v13  ;;  %v8900_v54 = vadd.f32 %v3350_v22, %v3304_v33  ;;  %v8902_v15 = vadd.f32 %v3351_v35, %v3305_v52  ;;  %v4424_v35 = vld [vmem:[%s5100_s11 + $0x126] sm:$0xff] }
 0x2d0   : >> { %v3360_v19 = vmul.f32 %v4414_v49, %v8832_v12  ;;  %v3361_v50 = vmul.f32 %v4415_v45, %v8832_v12  ;;  %v3362_v4 = vmul.f32 %v4416_v51, %v8832_v12  ;;  %v3363_v46 = vmul.f32 %v4417_v17, %v8832_v12 }
 0x2d1   : >> { %v3364_v21 = vmul.f32 %v4418_v41, %v8832_v12  ;;  %v3365_v42 = vmul.f32 %v4419_v44, %v8832_v12  ;;  %v8910_v37 = vadd.f32 %v3359_v59, %v3313_v47  ;;  %v3373_v14 = vmul.f32 %v4413_v40, %v8788_v7  ;;  %v4425_v59 = vld [vmem:[%s5100_s11 + $0x12e] sm:$0xff] }
 0x2d2   : >> { %v8912_v13 = vadd.f32 %v3360_v19, %v3314_v16  ;;  %v8914_v33 = vadd.f32 %v3361_v50, %v3315_v3  ;;  %v8916_v52 = vadd.f32 %v3362_v4, %v3316_v63  ;;  %v8919_v6 = vadd.f32 %v3363_v46, %v3317_v53  ;;  %v4426_v19 = vld [vmem:[%s5100_s11 + $0x136] sm:$0xff] }
 0x2d3   : >> { %v8921_v24 = vadd.f32 %v3364_v21, %v3318_v30  ;;  %v8923_v18 = vadd.f32 %v3365_v42, %v3319_v57  ;;  %v3374_v62 = vmul.f32 %v4414_v49, %v8788_v7  ;;  %v3375_v9 = vmul.f32 %v4415_v45, %v8788_v7 }
 0x2d4   : >> { %v3376_v47 = vmul.f32 %v4416_v51, %v8788_v7  ;;  %v3377_v16 = vmul.f32 %v4417_v17, %v8788_v7  ;;  %v3378_v3 = vmul.f32 %v4418_v41, %v8788_v7  ;;  %v3379_v63 = vmul.f32 %v4419_v44, %v8788_v7 }
 0x2d5   : >> { %v8931_v25 = vadd.f32 %v3373_v14, %v3327_v39  ;;  %v8933_v53 = vadd.f32 %v3374_v62, %v3328_v27  ;;  %v3387_v30 = vmul.f32 %v4413_v40, %v8778_v58  ;;  %v8936_v57 = vadd.f32 %v3375_v9, %v3329_v2 }
 0x2d6   : >> { %v8938_v36 = vadd.f32 %v3376_v47, %v3330_v32  ;;  %v8940_v10 = vadd.f32 %v3377_v16, %v3331_v0  ;;  %v8942_v56 = vadd.f32 %v3378_v3, %v3332_v38  ;;  %v8944_v31 = vadd.f32 %v3379_v63, %v3333_v26  ;;  %v4420_v26 = vld [vmem:[%s5100_s11 + $0x106] sm:$0xff] }
 0x2d7   : >> { %v3388_v22 = vmul.f32 %v4414_v49, %v8778_v58  ;;  %v3389_v39 = vmul.f32 %v4415_v45, %v8778_v58  ;;  %v3390_v27 = vmul.f32 %v4416_v51, %v8778_v58  ;;  %v3391_v2 = vmul.f32 %v4417_v17, %v8778_v58  ;;  %v9669_v17 = vld [vmem:[#allocation32_spill] sm:$0xff] }
 0x2d8   : >> { %v3392_v32 = vmul.f32 %v4418_v41, %v8778_v58  ;;  %v3393_v0 = vmul.f32 %v4419_v44, %v8778_v58  ;;  %v8953_v40 = vadd.f32 %v3387_v30, %v8762_v8  ;;  %v8967_v51 = vrot.slane %v9636_v5, %v9658_v60  ;;  %v4421_v41 = vld [vmem:[%s5100_s11 + $0x10e] sm:$0xff]  ;;  %v4423_v44 = vld [vmem:[%s5100_s11 + $0x11e] sm:$0xff] }
 0x2d9   : >> { %v8956_v49 = vadd.f32 %v3388_v22, %v8767_v28  ;;  %v8959_v45 = vadd.f32 %v3389_v39, %v8769_v55  ;;  %v8962_v38 = vadd.f32 %v3390_v27, %v8771_v43  ;;  %v8970_v58 = vadd.f32 %v3391_v2, %v8780_v1  ;;  %v4422_v55 = vld [vmem:[%s5100_s11 + $0x116] sm:$0xff] }
 0x2da   : >> { %v8973_v8 = vadd.f32 %v3392_v32, %v8782_v23  ;;  %v8976_v28 = vadd.f32 %v3393_v0, %v9669_v17  ;;  %v3426_v43 = vmul.f32 %v4420_v26, %v8867_v29  ;;  %v3412_v5 = vmul.f32 %v4420_v26, %v8967_v51 }
 0x2db   : >> { %v3413_v60 = vmul.f32 %v4421_v41, %v8967_v51  ;;  %v3414_v1 = vmul.f32 %v4422_v55, %v8967_v51  ;;  %v3415_v23 = vmul.f32 %v4423_v44, %v8967_v51  ;;  %v3416_v50 = vmul.f32 %v4424_v35, %v8967_v51 }
 0x2dc   : >> { %v3417_v4 = vmul.f32 %v4425_v59, %v8967_v51  ;;  %v3418_v46 = vmul.f32 %v4426_v19, %v8967_v51  ;;  %v3427_v21 = vmul.f32 %v4421_v41, %v8867_v29  ;;  %v8994_v42 = vadd.f32 %v3412_v5, %v8889_v20 }
 0x2dd   : >> { %v8997_v14 = vadd.f32 %v3413_v60, %v8891_v61  ;;  %v9000_v62 = vadd.f32 %v3414_v1, %v8894_v11  ;;  %v9003_v9 = vadd.f32 %v3415_v23, %v8896_v34  ;;  %v9006_v47 = vadd.f32 %v3416_v50, %v8898_v48  ;;  %v4427_v1 = vld [vmem:[%s5100_s11 + $0x146] sm:$0xff] }
 0x2de   : >> { %v9009_v16 = vadd.f32 %v3417_v4, %v8900_v54  ;;  %v9012_v3 = vadd.f32 %v3418_v46, %v8902_v15  ;;  %v3428_v20 = vmul.f32 %v4422_v55, %v8867_v29  ;;  %v3429_v61 = vmul.f32 %v4423_v44, %v8867_v29  ;;  %v9671_v23 = vld [vmem:[#allocation21_spill] sm:$0xff]  ;;  %v4432_v46 = vld [vmem:[%s5100_s11 + $0x16e] sm:$0xff] }
 0x2df   : >> { %v3430_v63 = vmul.f32 %v4424_v35, %v8867_v29  ;;  %v3431_v11 = vmul.f32 %v4425_v59, %v8867_v29  ;;  %v3432_v34 = vmul.f32 %v4426_v19, %v8867_v29  ;;  %v9020_v30 = vadd.f32 %v3426_v43, %v8910_v37  ;;  %v4431_v4 = vld [vmem:[%s5100_s11 + $0x166] sm:$0xff] }
 0x2e0   : >> { %v9023_v48 = vadd.f32 %v3427_v21, %v8912_v13  ;;  %v9026_v54 = vadd.f32 %v3428_v20, %v8914_v33  ;;  %v3440_v15 = vmul.f32 %v4420_v26, %v8832_v12  ;;  %v9030_v22 = vadd.f32 %v3429_v61, %v8916_v52  ;;  %v4433_v21 = vld [vmem:[%s5100_s11 + $0x176] sm:$0xff] }
 0x2e1   : >> { %v9033_v39 = vadd.f32 %v3430_v63, %v8919_v6  ;;  %v9036_v27 = vadd.f32 %v3431_v11, %v8921_v24  ;;  %v9039_v37 = vadd.f32 %v3432_v34, %v8923_v18  ;;  %v3441_v13 = vmul.f32 %v4421_v41, %v8832_v12 }
 0x2e2   : >> { %v3442_v2 = vmul.f32 %v4422_v55, %v8832_v12  ;;  %v3443_v33 = vmul.f32 %v4423_v44, %v8832_v12  ;;  %v3444_v32 = vmul.f32 %v4424_v35, %v8832_v12  ;;  %v3445_v52 = vmul.f32 %v4425_v59, %v8832_v12 }
 0x2e3   : >> { %v3446_v0 = vmul.f32 %v4426_v19, %v8832_v12  ;;  %v9048_v6 = vadd.f32 %v3440_v15, %v8931_v25  ;;  %v3454_v24 = vmul.f32 %v4420_v26, %v8788_v7  ;;  %v9052_v18 = vadd.f32 %v3441_v13, %v8933_v53 }
 0x2e4   : >> { %v9055_v17 = vadd.f32 %v3442_v2, %v8936_v57  ;;  %v9058_v43 = vadd.f32 %v3443_v33, %v8938_v36  ;;  %v9061_v5 = vadd.f32 %v3444_v32, %v8940_v10  ;;  %v9064_v60 = vadd.f32 %v3445_v52, %v8942_v56 }
 0x2e5   : >> { %v9067_v25 = vadd.f32 %v3446_v0, %v8944_v31  ;;  %v3455_v26 = vmul.f32 %v4421_v41, %v8788_v7  ;;  %v3456_v53 = vmul.f32 %v4422_v55, %v8788_v7  ;;  %v3457_v57 = vmul.f32 %v4423_v44, %v8788_v7  ;;  %v9670_v44 = vld [vmem:[#allocation31_spill] sm:$0xff] }
 0x2e6   : >> { %v3458_v36 = vmul.f32 %v4424_v35, %v8788_v7  ;;  %v3459_v10 = vmul.f32 %v4425_v59, %v8788_v7  ;;  %v3460_v56 = vmul.f32 %v4426_v19, %v8788_v7  ;;  %v9076_v31 = vadd.f32 %v3454_v24, %v8953_v40  ;;  %v4430_v19 = vld [vmem:[%s5100_s11 + $0x15e] sm:$0xff] }
 0x2e7   : >> { %v9079_v41 = vadd.f32 %v3455_v26, %v8956_v49  ;;  %v9082_v55 = vadd.f32 %v3456_v53, %v8959_v45  ;;  %v9087_v50 = vrot.slane %v9671_v23, %v9670_v44  ;;  %v9090_v35 = vadd.f32 %v3457_v57, %v8962_v38  ;;  %v4428_v49 = vld [vmem:[%s5100_s11 + $0x14e] sm:$0xff]  ;;  %v4429_v45 = vld [vmem:[%s5100_s11 + $0x156] sm:$0xff] }
 0x2e8   : >> { %v9093_v59 = vadd.f32 %v3458_v36, %v8970_v58  ;;  %v9096_v7 = vadd.f32 %v3459_v10, %v8973_v8  ;;  %v9099_v40 = vadd.f32 %v3460_v56, %v8976_v28  ;;  %v3493_v11 = vmul.f32 %v4427_v1, %v8967_v51 }
 0x2e9   : >> { %v3479_v20 = vmul.f32 %v4427_v1, %v9087_v50  ;;  %v3480_v38 = vmul.f32 %v4428_v49, %v9087_v50  ;;  %v3481_v61 = vmul.f32 %v4429_v45, %v9087_v50  ;;  %v3482_v58 = vmul.f32 %v4430_v19, %v9087_v50 }
 0x2ea   : >> { %v3483_v8 = vmul.f32 %v4431_v4, %v9087_v50  ;;  %v3484_v63 = vmul.f32 %v4432_v46, %v9087_v50  ;;  %v3485_v28 = vmul.f32 %v4433_v21, %v9087_v50  ;;  %v3494_v0 = vmul.f32 %v4428_v49, %v8967_v51 }
 0x2eb   : >> { %v3486_v34 = vadd.f32 %v3479_v20, %v8994_v42  ;;  %v3487_v15 = vadd.f32 %v3480_v38, %v8997_v14  ;;  %v3488_v13 = vadd.f32 %v3481_v61, %v9000_v62  ;;  %v3489_v2 = vadd.f32 %v3482_v58, %v9003_v9 }
 0x2ec   : >> { %v9120_v33 = vadd.f32 %v3483_v8, %v9006_v47  ;;  %v9123_v32 = vadd.f32 %v3484_v63, %v9009_v16  ;;  %v9126_v52 = vadd.f32 %v3485_v28, %v9012_v3  ;;  %v3495_v24 = vmul.f32 %v4429_v45, %v8967_v51  ;;  %v9672_v8 = vld [vmem:[#allocation22_spill] sm:$0xff] }
 0x2ed   : >> { %v3496_v42 = vmul.f32 %v4430_v19, %v8967_v51  ;;  %v3497_v14 = vmul.f32 %v4431_v4, %v8967_v51  ;;  %v3498_v62 = vmul.f32 %v4432_v46, %v8967_v51  ;;  %v3499_v9 = vmul.f32 %v4433_v21, %v8967_v51  ;;  %v4438_v28 = vld [vmem:[%s5100_s11 + $0x1a6] sm:$0xff] }
 0x2ee   : >> { %v9135_v47 = vadd.f32 %v3493_v11, %v9020_v30  ;;  %v9138_v16 = vadd.f32 %v3494_v0, %v9023_v48  ;;  %v3507_v3 = vmul.f32 %v4427_v1, %v8867_v29  ;;  %v9142_v26 = vadd.f32 %v3495_v24, %v9026_v54  ;;  %v4439_v11 = vld [vmem:[%s5100_s11 + $0x1ae] sm:$0xff]  ;;  %v4440_v0 = vld [vmem:[%s5100_s11 + $0x1b6] sm:$0xff] }
 0x2ef   : >> { %v9145_v53 = vadd.f32 %v3496_v42, %v9030_v22  ;;  %v9148_v57 = vadd.f32 %v3497_v14, %v9033_v39  ;;  %v9151_v36 = vadd.f32 %v3498_v62, %v9036_v27  ;;  %v9154_v30 = vadd.f32 %v3499_v9, %v9039_v37 }
 0x2f0   : >> { %v3508_v48 = vmul.f32 %v4428_v49, %v8867_v29  ;;  %v3509_v10 = vmul.f32 %v4429_v45, %v8867_v29  ;;  %v3510_v56 = vmul.f32 %v4430_v19, %v8867_v29  ;;  %v3511_v54 = vmul.f32 %v4431_v4, %v8867_v29 }
 0x2f1   : >> { %v3512_v22 = vmul.f32 %v4432_v46, %v8867_v29  ;;  %v3513_v39 = vmul.f32 %v4433_v21, %v8867_v29  ;;  %v9163_v44 = vadd.f32 %v3507_v3, %v9048_v6  ;;  %v3521_v20 = vmul.f32 %v4427_v1, %v8832_v12 }
 0x2f2   : >> { %v9166_v27 = vadd.f32 %v3508_v48, %v9052_v18  ;;  %v9169_v37 = vadd.f32 %v3509_v10, %v9055_v17  ;;  %v9172_v23 = vadd.f32 %v3510_v56, %v9058_v43  ;;  %v9176_v38 = vadd.f32 %v3511_v54, %v9061_v5 }
 0x2f3   : >> { %v9179_v61 = vadd.f32 %v3512_v22, %v9064_v60  ;;  %v9182_v6 = vadd.f32 %v3513_v39, %v9067_v25  ;;  %v3522_v18 = vmul.f32 %v4428_v49, %v8832_v12  ;;  %v3523_v17 = vmul.f32 %v4429_v45, %v8832_v12  ;;  %v4434_v60 = vld [vmem:[%s5100_s11 + $0x186] sm:$0xff] }
 0x2f4   : >> { %v3524_v43 = vmul.f32 %v4430_v19, %v8832_v12  ;;  %v3525_v1 = vmul.f32 %v4431_v4, %v8832_v12  ;;  %v3526_v5 = vmul.f32 %v4432_v46, %v8832_v12  ;;  %v3527_v58 = vmul.f32 %v4433_v21, %v8832_v12  ;;  %v4435_v12 = vld [vmem:[%s5100_s11 + $0x18e] sm:$0xff]  ;;  %v4437_v21 = vld [vmem:[%s5100_s11 + $0x19e] sm:$0xff] }
 0x2f5   : >> { %v9192_v25 = vadd.f32 %v3521_v20, %v9076_v31  ;;  %v9195_v49 = vadd.f32 %v3522_v18, %v9079_v41  ;;  %v3546_v45 = vmul.f32 %v9672_v8, %v4434_v60  ;;  %v9199_v19 = vadd.f32 %v3523_v17, %v9082_v55  ;;  %v4436_v31 = vld [vmem:[%s5100_s11 + $0x196] sm:$0xff] }
 0x2f6   : >> { %v9202_v4 = vadd.f32 %v3524_v43, %v9090_v35  ;;  %v9205_v46 = vadd.f32 %v3525_v1, %v9093_v59  ;;  %v9208_v63 = vadd.f32 %v3526_v5, %v9096_v7  ;;  %v9214_v41 = vadd.f32 %v3527_v58, %v9099_v40 }
 0x2f7   : >> { %v3547_v55 = vmul.f32 %v9672_v8, %v4435_v12  ;;  %v3548_v35 = vmul.f32 %v9672_v8, %v4436_v31  ;;  %v3549_v24 = vmul.f32 %v9672_v8, %v4437_v21  ;;  %v3550_v59 = vmul.f32 %v9672_v8, %v4438_v28 }
 0x2f8   : >> { %v3551_v7 = vmul.f32 %v9672_v8, %v4439_v11  ;;  %v3552_v42 = vmul.f32 %v9672_v8, %v4440_v0  ;;  %v9225_v14 = vadd.f32 %v3546_v45, %v3486_v34  ;;  %v3560_v3 = vmul.f32 %v4434_v60, %v9087_v50 }
 0x2f9   : >> { %v9227_v62 = vadd.f32 %v3547_v55, %v3487_v15  ;;  %v9229_v40 = vadd.f32 %v3548_v35, %v3488_v13  ;;  %v9231_v9 = vadd.f32 %v3549_v24, %v3489_v2  ;;  %v9235_v48 = vadd.f32 %v3550_v59, %v9120_v33 }
 0x2fa   : >> { %v9238_v10 = vadd.f32 %v3551_v7, %v9123_v32  ;;  %v9241_v56 = vadd.f32 %v3552_v42, %v9126_v52  ;;  %v3561_v34 = vmul.f32 %v4435_v12, %v9087_v50  ;;  %v3562_v15 = vmul.f32 %v4436_v31, %v9087_v50  ;;  %v4443_v42 = vld [vmem:[%s5100_s11 + $0x1ce] sm:$0xff] }
 0x2fb   : >> { %v3563_v13 = vmul.f32 %v4437_v21, %v9087_v50  ;;  %v3564_v2 = vmul.f32 %v4438_v28, %v9087_v50  ;;  %v3565_v54 = vmul.f32 %v4439_v11, %v9087_v50  ;;  %v3566_v22 = vmul.f32 %v4440_v0, %v9087_v50 }
 0x2fc   : >> { %v3567_v33 = vadd.f32 %v3560_v3, %v9135_v47  ;;  %v3568_v32 = vadd.f32 %v3561_v34, %v9138_v16  ;;  %v3574_v39 = vmul.f32 %v4434_v60, %v8967_v51  ;;  %v3569_v52 = vadd.f32 %v3562_v15, %v9142_v26  ;;  %v4445_v3 = vld [vmem:[%s5100_s11 + $0x1de] sm:$0xff] }
 0x2fd   : >> { %v3570_v20 = vadd.f32 %v3563_v13, %v9145_v53  ;;  %v3571_v18 = vadd.f32 %v3564_v2, %v9148_v57  ;;  %v3572_v17 = vadd.f32 %v3565_v54, %v9151_v36  ;;  %v3573_v43 = vadd.f32 %v3566_v22, %v9154_v30 }
 0x2fe   : >> { %v3575_v1 = vmul.f32 %v4435_v12, %v8967_v51  ;;  %v3576_v5 = vmul.f32 %v4436_v31, %v8967_v51  ;;  %v3577_v47 = vmul.f32 %v4437_v21, %v8967_v51  ;;  %v3578_v16 = vmul.f32 %v4438_v28, %v8967_v51 }
 0x2ff   : >> { %v3579_v58 = vmul.f32 %v4439_v11, %v8967_v51  ;;  %v3580_v26 = vmul.f32 %v4440_v0, %v8967_v51  ;;  %v3581_v53 = vadd.f32 %v3574_v39, %v9163_v44  ;;  %v3588_v45 = vmul.f32 %v4434_v60, %v8867_v29 }
 0x300   : >> { %v3582_v57 = vadd.f32 %v3575_v1, %v9166_v27  ;;  %v3583_v36 = vadd.f32 %v3576_v5, %v9169_v37  ;;  %v3584_v30 = vadd.f32 %v3577_v47, %v9172_v23  ;;  %v3585_v55 = vadd.f32 %v3578_v16, %v9176_v38  ;;  %v4442_v38 = vld [vmem:[%s5100_s11 + $0x1c6] sm:$0xff] }
 0x301   : >> { %v3586_v35 = vadd.f32 %v3579_v58, %v9179_v61  ;;  %v3587_v24 = vadd.f32 %v3580_v26, %v9182_v6  ;;  %v3589_v59 = vmul.f32 %v4435_v12, %v8867_v29  ;;  %v3590_v44 = vmul.f32 %v4436_v31, %v8867_v29 }
 0x302   : >> { %v3591_v27 = vmul.f32 %v4437_v21, %v8867_v29  ;;  %v3592_v37 = vmul.f32 %v4438_v28, %v8867_v29  ;;  %v3593_v23 = vmul.f32 %v4439_v11, %v8867_v29  ;;  %v3594_v61 = vmul.f32 %v4440_v0, %v8867_v29  ;;  %v4444_v11 = vld [vmem:[%s5100_s11 + $0x1d6] sm:$0xff]  ;;  %v4446_v29 = vld [vmem:[%s5100_s11 + $0x1e6] sm:$0xff]  ;;  %v4447_v0 = vld [vmem:[%s5100_s11 + $0x1ee] sm:$0xff] }
 0x303   : >> { %v3595_v6 = vadd.f32 %v3588_v45, %v9192_v25  ;;  %v3596_v60 = vadd.f32 %v3589_v59, %v9195_v49  ;;  %v3609_v12 = vmul.f32 %v4442_v38, %v9672_v8  ;;  %v3597_v31 = vadd.f32 %v3590_v44, %v9199_v19  ;;  %v4448_v25 = vld [vmem:[%s5100_s11 + $0x1f6] sm:$0xff] }
 0x304   : >> { %v3598_v21 = vadd.f32 %v3591_v27, %v9202_v4  ;;  %v3599_v7 = vadd.f32 %v3592_v37, %v9205_v46  ;;  %v3600_v28 = vadd.f32 %v3593_v23, %v9208_v63  ;;  %v3601_v34 = vadd.f32 %v3594_v61, %v9214_v41  ;;  %v4450_v61 = vld [vmem:[%s5100_s11 + $0x20e] sm:$0xff] }
 0x305   : >> { %v3610_v49 = vmul.f32 %v4443_v42, %v9672_v8  ;;  %v3611_v15 = vmul.f32 %v4444_v11, %v9672_v8  ;;  %v3612_v19 = vmul.f32 %v4445_v3, %v9672_v8  ;;  %v3613_v4 = vmul.f32 %v4446_v29, %v9672_v8 }
 0x306   : >> { %v3614_v46 = vmul.f32 %v4447_v0, %v9672_v8  ;;  %v3615_v63 = vmul.f32 %v4448_v25, %v9672_v8  ;;  %v9298_v13 = vadd.f32 %v3609_v12, %v3567_v33  ;;  %v3623_v22 = vmul.f32 %v4442_v38, %v9087_v50  ;;  %v4451_v12 = vld [vmem:[%s5100_s11 + $0x216] sm:$0xff] }
 0x307   : >> { %v9300_v2 = vadd.f32 %v3610_v49, %v3568_v32  ;;  %v9302_v41 = vadd.f32 %v3611_v15, %v3569_v52  ;;  %v9304_v54 = vadd.f32 %v3612_v19, %v3570_v20  ;;  %v9307_v39 = vadd.f32 %v3613_v4, %v3571_v18  ;;  %v4452_v15 = vld [vmem:[%s5100_s11 + $0x21e] sm:$0xff]  ;;  %v4454_v19 = vld [vmem:[%s5100_s11 + $0x22e] sm:$0xff] }
 0x308   : >> { %v9309_v1 = vadd.f32 %v3614_v46, %v3572_v17  ;;  %v9311_v5 = vadd.f32 %v3615_v63, %v3573_v43  ;;  %v3624_v47 = vmul.f32 %v4443_v42, %v9087_v50  ;;  %v3625_v16 = vmul.f32 %v4444_v11, %v9087_v50 }
 0x309   : >> { %v3626_v33 = vmul.f32 %v4445_v3, %v9087_v50  ;;  %v3627_v32 = vmul.f32 %v4446_v29, %v9087_v50  ;;  %v3628_v52 = vmul.f32 %v4447_v0, %v9087_v50  ;;  %v3629_v20 = vmul.f32 %v4448_v25, %v9087_v50 }
 0x30a   : >> { %v3630_v58 = vadd.f32 %v3623_v22, %v3581_v53  ;;  %v3631_v18 = vadd.f32 %v3624_v47, %v3582_v57  ;;  %v3637_v17 = vmul.f32 %v4442_v38, %v8967_v51  ;;  %v3632_v26 = vadd.f32 %v3625_v16, %v3583_v36  ;;  %v4456_v47 = vld [vmem:[%s5100_s11 + $0x246] sm:$0xff] }
 0x30b   : >> { %v3633_v43 = vadd.f32 %v3626_v33, %v3584_v30  ;;  %v3634_v45 = vadd.f32 %v3627_v32, %v3585_v55  ;;  %v3635_v59 = vadd.f32 %v3628_v52, %v3586_v35  ;;  %v3636_v44 = vadd.f32 %v3629_v20, %v3587_v24  ;;  %v4449_v55 = vld [vmem:[%s5100_s11 + $0x206] sm:$0xff]  ;;  %v4457_v20 = vld [vmem:[%s5100_s11 + $0x24e] sm:$0xff] }
 0x30c   : >> { %v3638_v27 = vmul.f32 %v4443_v42, %v8967_v51  ;;  %v3639_v37 = vmul.f32 %v4444_v11, %v8967_v51  ;;  %v3640_v23 = vmul.f32 %v4445_v3, %v8967_v51  ;;  %v3641_v53 = vmul.f32 %v4446_v29, %v8967_v51  ;;  %v4453_v29 = vld [vmem:[%s5100_s11 + $0x226] sm:$0xff] }
 0x30d   : >> { %v3642_v57 = vmul.f32 %v4447_v0, %v8967_v51  ;;  %v3643_v36 = vmul.f32 %v4448_v25, %v8967_v51  ;;  %v3644_v30 = vadd.f32 %v3637_v17, %v3595_v6  ;;  %v3658_v42 = vmul.f32 %v4449_v55, %v9672_v8  ;;  %v4455_v51 = vld [vmem:[%s5100_s11 + $0x236] sm:$0xff] }
 0x30e   : >> { %v3645_v35 = vadd.f32 %v3638_v27, %v3596_v60  ;;  %v3646_v24 = vadd.f32 %v3639_v37, %v3597_v31  ;;  %v3647_v38 = vadd.f32 %v3640_v23, %v3598_v21  ;;  %v3648_v11 = vadd.f32 %v3641_v53, %v3599_v7  ;;  %v4462_v53 = vld [vmem:[%s5100_s11 + $0x276] sm:$0xff] }
 0x30f   : >> { %v3649_v3 = vadd.f32 %v3642_v57, %v3600_v28  ;;  %v3650_v49 = vadd.f32 %v3643_v36, %v3601_v34  ;;  %v3659_v0 = vmul.f32 %v4450_v61, %v9672_v8  ;;  %v3660_v6 = vmul.f32 %v4451_v12, %v9672_v8 }
 0x310   : >> { %v3661_v60 = vmul.f32 %v4452_v15, %v9672_v8  ;;  %v3662_v31 = vmul.f32 %v4453_v29, %v9672_v8  ;;  %v3663_v21 = vmul.f32 %v4454_v19, %v9672_v8  ;;  %v3664_v7 = vmul.f32 %v4455_v51, %v9672_v8 }
 0x311   : >> { %v9340_v28 = vadd.f32 %v3658_v42, %v3630_v58  ;;  %v9342_v34 = vadd.f32 %v3659_v0, %v3631_v18  ;;  %v3672_v25 = vmul.f32 %v4449_v55, %v9087_v50  ;;  %v9345_v4 = vadd.f32 %v3660_v6, %v3632_v26  ;;  %v4458_v58 = vld [vmem:[%s5100_s11 + $0x256] sm:$0xff] }
 0x312   : >> { %v9347_v46 = vadd.f32 %v3661_v60, %v3633_v43  ;;  %v9349_v63 = vadd.f32 %v3662_v31, %v3634_v45  ;;  %v9351_v22 = vadd.f32 %v3663_v21, %v3635_v59  ;;  %v9354_v16 = vadd.f32 %v3664_v7, %v3636_v44  ;;  %v4459_v45 = vld [vmem:[%s5100_s11 + $0x25e] sm:$0xff]  ;;  %v4460_v59 = vld [vmem:[%s5100_s11 + $0x266] sm:$0xff]  ;;  %v4461_v44 = vld [vmem:[%s5100_s11 + $0x26e] sm:$0xff] }
 0x313   : >> { %v3673_v33 = vmul.f32 %v4450_v61, %v9087_v50  ;;  %v3674_v32 = vmul.f32 %v4451_v12, %v9087_v50  ;;  %v3675_v52 = vmul.f32 %v4452_v15, %v9087_v50  ;;  %v3676_v18 = vmul.f32 %v4453_v29, %v9087_v50 }
 0x314   : >> { %v3677_v17 = vmul.f32 %v4454_v19, %v9087_v50  ;;  %v3678_v26 = vmul.f32 %v4455_v51, %v9087_v50  ;;  %v3679_v43 = vadd.f32 %v3672_v25, %v3644_v30  ;;  %v3693_v57 = vmul.f32 %v4456_v47, %v9672_v8 }
 0x315   : >> { %v3680_v27 = vadd.f32 %v3673_v33, %v3645_v35  ;;  %v3681_v37 = vadd.f32 %v3674_v32, %v3646_v24  ;;  %v3682_v23 = vadd.f32 %v3675_v52, %v3647_v38  ;;  %v3683_v36 = vadd.f32 %v3676_v18, %v3648_v11  ;;  %v9673_v11 = vld [vmem:[#allocation23_spill] sm:$0xff] }
 0x316   : >> { %v3684_v55 = vadd.f32 %v3677_v17, %v3649_v3  ;;  %v3685_v61 = vadd.f32 %v3678_v26, %v3650_v49  ;;  %v3694_v12 = vmul.f32 %v4457_v20, %v9672_v8  ;;  %v3695_v42 = vmul.f32 %v4458_v58, %v9672_v8 }
 0x317   : >> { %v3696_v50 = vmul.f32 %v4459_v45, %v9672_v8  ;;  %v3697_v30 = vmul.f32 %v4460_v59, %v9672_v8  ;;  %v3698_v15 = vmul.f32 %v4461_v44, %v9672_v8  ;;  %v3699_v35 = vmul.f32 %v4462_v53, %v9672_v8 }
 0x318   : >> { %v3700_v24 = vadd.f32 %v3693_v57, %v3679_v43  ;;  %v3701_v38 = vadd.f32 %v3694_v12, %v3680_v27  ;;  %v3713_v3 = vadd.f32 %v9673_v11, %v9225_v14  ;;  %v3702_v49 = vadd.f32 %v3695_v42, %v3681_v37 }
 0x319   : >> { %v3703_v29 = vadd.f32 %v3696_v50, %v3682_v23  ;;  %v3704_v19 = vadd.f32 %v3697_v30, %v3683_v36  ;;  %v3705_v0 = vadd.f32 %v3698_v15, %v3684_v55  ;;  %v3706_v51 = vadd.f32 %v3699_v35, %v3685_v61 }
 0x31a   : >> { %v3714_v6 = vadd.f32 %v9673_v11, %v9227_v62  ;;  %v3715_v60 = vadd.f32 %v9673_v11, %v9229_v40  ;;  %v3716_v31 = vadd.f32 %v9673_v11, %v9231_v9  ;;  %3722 = vst [vmem:[%s9377_s5] sm:$0xff] %v3713_v3  ;;  %v3717_v14 = vadd.f32 %v9673_v11, %v9235_v48 }
 0x31b   : >> { %v3718_v21 = vadd.f32 %v9673_v11, %v9238_v10  ;;  %v3719_v7 = vadd.f32 %v9673_v11, %v9241_v56  ;;  %v3729_v62 = vadd.f32 %v9673_v11, %v9298_v13  ;;  %v3730_v40 = vadd.f32 %v9673_v11, %v9300_v2 }
 0x31c   : >> { %3723 = vst [vmem:[%s9377_s5 + $0x8] sm:$0xff] %v3714_v6  ;;  %3724 = vst [vmem:[%s9377_s5 + $0x10] sm:$0xff] %v3715_v60  ;;  %v3731_v9 = vadd.f32 %v9673_v11, %v9302_v41  ;;  %v3732_v48 = vadd.f32 %v9673_v11, %v9304_v54  ;;  %v3733_v10 = vadd.f32 %v9673_v11, %v9307_v39 }
 0x31d   : >> { %3725 = vst [vmem:[%s9377_s5 + $0x18] sm:$0xff] %v3716_v31  ;;  %3726 = vst [vmem:[%s9377_s5 + $0x20] sm:$0xff] %v3717_v14  ;;  %v3734_v56 = vadd.f32 %v9673_v11, %v9309_v1  ;;  %v3735_v13 = vadd.f32 %v9673_v11, %v9311_v5  ;;  %v3746_v2 = vadd.f32 %v9673_v11, %v9340_v28 }
 0x31e   : >> { %3727 = vst [vmem:[%s9377_s5 + $0x28] sm:$0xff] %v3718_v21  ;;  %3728 = vst [vmem:[%s9377_s5 + $0x30] sm:$0xff] %v3719_v7  ;;  %v3747_v41 = vadd.f32 %v9673_v11, %v9342_v34  ;;  %v3748_v54 = vadd.f32 %v9673_v11, %v9345_v4  ;;  %v3749_v39 = vadd.f32 %v9673_v11, %v9347_v46 }
 0x31f   : >> { %4467 = vst [vmem:[%s9377_s5 + $0x38] sm:$0xff] %v3729_v62  ;;  %4468 = vst [vmem:[%s9377_s5 + $0x40] sm:$0xff] %v3730_v40  ;;  %v3750_v1 = vadd.f32 %v9673_v11, %v9349_v63  ;;  %v3751_v5 = vadd.f32 %v9673_v11, %v9351_v22  ;;  %v3752_v28 = vadd.f32 %v9673_v11, %v9354_v16 }
 0x320   : >> { %4469 = vst [vmem:[%s9377_s5 + $0x48] sm:$0xff] %v3731_v9  ;;  %4470 = vst [vmem:[%s9377_s5 + $0x50] sm:$0xff] %v3732_v48  ;;  %v3763_v34 = vadd.f32 %v9673_v11, %v3700_v24  ;;  %v3764_v25 = vadd.f32 %v9673_v11, %v3701_v38  ;;  %v3765_v4 = vadd.f32 %v9673_v11, %v3702_v49 }
 0x321   : >> { %4471 = vst [vmem:[%s9377_s5 + $0x58] sm:$0xff] %v3733_v10  ;;  %4472 = vst [vmem:[%s9377_s5 + $0x60] sm:$0xff] %v3734_v56  ;;  %v3766_v46 = vadd.f32 %v9673_v11, %v3703_v29  ;;  %v3767_v63 = vadd.f32 %v9673_v11, %v3704_v19  ;;  %v3768_v22 = vadd.f32 %v9673_v11, %v3705_v0 }
 0x322   : >> { %4473 = vst [vmem:[%s9377_s5 + $0x68] sm:$0xff] %v3735_v13  ;;  %4476 = vst [vmem:[%s9377_s5 + $0x70] sm:$0xff] %v3746_v2  ;;  %v3769_v47 = vadd.f32 %v9673_v11, %v3706_v51 }
 0x323   : >> { %4477 = vst [vmem:[%s9377_s5 + $0x78] sm:$0xff] %v3747_v41  ;;  %4478 = vst [vmem:[%s9377_s5 + $0x80] sm:$0xff] %v3748_v54 }
 0x324   : >> { %4479 = vst [vmem:[%s9377_s5 + $0x88] sm:$0xff] %v3749_v39  ;;  %4480 = vst [vmem:[%s9377_s5 + $0x90] sm:$0xff] %v3750_v1 }
 0x325   : >> { %4481 = vst [vmem:[%s9377_s5 + $0x98] sm:$0xff] %v3751_v5  ;;  %4482 = vst [vmem:[%s9377_s5 + $0xa0] sm:$0xff] %v3752_v28  ;;  %244 = sbr.rel (!%p242_p1) target bundleno = 95 (0x5f), region = 106 }
 0x326   : >> { %4485 = vst [vmem:[%s9377_s5 + $0xa8] sm:$0xff] %v3763_v34  ;;  %4486 = vst [vmem:[%s9377_s5 + $0xb0] sm:$0xff] %v3764_v25 }
 0x327   : >> { %4487 = vst [vmem:[%s9377_s5 + $0xb8] sm:$0xff] %v3765_v4  ;;  %4488 = vst [vmem:[%s9377_s5 + $0xc0] sm:$0xff] %v3766_v46 }
 0x328   : >> { %4489 = vst [vmem:[%s9377_s5 + $0xc8] sm:$0xff] %v3767_v63  ;;  %4490 = vst [vmem:[%s9377_s5 + $0xd0] sm:$0xff] %v3768_v22 }
 0x329   : >> { %4491 = vst [vmem:[%s9377_s5 + $0xd8] sm:$0xff] %v3769_v47 }
 0x32a   : > { %4731 = shalt.err (!%p4728_p2)
}
 0x32b   : > { %s4732_s3 = scalar_lea.hbm %s9469_s10, 7168  ;;  %s4736_s11 = scalar_lea.hbm %s9674_s27, 100352 }
 0x32c   : > { %p4733_p4 = scmp.ne.s32.totalorder %s9469_s10, %s4732_s3  ;;  %p4737_p10 = scmp.lt.s32.totalorder %s9469_s10, %s9674_s27 }
 0x32d   : > { %p4738_p6 = scmp.lt.s32.totalorder %s4736_s11, %s4732_s3 }
 0x32e   : > { %p4734_p13 = pnand %p4733_p4, %p4951_p7 }
 0x32f   : > { %p4739_p1 = por %p4738_p6, %p4737_p10 }
 0x330   : > { %p4735_p8 = pneg %p4734_p13 }
 0x332   : > { %p4740_p3 = pnand %p4739_p1, %p4735_p8 }
 0x334   : > { %4743 = shalt.err (!%p4740_p3)
}
 0x335   : > { %s4858_s6 = smov 128   ;;  %s4859_s29 = smov 8  }
 0x336   : > { %4513 = dma.vmem_to_hbm [thread:$0]  (%p4951_p7), %s9464_s23, 7168, %s9469_s10, %s9473_s8, %s4858_s6, %s4858_s6, %s4859_s29  }
 0x337 PF: > { %s9675_s24 = sld [smem:[#allocation12_spill]]  ;;  %p4535_p9 = scmp.ge.s32.totalorder %s4846_s22, 2 }
 0x338   : > { %s9676_s4 = sld [smem:[#allocation14_spill]] }
 0x33d   : > { %s3812_s30 = sand.u32 1, %s9675_s24  }
 0x33e   : > { %p9677_p11 = scmp.ne.s32.totalorder %s9676_s4, 0  ;;  %s3813_s9 = scalar_lea.sflag [#allocation4], %s3812_s30 }
 0x340   : > { %p4527_p5 = pnand %p4535_p9, %p9677_p11 }
 0x342   : > { %p4528_p12 = pneg %p4527_p5 }
 0x344   : > { %4801 = dma.done.wait (%p4528_p12), %s3813_s9, 7168  }
 0x345   : > { %4803 = vsyncadd (%p4528_p12), %s3813_s9, 4294960128  ;;  %s20_s22 = sadd.s32 1, %s4846_s22   ;;  %s9678_s18 = sld [smem:[#allocation13_spill]] }
 0x346   : > { %p17_p0 = scmp.ge.s32.totalorder %s20_s22, 16   ;;  %s9679_s28 = sld [smem:[#allocation15_spill]] }
 0x347   : > { %s9680_s23 = smov %s9695_s15  ;;  %s9681_s12 = smov %s4810_s13 }
 0x348   : > { %s9682_s13 = smov %s4814_s14  ;;  %s9683_s14 = smov %s5027_s20 }
 0x349   : > { %s9684_s15 = smov %s4822_s16  ;;  %s9685_s16 = smov %s4826_s17 }
 0x34a   : > { %s9686_s17 = smov %s5022_s2  ;;  %s9687_s19 = smov %s4842_s21 }
 0x34b   : > { %s9689_s21 = smov %s9680_s23  ;;  %19 = sbr.rel (!%p17_p0) target bundleno = 14 (0xe), region = 117 }
 0x34c   : > { %s9688_s20 = smov %s9679_s28 }
 0x350   :  { %3818 = vsyncpa [#allocation3], 1 }
 0x351   :  { %3820 = vsyncpa [#allocation3 + $0x1], 1 }
 0x352   :  { %3821 = vsyncpa [#allocation6], 1 }
 0x353   :  { %3822 = vsyncpa [#allocation4], 1 }
 0x354   :  { %3824 = vsyncpa [#allocation4 + $0x1], 1 }

</bundles_post_ra>
